<compile_context>
chip_gen: v6e
topology: v6e:2x2x1
jax: 0.10.0
libtpu: 0.0.40
codegen_flags: <defaults>
</compile_context>

<pallas_src>
import jax
import jax.numpy as jnp
from jax.experimental import pallas as pl
from jax.experimental.pallas import tpu as pltpu

IN_FEATURES = 3 * 224 * 224  # 150528 = 21504 * 7 = 7168 * 21 = 3072 * 49


# --------------------------------------------------------------------------- #
# VMEM budget / tiling selection (trace-time, per TPU generation)
# --------------------------------------------------------------------------- #
def _vmem_limit_bytes():
    """Scoped-VMEM limit derived from the chip's physical VMEM capacity."""
    try:
        cap = int(pltpu.get_tpu_info().vmem_capacity_bytes)
    except Exception:
        cap = 64 * 1024 * 1024  # conservative fallback: v7x per-TensorCore VMEM
    # ~25% headroom for compiler-internal scratch; cap at 96 MB on 128 MiB parts.
    limit = min((cap * 3) // 4, 96 * 1024 * 1024)
    return max(limit, 48 * 1024 * 1024)  # 48 MB is known-safe everywhere


def _pick_tk(K, tn, M, vmem_limit_bytes, w_itemsize):
    """Largest reduction tile (dividing K) whose buffers fit the VMEM budget."""
    headroom = 8 * 1024 * 1024  # output block, bias, misc compiler scratch
    smallest_divisor = None
    for tk in (21504, 7168, 3072, 1024, 512, 128):
        if K % tk:
            continue
        smallest_divisor = tk
        w_bytes = 2 * tk * tn * w_itemsize  # double-buffered weight tile
        x_bytes = 2 * M * tk * 4            # double-buffered f32 x tile
        if w_bytes + x_bytes + headroom <= vmem_limit_bytes:
            return tk
    return smallest_divisor if smallest_divisor is not None else K


# --------------------------------------------------------------------------- #
# fc1: out = relu(x @ W + b), W stored pre-transposed (K, N) in bf16
# --------------------------------------------------------------------------- #
def _linear_relu_kernel(x_ref, w_ref, b_ref, o_ref):
    """One (N-tile, K-tile) grid step; o_ref is resident across the k axis."""
    k = pl.program_id(1)

    @pl.when(k == 0)
    def _():
        o_ref[...] = jnp.zeros_like(o_ref)

    # bf16 x bf16 on the MXU, f32 accumulation into the resident output block.
    o_ref[...] += jnp.dot(
        x_ref[...].astype(jnp.bfloat16),  # VPU cast; kernel is DMA-bound
        w_ref[...],
        preferred_element_type=jnp.float32,
    )

    @pl.when(k == pl.num_programs(1) - 1)
    def _():
        o_ref[...] = jnp.maximum(o_ref[...] + b_ref[...], 0.0)


def linear_relu(x, w_kn, b, *, tn=512):
    """relu(x @ w_kn + b).

    x:    (M, K) float32
    w_kn: (K, N) bfloat16 -- nn.Linear weight transposed ONCE at init time
    b:    (N,)   float32
    """
    M, K = x.shape
    Kw, N = w_kn.shape
    assert K == Kw, (K, Kw)

    tn_eff = tn if N % tn == 0 else N
    vmem_limit = _vmem_limit_bytes()
    tk_eff = _pick_tk(K, tn_eff, M, vmem_limit, jnp.dtype(w_kn.dtype).itemsize)
    assert K % tk_eff == 0, (K, tk_eff)

    b2 = b.reshape(1, N).astype(jnp.float32)

    grid = (N // tn_eff, K // tk_eff)  # reduction axis last

    return pl.pallas_call(
        _linear_relu_kernel,
        out_shape=jax.ShapeDtypeStruct((M, N), jnp.float32),
        grid_spec=pltpu.PrefetchScalarGridSpec(
            num_scalar_prefetch=0,
            grid=grid,
            in_specs=[
                pl.BlockSpec((M, tk_eff), lambda j, k: (0, k)),       # x (f32)
                pl.BlockSpec((tk_eff, tn_eff), lambda j, k: (k, j)),  # W (bf16)
                pl.BlockSpec((1, tn_eff), lambda j, k: (0, j)),       # bias (f32)
            ],
            out_specs=pl.BlockSpec((M, tn_eff), lambda j, k: (0, j)),
        ),
        compiler_params=pltpu.CompilerParams(
            dimension_semantics=("parallel", "arbitrary"),
            vmem_limit_bytes=vmem_limit,
        ),
    )(x, w_kn, b2)


# --------------------------------------------------------------------------- #
# fused fc2 -> fc3 -> fc4 tail (all weights resident in VMEM, ~2.3 MB total)
# --------------------------------------------------------------------------- #
def _mlp_tail_kernel(h_ref, w2_ref, b2_ref, w3_ref, b3_ref, w4_ref, b4_ref, o_ref):
    h = jnp.maximum(
        jnp.dot(h_ref[...], w2_ref[...], preferred_element_type=jnp.float32)
        + b2_ref[...],
        0.0,
    )
    # dropout(p=0.5): identity in eval mode
    h = jnp.maximum(
        jnp.dot(h, w3_ref[...], preferred_element_type=jnp.float32) + b3_ref[...],
        0.0,
    )
    h = jnp.maximum(
        jnp.dot(h, w4_ref[...], preferred_element_type=jnp.float32) + b4_ref[...],
        0.0,
    )
    o_ref[...] = h.astype(o_ref.dtype)


def mlp_tail(h, w2, b2, w3, b3, w4, b4):
    """relu(relu(relu(h @ w2 + b2) @ w3 + b3) @ w4 + b4), single pallas_call."""
    M = h.shape[0]
    N_out = w4.shape[1]
    return pl.pallas_call(
        _mlp_tail_kernel,
        out_shape=jax.ShapeDtypeStruct((M, N_out), jnp.float32),
    )(
        h,
        w2, b2.reshape(1, -1),
        w3, b3.reshape(1, -1),
        w4, b4.reshape(1, -1),
    )


# --------------------------------------------------------------------------- #
# params + forward
# --------------------------------------------------------------------------- #
def init_params(key):
    """Deterministic synthetic parameters.

    Weights are stored pre-transposed as (fan_in, fan_out) = (K, N), i.e. the
    PyTorch nn.Linear (N, K) weight transposed once at init.  fc1's weight is
    stored in bf16 so the dominant HBM stream is half-width; all other params
    stay f32.
    """
    dims = [(IN_FEATURES, 1024), (1024, 512), (512, 128), (128, 2)]
    params = {}
    for i, (fan_in, fan_out) in enumerate(dims, start=1):
        key, kw, kb = jax.random.split(key, 3)
        scale = 1.0 / jnp.sqrt(jnp.float32(fan_in))
        w = jax.random.uniform(kw, (fan_in, fan_out), jnp.float32, -1.0, 1.0) * scale
        b = jax.random.uniform(kb, (fan_out,), jnp.float32, -1.0, 1.0) * scale
        if i == 1:
            w = w.astype(jnp.bfloat16)  # fc1 weight streamed as bf16
        params[f"fc{i}_w"] = w
        params[f"fc{i}_b"] = b
    return params


@jax.jit
def dnn_forward(x, params):
    """x: (B, 3, 224, 224) NCHW float32 -> (B, 2) float32."""
    B = x.shape[0]
    h = x.reshape(B, -1)                                             # x.view(B, -1)
    h = linear_relu(h, params["fc1_w"], params["fc1_b"], tn=512)     # relu(fc1)
    # dropout(p=0.5): identity in eval mode
    h = mlp_tail(
        h,
        params["fc2_w"], params["fc2_b"],
        params["fc3_w"], params["fc3_b"],
        params["fc4_w"], params["fc4_b"],
    )                                                                # relu(fc2..fc4)
    return h


if __name__ == "__main__":
    key = jax.random.PRNGKey(0)
    key, kx, kp = jax.random.split(key, 3)

    # Small batch; spatial shape is fixed by the module (fc1 expects 3*224*224 inputs).
    x = jax.random.normal(kx, (2, 3, 224, 224), jnp.float32)
    params = init_params(kp)

    out = dnn_forward(x, params)
    out = jax.block_until_ready(out)

    # Reference in plain JAX, matching the kernel's dtype handling
    # (bf16 weight-streaming for fc1, f32 accumulation).
    def ref(x, p):
        h = x.reshape(x.shape[0], -1)
        h = jnp.maximum(
            jnp.dot(h.astype(jnp.bfloat16), p["fc1_w"],
                    preferred_element_type=jnp.float32) + p["fc1_b"],
            0.0,
        )
        for i in range(2, 5):
            h = jnp.maximum(
                jnp.dot(h, p[f"fc{i}_w"], preferred_element_type=jnp.float32)
                + p[f"fc{i}_b"],
                0.0,
            )
        return h

    expected = ref(x, params)
    assert out.shape == (2, 2), out.shape
    assert jnp.allclose(out, expected, atol=2e-2, rtol=2e-2), (out, expected)

    print("KERNEL_OK")
</pallas_src>

<mosaic_0001>
module attributes {stable_mosaic.version = 11 : i64} {
  func.func @_linear_relu_kernel(%arg0: i32, %arg1: i32, %arg2: memref<2x7168xf32, #tpu.memory_space<vmem>>, %arg3: memref<7168x512xbf16, #tpu.memory_space<vmem>>, %arg4: memref<1x512xf32, #tpu.memory_space<vmem>>, %arg5: memref<2x512xf32, #tpu.memory_space<vmem>>) attributes {dimension_semantics = [#tpu.dimension_semantics<parallel>, #tpu.dimension_semantics<arbitrary>], iteration_bounds = array<i64: 2, 21>, scalar_prefetch = 0 : i64, scratch_operands = 0 : i64, tpu.core_type = #tpu.core_type<tc>, window_params = [{transform_indices = @transform_0, window_bounds = array<i64: 2, 7168>}, {transform_indices = @transform_1, window_bounds = array<i64: 7168, 512>}, {transform_indices = @transform_2, window_bounds = array<i64: 1, 512>}, {transform_indices = @transform_3, window_bounds = array<i64: 2, 512>}]} {
    %c0_i32 = arith.constant 0 : i32
    %0 = arith.cmpi eq, %arg1, %c0_i32 : i32
    %1 = arith.extui %0 : i1 to i32
    %c0_i32_0 = arith.constant 0 : i32
    %2 = arith.cmpi ne, %1, %c0_i32_0 : i32
    scf.if %2 {
      %cst_9 = arith.constant 0.000000e+00 : f32
      %13 = vector.broadcast %cst_9 : f32 to vector<2x512xf32>
      %c0_10 = arith.constant 0 : index
      %c0_11 = arith.constant 0 : index
      %14 = vector.load %arg5[%c0_10, %c0_11] : memref<2x512xf32, #tpu.memory_space<vmem>>, vector<2x512xf32>
      tpu.vector_store %arg5[%c0_10, %c0_11], %13 {strides = array<i32>} : memref<2x512xf32, #tpu.memory_space<vmem>>, vector<2x512xf32>,
    } else {
    }
    %c0 = arith.constant 0 : index
    %c0_1 = arith.constant 0 : index
    %3 = vector.load %arg5[%c0, %c0_1] : memref<2x512xf32, #tpu.memory_space<vmem>>, vector<2x512xf32>
    %c0_2 = arith.constant 0 : index
    %c0_3 = arith.constant 0 : index
    %4 = vector.load %arg2[%c0_2, %c0_3] : memref<2x7168xf32, #tpu.memory_space<vmem>>, vector<2x7168xf32>
    %5 = arith.truncf %4 : vector<2x7168xf32> to vector<2x7168xbf16>
    %c0_4 = arith.constant 0 : index
    %c0_5 = arith.constant 0 : index
    %6 = vector.load %arg3[%c0_4, %c0_5] : memref<7168x512xbf16, #tpu.memory_space<vmem>>, vector<7168x512xbf16>
    %cst = arith.constant dense<0.000000e+00> : vector<2x512xf32>
    %7 = tpu.matmul %5, %6, %cst {dimension_numbers = #tpu.dot_dimension_numbers<[1], [0], [0], [1], [0, 0, 1, 1], [], []>} : vector<2x7168xbf16>, vector<7168x512xbf16>, vector<2x512xf32> -> vector<2x512xf32>
    %8 = arith.addf %3, %7 : vector<2x512xf32>
    %c0_6 = arith.constant 0 : index
    %c0_7 = arith.constant 0 : index
    %9 = vector.load %arg5[%c0_6, %c0_7] : memref<2x512xf32, #tpu.memory_space<vmem>>, vector<2x512xf32>
    tpu.vector_store %arg5[%c0_6, %c0_7], %8 {strides = array<i32>} : memref<2x512xf32, #tpu.memory_space<vmem>>, vector<2x512xf32>,
    %c20_i32 = arith.constant 20 : i32
    %10 = arith.cmpi eq, %arg1, %c20_i32 : i32
    %11 = arith.extui %10 : i1 to i32
    %c0_i32_8 = arith.constant 0 : i32
    %12 = arith.cmpi ne, %11, %c0_i32_8 : i32
    scf.if %12 {
      %c0_9 = arith.constant 0 : index
      %c0_10 = arith.constant 0 : index
      %13 = vector.load %arg5[%c0_9, %c0_10] : memref<2x512xf32, #tpu.memory_space<vmem>>, vector<2x512xf32>
      %c0_11 = arith.constant 0 : index
      %c0_12 = arith.constant 0 : index
      %14 = vector.load %arg4[%c0_11, %c0_12] : memref<1x512xf32, #tpu.memory_space<vmem>>, vector<1x512xf32>
      %15 = vector.broadcast %14 : vector<1x512xf32> to vector<2x512xf32>
      %16 = arith.addf %13, %15 : vector<2x512xf32>
      %cst_13 = arith.constant 0.000000e+00 : f32
      %17 = vector.broadcast %cst_13 : f32 to vector<2x512xf32>
      %18 = arith.maximumf %16, %17 : vector<2x512xf32>
      %c0_14 = arith.constant 0 : index
      %c0_15 = arith.constant 0 : index
      %19 = vector.load %arg5[%c0_14, %c0_15] : memref<2x512xf32, #tpu.memory_space<vmem>>, vector<2x512xf32>
      tpu.vector_store %arg5[%c0_14, %c0_15], %18 {strides = array<i32>} : memref<2x512xf32, #tpu.memory_space<vmem>>, vector<2x512xf32>,
    } else {
    }
    return
  }
  func.func @transform_0(%arg0: i32, %arg1: i32) -> (i32, i32) {
    %c0_i32 = arith.constant 0 : i32
    %c0_i32_0 = arith.constant 0 : i32
    return %c0_i32, %arg1 : i32, i32
  }
  func.func @transform_1(%arg0: i32, %arg1: i32) -> (i32, i32) {
    %c0_i32 = arith.constant 0 : i32
    return %arg1, %arg0 : i32, i32
  }
  func.func @transform_2(%arg0: i32, %arg1: i32) -> (i32, i32) {
    %c0_i32 = arith.constant 0 : i32
    %c0_i32_0 = arith.constant 0 : i32
    return %c0_i32, %arg0 : i32, i32
  }
  func.func @transform_3(%arg0: i32, %arg1: i32) -> (i32, i32) {
    %c0_i32 = arith.constant 0 : i32
    %c0_i32_0 = arith.constant 0 : i32
    return %c0_i32, %arg0 : i32, i32
  }
}

module attributes {stable_mosaic.version = 11 : i64} {
  func.func @_mlp_tail_kernel(%arg0: memref<2x1024xf32, #tpu.memory_space<vmem>>, %arg1: memref<1024x512xf32, #tpu.memory_space<vmem>>, %arg2: memref<1x512xf32, #tpu.memory_space<vmem>>, %arg3: memref<512x128xf32, #tpu.memory_space<vmem>>, %arg4: memref<1x128xf32, #tpu.memory_space<vmem>>, %arg5: memref<128x2xf32, #tpu.memory_space<vmem>>, %arg6: memref<1x2xf32, #tpu.memory_space<vmem>>, %arg7: memref<2x2xf32, #tpu.memory_space<vmem>>) attributes {dimension_semantics = [], scalar_prefetch = 0 : i64, scratch_operands = 0 : i64, tpu.core_type = #tpu.core_type<tc>} {
    %c0 = arith.constant 0 : index
    %c0_0 = arith.constant 0 : index
    %0 = vector.load %arg0[%c0, %c0_0] : memref<2x1024xf32, #tpu.memory_space<vmem>>, vector<2x1024xf32>
    %c0_1 = arith.constant 0 : index
    %c0_2 = arith.constant 0 : index
    %1 = vector.load %arg1[%c0_1, %c0_2] : memref<1024x512xf32, #tpu.memory_space<vmem>>, vector<1024x512xf32>
    %cst = arith.constant dense<0.000000e+00> : vector<2x512xf32>
    %2 = tpu.matmul %0, %1, %cst {dimension_numbers = #tpu.dot_dimension_numbers<[1], [0], [0], [1], [0, 0, 1, 1], [], []>} : vector<2x1024xf32>, vector<1024x512xf32>, vector<2x512xf32> -> vector<2x512xf32>
    %c0_3 = arith.constant 0 : index
    %c0_4 = arith.constant 0 : index
    %3 = vector.load %arg2[%c0_3, %c0_4] : memref<1x512xf32, #tpu.memory_space<vmem>>, vector<1x512xf32>
    %4 = vector.broadcast %3 : vector<1x512xf32> to vector<2x512xf32>
    %5 = arith.addf %2, %4 : vector<2x512xf32>
    %cst_5 = arith.constant 0.000000e+00 : f32
    %6 = vector.broadcast %cst_5 : f32 to vector<2x512xf32>
    %7 = arith.maximumf %5, %6 : vector<2x512xf32>
    %c0_6 = arith.constant 0 : index
    %c0_7 = arith.constant 0 : index
    %8 = vector.load %arg3[%c0_6, %c0_7] : memref<512x128xf32, #tpu.memory_space<vmem>>, vector<512x128xf32>
    %cst_8 = arith.constant dense<0.000000e+00> : vector<2x128xf32>
    %9 = tpu.matmul %7, %8, %cst_8 {dimension_numbers = #tpu.dot_dimension_numbers<[1], [0], [0], [1], [0, 0, 1, 1], [], []>} : vector<2x512xf32>, vector<512x128xf32>, vector<2x128xf32> -> vector<2x128xf32>
    %c0_9 = arith.constant 0 : index
    %c0_10 = arith.constant 0 : index
    %10 = vector.load %arg4[%c0_9, %c0_10] : memref<1x128xf32, #tpu.memory_space<vmem>>, vector<1x128xf32>
    %11 = vector.broadcast %10 : vector<1x128xf32> to vector<2x128xf32>
    %12 = arith.addf %9, %11 : vector<2x128xf32>
    %cst_11 = arith.constant 0.000000e+00 : f32
    %13 = vector.broadcast %cst_11 : f32 to vector<2x128xf32>
    %14 = arith.maximumf %12, %13 : vector<2x128xf32>
    %c0_12 = arith.constant 0 : index
    %c0_13 = arith.constant 0 : index
    %15 = vector.load %arg5[%c0_12, %c0_13] : memref<128x2xf32, #tpu.memory_space<vmem>>, vector<128x2xf32>
    %cst_14 = arith.constant dense<0.000000e+00> : vector<2x2xf32>
    %16 = tpu.matmul %14, %15, %cst_14 {dimension_numbers = #tpu.dot_dimension_numbers<[1], [0], [0], [1], [0, 0, 1, 1], [], []>} : vector<2x128xf32>, vector<128x2xf32>, vector<2x2xf32> -> vector<2x2xf32>
    %c0_15 = arith.constant 0 : index
    %c0_16 = arith.constant 0 : index
    %17 = vector.load %arg6[%c0_15, %c0_16] : memref<1x2xf32, #tpu.memory_space<vmem>>, vector<1x2xf32>
    %18 = vector.broadcast %17 : vector<1x2xf32> to vector<2x2xf32>
    %19 = arith.addf %16, %18 : vector<2x2xf32>
    %cst_17 = arith.constant 0.000000e+00 : f32
    %20 = vector.broadcast %cst_17 : f32 to vector<2x2xf32>
    %21 = arith.maximumf %19, %20 : vector<2x2xf32>
    %c0_18 = arith.constant 0 : index
    %c0_19 = arith.constant 0 : index
    %22 = vector.load %arg7[%c0_18, %c0_19] : memref<2x2xf32, #tpu.memory_space<vmem>>, vector<2x2xf32>
    tpu.vector_store %arg7[%c0_18, %c0_19], %21 {strides = array<i32>} : memref<2x2xf32, #tpu.memory_space<vmem>>, vector<2x2xf32>,
    return
  }
}

</mosaic_0001>

<bundles_post_ra>
// kernel: dnn_forward.3
= control target key start
LH: loop header
LB: loop body
LE: loop exit
PB: predicated region body
PF: predicated region fallthrough
CT: control target
= control target key end

     0   :  { %s3567_s0 = inlined_call_operand.vmem [shape: f32[2,1024], index: 0, kind: input, shape index: {}]   ;;  %s3568_s1 = inlined_call_operand.vmem [shape: f32[1024,512], index: 1, kind: input, shape index: {}]   ;;  %s3569_s2 = inlined_call_operand.vmem [shape: f32[1,512], index: 2, kind: input, shape index: {}]   ;;  %s3570_s3 = inlined_call_operand.vmem [shape: f32[512,128], index: 3, kind: input, shape index: {}]   ;;  %s3571_s4 = inlined_call_operand.vmem [shape: f32[1,128], index: 4, kind: input, shape index: {}]   ;;  %s3572_s5 = inlined_call_operand.vmem [shape: f32[128,2], index: 5, kind: input, shape index: {}]   ;;  %s3573_s6 = inlined_call_operand.vmem [shape: f32[1,2], index: 6, kind: input, shape index: {}]   ;;  %s3574_s7 = inlined_call_operand.hbm [shape: f32[2,2], index: 7, kind: output, shape index: {}]  }
   0x1   :  { %v90_v0 = vld [vmem:[%s3568_s1 + $0x1e8] sm:$0xff]  ;;  %v89_v2 = vld [vmem:[%s3568_s1 + $0x1e0] sm:$0xff] }
   0x2   :  { %v218_v1 = vld [vmem:[%s3568_s1 + $0x5e8] sm:$0xff]  ;;  %607 = vmatprep.subr.mxu0 %v90_v0  ;;  %v217_v3 = vld [vmem:[%s3568_s1 + $0x5e0] sm:$0xff] }
   0x3   :  { %678 = vmatprep.subr.mxu1 %v218_v1  ;;  %v86_v4 = vld [vmem:[%s3568_s1 + $0x1c8] sm:$0xff]  ;;  %608 = vmatpush1.msra.mxu0 %v89_v2  ;;  %v85_v6 = vld [vmem:[%s3568_s1 + $0x1c0] sm:$0xff] }
   0x4   :  { %v214_v5 = vld [vmem:[%s3568_s1 + $0x5c8] sm:$0xff]  ;;  %679 = vmatpush1.msra.mxu1 %v217_v3  ;;  %v213_v7 = vld [vmem:[%s3568_s1 + $0x5c0] sm:$0xff]  ;;  %609 = vmatprep.subr.mxu0 %v86_v4 }
   0x5   :  { %v82_v8 = vld [vmem:[%s3568_s1 + $0x1a8] sm:$0xff]  ;;  %680 = vmatprep.subr.mxu1 %v214_v5  ;;  %v81_v10 = vld [vmem:[%s3568_s1 + $0x1a0] sm:$0xff]  ;;  %610 = vmatpush1.msra.mxu0 %v85_v6 }
   0x6   :  { %v210_v9 = vld [vmem:[%s3568_s1 + $0x5a8] sm:$0xff]  ;;  %v209_v11 = vld [vmem:[%s3568_s1 + $0x5a0] sm:$0xff]  ;;  %681 = vmatpush1.msra.mxu1 %v213_v7  ;;  %611 = vmatprep.subr.mxu0 %v82_v8 }
   0x7   :  { %v78_v12 = vld [vmem:[%s3568_s1 + $0x188] sm:$0xff]  ;;  %682 = vmatprep.subr.mxu1 %v210_v9  ;;  %v77_v14 = vld [vmem:[%s3568_s1 + $0x180] sm:$0xff]  ;;  %612 = vmatpush1.msra.mxu0 %v81_v10 }
   0x8   :  { %v206_v13 = vld [vmem:[%s3568_s1 + $0x588] sm:$0xff]  ;;  %v205_v15 = vld [vmem:[%s3568_s1 + $0x580] sm:$0xff]  ;;  %683 = vmatpush1.msra.mxu1 %v209_v11  ;;  %613 = vmatprep.subr.mxu0 %v78_v12 }
   0x9   :  { %v74_v16 = vld [vmem:[%s3568_s1 + $0x168] sm:$0xff]  ;;  %684 = vmatprep.subr.mxu1 %v206_v13  ;;  %v73_v18 = vld [vmem:[%s3568_s1 + $0x160] sm:$0xff]  ;;  %614 = vmatpush1.msra.mxu0 %v77_v14 }
   0xa   :  { %v202_v17 = vld [vmem:[%s3568_s1 + $0x568] sm:$0xff]  ;;  %v201_v19 = vld [vmem:[%s3568_s1 + $0x560] sm:$0xff]  ;;  %685 = vmatpush1.msra.mxu1 %v205_v15  ;;  %615 = vmatprep.subr.mxu0 %v74_v16 }
   0xb   :  { %v70_v20 = vld [vmem:[%s3568_s1 + $0x148] sm:$0xff]  ;;  %686 = vmatprep.subr.mxu1 %v202_v17  ;;  %v69_v22 = vld [vmem:[%s3568_s1 + $0x140] sm:$0xff]  ;;  %616 = vmatpush1.msra.mxu0 %v73_v18 }
   0xc   :  { %v198_v21 = vld [vmem:[%s3568_s1 + $0x548] sm:$0xff]  ;;  %v197_v23 = vld [vmem:[%s3568_s1 + $0x540] sm:$0xff]  ;;  %687 = vmatpush1.msra.mxu1 %v201_v19  ;;  %617 = vmatprep.subr.mxu0 %v70_v20 }
   0xd   :  { %v66_v24 = vld [vmem:[%s3568_s1 + $0x128] sm:$0xff]  ;;  %688 = vmatprep.subr.mxu1 %v198_v21  ;;  %v65_v26 = vld [vmem:[%s3568_s1 + $0x120] sm:$0xff]  ;;  %618 = vmatpush1.msra.mxu0 %v69_v22 }
   0xe   :  { %v194_v25 = vld [vmem:[%s3568_s1 + $0x528] sm:$0xff]  ;;  %v193_v27 = vld [vmem:[%s3568_s1 + $0x520] sm:$0xff]  ;;  %689 = vmatpush1.msra.mxu1 %v197_v23  ;;  %619 = vmatprep.subr.mxu0 %v66_v24 }
   0xf   :  { %v62_v28 = vld [vmem:[%s3568_s1 + $0x108] sm:$0xff]  ;;  %690 = vmatprep.subr.mxu1 %v194_v25  ;;  %v61_v30 = vld [vmem:[%s3568_s1 + $0x100] sm:$0xff]  ;;  %620 = vmatpush1.msra.mxu0 %v65_v26 }
  0x10   :  { %v190_v29 = vld [vmem:[%s3568_s1 + $0x508] sm:$0xff]  ;;  %v189_v31 = vld [vmem:[%s3568_s1 + $0x500] sm:$0xff]  ;;  %691 = vmatpush1.msra.mxu1 %v193_v27  ;;  %621 = vmatprep.subr.mxu0 %v62_v28 }
  0x11   :  { %v58_v32 = vld [vmem:[%s3568_s1 + $0xe8] sm:$0xff]  ;;  %692 = vmatprep.subr.mxu1 %v190_v29  ;;  %v57_v34 = vld [vmem:[%s3568_s1 + $0xe0] sm:$0xff]  ;;  %622 = vmatpush1.msra.mxu0 %v61_v30  ;;  %v543_v30 = vlaneseq }
  0x12   :  { %v186_v33 = vld [vmem:[%s3568_s1 + $0x4e8] sm:$0xff]  ;;  %v185_v35 = vld [vmem:[%s3568_s1 + $0x4e0] sm:$0xff]  ;;  %693 = vmatpush1.msra.mxu1 %v189_v31  ;;  %623 = vmatprep.subr.mxu0 %v58_v32  ;;  %v1653_v31 = vmov 1983009808  }
  0x13   :  { %v54_v36 = vld [vmem:[%s3568_s1 + $0xc8] sm:$0xff]  ;;  %694 = vmatprep.subr.mxu1 %v186_v33  ;;  %v53_v38 = vld [vmem:[%s3568_s1 + $0xc0] sm:$0xff]  ;;  %624 = vmatpush1.msra.mxu0 %v57_v34  ;;  %v567_v32 = vunpack.c.l.s4 %v1653_v31 }
  0x14   :  { %v182_v37 = vld [vmem:[%s3568_s1 + $0x4c8] sm:$0xff]  ;;  %v181_v39 = vld [vmem:[%s3568_s1 + $0x4c0] sm:$0xff]  ;;  %695 = vmatpush1.msra.mxu1 %v185_v35  ;;  %625 = vmatprep.subr.mxu0 %v54_v36 }
  0x15   :  { %v50_v40 = vld [vmem:[%s3568_s1 + $0xa8] sm:$0xff]  ;;  %696 = vmatprep.subr.mxu1 %v182_v37  ;;  %v49_v42 = vld [vmem:[%s3568_s1 + $0xa0] sm:$0xff]  ;;  %626 = vmatpush1.msra.mxu0 %v53_v38 }
  0x16   :  { %v178_v41 = vld [vmem:[%s3568_s1 + $0x4a8] sm:$0xff]  ;;  %v177_v43 = vld [vmem:[%s3568_s1 + $0x4a0] sm:$0xff]  ;;  %697 = vmatpush1.msra.mxu1 %v181_v39  ;;  %627 = vmatprep.subr.mxu0 %v50_v40 }
  0x17   :  { %v46_v44 = vld [vmem:[%s3568_s1 + $0x88] sm:$0xff]  ;;  %698 = vmatprep.subr.mxu1 %v178_v41  ;;  %v45_v46 = vld [vmem:[%s3568_s1 + $0x80] sm:$0xff]  ;;  %628 = vmatpush1.msra.mxu0 %v49_v42  ;;  %v2003_v41 = vshrl.u32 %v543_v30, 7  ;;  %v568_v42 = vunpack.c.0.s8 %v567_v32 }
  0x18   :  { %v174_v45 = vld [vmem:[%s3568_s1 + $0x488] sm:$0xff]  ;;  %v173_v47 = vld [vmem:[%s3568_s1 + $0x480] sm:$0xff]  ;;  %699 = vmatpush1.msra.mxu1 %v177_v43  ;;  %629 = vmatprep.subr.mxu0 %v46_v44 }
  0x19   :  { %v42_v48 = vld [vmem:[%s3568_s1 + $0x68] sm:$0xff]  ;;  %700 = vmatprep.subr.mxu1 %v174_v45  ;;  %v41_v50 = vld [vmem:[%s3568_s1 + $0x60] sm:$0xff]  ;;  %630 = vmatpush1.msra.mxu0 %v45_v46 }
  0x1a   :  { %v170_v49 = vld [vmem:[%s3568_s1 + $0x468] sm:$0xff]  ;;  %v169_v51 = vld [vmem:[%s3568_s1 + $0x460] sm:$0xff]  ;;  %701 = vmatpush1.msra.mxu1 %v173_v47  ;;  %631 = vmatprep.subr.mxu0 %v42_v48 }
  0x1b   :  { %v38_v52 = vld [vmem:[%s3568_s1 + $0x48] sm:$0xff]  ;;  %702 = vmatprep.subr.mxu1 %v170_v49  ;;  %v37_v54 = vld [vmem:[%s3568_s1 + $0x40] sm:$0xff]  ;;  %632 = vmatpush1.msra.mxu0 %v41_v50 }
  0x1c   :  { %v166_v53 = vld [vmem:[%s3568_s1 + $0x448] sm:$0xff]  ;;  %v165_v55 = vld [vmem:[%s3568_s1 + $0x440] sm:$0xff]  ;;  %703 = vmatpush1.msra.mxu1 %v169_v51  ;;  %633 = vmatprep.subr.mxu0 %v38_v52  ;;  %v2033_v52 = vsub.s32 %v568_v42, %v2003_v41 }
  0x1d   :  { %v34_v56 = vld [vmem:[%s3568_s1 + $0x28] sm:$0xff]  ;;  %704 = vmatprep.subr.mxu1 %v166_v53  ;;  %v33_v58 = vld [vmem:[%s3568_s1 + $0x20] sm:$0xff]  ;;  %634 = vmatpush1.msra.mxu0 %v37_v54 }
  0x1e   :  { %v162_v57 = vld [vmem:[%s3568_s1 + $0x428] sm:$0xff]  ;;  %v161_v59 = vld [vmem:[%s3568_s1 + $0x420] sm:$0xff]  ;;  %705 = vmatpush1.msra.mxu1 %v165_v55  ;;  %635 = vmatprep.subr.mxu0 %v34_v56 }
  0x1f   :  { %v30_v60 = vld [vmem:[%s3568_s1 + $0x8] sm:$0xff]  ;;  %706 = vmatprep.subr.mxu1 %v162_v57  ;;  %v29_v62 = vld [vmem:[%s3568_s1] sm:$0xff]  ;;  %636 = vmatpush1.msra.mxu0 %v33_v58 }
  0x20   :  { %v158_v61 = vld [vmem:[%s3568_s1 + $0x408] sm:$0xff]  ;;  %v157_v63 = vld [vmem:[%s3568_s1 + $0x400] sm:$0xff]  ;;  %707 = vmatpush1.msra.mxu1 %v161_v59  ;;  %637 = vmatprep.subr.mxu0 %v30_v60 }
  0x21   :  { %v154_v0 = vld [vmem:[%s3568_s1 + $0x3e8] sm:$0xff]  ;;  %708 = vmatprep.subr.mxu1 %v158_v61  ;;  %v153_v2 = vld [vmem:[%s3568_s1 + $0x3e0] sm:$0xff]  ;;  %638 = vmatpush1.msra.mxu0 %v29_v62 }
  0x22   :  { %v282_v1 = vld [vmem:[%s3568_s1 + $0x7e8] sm:$0xff]  ;;  %v281_v3 = vld [vmem:[%s3568_s1 + $0x7e0] sm:$0xff]  ;;  %709 = vmatpush1.msra.mxu1 %v157_v63  ;;  %639 = vmatprep.subr.mxu0 %v154_v0 }
  0x23   :  { %v150_v4 = vld [vmem:[%s3568_s1 + $0x3c8] sm:$0xff]  ;;  %710 = vmatprep.subr.mxu1 %v282_v1  ;;  %v149_v6 = vld [vmem:[%s3568_s1 + $0x3c0] sm:$0xff]  ;;  %640 = vmatpush2.msra.mxu0 %v153_v2 }
  0x24   :  { %v278_v5 = vld [vmem:[%s3568_s1 + $0x7c8] sm:$0xff]  ;;  %v277_v7 = vld [vmem:[%s3568_s1 + $0x7c0] sm:$0xff]  ;;  %711 = vmatpush2.msra.mxu1 %v281_v3  ;;  %641 = vmatprep.subr.mxu0 %v150_v4 }
  0x25   :  { %v146_v8 = vld [vmem:[%s3568_s1 + $0x3a8] sm:$0xff]  ;;  %712 = vmatprep.subr.mxu1 %v278_v5  ;;  %v145_v10 = vld [vmem:[%s3568_s1 + $0x3a0] sm:$0xff]  ;;  %642 = vmatpush2.msra.mxu0 %v149_v6 }
  0x26   :  { %v274_v9 = vld [vmem:[%s3568_s1 + $0x7a8] sm:$0xff]  ;;  %v273_v11 = vld [vmem:[%s3568_s1 + $0x7a0] sm:$0xff]  ;;  %713 = vmatpush2.msra.mxu1 %v277_v7  ;;  %643 = vmatprep.subr.mxu0 %v146_v8 }
  0x27   :  { %v142_v12 = vld [vmem:[%s3568_s1 + $0x388] sm:$0xff]  ;;  %714 = vmatprep.subr.mxu1 %v274_v9  ;;  %v141_v14 = vld [vmem:[%s3568_s1 + $0x380] sm:$0xff]  ;;  %644 = vmatpush2.msra.mxu0 %v145_v10 }
  0x28   :  { %v270_v13 = vld [vmem:[%s3568_s1 + $0x788] sm:$0xff]  ;;  %v269_v15 = vld [vmem:[%s3568_s1 + $0x780] sm:$0xff]  ;;  %715 = vmatpush2.msra.mxu1 %v273_v11  ;;  %645 = vmatprep.subr.mxu0 %v142_v12 }
  0x29   :  { %v138_v16 = vld [vmem:[%s3568_s1 + $0x368] sm:$0xff]  ;;  %716 = vmatprep.subr.mxu1 %v270_v13  ;;  %v137_v18 = vld [vmem:[%s3568_s1 + $0x360] sm:$0xff]  ;;  %646 = vmatpush2.msra.mxu0 %v141_v14 }
  0x2a   :  { %v266_v17 = vld [vmem:[%s3568_s1 + $0x768] sm:$0xff]  ;;  %v265_v19 = vld [vmem:[%s3568_s1 + $0x760] sm:$0xff]  ;;  %717 = vmatpush2.msra.mxu1 %v269_v15  ;;  %647 = vmatprep.subr.mxu0 %v138_v16 }
  0x2b   :  { %v134_v20 = vld [vmem:[%s3568_s1 + $0x348] sm:$0xff]  ;;  %718 = vmatprep.subr.mxu1 %v266_v17  ;;  %v133_v22 = vld [vmem:[%s3568_s1 + $0x340] sm:$0xff]  ;;  %648 = vmatpush2.msra.mxu0 %v137_v18 }
  0x2c   :  { %v262_v21 = vld [vmem:[%s3568_s1 + $0x748] sm:$0xff]  ;;  %v261_v23 = vld [vmem:[%s3568_s1 + $0x740] sm:$0xff]  ;;  %719 = vmatpush2.msra.mxu1 %v265_v19  ;;  %649 = vmatprep.subr.mxu0 %v134_v20 }
  0x2d   :  { %v130_v24 = vld [vmem:[%s3568_s1 + $0x328] sm:$0xff]  ;;  %720 = vmatprep.subr.mxu1 %v262_v21  ;;  %v129_v26 = vld [vmem:[%s3568_s1 + $0x320] sm:$0xff]  ;;  %650 = vmatpush2.msra.mxu0 %v133_v22 }
  0x2e   :  { %v258_v25 = vld [vmem:[%s3568_s1 + $0x728] sm:$0xff]  ;;  %v257_v27 = vld [vmem:[%s3568_s1 + $0x720] sm:$0xff]  ;;  %721 = vmatpush2.msra.mxu1 %v261_v23  ;;  %651 = vmatprep.subr.mxu0 %v130_v24 }
  0x2f   :  { %v126_v28 = vld [vmem:[%s3568_s1 + $0x308] sm:$0xff]  ;;  %722 = vmatprep.subr.mxu1 %v258_v25  ;;  %v125_v33 = vld [vmem:[%s3568_s1 + $0x300] sm:$0xff]  ;;  %652 = vmatpush2.msra.mxu0 %v129_v26 }
  0x30   :  { %v254_v29 = vld [vmem:[%s3568_s1 + $0x708] sm:$0xff]  ;;  %v253_v34 = vld [vmem:[%s3568_s1 + $0x700] sm:$0xff]  ;;  %723 = vmatpush2.msra.mxu1 %v257_v27  ;;  %653 = vmatprep.subr.mxu0 %v126_v28 }
  0x31   :  { %v122_v35 = vld [vmem:[%s3568_s1 + $0x2e8] sm:$0xff]  ;;  %724 = vmatprep.subr.mxu1 %v254_v29  ;;  %v121_v37 = vld [vmem:[%s3568_s1 + $0x2e0] sm:$0xff]  ;;  %654 = vmatpush2.msra.mxu0 %v125_v33 }
  0x32   :  { %v250_v36 = vld [vmem:[%s3568_s1 + $0x6e8] sm:$0xff]  ;;  %v249_v38 = vld [vmem:[%s3568_s1 + $0x6e0] sm:$0xff]  ;;  %725 = vmatpush2.msra.mxu1 %v253_v34  ;;  %655 = vmatprep.subr.mxu0 %v122_v35 }
  0x33   :  { %v118_v39 = vld [vmem:[%s3568_s1 + $0x2c8] sm:$0xff]  ;;  %726 = vmatprep.subr.mxu1 %v250_v36  ;;  %v117_v43 = vld [vmem:[%s3568_s1 + $0x2c0] sm:$0xff]  ;;  %656 = vmatpush2.msra.mxu0 %v121_v37 }
  0x34   :  { %v246_v40 = vld [vmem:[%s3568_s1 + $0x6c8] sm:$0xff]  ;;  %v245_v44 = vld [vmem:[%s3568_s1 + $0x6c0] sm:$0xff]  ;;  %727 = vmatpush2.msra.mxu1 %v249_v38  ;;  %657 = vmatprep.subr.mxu0 %v118_v39 }
  0x35   :  { %v114_v45 = vld [vmem:[%s3568_s1 + $0x2a8] sm:$0xff]  ;;  %728 = vmatprep.subr.mxu1 %v246_v40  ;;  %v113_v47 = vld [vmem:[%s3568_s1 + $0x2a0] sm:$0xff]  ;;  %658 = vmatpush2.msra.mxu0 %v117_v43 }
  0x36   :  { %v242_v46 = vld [vmem:[%s3568_s1 + $0x6a8] sm:$0xff]  ;;  %v241_v48 = vld [vmem:[%s3568_s1 + $0x6a0] sm:$0xff]  ;;  %729 = vmatpush2.msra.mxu1 %v245_v44  ;;  %659 = vmatprep.subr.mxu0 %v114_v45 }
  0x37   :  { %v27_v49 = vld [vmem:[%s3567_s0] sm:$0xff]  ;;  %v110_v50 = vld [vmem:[%s3568_s1 + $0x288] sm:$0xff]  ;;  %730 = vmatprep.subr.mxu1 %v242_v46  ;;  %660 = vmatpush2.msra.mxu0 %v113_v47 }
  0x38   :  { %v238_v51 = vld [vmem:[%s3568_s1 + $0x688] sm:$0xff]  ;;  %v109_v53 = vld [vmem:[%s3568_s1 + $0x280] sm:$0xff]  ;;  %731 = vmatpush2.msra.mxu1 %v241_v48  ;;  %v565_v57 = vcombine.high %v27_v49, %v27_v49  ;;  %661 = vmatprep.subr.mxu0 %v110_v50  ;;  %v2060_v62 = vrot.slane %v27_v49, %v2033_v52 }
  0x39   :  { %v237_v54 = vld [vmem:[%s3568_s1 + $0x680] sm:$0xff]  ;;  %v106_v55 = vld [vmem:[%s3568_s1 + $0x268] sm:$0xff]  ;;  %732 = vmatprep.subr.mxu1 %v238_v51  ;;  %662 = vmatpush2.msra.mxu0 %v109_v53 }
  0x3a   :  { %v234_v56 = vld [vmem:[%s3568_s1 + $0x668] sm:$0xff]  ;;  %v105_v58 = vld [vmem:[%s3568_s1 + $0x260] sm:$0xff]  ;;  %733 = vmatpush2.msra.mxu1 %v237_v54  ;;  %663 = vmatprep.subr.mxu0 %v106_v55  ;;  %v2075_v3 = vrot.slane %v565_v57, %v2033_v52  ;;  %v2091_v8 = vcombine.high %v2060_v62, %v2060_v62 }
  0x3b   :  { %v233_v59 = vld [vmem:[%s3568_s1 + $0x660] sm:$0xff]  ;;  %v102_v60 = vld [vmem:[%s3568_s1 + $0x248] sm:$0xff]  ;;  %734 = vmatprep.subr.mxu1 %v234_v56  ;;  %664 = vmatpush2.msra.mxu0 %v105_v58 }
  0x3c   :  { %v230_v61 = vld [vmem:[%s3568_s1 + $0x648] sm:$0xff]  ;;  %v101_v63 = vld [vmem:[%s3568_s1 + $0x240] sm:$0xff]  ;;  %735 = vmatpush2.msra.mxu1 %v233_v59  ;;  %665 = vmatprep.subr.mxu0 %v102_v60  ;;  %v2101_v11 = vcombine.high %v2075_v3, %v2075_v3 }
  0x3d   :  { %v229_v0 = vld [vmem:[%s3568_s1 + $0x640] sm:$0xff]  ;;  %v98_v1 = vld [vmem:[%s3568_s1 + $0x228] sm:$0xff]  ;;  %736 = vmatprep.subr.mxu1 %v230_v61  ;;  %666 = vmatpush2.msra.mxu0 %v101_v63 }
  0x3e   :  { %v226_v2 = vld [vmem:[%s3568_s1 + $0x628] sm:$0xff]  ;;  %v97_v4 = vld [vmem:[%s3568_s1 + $0x220] sm:$0xff]  ;;  %737 = vmatpush2.msra.mxu1 %v229_v0  ;;  %667 = vmatprep.subr.mxu0 %v98_v1 }
  0x3f   :  { %v225_v5 = vld [vmem:[%s3568_s1 + $0x620] sm:$0xff]  ;;  %v94_v6 = vld [vmem:[%s3568_s1 + $0x208] sm:$0xff]  ;;  %738 = vmatprep.subr.mxu1 %v226_v2  ;;  %668 = vmatpush2.msra.mxu0 %v97_v4 }
  0x40   :  { %v222_v7 = vld [vmem:[%s3568_s1 + $0x608] sm:$0xff]  ;;  %v93_v9 = vld [vmem:[%s3568_s1 + $0x200] sm:$0xff]  ;;  %739 = vmatpush2.msra.mxu1 %v225_v5  ;;  %669 = vmatprep.subr.mxu0 %v94_v6 }
  0x41   :  { %v221_v10 = vld [vmem:[%s3568_s1 + $0x600] sm:$0xff]  ;;  %740 = vmatprep.subr.mxu1 %v222_v7  ;;  %v346_v12 = vld [vmem:[%s3568_s1 + $0x9e8] sm:$0xff]  ;;  %670 = vmatpush2.msra.mxu0 %v93_v9 }
  0x42   :  { %671 = vmatprep.mubr.f32.mxu0 %v2091_v8  ;;  %v474_v13 = vld [vmem:[%s3568_s1 + $0xde8] sm:$0xff]  ;;  %741 = vmatpush2.msra.mxu1 %v221_v10  ;;  %v345_v14 = vld [vmem:[%s3568_s1 + $0x9e0] sm:$0xff] }
  0x43   :  { %672 = vmatmul.mubr.f32.vlgmr.msra.gmra.mxu0 %v2060_v62  ;;  %v473_v15 = vld [vmem:[%s3568_s1 + $0xde0] sm:$0xff]  ;;  %742 = vmatprep.mubr.f32.mxu1 %v2101_v11  ;;  %v342_v16 = vld [vmem:[%s3568_s1 + $0x9c8] sm:$0xff] }
  0x44   :  { %749 = vmatprep.subr.mxu0 %v346_v12  ;;  %v470_v17 = vld [vmem:[%s3568_s1 + $0xdc8] sm:$0xff]  ;;  %820 = vmatprep.subr.mxu1 %v474_v13  ;;  %v341_v18 = vld [vmem:[%s3568_s1 + $0x9c0] sm:$0xff] }
  0x45   :  { %743 = vmatmul.mubr.f32.vlgmr.msra.gmra.mxu1 %v2075_v3  ;;  %v469_v19 = vld [vmem:[%s3568_s1 + $0xdc0] sm:$0xff]  ;;  %750 = vmatpush1.msra.mxu0 %v345_v14  ;;  %v338_v20 = vld [vmem:[%s3568_s1 + $0x9a8] sm:$0xff] }
  0x46   :  { %821 = vmatpush1.msra.mxu1 %v473_v15  ;;  %v466_v21 = vld [vmem:[%s3568_s1 + $0xda8] sm:$0xff]  ;;  %751 = vmatprep.subr.mxu0 %v342_v16  ;;  %v337_v22 = vld [vmem:[%s3568_s1 + $0x9a0] sm:$0xff] }
  0x47   :  { %822 = vmatprep.subr.mxu1 %v470_v17  ;;  %v465_v23 = vld [vmem:[%s3568_s1 + $0xda0] sm:$0xff]  ;;  %752 = vmatpush1.msra.mxu0 %v341_v18  ;;  %v334_v24 = vld [vmem:[%s3568_s1 + $0x988] sm:$0xff] }
  0x48   :  { %823 = vmatpush1.msra.mxu1 %v469_v19  ;;  %v462_v25 = vld [vmem:[%s3568_s1 + $0xd88] sm:$0xff]  ;;  %753 = vmatprep.subr.mxu0 %v338_v20  ;;  %v333_v26 = vld [vmem:[%s3568_s1 + $0x980] sm:$0xff] }
  0x49   :  { %824 = vmatprep.subr.mxu1 %v466_v21  ;;  %v461_v27 = vld [vmem:[%s3568_s1 + $0xd80] sm:$0xff]  ;;  %754 = vmatpush1.msra.mxu0 %v337_v22  ;;  %v330_v28 = vld [vmem:[%s3568_s1 + $0x968] sm:$0xff] }
  0x4a   :  { %825 = vmatpush1.msra.mxu1 %v465_v23  ;;  %v458_v29 = vld [vmem:[%s3568_s1 + $0xd68] sm:$0xff]  ;;  %755 = vmatprep.subr.mxu0 %v334_v24  ;;  %v329_v30 = vld [vmem:[%s3568_s1 + $0x960] sm:$0xff] }
  0x4b   :  { %826 = vmatprep.subr.mxu1 %v462_v25  ;;  %v457_v31 = vld [vmem:[%s3568_s1 + $0xd60] sm:$0xff]  ;;  %756 = vmatpush1.msra.mxu0 %v333_v26  ;;  %v326_v32 = vld [vmem:[%s3568_s1 + $0x948] sm:$0xff] }
  0x4c   :  { %827 = vmatpush1.msra.mxu1 %v461_v27  ;;  %v454_v33 = vld [vmem:[%s3568_s1 + $0xd48] sm:$0xff]  ;;  %757 = vmatprep.subr.mxu0 %v330_v28  ;;  %v325_v34 = vld [vmem:[%s3568_s1 + $0x940] sm:$0xff] }
  0x4d   :  { %828 = vmatprep.subr.mxu1 %v458_v29  ;;  %v453_v35 = vld [vmem:[%s3568_s1 + $0xd40] sm:$0xff]  ;;  %758 = vmatpush1.msra.mxu0 %v329_v30  ;;  %v322_v36 = vld [vmem:[%s3568_s1 + $0x928] sm:$0xff] }
  0x4e   :  { %829 = vmatpush1.msra.mxu1 %v457_v31  ;;  %v450_v37 = vld [vmem:[%s3568_s1 + $0xd28] sm:$0xff]  ;;  %759 = vmatprep.subr.mxu0 %v326_v32  ;;  %v321_v38 = vld [vmem:[%s3568_s1 + $0x920] sm:$0xff] }
  0x4f   :  { %830 = vmatprep.subr.mxu1 %v454_v33  ;;  %v449_v39 = vld [vmem:[%s3568_s1 + $0xd20] sm:$0xff]  ;;  %760 = vmatpush1.msra.mxu0 %v325_v34  ;;  %v318_v40 = vld [vmem:[%s3568_s1 + $0x908] sm:$0xff] }
  0x50   :  { %831 = vmatpush1.msra.mxu1 %v453_v35  ;;  %v446_v42 = vld [vmem:[%s3568_s1 + $0xd08] sm:$0xff]  ;;  %761 = vmatprep.subr.mxu0 %v322_v36  ;;  %v317_v43 = vld [vmem:[%s3568_s1 + $0x900] sm:$0xff] }
  0x51   :  { %832 = vmatprep.subr.mxu1 %v450_v37  ;;  %v445_v44 = vld [vmem:[%s3568_s1 + $0xd00] sm:$0xff]  ;;  %762 = vmatpush1.msra.mxu0 %v321_v38  ;;  %v314_v45 = vld [vmem:[%s3568_s1 + $0x8e8] sm:$0xff] }
  0x52   :  { %833 = vmatpush1.msra.mxu1 %v449_v39  ;;  %v442_v46 = vld [vmem:[%s3568_s1 + $0xce8] sm:$0xff]  ;;  %763 = vmatprep.subr.mxu0 %v318_v40  ;;  %v313_v47 = vld [vmem:[%s3568_s1 + $0x8e0] sm:$0xff] }
  0x53   :  { %834 = vmatprep.subr.mxu1 %v446_v42  ;;  %v441_v48 = vld [vmem:[%s3568_s1 + $0xce0] sm:$0xff]  ;;  %764 = vmatpush1.msra.mxu0 %v317_v43  ;;  %v310_v49 = vld [vmem:[%s3568_s1 + $0x8c8] sm:$0xff] }
  0x54   :  { %835 = vmatpush1.msra.mxu1 %v445_v44  ;;  %v438_v50 = vld [vmem:[%s3568_s1 + $0xcc8] sm:$0xff]  ;;  %765 = vmatprep.subr.mxu0 %v314_v45  ;;  %v309_v51 = vld [vmem:[%s3568_s1 + $0x8c0] sm:$0xff] }
  0x55   :  { %836 = vmatprep.subr.mxu1 %v442_v46  ;;  %v437_v53 = vld [vmem:[%s3568_s1 + $0xcc0] sm:$0xff]  ;;  %766 = vmatpush1.msra.mxu0 %v313_v47  ;;  %v306_v54 = vld [vmem:[%s3568_s1 + $0x8a8] sm:$0xff] }
  0x56   :  { %837 = vmatpush1.msra.mxu1 %v441_v48  ;;  %v434_v55 = vld [vmem:[%s3568_s1 + $0xca8] sm:$0xff]  ;;  %767 = vmatprep.subr.mxu0 %v310_v49  ;;  %v305_v56 = vld [vmem:[%s3568_s1 + $0x8a0] sm:$0xff] }
  0x57   :  { %838 = vmatprep.subr.mxu1 %v438_v50  ;;  %v433_v57 = vld [vmem:[%s3568_s1 + $0xca0] sm:$0xff]  ;;  %768 = vmatpush1.msra.mxu0 %v309_v51  ;;  %v302_v58 = vld [vmem:[%s3568_s1 + $0x888] sm:$0xff] }
  0x58   :  { %839 = vmatpush1.msra.mxu1 %v437_v53  ;;  %v430_v59 = vld [vmem:[%s3568_s1 + $0xc88] sm:$0xff]  ;;  %769 = vmatprep.subr.mxu0 %v306_v54  ;;  %v301_v60 = vld [vmem:[%s3568_s1 + $0x880] sm:$0xff] }
  0x59   :  { %840 = vmatprep.subr.mxu1 %v434_v55  ;;  %v429_v61 = vld [vmem:[%s3568_s1 + $0xc80] sm:$0xff]  ;;  %770 = vmatpush1.msra.mxu0 %v305_v56  ;;  %v298_v63 = vld [vmem:[%s3568_s1 + $0x868] sm:$0xff] }
  0x5a   :  { %841 = vmatpush1.msra.mxu1 %v433_v57  ;;  %v426_v0 = vld [vmem:[%s3568_s1 + $0xc68] sm:$0xff]  ;;  %771 = vmatprep.subr.mxu0 %v302_v58  ;;  %v297_v1 = vld [vmem:[%s3568_s1 + $0x860] sm:$0xff] }
  0x5b   :  { %842 = vmatprep.subr.mxu1 %v430_v59  ;;  %v425_v2 = vld [vmem:[%s3568_s1 + $0xc60] sm:$0xff]  ;;  %772 = vmatpush1.msra.mxu0 %v301_v60  ;;  %v294_v4 = vld [vmem:[%s3568_s1 + $0x848] sm:$0xff] }
  0x5c   :  { %843 = vmatpush1.msra.mxu1 %v429_v61  ;;  %v422_v5 = vld [vmem:[%s3568_s1 + $0xc48] sm:$0xff]  ;;  %773 = vmatprep.subr.mxu0 %v298_v63  ;;  %v293_v6 = vld [vmem:[%s3568_s1 + $0x840] sm:$0xff] }
  0x5d   :  { %844 = vmatprep.subr.mxu1 %v426_v0  ;;  %v421_v7 = vld [vmem:[%s3568_s1 + $0xc40] sm:$0xff]  ;;  %774 = vmatpush1.msra.mxu0 %v297_v1  ;;  %v290_v9 = vld [vmem:[%s3568_s1 + $0x828] sm:$0xff] }
  0x5e   :  { %845 = vmatpush1.msra.mxu1 %v425_v2  ;;  %v418_v10 = vld [vmem:[%s3568_s1 + $0xc28] sm:$0xff]  ;;  %775 = vmatprep.subr.mxu0 %v294_v4  ;;  %v289_v12 = vld [vmem:[%s3568_s1 + $0x820] sm:$0xff] }
  0x5f   :  { %846 = vmatprep.subr.mxu1 %v422_v5  ;;  %v417_v13 = vld [vmem:[%s3568_s1 + $0xc20] sm:$0xff]  ;;  %776 = vmatpush1.msra.mxu0 %v293_v6  ;;  %v286_v14 = vld [vmem:[%s3568_s1 + $0x808] sm:$0xff] }
  0x60   :  { %847 = vmatpush1.msra.mxu1 %v421_v7  ;;  %v414_v15 = vld [vmem:[%s3568_s1 + $0xc08] sm:$0xff]  ;;  %777 = vmatprep.subr.mxu0 %v290_v9  ;;  %v285_v16 = vld [vmem:[%s3568_s1 + $0x800] sm:$0xff] }
  0x61   :  { %848 = vmatprep.subr.mxu1 %v418_v10  ;;  %v413_v17 = vld [vmem:[%s3568_s1 + $0xc00] sm:$0xff]  ;;  %778 = vmatpush1.msra.mxu0 %v289_v12  ;;  %v410_v18 = vld [vmem:[%s3568_s1 + $0xbe8] sm:$0xff] }
  0x62   :  { %849 = vmatpush1.msra.mxu1 %v417_v13  ;;  %v538_v19 = vld [vmem:[%s3568_s1 + $0xfe8] sm:$0xff]  ;;  %779 = vmatprep.subr.mxu0 %v286_v14  ;;  %v409_v20 = vld [vmem:[%s3568_s1 + $0xbe0] sm:$0xff] }
  0x63   :  { %850 = vmatprep.subr.mxu1 %v414_v15  ;;  %v537_v21 = vld [vmem:[%s3568_s1 + $0xfe0] sm:$0xff]  ;;  %780 = vmatpush1.msra.mxu0 %v285_v16  ;;  %v406_v22 = vld [vmem:[%s3568_s1 + $0xbc8] sm:$0xff] }
  0x64   :  { %851 = vmatpush1.msra.mxu1 %v413_v17  ;;  %v534_v23 = vld [vmem:[%s3568_s1 + $0xfc8] sm:$0xff]  ;;  %781 = vmatprep.subr.mxu0 %v410_v18  ;;  %v405_v24 = vld [vmem:[%s3568_s1 + $0xbc0] sm:$0xff] }
  0x65   :  { %852 = vmatprep.subr.mxu1 %v538_v19  ;;  %v533_v25 = vld [vmem:[%s3568_s1 + $0xfc0] sm:$0xff]  ;;  %782 = vmatpush2.msra.mxu0 %v409_v20  ;;  %v402_v26 = vld [vmem:[%s3568_s1 + $0xba8] sm:$0xff] }
  0x66   :  { %853 = vmatpush2.msra.mxu1 %v537_v21  ;;  %v530_v27 = vld [vmem:[%s3568_s1 + $0xfa8] sm:$0xff]  ;;  %783 = vmatprep.subr.mxu0 %v406_v22  ;;  %v401_v28 = vld [vmem:[%s3568_s1 + $0xba0] sm:$0xff] }
  0x67   :  { %854 = vmatprep.subr.mxu1 %v534_v23  ;;  %v529_v29 = vld [vmem:[%s3568_s1 + $0xfa0] sm:$0xff]  ;;  %784 = vmatpush2.msra.mxu0 %v405_v24  ;;  %v398_v30 = vld [vmem:[%s3568_s1 + $0xb88] sm:$0xff] }
  0x68   :  { %855 = vmatpush2.msra.mxu1 %v533_v25  ;;  %v526_v31 = vld [vmem:[%s3568_s1 + $0xf88] sm:$0xff]  ;;  %785 = vmatprep.subr.mxu0 %v402_v26  ;;  %v397_v32 = vld [vmem:[%s3568_s1 + $0xb80] sm:$0xff] }
  0x69   :  { %856 = vmatprep.subr.mxu1 %v530_v27  ;;  %v525_v33 = vld [vmem:[%s3568_s1 + $0xf80] sm:$0xff]  ;;  %786 = vmatpush2.msra.mxu0 %v401_v28  ;;  %v394_v34 = vld [vmem:[%s3568_s1 + $0xb68] sm:$0xff] }
  0x6a   :  { %857 = vmatpush2.msra.mxu1 %v529_v29  ;;  %v522_v35 = vld [vmem:[%s3568_s1 + $0xf68] sm:$0xff]  ;;  %787 = vmatprep.subr.mxu0 %v398_v30  ;;  %v393_v36 = vld [vmem:[%s3568_s1 + $0xb60] sm:$0xff]  ;;  %v92_v29 = vld [vmem:[%s3568_s1 + $0x1f8] sm:$0xff] }
  0x6b   :  { %858 = vmatprep.subr.mxu1 %v526_v31  ;;  %v521_v37 = vld [vmem:[%s3568_s1 + $0xf60] sm:$0xff]  ;;  %788 = vmatpush2.msra.mxu0 %v397_v32  ;;  %v390_v38 = vld [vmem:[%s3568_s1 + $0xb48] sm:$0xff]  ;;  %v220_v30 = vld [vmem:[%s3568_s1 + $0x5f8] sm:$0xff] }
  0x6c   :  { %859 = vmatpush2.msra.mxu1 %v525_v33  ;;  %v518_v39 = vld [vmem:[%s3568_s1 + $0xf48] sm:$0xff]  ;;  %789 = vmatprep.subr.mxu0 %v394_v34  ;;  %v389_v40 = vld [vmem:[%s3568_s1 + $0xb40] sm:$0xff]  ;;  %v91_v31 = vld [vmem:[%s3568_s1 + $0x1f0] sm:$0xff] }
  0x6d   :  { %860 = vmatprep.subr.mxu1 %v522_v35  ;;  %v517_v42 = vld [vmem:[%s3568_s1 + $0xf40] sm:$0xff]  ;;  %790 = vmatpush2.msra.mxu0 %v393_v36  ;;  %v386_v43 = vld [vmem:[%s3568_s1 + $0xb28] sm:$0xff]  ;;  %v219_v32 = vld [vmem:[%s3568_s1 + $0x5f0] sm:$0xff] }
  0x6e   :  { %861 = vmatpush2.msra.mxu1 %v521_v37  ;;  %v514_v44 = vld [vmem:[%s3568_s1 + $0xf28] sm:$0xff]  ;;  %791 = vmatprep.subr.mxu0 %v390_v38  ;;  %v385_v45 = vld [vmem:[%s3568_s1 + $0xb20] sm:$0xff]  ;;  %v88_v33 = vld [vmem:[%s3568_s1 + $0x1d8] sm:$0xff] }
  0x6f   :  { %862 = vmatprep.subr.mxu1 %v518_v39  ;;  %v513_v46 = vld [vmem:[%s3568_s1 + $0xf20] sm:$0xff]  ;;  %792 = vmatpush2.msra.mxu0 %v389_v40  ;;  %v382_v47 = vld [vmem:[%s3568_s1 + $0xb08] sm:$0xff]  ;;  %v216_v34 = vld [vmem:[%s3568_s1 + $0x5d8] sm:$0xff] }
  0x70   :  { %863 = vmatpush2.msra.mxu1 %v517_v42  ;;  %v510_v48 = vld [vmem:[%s3568_s1 + $0xf08] sm:$0xff]  ;;  %793 = vmatprep.subr.mxu0 %v386_v43  ;;  %v381_v49 = vld [vmem:[%s3568_s1 + $0xb00] sm:$0xff]  ;;  %v87_v35 = vld [vmem:[%s3568_s1 + $0x1d0] sm:$0xff] }
  0x71   :  { %864 = vmatprep.subr.mxu1 %v514_v44  ;;  %v509_v50 = vld [vmem:[%s3568_s1 + $0xf00] sm:$0xff]  ;;  %794 = vmatpush2.msra.mxu0 %v385_v45  ;;  %v378_v51 = vld [vmem:[%s3568_s1 + $0xae8] sm:$0xff]  ;;  %v215_v36 = vld [vmem:[%s3568_s1 + $0x5d0] sm:$0xff] }
  0x72   :  { %865 = vmatpush2.msra.mxu1 %v513_v46  ;;  %v506_v53 = vld [vmem:[%s3568_s1 + $0xee8] sm:$0xff]  ;;  %795 = vmatprep.subr.mxu0 %v382_v47  ;;  %v377_v54 = vld [vmem:[%s3568_s1 + $0xae0] sm:$0xff]  ;;  %v84_v37 = vld [vmem:[%s3568_s1 + $0x1b8] sm:$0xff] }
  0x73   :  { %866 = vmatprep.subr.mxu1 %v510_v48  ;;  %v505_v55 = vld [vmem:[%s3568_s1 + $0xee0] sm:$0xff]  ;;  %796 = vmatpush2.msra.mxu0 %v381_v49  ;;  %v374_v56 = vld [vmem:[%s3568_s1 + $0xac8] sm:$0xff]  ;;  %v212_v38 = vld [vmem:[%s3568_s1 + $0x5b8] sm:$0xff] }
  0x74   :  { %867 = vmatpush2.msra.mxu1 %v509_v50  ;;  %v502_v57 = vld [vmem:[%s3568_s1 + $0xec8] sm:$0xff]  ;;  %797 = vmatprep.subr.mxu0 %v378_v51  ;;  %v373_v58 = vld [vmem:[%s3568_s1 + $0xac0] sm:$0xff]  ;;  %v83_v39 = vld [vmem:[%s3568_s1 + $0x1b0] sm:$0xff] }
  0x75   :  { %868 = vmatprep.subr.mxu1 %v506_v53  ;;  %v501_v59 = vld [vmem:[%s3568_s1 + $0xec0] sm:$0xff]  ;;  %798 = vmatpush2.msra.mxu0 %v377_v54  ;;  %v370_v60 = vld [vmem:[%s3568_s1 + $0xaa8] sm:$0xff]  ;;  %v211_v40 = vld [vmem:[%s3568_s1 + $0x5b0] sm:$0xff] }
  0x76   :  { %869 = vmatpush2.msra.mxu1 %v505_v55  ;;  %v498_v61 = vld [vmem:[%s3568_s1 + $0xea8] sm:$0xff]  ;;  %799 = vmatprep.subr.mxu0 %v374_v56  ;;  %v369_v63 = vld [vmem:[%s3568_s1 + $0xaa0] sm:$0xff]  ;;  %v80_v42 = vld [vmem:[%s3568_s1 + $0x198] sm:$0xff] }
  0x77   :  { %870 = vmatprep.subr.mxu1 %v502_v57  ;;  %v497_v0 = vld [vmem:[%s3568_s1 + $0xea0] sm:$0xff]  ;;  %v28_v1 = vld [vmem:[%s3567_s0 + $0x8] sm:$0xff]  ;;  %800 = vmatpush2.msra.mxu0 %v373_v58  ;;  %v208_v43 = vld [vmem:[%s3568_s1 + $0x598] sm:$0xff] }
  0x78   :  { %871 = vmatpush2.msra.mxu1 %v501_v59  ;;  %v366_v2 = vld [vmem:[%s3568_s1 + $0xa88] sm:$0xff]  ;;  %801 = vmatprep.subr.mxu0 %v370_v60  ;;  %v365_v5 = vld [vmem:[%s3568_s1 + $0xa80] sm:$0xff]  ;;  %v582_v10 = vcombine.high %v28_v1, %v28_v1  ;;  %v2465_v16 = vrot.slane %v28_v1, %v2033_v52  ;;  %v79_v44 = vld [vmem:[%s3568_s1 + $0x190] sm:$0xff] }
  0x79   :  { %v494_v4 = vld [vmem:[%s3568_s1 + $0xe88] sm:$0xff]  ;;  %872 = vmatprep.subr.mxu1 %v498_v61  ;;  %v493_v6 = vld [vmem:[%s3568_s1 + $0xe80] sm:$0xff]  ;;  %802 = vmatpush2.msra.mxu0 %v369_v63  ;;  %v207_v45 = vld [vmem:[%s3568_s1 + $0x590] sm:$0xff] }
  0x7a   :  { %873 = vmatpush2.msra.mxu1 %v497_v0  ;;  %v362_v7 = vld [vmem:[%s3568_s1 + $0xa68] sm:$0xff]  ;;  %803 = vmatprep.subr.mxu0 %v366_v2  ;;  %v361_v12 = vld [vmem:[%s3568_s1 + $0xa60] sm:$0xff]  ;;  %v2480_v21 = vrot.slane %v582_v10, %v2033_v52  ;;  %v2496_v25 = vcombine.high %v2465_v16, %v2465_v16  ;;  %v76_v46 = vld [vmem:[%s3568_s1 + $0x178] sm:$0xff] }
  0x7b   :  { %v490_v9 = vld [vmem:[%s3568_s1 + $0xe68] sm:$0xff]  ;;  %874 = vmatprep.subr.mxu1 %v494_v4  ;;  %v489_v13 = vld [vmem:[%s3568_s1 + $0xe60] sm:$0xff]  ;;  %804 = vmatpush2.msra.mxu0 %v365_v5  ;;  %v204_v47 = vld [vmem:[%s3568_s1 + $0x578] sm:$0xff] }
  0x7c   :  { %875 = vmatpush2.msra.mxu1 %v493_v6  ;;  %v358_v14 = vld [vmem:[%s3568_s1 + $0xa48] sm:$0xff]  ;;  %805 = vmatprep.subr.mxu0 %v362_v7  ;;  %v357_v17 = vld [vmem:[%s3568_s1 + $0xa40] sm:$0xff]  ;;  %v2506_v28 = vcombine.high %v2480_v21, %v2480_v21  ;;  %v75_v48 = vld [vmem:[%s3568_s1 + $0x170] sm:$0xff] }
  0x7d   :  { %v486_v15 = vld [vmem:[%s3568_s1 + $0xe48] sm:$0xff]  ;;  %876 = vmatprep.subr.mxu1 %v490_v9  ;;  %v485_v18 = vld [vmem:[%s3568_s1 + $0xe40] sm:$0xff]  ;;  %806 = vmatpush2.msra.mxu0 %v361_v12  ;;  %v203_v49 = vld [vmem:[%s3568_s1 + $0x570] sm:$0xff] }
  0x7e   :  { %877 = vmatpush2.msra.mxu1 %v489_v13  ;;  %v354_v19 = vld [vmem:[%s3568_s1 + $0xa28] sm:$0xff]  ;;  %807 = vmatprep.subr.mxu0 %v358_v14  ;;  %v353_v22 = vld [vmem:[%s3568_s1 + $0xa20] sm:$0xff]  ;;  %v72_v50 = vld [vmem:[%s3568_s1 + $0x158] sm:$0xff] }
  0x7f   :  { %v482_v20 = vld [vmem:[%s3568_s1 + $0xe28] sm:$0xff]  ;;  %878 = vmatprep.subr.mxu1 %v486_v15  ;;  %v481_v23 = vld [vmem:[%s3568_s1 + $0xe20] sm:$0xff]  ;;  %808 = vmatpush2.msra.mxu0 %v357_v17  ;;  %v200_v51 = vld [vmem:[%s3568_s1 + $0x558] sm:$0xff] }
  0x80   :  { %879 = vmatpush2.msra.mxu1 %v485_v18  ;;  %v350_v24 = vld [vmem:[%s3568_s1 + $0xa08] sm:$0xff]  ;;  %809 = vmatprep.subr.mxu0 %v354_v19  ;;  %v349_v26 = vld [vmem:[%s3568_s1 + $0xa00] sm:$0xff]  ;;  %v71_v53 = vld [vmem:[%s3568_s1 + $0x150] sm:$0xff] }
  0x81   :  { %v478_v52 = vld [vmem:[%s3568_s1 + $0xe08] sm:$0xff]  ;;  %880 = vmatprep.subr.mxu1 %v482_v20  ;;  %810 = vmatpush2.msra.mxu0 %v353_v22  ;;  %v477_v27 = vld [vmem:[%s3568_s1 + $0xe00] sm:$0xff]  ;;  %v199_v54 = vld [vmem:[%s3568_s1 + $0x550] sm:$0xff] }
  0x82   :  { %881 = vmatpush2.msra.mxu1 %v481_v23  ;;  %811 = vmatprep.subr.mxu0 %v350_v24  ;;  %v68_v55 = vld [vmem:[%s3568_s1 + $0x138] sm:$0xff]  ;;  %v67_v57 = vld [vmem:[%s3568_s1 + $0x130] sm:$0xff] }
  0x83   :  { %882 = vmatprep.subr.mxu1 %v478_v52  ;;  %812 = vmatpush2.msra.mxu0 %v349_v26  ;;  %v196_v56 = vld [vmem:[%s3568_s1 + $0x538] sm:$0xff]  ;;  %v195_v58 = vld [vmem:[%s3568_s1 + $0x530] sm:$0xff] }
  0x84   :  { %813 = vmatprep.mubr.f32.mxu0 %v2496_v25  ;;  %883 = vmatpush2.msra.mxu1 %v477_v27  ;;  %v64_v59 = vld [vmem:[%s3568_s1 + $0x118] sm:$0xff]  ;;  %v63_v61 = vld [vmem:[%s3568_s1 + $0x110] sm:$0xff] }
  0x85   :  { %814 = vmatmul.mubr.f32.vlgmr.msra.gmra.mxu0 %v2465_v16  ;;  %884 = vmatprep.mubr.f32.mxu1 %v2506_v28  ;;  %v192_v60 = vld [vmem:[%s3568_s1 + $0x518] sm:$0xff]  ;;  %v191_v63 = vld [vmem:[%s3568_s1 + $0x510] sm:$0xff] }
  0x86   :  { %891 = vmatprep.subr.mxu0 %v92_v29  ;;  %962 = vmatprep.subr.mxu1 %v220_v30  ;;  %v60_v0 = vld [vmem:[%s3568_s1 + $0xf8] sm:$0xff]  ;;  %v59_v2 = vld [vmem:[%s3568_s1 + $0xf0] sm:$0xff] }
  0x87   :  { %885 = vmatmul.mubr.f32.vlgmr.msra.gmra.mxu1 %v2480_v21  ;;  %892 = vmatpush1.msra.mxu0 %v91_v31  ;;  %v188_v1 = vld [vmem:[%s3568_s1 + $0x4f8] sm:$0xff]  ;;  %v187_v4 = vld [vmem:[%s3568_s1 + $0x4f0] sm:$0xff] }
  0x88   :  { %963 = vmatpush1.msra.mxu1 %v219_v32  ;;  %893 = vmatprep.subr.mxu0 %v88_v33  ;;  %v56_v5 = vld [vmem:[%s3568_s1 + $0xd8] sm:$0xff]  ;;  %v55_v7 = vld [vmem:[%s3568_s1 + $0xd0] sm:$0xff] }
  0x89   :  { %964 = vmatprep.subr.mxu1 %v216_v34  ;;  %894 = vmatpush1.msra.mxu0 %v87_v35  ;;  %v184_v6 = vld [vmem:[%s3568_s1 + $0x4d8] sm:$0xff]  ;;  %v183_v9 = vld [vmem:[%s3568_s1 + $0x4d0] sm:$0xff] }
  0x8a   :  { %965 = vmatpush1.msra.mxu1 %v215_v36  ;;  %895 = vmatprep.subr.mxu0 %v84_v37  ;;  %v52_v10 = vld [vmem:[%s3568_s1 + $0xb8] sm:$0xff]  ;;  %v51_v13 = vld [vmem:[%s3568_s1 + $0xb0] sm:$0xff] }
  0x8b   :  { %966 = vmatprep.subr.mxu1 %v212_v38  ;;  %896 = vmatpush1.msra.mxu0 %v83_v39  ;;  %v180_v12 = vld [vmem:[%s3568_s1 + $0x4b8] sm:$0xff]  ;;  %v179_v14 = vld [vmem:[%s3568_s1 + $0x4b0] sm:$0xff] }
  0x8c   :  { %967 = vmatpush1.msra.mxu1 %v211_v40  ;;  %897 = vmatprep.subr.mxu0 %v80_v42  ;;  %v48_v15 = vld [vmem:[%s3568_s1 + $0x98] sm:$0xff]  ;;  %v47_v18 = vld [vmem:[%s3568_s1 + $0x90] sm:$0xff] }
  0x8d   :  { %968 = vmatprep.subr.mxu1 %v208_v43  ;;  %898 = vmatpush1.msra.mxu0 %v79_v44  ;;  %v176_v17 = vld [vmem:[%s3568_s1 + $0x498] sm:$0xff]  ;;  %v175_v19 = vld [vmem:[%s3568_s1 + $0x490] sm:$0xff] }
  0x8e   :  { %969 = vmatpush1.msra.mxu1 %v207_v45  ;;  %899 = vmatprep.subr.mxu0 %v76_v46  ;;  %v44_v20 = vld [vmem:[%s3568_s1 + $0x78] sm:$0xff]  ;;  %v43_v23 = vld [vmem:[%s3568_s1 + $0x70] sm:$0xff] }
  0x8f   :  { %970 = vmatprep.subr.mxu1 %v204_v47  ;;  %900 = vmatpush1.msra.mxu0 %v75_v48  ;;  %v172_v22 = vld [vmem:[%s3568_s1 + $0x478] sm:$0xff]  ;;  %v171_v24 = vld [vmem:[%s3568_s1 + $0x470] sm:$0xff] }
  0x90   :  { %971 = vmatpush1.msra.mxu1 %v203_v49  ;;  %901 = vmatprep.subr.mxu0 %v72_v50  ;;  %v40_v52 = vld [vmem:[%s3568_s1 + $0x58] sm:$0xff]  ;;  %v39_v27 = vld [vmem:[%s3568_s1 + $0x50] sm:$0xff] }
  0x91   :  { %972 = vmatprep.subr.mxu1 %v200_v51  ;;  %902 = vmatpush1.msra.mxu0 %v71_v53  ;;  %v168_v26 = vld [vmem:[%s3568_s1 + $0x458] sm:$0xff]  ;;  %v167_v29 = vld [vmem:[%s3568_s1 + $0x450] sm:$0xff] }
  0x92   :  { %973 = vmatpush1.msra.mxu1 %v199_v54  ;;  %903 = vmatprep.subr.mxu0 %v68_v55  ;;  %v36_v30 = vld [vmem:[%s3568_s1 + $0x38] sm:$0xff]  ;;  %v35_v32 = vld [vmem:[%s3568_s1 + $0x30] sm:$0xff] }
  0x93   :  { %974 = vmatprep.subr.mxu1 %v196_v56  ;;  %904 = vmatpush1.msra.mxu0 %v67_v57  ;;  %v164_v31 = vld [vmem:[%s3568_s1 + $0x438] sm:$0xff]  ;;  %v163_v33 = vld [vmem:[%s3568_s1 + $0x430] sm:$0xff] }
  0x94   :  { %975 = vmatpush1.msra.mxu1 %v195_v58  ;;  %905 = vmatprep.subr.mxu0 %v64_v59  ;;  %v32_v34 = vld [vmem:[%s3568_s1 + $0x18] sm:$0xff]  ;;  %v31_v36 = vld [vmem:[%s3568_s1 + $0x10] sm:$0xff] }
  0x95   :  { %976 = vmatprep.subr.mxu1 %v192_v60  ;;  %906 = vmatpush1.msra.mxu0 %v63_v61  ;;  %v160_v35 = vld [vmem:[%s3568_s1 + $0x418] sm:$0xff]  ;;  %v159_v37 = vld [vmem:[%s3568_s1 + $0x410] sm:$0xff] }
  0x96   :  { %977 = vmatpush1.msra.mxu1 %v191_v63  ;;  %907 = vmatprep.subr.mxu0 %v60_v0  ;;  %v156_v38 = vld [vmem:[%s3568_s1 + $0x3f8] sm:$0xff]  ;;  %v155_v40 = vld [vmem:[%s3568_s1 + $0x3f0] sm:$0xff] }
  0x97   :  { %978 = vmatprep.subr.mxu1 %v188_v1  ;;  %908 = vmatpush1.msra.mxu0 %v59_v2  ;;  %v284_v39 = vld [vmem:[%s3568_s1 + $0x7f8] sm:$0xff]  ;;  %v283_v42 = vld [vmem:[%s3568_s1 + $0x7f0] sm:$0xff] }
  0x98   :  { %979 = vmatpush1.msra.mxu1 %v187_v4  ;;  %909 = vmatprep.subr.mxu0 %v56_v5  ;;  %v152_v43 = vld [vmem:[%s3568_s1 + $0x3d8] sm:$0xff]  ;;  %v151_v45 = vld [vmem:[%s3568_s1 + $0x3d0] sm:$0xff] }
  0x99   :  { %980 = vmatprep.subr.mxu1 %v184_v6  ;;  %910 = vmatpush1.msra.mxu0 %v55_v7  ;;  %v280_v44 = vld [vmem:[%s3568_s1 + $0x7d8] sm:$0xff]  ;;  %v279_v46 = vld [vmem:[%s3568_s1 + $0x7d0] sm:$0xff] }
  0x9a   :  { %981 = vmatpush1.msra.mxu1 %v183_v9  ;;  %911 = vmatprep.subr.mxu0 %v52_v10  ;;  %v148_v47 = vld [vmem:[%s3568_s1 + $0x3b8] sm:$0xff]  ;;  %v147_v49 = vld [vmem:[%s3568_s1 + $0x3b0] sm:$0xff] }
  0x9b   :  { %982 = vmatprep.subr.mxu1 %v180_v12  ;;  %912 = vmatpush1.msra.mxu0 %v51_v13  ;;  %v276_v48 = vld [vmem:[%s3568_s1 + $0x7b8] sm:$0xff]  ;;  %v275_v50 = vld [vmem:[%s3568_s1 + $0x7b0] sm:$0xff] }
  0x9c   :  { %983 = vmatpush1.msra.mxu1 %v179_v14  ;;  %913 = vmatprep.subr.mxu0 %v48_v15  ;;  %v144_v51 = vld [vmem:[%s3568_s1 + $0x398] sm:$0xff]  ;;  %v143_v54 = vld [vmem:[%s3568_s1 + $0x390] sm:$0xff] }
  0x9d   :  { %984 = vmatprep.subr.mxu1 %v176_v17  ;;  %914 = vmatpush1.msra.mxu0 %v47_v18  ;;  %v272_v53 = vld [vmem:[%s3568_s1 + $0x798] sm:$0xff]  ;;  %v271_v55 = vld [vmem:[%s3568_s1 + $0x790] sm:$0xff] }
  0x9e   :  { %985 = vmatpush1.msra.mxu1 %v175_v19  ;;  %915 = vmatprep.subr.mxu0 %v44_v20  ;;  %v140_v56 = vld [vmem:[%s3568_s1 + $0x378] sm:$0xff]  ;;  %v139_v58 = vld [vmem:[%s3568_s1 + $0x370] sm:$0xff] }
  0x9f   :  { %986 = vmatprep.subr.mxu1 %v172_v22  ;;  %916 = vmatpush1.msra.mxu0 %v43_v23  ;;  %v268_v57 = vld [vmem:[%s3568_s1 + $0x778] sm:$0xff]  ;;  %v267_v59 = vld [vmem:[%s3568_s1 + $0x770] sm:$0xff] }
  0xa0   :  { %987 = vmatpush1.msra.mxu1 %v171_v24  ;;  %917 = vmatprep.subr.mxu0 %v40_v52  ;;  %v136_v60 = vld [vmem:[%s3568_s1 + $0x358] sm:$0xff]  ;;  %v135_v63 = vld [vmem:[%s3568_s1 + $0x350] sm:$0xff] }
  0xa1   :  { %988 = vmatprep.subr.mxu1 %v168_v26  ;;  %918 = vmatpush1.msra.mxu0 %v39_v27  ;;  %v264_v61 = vld [vmem:[%s3568_s1 + $0x758] sm:$0xff]  ;;  %v263_v0 = vld [vmem:[%s3568_s1 + $0x750] sm:$0xff] }
  0xa2   :  { %989 = vmatpush1.msra.mxu1 %v167_v29  ;;  %919 = vmatprep.subr.mxu0 %v36_v30  ;;  %v132_v1 = vld [vmem:[%s3568_s1 + $0x338] sm:$0xff]  ;;  %v131_v4 = vld [vmem:[%s3568_s1 + $0x330] sm:$0xff] }
  0xa3   :  { %990 = vmatprep.subr.mxu1 %v164_v31  ;;  %920 = vmatpush1.msra.mxu0 %v35_v32  ;;  %v260_v2 = vld [vmem:[%s3568_s1 + $0x738] sm:$0xff]  ;;  %v259_v5 = vld [vmem:[%s3568_s1 + $0x730] sm:$0xff] }
  0xa4   :  { %991 = vmatpush1.msra.mxu1 %v163_v33  ;;  %921 = vmatprep.subr.mxu0 %v32_v34  ;;  %v128_v6 = vld [vmem:[%s3568_s1 + $0x318] sm:$0xff]  ;;  %v127_v9 = vld [vmem:[%s3568_s1 + $0x310] sm:$0xff] }
  0xa5   :  { %992 = vmatprep.subr.mxu1 %v160_v35  ;;  %922 = vmatpush1.msra.mxu0 %v31_v36  ;;  %v256_v7 = vld [vmem:[%s3568_s1 + $0x718] sm:$0xff]  ;;  %v255_v10 = vld [vmem:[%s3568_s1 + $0x710] sm:$0xff] }
  0xa6   :  { %993 = vmatpush1.msra.mxu1 %v159_v37  ;;  %923 = vmatprep.subr.mxu0 %v156_v38  ;;  %v124_v12 = vld [vmem:[%s3568_s1 + $0x2f8] sm:$0xff]  ;;  %v123_v14 = vld [vmem:[%s3568_s1 + $0x2f0] sm:$0xff] }
  0xa7   :  { %994 = vmatprep.subr.mxu1 %v284_v39  ;;  %924 = vmatpush2.msra.mxu0 %v155_v40  ;;  %v252_v13 = vld [vmem:[%s3568_s1 + $0x6f8] sm:$0xff]  ;;  %v251_v15 = vld [vmem:[%s3568_s1 + $0x6f0] sm:$0xff] }
  0xa8   :  { %995 = vmatpush2.msra.mxu1 %v283_v42  ;;  %925 = vmatprep.subr.mxu0 %v152_v43 }
  0xa9   :  { %996 = vmatprep.subr.mxu1 %v280_v44  ;;  %926 = vmatpush2.msra.mxu0 %v151_v45 }
  0xaa   :  { %997 = vmatpush2.msra.mxu1 %v279_v46  ;;  %927 = vmatprep.subr.mxu0 %v148_v47 }
  0xab   :  { %998 = vmatprep.subr.mxu1 %v276_v48  ;;  %928 = vmatpush2.msra.mxu0 %v147_v49 }
  0xac   :  { %999 = vmatpush2.msra.mxu1 %v275_v50  ;;  %929 = vmatprep.subr.mxu0 %v144_v51 }
  0xad   :  { %1000 = vmatprep.subr.mxu1 %v272_v53  ;;  %930 = vmatpush2.msra.mxu0 %v143_v54 }
  0xae   :  { %1001 = vmatpush2.msra.mxu1 %v271_v55  ;;  %931 = vmatprep.subr.mxu0 %v140_v56 }
  0xaf   :  { %1002 = vmatprep.subr.mxu1 %v268_v57  ;;  %932 = vmatpush2.msra.mxu0 %v139_v58 }
  0xb0   :  { %1003 = vmatpush2.msra.mxu1 %v267_v59  ;;  %933 = vmatprep.subr.mxu0 %v136_v60 }
  0xb1   :  { %1004 = vmatprep.subr.mxu1 %v264_v61  ;;  %934 = vmatpush2.msra.mxu0 %v135_v63 }
  0xb2   :  { %1005 = vmatpush2.msra.mxu1 %v263_v0  ;;  %935 = vmatprep.subr.mxu0 %v132_v1 }
  0xb3   :  { %1006 = vmatprep.subr.mxu1 %v260_v2  ;;  %936 = vmatpush2.msra.mxu0 %v131_v4 }
  0xb4   :  { %1007 = vmatpush2.msra.mxu1 %v259_v5  ;;  %937 = vmatprep.subr.mxu0 %v128_v6 }
  0xb5   :  { %1008 = vmatprep.subr.mxu1 %v256_v7 }
  0xb6   :  { %12 = vsyncpa [#allocation3], 0  ;;  %938 = vmatpush2.msra.mxu0 %v127_v9  ;;  %1009 = vmatpush2.msra.mxu1 %v255_v10  ;;  %v120_v17 = vld [vmem:[%s3568_s1 + $0x2d8] sm:$0xff]  ;;  %v119_v19 = vld [vmem:[%s3568_s1 + $0x2d0] sm:$0xff]  ;;  %vm1655_vm0 = vmmov 0   ;;  %s1656_s25 = smov [#allocation2]  }
  0xb7   :  { %v248_v18 = vld [vmem:[%s3568_s1 + $0x6d8] sm:$0xff]  ;;  %939 = vmatprep.subr.mxu0 %v124_v12  ;;  %1010 = vmatprep.subr.mxu1 %v252_v13  ;;  %v247_v20 = vld [vmem:[%s3568_s1 + $0x6d0] sm:$0xff]  ;;  %s1493_s26 = sshll.u32 %s1656_s25, 4  ;;  %vm1485_vm1 = vcmask 9216   ;;  %s1494_s26 = int_to_ptr.vmem [resolvable:$true] %s1493_s26 }
  0xb8   :  { %940 = vmatpush2.msra.mxu0 %v123_v14  ;;  %1011 = vmatpush2.msra.mxu1 %v251_v15  ;;  %v116_v22 = vld [vmem:[%s3568_s1 + $0x2b8] sm:$0xff]  ;;  %v115_v24 = vld [vmem:[%s3568_s1 + $0x2b0] sm:$0xff]  ;;  %p1636_p1 = scmp.lt.s32.totalorder %s1494_s26, %s1494_s26 }
  0xb9   :  { %v244_v23 = vld [vmem:[%s3568_s1 + $0x6b8] sm:$0xff]  ;;  %941 = vmatprep.subr.mxu0 %v120_v17  ;;  %1012 = vmatprep.subr.mxu1 %v248_v18  ;;  %v243_v52 = vld [vmem:[%s3568_s1 + $0x6b0] sm:$0xff] }
  0xba   :  { %942 = vmatpush2.msra.mxu0 %v119_v19  ;;  %1013 = vmatpush2.msra.mxu1 %v247_v20  ;;  %v112_v26 = vld [vmem:[%s3568_s1 + $0x298] sm:$0xff]  ;;  %v111_v29 = vld [vmem:[%s3568_s1 + $0x290] sm:$0xff] }
  0xbb   :  { %v240_v27 = vld [vmem:[%s3568_s1 + $0x698] sm:$0xff]  ;;  %943 = vmatprep.subr.mxu0 %v116_v22  ;;  %1014 = vmatprep.subr.mxu1 %v244_v23  ;;  %v239_v30 = vld [vmem:[%s3568_s1 + $0x690] sm:$0xff] }
  0xbc   :  { %944 = vmatpush2.msra.mxu0 %v115_v24  ;;  %1015 = vmatpush2.msra.mxu1 %v243_v52  ;;  %v108_v31 = vld [vmem:[%s3568_s1 + $0x278] sm:$0xff]  ;;  %v107_v33 = vld [vmem:[%s3568_s1 + $0x270] sm:$0xff] }
  0xbd   :  { %v236_v32 = vld [vmem:[%s3568_s1 + $0x678] sm:$0xff]  ;;  %945 = vmatprep.subr.mxu0 %v112_v26  ;;  %1016 = vmatprep.subr.mxu1 %v240_v27  ;;  %v235_v34 = vld [vmem:[%s3568_s1 + $0x670] sm:$0xff] }
  0xbe   :  { %946 = vmatpush2.msra.mxu0 %v111_v29  ;;  %1017 = vmatpush2.msra.mxu1 %v239_v30  ;;  %v104_v35 = vld [vmem:[%s3568_s1 + $0x258] sm:$0xff]  ;;  %v103_v37 = vld [vmem:[%s3568_s1 + $0x250] sm:$0xff] }
  0xbf   :  { %v232_v36 = vld [vmem:[%s3568_s1 + $0x658] sm:$0xff]  ;;  %947 = vmatprep.subr.mxu0 %v108_v31  ;;  %1018 = vmatprep.subr.mxu1 %v236_v32  ;;  %v231_v38 = vld [vmem:[%s3568_s1 + $0x650] sm:$0xff] }
  0xc0   :  { %948 = vmatpush2.msra.mxu0 %v107_v33  ;;  %1019 = vmatpush2.msra.mxu1 %v235_v34  ;;  %v100_v39 = vld [vmem:[%s3568_s1 + $0x238] sm:$0xff]  ;;  %v99_v42 = vld [vmem:[%s3568_s1 + $0x230] sm:$0xff] }
  0xc1   :  { %v228_v40 = vld [vmem:[%s3568_s1 + $0x638] sm:$0xff]  ;;  %949 = vmatprep.subr.mxu0 %v104_v35  ;;  %1020 = vmatprep.subr.mxu1 %v232_v36  ;;  %v227_v43 = vld [vmem:[%s3568_s1 + $0x630] sm:$0xff] }
  0xc2   :  { %950 = vmatpush2.msra.mxu0 %v103_v37  ;;  %1021 = vmatpush2.msra.mxu1 %v231_v38  ;;  %v96_v44 = vld [vmem:[%s3568_s1 + $0x218] sm:$0xff]  ;;  %v95_v46 = vld [vmem:[%s3568_s1 + $0x210] sm:$0xff] }
  0xc3   :  { %v224_v45 = vld [vmem:[%s3568_s1 + $0x618] sm:$0xff]  ;;  %951 = vmatprep.subr.mxu0 %v100_v39  ;;  %1022 = vmatprep.subr.mxu1 %v228_v40  ;;  %v223_v47 = vld [vmem:[%s3568_s1 + $0x610] sm:$0xff] }
  0xc4   :  { %952 = vmatpush2.msra.mxu0 %v99_v42  ;;  %1023 = vmatpush2.msra.mxu1 %v227_v43  ;;  %v348_v48 = vld [vmem:[%s3568_s1 + $0x9f8] sm:$0xff]  ;;  %v347_v50 = vld [vmem:[%s3568_s1 + $0x9f0] sm:$0xff] }
  0xc5   :  { %953 = vmatprep.subr.mxu0 %v96_v44  ;;  %1024 = vmatprep.subr.mxu1 %v224_v45  ;;  %v476_v49 = vld [vmem:[%s3568_s1 + $0xdf8] sm:$0xff]  ;;  %v475_v51 = vld [vmem:[%s3568_s1 + $0xdf0] sm:$0xff] }
  0xc6   :  { %954 = vmatpush2.msra.mxu0 %v95_v46  ;;  %955 = vmatprep.mubr.f32.mxu0 %v2091_v8  ;;  %v344_v8 = vld [vmem:[%s3568_s1 + $0x9d8] sm:$0xff]  ;;  %v467_v56 = vld [vmem:[%s3568_s1 + $0xdb0] sm:$0xff] }
  0xc7   :  { %1025 = vmatpush2.msra.mxu1 %v223_v47  ;;  %956 = vmatmul.mubr.f32.vlgmr.msra.gmra.mxu0 %v2060_v62  ;;  %v472_v53 = vld [vmem:[%s3568_s1 + $0xdd8] sm:$0xff]  ;;  %v343_v62 = vld [vmem:[%s3568_s1 + $0x9d0] sm:$0xff] }
  0xc8   :  { %1026 = vmatprep.mubr.f32.mxu1 %v2101_v11  ;;  %1033 = vmatprep.subr.mxu0 %v348_v48  ;;  %v471_v11 = vld [vmem:[%s3568_s1 + $0xdd0] sm:$0xff]  ;;  %v340_v54 = vld [vmem:[%s3568_s1 + $0x9b8] sm:$0xff] }
  0xc9   :  { %1104 = vmatprep.subr.mxu1 %v476_v49  ;;  %1027 = vmatmul.mubr.f32.vlgmr.msra.gmra.mxu1 %v2075_v3  ;;  %v468_v55 = vld [vmem:[%s3568_s1 + $0xdb8] sm:$0xff]  ;;  %v339_v3 = vld [vmem:[%s3568_s1 + $0x9b0] sm:$0xff] }
  0xca   :  { %1034 = vmatpush1.msra.mxu0 %v347_v50  ;;  %1105 = vmatpush1.msra.mxu1 %v475_v51  ;;  %v336_v57 = vld [vmem:[%s3568_s1 + $0x998] sm:$0xff]  ;;  %v335_v59 = vld [vmem:[%s3568_s1 + $0x990] sm:$0xff] }
  0xcb   :  { %1035 = vmatprep.subr.mxu0 %v344_v8  ;;  %1106 = vmatprep.subr.mxu1 %v472_v53  ;;  %v464_v58 = vld [vmem:[%s3568_s1 + $0xd98] sm:$0xff]  ;;  %v463_v60 = vld [vmem:[%s3568_s1 + $0xd90] sm:$0xff] }
  0xcc   :  { %1036 = vmatpush1.msra.mxu0 %v343_v62  ;;  %1107 = vmatpush1.msra.mxu1 %v471_v11  ;;  %v332_v61 = vld [vmem:[%s3568_s1 + $0x978] sm:$0xff]  ;;  %v331_v0 = vld [vmem:[%s3568_s1 + $0x970] sm:$0xff] }
  0xcd   :  { %1037 = vmatprep.subr.mxu0 %v340_v54  ;;  %1108 = vmatprep.subr.mxu1 %v468_v55  ;;  %v460_v63 = vld [vmem:[%s3568_s1 + $0xd78] sm:$0xff]  ;;  %v459_v1 = vld [vmem:[%s3568_s1 + $0xd70] sm:$0xff] }
  0xce   :  { %1038 = vmatpush1.msra.mxu0 %v339_v3  ;;  %1109 = vmatpush1.msra.mxu1 %v467_v56  ;;  %v328_v2 = vld [vmem:[%s3568_s1 + $0x958] sm:$0xff]  ;;  %v327_v5 = vld [vmem:[%s3568_s1 + $0x950] sm:$0xff] }
  0xcf   :  { %1039 = vmatprep.subr.mxu0 %v336_v57  ;;  %1110 = vmatprep.subr.mxu1 %v464_v58  ;;  %v456_v4 = vld [vmem:[%s3568_s1 + $0xd58] sm:$0xff]  ;;  %v455_v6 = vld [vmem:[%s3568_s1 + $0xd50] sm:$0xff] }
  0xd0   :  { %1040 = vmatpush1.msra.mxu0 %v335_v59  ;;  %1111 = vmatpush1.msra.mxu1 %v463_v60  ;;  %v324_v7 = vld [vmem:[%s3568_s1 + $0x938] sm:$0xff]  ;;  %v323_v10 = vld [vmem:[%s3568_s1 + $0x930] sm:$0xff] }
  0xd1   :  { %1041 = vmatprep.subr.mxu0 %v332_v61  ;;  %1112 = vmatprep.subr.mxu1 %v460_v63  ;;  %v452_v9 = vld [vmem:[%s3568_s1 + $0xd38] sm:$0xff]  ;;  %v451_v12 = vld [vmem:[%s3568_s1 + $0xd30] sm:$0xff] }
  0xd2   :  { %1042 = vmatpush1.msra.mxu0 %v331_v0  ;;  %1113 = vmatpush1.msra.mxu1 %v459_v1  ;;  %v320_v13 = vld [vmem:[%s3568_s1 + $0x918] sm:$0xff]  ;;  %v319_v15 = vld [vmem:[%s3568_s1 + $0x910] sm:$0xff] }
  0xd3   :  { %1043 = vmatprep.subr.mxu0 %v328_v2  ;;  %1114 = vmatprep.subr.mxu1 %v456_v4  ;;  %v448_v14 = vld [vmem:[%s3568_s1 + $0xd18] sm:$0xff]  ;;  %v447_v17 = vld [vmem:[%s3568_s1 + $0xd10] sm:$0xff] }
  0xd4   :  { %1044 = vmatpush1.msra.mxu0 %v327_v5  ;;  %1115 = vmatpush1.msra.mxu1 %v455_v6  ;;  %v316_v18 = vld [vmem:[%s3568_s1 + $0x8f8] sm:$0xff]  ;;  %v315_v20 = vld [vmem:[%s3568_s1 + $0x8f0] sm:$0xff] }
  0xd5   :  { %1045 = vmatprep.subr.mxu0 %v324_v7  ;;  %1116 = vmatprep.subr.mxu1 %v452_v9  ;;  %v444_v19 = vld [vmem:[%s3568_s1 + $0xcf8] sm:$0xff]  ;;  %v443_v22 = vld [vmem:[%s3568_s1 + $0xcf0] sm:$0xff] }
  0xd6   :  { %1046 = vmatpush1.msra.mxu0 %v323_v10  ;;  %1117 = vmatpush1.msra.mxu1 %v451_v12  ;;  %v312_v23 = vld [vmem:[%s3568_s1 + $0x8d8] sm:$0xff]  ;;  %v311_v52 = vld [vmem:[%s3568_s1 + $0x8d0] sm:$0xff] }
  0xd7   :  { %1047 = vmatprep.subr.mxu0 %v320_v13  ;;  %1118 = vmatprep.subr.mxu1 %v448_v14  ;;  %v440_v24 = vld [vmem:[%s3568_s1 + $0xcd8] sm:$0xff]  ;;  %v439_v26 = vld [vmem:[%s3568_s1 + $0xcd0] sm:$0xff] }
  0xd8   :  { %1048 = vmatpush1.msra.mxu0 %v319_v15  ;;  %1119 = vmatpush1.msra.mxu1 %v447_v17  ;;  %v308_v27 = vld [vmem:[%s3568_s1 + $0x8b8] sm:$0xff]  ;;  %v307_v30 = vld [vmem:[%s3568_s1 + $0x8b0] sm:$0xff] }
  0xd9   :  { %1049 = vmatprep.subr.mxu0 %v316_v18  ;;  %1120 = vmatprep.subr.mxu1 %v444_v19  ;;  %v436_v29 = vld [vmem:[%s3568_s1 + $0xcb8] sm:$0xff]  ;;  %v435_v31 = vld [vmem:[%s3568_s1 + $0xcb0] sm:$0xff] }
  0xda   :  { %1050 = vmatpush1.msra.mxu0 %v315_v20  ;;  %1121 = vmatpush1.msra.mxu1 %v443_v22  ;;  %v304_v32 = vld [vmem:[%s3568_s1 + $0x898] sm:$0xff]  ;;  %v303_v34 = vld [vmem:[%s3568_s1 + $0x890] sm:$0xff] }
  0xdb   :  { %1051 = vmatprep.subr.mxu0 %v312_v23  ;;  %1122 = vmatprep.subr.mxu1 %v440_v24  ;;  %v432_v33 = vld [vmem:[%s3568_s1 + $0xc98] sm:$0xff]  ;;  %v431_v35 = vld [vmem:[%s3568_s1 + $0xc90] sm:$0xff] }
  0xdc   :  { %1052 = vmatpush1.msra.mxu0 %v311_v52  ;;  %1123 = vmatpush1.msra.mxu1 %v439_v26  ;;  %v300_v36 = vld [vmem:[%s3568_s1 + $0x878] sm:$0xff]  ;;  %v299_v38 = vld [vmem:[%s3568_s1 + $0x870] sm:$0xff] }
  0xdd   :  { %1053 = vmatprep.subr.mxu0 %v308_v27  ;;  %1124 = vmatprep.subr.mxu1 %v436_v29  ;;  %v428_v37 = vld [vmem:[%s3568_s1 + $0xc78] sm:$0xff]  ;;  %v427_v39 = vld [vmem:[%s3568_s1 + $0xc70] sm:$0xff] }
  0xde   :  { %1054 = vmatpush1.msra.mxu0 %v307_v30  ;;  %1125 = vmatpush1.msra.mxu1 %v435_v31  ;;  %v296_v40 = vld [vmem:[%s3568_s1 + $0x858] sm:$0xff]  ;;  %v295_v43 = vld [vmem:[%s3568_s1 + $0x850] sm:$0xff] }
  0xdf   :  { %1055 = vmatprep.subr.mxu0 %v304_v32  ;;  %1126 = vmatprep.subr.mxu1 %v432_v33  ;;  %v424_v42 = vld [vmem:[%s3568_s1 + $0xc58] sm:$0xff]  ;;  %v423_v44 = vld [vmem:[%s3568_s1 + $0xc50] sm:$0xff] }
  0xe0   :  { %1056 = vmatpush1.msra.mxu0 %v303_v34  ;;  %1127 = vmatpush1.msra.mxu1 %v431_v35  ;;  %v292_v45 = vld [vmem:[%s3568_s1 + $0x838] sm:$0xff]  ;;  %v291_v47 = vld [vmem:[%s3568_s1 + $0x830] sm:$0xff] }
  0xe1   :  { %1057 = vmatprep.subr.mxu0 %v300_v36  ;;  %1128 = vmatprep.subr.mxu1 %v428_v37  ;;  %v420_v46 = vld [vmem:[%s3568_s1 + $0xc38] sm:$0xff]  ;;  %v419_v48 = vld [vmem:[%s3568_s1 + $0xc30] sm:$0xff] }
  0xe2   :  { %1058 = vmatpush1.msra.mxu0 %v299_v38  ;;  %1129 = vmatpush1.msra.mxu1 %v427_v39  ;;  %v288_v49 = vld [vmem:[%s3568_s1 + $0x818] sm:$0xff]  ;;  %v287_v51 = vld [vmem:[%s3568_s1 + $0x810] sm:$0xff] }
  0xe3   :  { %1059 = vmatprep.subr.mxu0 %v296_v40  ;;  %1130 = vmatprep.subr.mxu1 %v424_v42  ;;  %v416_v50 = vld [vmem:[%s3568_s1 + $0xc18] sm:$0xff]  ;;  %v415_v8 = vld [vmem:[%s3568_s1 + $0xc10] sm:$0xff] }
  0xe4   :  { %1060 = vmatpush1.msra.mxu0 %v295_v43  ;;  %1131 = vmatpush1.msra.mxu1 %v423_v44  ;;  %v412_v53 = vld [vmem:[%s3568_s1 + $0xbf8] sm:$0xff]  ;;  %v411_v11 = vld [vmem:[%s3568_s1 + $0xbf0] sm:$0xff] }
  0xe5   :  { %1061 = vmatprep.subr.mxu0 %v292_v45  ;;  %1132 = vmatprep.subr.mxu1 %v420_v46  ;;  %v540_v62 = vld [vmem:[%s3568_s1 + $0xff8] sm:$0xff]  ;;  %v539_v54 = vld [vmem:[%s3568_s1 + $0xff0] sm:$0xff] }
  0xe6   :  { %1062 = vmatpush1.msra.mxu0 %v291_v47  ;;  %1133 = vmatpush1.msra.mxu1 %v419_v48  ;;  %v408_v55 = vld [vmem:[%s3568_s1 + $0xbd8] sm:$0xff]  ;;  %v407_v56 = vld [vmem:[%s3568_s1 + $0xbd0] sm:$0xff] }
  0xe7   :  { %1063 = vmatprep.subr.mxu0 %v288_v49  ;;  %1134 = vmatprep.subr.mxu1 %v416_v50  ;;  %v536_v3 = vld [vmem:[%s3568_s1 + $0xfd8] sm:$0xff]  ;;  %v535_v57 = vld [vmem:[%s3568_s1 + $0xfd0] sm:$0xff] }
  0xe8   :  { %1064 = vmatpush1.msra.mxu0 %v287_v51  ;;  %1135 = vmatpush1.msra.mxu1 %v415_v8  ;;  %v404_v58 = vld [vmem:[%s3568_s1 + $0xbb8] sm:$0xff]  ;;  %v403_v60 = vld [vmem:[%s3568_s1 + $0xbb0] sm:$0xff] }
  0xe9   :  { %1065 = vmatprep.subr.mxu0 %v412_v53  ;;  %1136 = vmatprep.subr.mxu1 %v540_v62  ;;  %v532_v59 = vld [vmem:[%s3568_s1 + $0xfb8] sm:$0xff]  ;;  %v531_v61 = vld [vmem:[%s3568_s1 + $0xfb0] sm:$0xff] }
  0xea   :  { %1066 = vmatpush2.msra.mxu0 %v411_v11  ;;  %1137 = vmatpush2.msra.mxu1 %v539_v54  ;;  %v400_v63 = vld [vmem:[%s3568_s1 + $0xb98] sm:$0xff]  ;;  %v399_v1 = vld [vmem:[%s3568_s1 + $0xb90] sm:$0xff] }
  0xeb   :  { %1067 = vmatprep.subr.mxu0 %v408_v55  ;;  %1138 = vmatprep.subr.mxu1 %v536_v3  ;;  %v528_v0 = vld [vmem:[%s3568_s1 + $0xf98] sm:$0xff]  ;;  %v527_v2 = vld [vmem:[%s3568_s1 + $0xf90] sm:$0xff] }
  0xec   :  { %1068 = vmatpush2.msra.mxu0 %v407_v56  ;;  %1139 = vmatpush2.msra.mxu1 %v535_v57  ;;  %v396_v4 = vld [vmem:[%s3568_s1 + $0xb78] sm:$0xff]  ;;  %v395_v6 = vld [vmem:[%s3568_s1 + $0xb70] sm:$0xff] }
  0xed   :  { %1069 = vmatprep.subr.mxu0 %v404_v58  ;;  %1140 = vmatprep.subr.mxu1 %v532_v59  ;;  %v524_v5 = vld [vmem:[%s3568_s1 + $0xf78] sm:$0xff]  ;;  %v523_v7 = vld [vmem:[%s3568_s1 + $0xf70] sm:$0xff]  ;;  %v1192_v59 = vld [vmem:[%s3570_s3 + $0x68] sm:$0xff] }
  0xee   :  { %1070 = vmatpush2.msra.mxu0 %v403_v60  ;;  %1141 = vmatpush2.msra.mxu1 %v531_v61  ;;  %v392_v9 = vld [vmem:[%s3568_s1 + $0xb58] sm:$0xff]  ;;  %v391_v12 = vld [vmem:[%s3568_s1 + $0xb50] sm:$0xff]  ;;  %v1207_v61 = vld [vmem:[%s3570_s3 + $0xe0] sm:$0xff] }
  0xef   :  { %1071 = vmatprep.subr.mxu0 %v400_v63  ;;  %1142 = vmatprep.subr.mxu1 %v528_v0  ;;  %v520_v10 = vld [vmem:[%s3568_s1 + $0xf58] sm:$0xff]  ;;  %v519_v13 = vld [vmem:[%s3568_s1 + $0xf50] sm:$0xff]  ;;  %v1240_v63 = vld [vmem:[%s3570_s3 + $0x1e8] sm:$0xff] }
  0xf0   :  { %1072 = vmatpush2.msra.mxu0 %v399_v1  ;;  %1143 = vmatpush2.msra.mxu1 %v527_v2  ;;  %v388_v14 = vld [vmem:[%s3568_s1 + $0xb38] sm:$0xff]  ;;  %v387_v17 = vld [vmem:[%s3568_s1 + $0xb30] sm:$0xff]  ;;  %v1191_v0 = vld [vmem:[%s3570_s3 + $0x60] sm:$0xff] }
  0xf1   :  { %1073 = vmatprep.subr.mxu0 %v396_v4  ;;  %1144 = vmatprep.subr.mxu1 %v524_v5  ;;  %v516_v15 = vld [vmem:[%s3568_s1 + $0xf38] sm:$0xff]  ;;  %v515_v18 = vld [vmem:[%s3568_s1 + $0xf30] sm:$0xff]  ;;  %v1224_v1 = vld [vmem:[%s3570_s3 + $0x168] sm:$0xff] }
  0xf2   :  { %1074 = vmatpush2.msra.mxu0 %v395_v6  ;;  %1145 = vmatpush2.msra.mxu1 %v523_v7  ;;  %v384_v19 = vld [vmem:[%s3568_s1 + $0xb18] sm:$0xff]  ;;  %v383_v22 = vld [vmem:[%s3568_s1 + $0xb10] sm:$0xff]  ;;  %v1239_v4 = vld [vmem:[%s3570_s3 + $0x1e0] sm:$0xff] }
  0xf3   :  { %1075 = vmatprep.subr.mxu0 %v392_v9  ;;  %1146 = vmatprep.subr.mxu1 %v520_v10  ;;  %v512_v20 = vld [vmem:[%s3568_s1 + $0xf18] sm:$0xff]  ;;  %v511_v23 = vld [vmem:[%s3568_s1 + $0xf10] sm:$0xff]  ;;  %v1223_v6 = vld [vmem:[%s3570_s3 + $0x160] sm:$0xff] }
  0xf4   :  { %1076 = vmatpush2.msra.mxu0 %v391_v12  ;;  %1147 = vmatpush2.msra.mxu1 %v519_v13  ;;  %v380_v24 = vld [vmem:[%s3568_s1 + $0xaf8] sm:$0xff]  ;;  %v379_v26 = vld [vmem:[%s3568_s1 + $0xaf0] sm:$0xff]  ;;  %v1204_v13 = vld [vmem:[%s3570_s3 + $0xc8] sm:$0xff] }
  0xf5   :  { %1077 = vmatprep.subr.mxu0 %v388_v14  ;;  %1148 = vmatprep.subr.mxu1 %v516_v15  ;;  %v508_v52 = vld [vmem:[%s3568_s1 + $0xef8] sm:$0xff]  ;;  %v507_v27 = vld [vmem:[%s3568_s1 + $0xef0] sm:$0xff]  ;;  %v1188_v15 = vld [vmem:[%s3570_s3 + $0x48] sm:$0xff] }
  0xf6   :  { %1078 = vmatpush2.msra.mxu0 %v387_v17  ;;  %1149 = vmatpush2.msra.mxu1 %v515_v18  ;;  %v376_v29 = vld [vmem:[%s3568_s1 + $0xad8] sm:$0xff]  ;;  %v375_v31 = vld [vmem:[%s3568_s1 + $0xad0] sm:$0xff]  ;;  %v1203_v18 = vld [vmem:[%s3570_s3 + $0xc0] sm:$0xff] }
  0xf7   :  { %1079 = vmatprep.subr.mxu0 %v384_v19  ;;  %1150 = vmatprep.subr.mxu1 %v512_v20  ;;  %v504_v30 = vld [vmem:[%s3568_s1 + $0xed8] sm:$0xff]  ;;  %v503_v32 = vld [vmem:[%s3568_s1 + $0xed0] sm:$0xff]  ;;  %v1236_v19 = vld [vmem:[%s3570_s3 + $0x1c8] sm:$0xff] }
  0xf8   :  { %1080 = vmatpush2.msra.mxu0 %v383_v22  ;;  %1151 = vmatpush2.msra.mxu1 %v511_v23  ;;  %v372_v33 = vld [vmem:[%s3568_s1 + $0xab8] sm:$0xff]  ;;  %v371_v35 = vld [vmem:[%s3568_s1 + $0xab0] sm:$0xff]  ;;  %v1187_v20 = vld [vmem:[%s3570_s3 + $0x40] sm:$0xff] }
  0xf9   :  { %1081 = vmatprep.subr.mxu0 %v380_v24  ;;  %1152 = vmatprep.subr.mxu1 %v508_v52  ;;  %v500_v34 = vld [vmem:[%s3568_s1 + $0xeb8] sm:$0xff]  ;;  %v499_v36 = vld [vmem:[%s3568_s1 + $0xeb0] sm:$0xff]  ;;  %v1220_v22 = vld [vmem:[%s3570_s3 + $0x148] sm:$0xff] }
  0xfa   :  { %1082 = vmatpush2.msra.mxu0 %v379_v26  ;;  %1153 = vmatpush2.msra.mxu1 %v507_v27  ;;  %v368_v37 = vld [vmem:[%s3568_s1 + $0xa98] sm:$0xff]  ;;  %v367_v39 = vld [vmem:[%s3568_s1 + $0xa90] sm:$0xff]  ;;  %v1235_v24 = vld [vmem:[%s3570_s3 + $0x1c0] sm:$0xff] }
  0xfb   :  { %1083 = vmatprep.subr.mxu0 %v376_v29  ;;  %1154 = vmatprep.subr.mxu1 %v504_v30  ;;  %v496_v38 = vld [vmem:[%s3568_s1 + $0xe98] sm:$0xff]  ;;  %v495_v40 = vld [vmem:[%s3568_s1 + $0xe90] sm:$0xff]  ;;  %v1219_v26 = vld [vmem:[%s3570_s3 + $0x140] sm:$0xff] }
  0xfc   :  { %1084 = vmatpush2.msra.mxu0 %v375_v31  ;;  %1155 = vmatpush2.msra.mxu1 %v503_v32  ;;  %v364_v42 = vld [vmem:[%s3568_s1 + $0xa78] sm:$0xff]  ;;  %v363_v44 = vld [vmem:[%s3568_s1 + $0xa70] sm:$0xff]  ;;  %v1200_v32 = vld [vmem:[%s3570_s3 + $0xa8] sm:$0xff] }
  0xfd   :  { %1085 = vmatprep.subr.mxu0 %v372_v33  ;;  %1156 = vmatprep.subr.mxu1 %v500_v34  ;;  %v492_v43 = vld [vmem:[%s3568_s1 + $0xe78] sm:$0xff]  ;;  %v491_v45 = vld [vmem:[%s3568_s1 + $0xe70] sm:$0xff]  ;;  %v1184_v34 = vld [vmem:[%s3570_s3 + $0x28] sm:$0xff] }
  0xfe   :  { %1086 = vmatpush2.msra.mxu0 %v371_v35  ;;  %1157 = vmatpush2.msra.mxu1 %v499_v36  ;;  %v360_v46 = vld [vmem:[%s3568_s1 + $0xa58] sm:$0xff]  ;;  %v359_v48 = vld [vmem:[%s3568_s1 + $0xa50] sm:$0xff]  ;;  %v1199_v36 = vld [vmem:[%s3570_s3 + $0xa0] sm:$0xff] }
  0xff   :  { %1087 = vmatprep.subr.mxu0 %v368_v37  ;;  %1158 = vmatprep.subr.mxu1 %v496_v38  ;;  %v488_v47 = vld [vmem:[%s3568_s1 + $0xe58] sm:$0xff]  ;;  %v487_v49 = vld [vmem:[%s3568_s1 + $0xe50] sm:$0xff]  ;;  %v1232_v37 = vld [vmem:[%s3570_s3 + $0x1a8] sm:$0xff] }
 0x100   :  { %1088 = vmatpush2.msra.mxu0 %v367_v39  ;;  %1159 = vmatpush2.msra.mxu1 %v495_v40  ;;  %v356_v50 = vld [vmem:[%s3568_s1 + $0xa38] sm:$0xff]  ;;  %v355_v8 = vld [vmem:[%s3568_s1 + $0xa30] sm:$0xff]  ;;  %v1183_v38 = vld [vmem:[%s3570_s3 + $0x20] sm:$0xff] }
 0x101   :  { %1089 = vmatprep.subr.mxu0 %v364_v42  ;;  %1160 = vmatprep.subr.mxu1 %v492_v43  ;;  %v484_v51 = vld [vmem:[%s3568_s1 + $0xe38] sm:$0xff]  ;;  %v483_v53 = vld [vmem:[%s3568_s1 + $0xe30] sm:$0xff]  ;;  %v1216_v39 = vld [vmem:[%s3570_s3 + $0x128] sm:$0xff] }
 0x102   :  { %1090 = vmatpush2.msra.mxu0 %v363_v44  ;;  %1161 = vmatpush2.msra.mxu1 %v491_v45  ;;  %v352_v62 = vld [vmem:[%s3568_s1 + $0xa18] sm:$0xff]  ;;  %v351_v54 = vld [vmem:[%s3568_s1 + $0xa10] sm:$0xff]  ;;  %v1196_v45 = vld [vmem:[%s3570_s3 + $0x88] sm:$0xff] }
 0x103   :  { %1091 = vmatprep.subr.mxu0 %v360_v46  ;;  %1162 = vmatprep.subr.mxu1 %v488_v47  ;;  %v480_v11 = vld [vmem:[%s3568_s1 + $0xe18] sm:$0xff]  ;;  %v479_v55 = vld [vmem:[%s3568_s1 + $0xe10] sm:$0xff]  ;;  %v1180_v46 = vld [vmem:[%s3570_s3 + $0x8] sm:$0xff] }
 0x104   :  { %1092 = vmatpush2.msra.mxu0 %v359_v48  ;;  %1163 = vmatpush2.msra.mxu1 %v487_v49  ;;  %v1210_v3 = vld [vmem:[%s3570_s3 + $0xf8] sm:$0xff]  ;;  %v1209_v57 = vld [vmem:[%s3570_s3 + $0xf0] sm:$0xff]  ;;  %v1195_v47 = vld [vmem:[%s3570_s3 + $0x80] sm:$0xff]  ;;  %v545_v49 = vsub.s32 0, %v2003_v41 }
 0x105   :  { %1093 = vmatprep.subr.mxu0 %v356_v50  ;;  %1164 = vmatprep.subr.mxu1 %v484_v51  ;;  %v1194_v56 = vld [vmem:[%s3570_s3 + $0x78] sm:$0xff]  ;;  %v1241_v58 = vld [vmem:[%s3570_s3 + $0x1f0] sm:$0xff]  ;;  %v1179_v48 = vld [vmem:[%s3570_s3] sm:$0xff]  ;;  %v549_v51 = vsub.s32 1, %v2003_v41 }
 0x106   :  { %1094 = vmatpush2.msra.mxu0 %v355_v8  ;;  %1165 = vmatpush2.msra.mxu1 %v483_v53  ;;  %v1225_v60 = vld [vmem:[%s3570_s3 + $0x170] sm:$0xff]  ;;  %v1206_v2 = vld [vmem:[%s3570_s3 + $0xd8] sm:$0xff]  ;;  %v3454_v50 = vld [vmem:[%s3569_s2] sm:$0xf]  ;;  %v673_v8 = vpop.f32.mrf.mxu0 }
 0x107   :  { %1095 = vmatprep.subr.mxu0 %v352_v62  ;;  %1166 = vmatprep.subr.mxu1 %v480_v11  ;;  %v1190_v5 = vld [vmem:[%s3570_s3 + $0x58] sm:$0xff]  ;;  %v1205_v7 = vld [vmem:[%s3570_s3 + $0xd0] sm:$0xff]  ;;  %v546_v53 = vrot.slane %v3454_v50, %v545_v49  ;;  %v550_v62 = vrot.slane %v3454_v50, %v549_v51  ;;  %v744_v11 = vpop.f32.mrf.mxu1 }
 0x108   :  { %1096 = vmatpush2.msra.mxu0 %v351_v54  ;;  %1097 = vmatprep.mubr.f32.mxu0 %v2496_v25  ;;  %v1193_v25 = vld [vmem:[%s3570_s3 + $0x70] sm:$0xff]  ;;  %v1238_v9 = vld [vmem:[%s3570_s3 + $0x1d8] sm:$0xff]  ;;  %v675_v54 = vpop.f32.mrf.mxu0 }
 0x109   :  { %1167 = vmatpush2.msra.mxu1 %v479_v55  ;;  %1168 = vmatprep.mubr.f32.mxu1 %v2506_v28  ;;  %v1208_v28 = vld [vmem:[%s3570_s3 + $0xe8] sm:$0xff]  ;;  %v1189_v10 = vld [vmem:[%s3570_s3 + $0x50] sm:$0xff]  ;;  %v1222_v12 = vld [vmem:[%s3570_s3 + $0x158] sm:$0xff]  ;;  %v674_v55 = vadd.f32 %v673_v8, %v546_v53 }
 0x10a   :  { %1098 = vmatmul.mubr.f32.vlgmr.msra.gmra.mxu0 %v2465_v16  ;;  %1169 = vmatmul.mubr.f32.vlgmr.msra.gmra.mxu1 %v2480_v21  ;;  %v1242_v16 = vld [vmem:[%s3570_s3 + $0x1f8] sm:$0xff]  ;;  %v1237_v14 = vld [vmem:[%s3570_s3 + $0x1d0] sm:$0xff] }
 0x10b   :  { %1503 = vmatprep.subr.mxu0 %v1210_v3  ;;  %v1226_v21 = vld [vmem:[%s3570_s3 + $0x178] sm:$0xff]  ;;  %1538 = vmatprep.subr.mxu1 %v1242_v16  ;;  %v1221_v17 = vld [vmem:[%s3570_s3 + $0x150] sm:$0xff]  ;;  %v676_v3 = vadd.f32 %v675_v54, %v550_v62  ;;  %v1391_v54 = vld [vmem:[%s3572_s5] sm:$0xff] }
 0x10c   :  { %1504 = vmatpush3.msra.mxu0 %v1194_v56  ;;  %1539 = vmatpush3.msra.mxu1 %v1226_v21  ;;  %v1202_v23 = vld [vmem:[%s3570_s3 + $0xb8] sm:$0xff]  ;;  %v1201_v27 = vld [vmem:[%s3570_s3 + $0xb0] sm:$0xff]  ;;  %v746_v56 = vpop.f32.mrf.mxu1 }
 0x10d   :  { %1505 = vmatprep.subr.mxu0 %v1209_v57  ;;  %1540 = vmatprep.subr.mxu1 %v1241_v58  ;;  %v1186_v52 = vld [vmem:[%s3570_s3 + $0x38] sm:$0xff]  ;;  %v1185_v30 = vld [vmem:[%s3570_s3 + $0x30] sm:$0xff]  ;;  %v745_v57 = vadd.f32 %v744_v11, %v674_v55  ;;  %v1392_v11 = vld [vmem:[%s3572_s5 + $0x8] sm:$0xff] }
 0x10e   :  { %1506 = vmatpush3.msra.mxu0 %v1193_v25  ;;  %1541 = vmatpush3.msra.mxu1 %v1225_v60  ;;  %v1234_v29 = vld [vmem:[%s3570_s3 + $0x1b8] sm:$0xff]  ;;  %v1233_v33 = vld [vmem:[%s3570_s3 + $0x1b0] sm:$0xff] }
 0x10f   :  { %1507 = vmatprep.subr.mxu0 %v1208_v28  ;;  %1542 = vmatprep.subr.mxu1 %v1240_v63  ;;  %v1218_v31 = vld [vmem:[%s3570_s3 + $0x138] sm:$0xff]  ;;  %v1217_v35 = vld [vmem:[%s3570_s3 + $0x130] sm:$0xff]  ;;  %v747_v28 = vadd.f32 %v746_v56, %v676_v3  ;;  %v1231_v63 = vld [vmem:[%s3570_s3 + $0x1a0] sm:$0xff] }
 0x110   :  { %1508 = vmatpush3.msra.mxu0 %v1192_v59  ;;  %1543 = vmatpush3.msra.mxu1 %v1224_v1  ;;  %v1198_v40 = vld [vmem:[%s3570_s3 + $0x98] sm:$0xff]  ;;  %v1197_v43 = vld [vmem:[%s3570_s3 + $0x90] sm:$0xff]  ;;  %v1215_v1 = vld [vmem:[%s3570_s3 + $0x120] sm:$0xff] }
 0x111   :  { %1509 = vmatprep.subr.mxu0 %v1207_v61  ;;  %1544 = vmatprep.subr.mxu1 %v1239_v4  ;;  %v1182_v42 = vld [vmem:[%s3570_s3 + $0x18] sm:$0xff]  ;;  %v1181_v44 = vld [vmem:[%s3570_s3 + $0x10] sm:$0xff] }
 0x112   :  { %1510 = vmatpush3.msra.mxu0 %v1191_v0  ;;  %1545 = vmatpush3.msra.mxu1 %v1223_v6  ;;  %v1394_v53 = vld [vmem:[%s3572_s5 + $0x18] sm:$0xff]  ;;  %v1393_v62 = vld [vmem:[%s3572_s5 + $0x10] sm:$0xff] }
 0x113   :  { %1511 = vmatprep.subr.mxu0 %v1206_v2  ;;  %1546 = vmatprep.subr.mxu1 %v1238_v9  ;;  %v1230_v2 = vld [vmem:[%s3570_s3 + $0x198] sm:$0xff]  ;;  %v1213_v9 = vld [vmem:[%s3570_s3 + $0x110] sm:$0xff] }
 0x114   :  { %1512 = vmatpush3.msra.mxu0 %v1190_v5  ;;  %1547 = vmatpush3.msra.mxu1 %v1222_v12  ;;  %v1214_v5 = vld [vmem:[%s3570_s3 + $0x118] sm:$0xff]  ;;  %v1212_v12 = vld [vmem:[%s3570_s3 + $0x108] sm:$0xff] }
 0x115   :  { %1513 = vmatprep.subr.mxu0 %v1205_v7  ;;  %1548 = vmatprep.subr.mxu1 %v1237_v14  ;;  %v1229_v7 = vld [vmem:[%s3570_s3 + $0x190] sm:$0xff]  ;;  %v1211_v14 = vld [vmem:[%s3570_s3 + $0x100] sm:$0xff] }
 0x116   :  { %1514 = vmatpush3.msra.mxu0 %v1189_v10  ;;  %1549 = vmatpush3.msra.mxu1 %v1221_v17  ;;  %v1228_v10 = vld [vmem:[%s3570_s3 + $0x188] sm:$0xff]  ;;  %v1654_v17 = vmov 0.0  }
 0x117   :  { %1515 = vmatprep.subr.mxu0 %v1204_v13  ;;  %1550 = vmatprep.subr.mxu1 %v1236_v19  ;;  %v1227_v13 = vld [vmem:[%s3570_s3 + $0x180] sm:$0xff]  ;;  %v1404_v19 = vld [vmem:[%s3572_s5 + $0x68] sm:$0xff] }
 0x118   :  { %1516 = vmatpush3.msra.mxu0 %v1188_v15  ;;  %1551 = vmatpush3.msra.mxu1 %v1220_v22  ;;  %v1406_v15 = vld [vmem:[%s3572_s5 + $0x78] sm:$0xff] }
 0x119   :  { %1517 = vmatprep.subr.mxu0 %v1203_v18  ;;  %1552 = vmatprep.subr.mxu1 %v1235_v24  ;;  %v1405_v18 = vld [vmem:[%s3572_s5 + $0x70] sm:$0xff]  ;;  %v1402_v22 = vld [vmem:[%s3572_s5 + $0x58] sm:$0xff]  ;;  %v1400_v24 = vld [vmem:[%s3572_s5 + $0x48] sm:$0xff] }
 0x11a   :  { %1518 = vmatpush3.msra.mxu0 %v1187_v20  ;;  %1553 = vmatpush3.msra.mxu1 %v1219_v26  ;;  %v1403_v20 = vld [vmem:[%s3572_s5 + $0x60] sm:$0xff]  ;;  %v1398_v26 = vld [vmem:[%s3572_s5 + $0x38] sm:$0xff] }
 0x11b   :  { %1519 = vmatprep.subr.mxu0 %v1202_v23  ;;  %1554 = vmatprep.subr.mxu1 %v1234_v29  ;;  %v1401_v23 = vld [vmem:[%s3572_s5 + $0x50] sm:$0xff]  ;;  %v1396_v29 = vld [vmem:[%s3572_s5 + $0x28] sm:$0xff] }
 0x11c   :  { %1520 = vmatpush3.msra.mxu0 %v1186_v52  ;;  %1555 = vmatpush3.msra.mxu1 %v1218_v31  ;;  %v1399_v52 = vld [vmem:[%s3572_s5 + $0x40] sm:$0xff]  ;;  %v557_v31 = vsub.s32 3, %v2003_v41 }
 0x11d   :  { %1521 = vmatprep.subr.mxu0 %v1201_v27  ;;  %1556 = vmatprep.subr.mxu1 %v1233_v33  ;;  %v1397_v27 = vld [vmem:[%s3572_s5 + $0x30] sm:$0xff] }
 0x11e   :  { %1522 = vmatpush3.msra.mxu0 %v1185_v30  ;;  %1557 = vmatpush3.msra.mxu1 %v1217_v35  ;;  %v553_v30 = vsub.s32 2, %v2003_v41 }
 0x11f   :  { %1523 = vmatprep.subr.mxu0 %v1200_v32  ;;  %1558 = vmatprep.subr.mxu1 %v1232_v37 }
 0x120   :  { %1524 = vmatpush3.msra.mxu0 %v1184_v34  ;;  %1559 = vmatpush3.msra.mxu1 %v1216_v39  ;;  %v554_v33 = vrot.slane %v3454_v50, %v553_v30  ;;  %v558_v34 = vrot.slane %v3454_v50, %v557_v31  ;;  %v1395_v50 = vld [vmem:[%s3572_s5 + $0x20] sm:$0xff] }
 0x121   :  { %1525 = vmatprep.subr.mxu0 %v1199_v36  ;;  %1560 = vmatprep.subr.mxu1 %v1231_v63 }
 0x122   :  { %1526 = vmatpush3.msra.mxu0 %v1183_v38  ;;  %1561 = vmatpush3.msra.mxu1 %v1215_v1 }
 0x123   :  { %1527 = vmatprep.subr.mxu0 %v1198_v40  ;;  %1562 = vmatprep.subr.mxu1 %v1230_v2 }
 0x124   :  { %1528 = vmatpush3.msra.mxu0 %v1182_v42  ;;  %1563 = vmatpush3.msra.mxu1 %v1214_v5 }
 0x125   :  { %1529 = vmatprep.subr.mxu0 %v1197_v43  ;;  %1564 = vmatprep.subr.mxu1 %v1229_v7 }
 0x126   :  { %1530 = vmatpush3.msra.mxu0 %v1181_v44  ;;  %1565 = vmatpush3.msra.mxu1 %v1213_v9 }
 0x127   :  { %1531 = vmatprep.subr.mxu0 %v1196_v45  ;;  %1566 = vmatprep.subr.mxu1 %v1228_v10 }
 0x128   :  { %1532 = vmatpush3.msra.mxu0 %v1180_v46  ;;  %1567 = vmatpush3.msra.mxu1 %v1212_v12 }
 0x129   :  { %1533 = vmatprep.subr.mxu0 %v1195_v47  ;;  %1568 = vmatprep.subr.mxu1 %v1227_v13 }
 0x12a   :  { %1534 = vmatpush3.msra.mxu0 %v1179_v48  ;;  %1569 = vmatpush3.msra.mxu1 %v1211_v14 }
 0x12b   :  { %1590 = vmatprep.subr.mxu0 %v1654_v17 }
 0x145   :  { %v815_v25 = vpop.f32.mrf.mxu0 }
 0x146   :  { %v816_v16 = vadd.f32 %v815_v25, %v745_v57  ;;  %v1501_v57 = vld [vmem:[%s3571_s4] ss:$0 sm:$0xff]  ;;  %s1631_s4 = scalar_lea.vmem %s1494_s26, 32 }
 0x147   :  { %v886_v21 = vpop.f32.mrf.mxu1  ;;  %v817_v58 = vpop.f32.mrf.mxu0  ;;  %p1632_p0 = scmp.ne.s32.totalorder %s1494_s26, %s1631_s4  ;;  %p1637_p2 = scmp.lt.s32.totalorder %s1631_s4, %s1631_s4 }
 0x148   :  { %v818_v59 = vadd.f32 %v817_v58, %v747_v28  ;;  %v887_v60 = vadd.f32 %v886_v21, %v816_v16 }
 0x149   :  { %v888_v61 = vpop.f32.mrf.mxu1  ;;  %p1638_p3 = por %p1637_p2, %p1636_p1 }
 0x14a   :  { %v889_v0 = vadd.f32 %v888_v61, %v818_v59  ;;  %v1175_v6 = vmax.f32 %v887_v60, 0.0  ;;  %v1502_v60 = vld [vmem:[%s3573_s6] ss:$0 sm:$0xff] }
 0x14b   :  { %p1639_p4 = pnand %p1638_p3, %p1632_p0 }
 0x14c   :  { %v1176_v4 = vmax.f32 %v889_v0, 0.0 }
 0x14e   :  { %1314 = vmatprep.mubr.f32.mxu0 %v1176_v4 }
 0x14f   :  { %1315 = vmatmul.mubr.f32.vlgmr.msra.gmra.mxu0 %v1175_v6 }
 0x150   :  { %1591 = vmatpush3.msra.mxu0 %v1406_v15  ;;  %1622 = vmatprep.mubr.msk.f32.mxu0 %vm1655_vm0, %v1654_v17 }
 0x151   :  { %1592 = vmatprep.subr.mxu0 %v1654_v17 }
 0x152   :  { %1593 = vmatpush3.msra.mxu0 %v1405_v18 }
 0x153   :  { %1594 = vmatprep.subr.mxu0 %v1654_v17 }
 0x154   :  { %1595 = vmatpush3.msra.mxu0 %v1404_v19 }
 0x155   :  { %1596 = vmatprep.subr.mxu0 %v1654_v17 }
 0x156   :  { %1597 = vmatpush3.msra.mxu0 %v1403_v20 }
 0x157   :  { %1598 = vmatprep.subr.mxu0 %v1654_v17 }
 0x158   :  { %1599 = vmatpush3.msra.mxu0 %v1402_v22 }
 0x159   :  { %1600 = vmatprep.subr.mxu0 %v1654_v17 }
 0x15a   :  { %1601 = vmatpush3.msra.mxu0 %v1401_v23 }
 0x15b   :  { %1602 = vmatprep.subr.mxu0 %v1654_v17 }
 0x15c   :  { %1603 = vmatpush3.msra.mxu0 %v1400_v24 }
 0x15d   :  { %1604 = vmatprep.subr.mxu0 %v1654_v17 }
 0x15e   :  { %1605 = vmatpush3.msra.mxu0 %v1399_v52 }
 0x15f   :  { %1606 = vmatprep.subr.mxu0 %v1654_v17 }
 0x160   :  { %1607 = vmatpush3.msra.mxu0 %v1398_v26 }
 0x161   :  { %1608 = vmatprep.subr.mxu0 %v1654_v17 }
 0x162   :  { %1609 = vmatpush3.msra.mxu0 %v1397_v27 }
 0x163   :  { %1610 = vmatprep.subr.mxu0 %v1654_v17 }
 0x164   :  { %1611 = vmatpush3.msra.mxu0 %v1396_v29 }
 0x165   :  { %1612 = vmatprep.subr.mxu0 %v1654_v17 }
 0x166   :  { %1613 = vmatpush3.msra.mxu0 %v1395_v50 }
 0x167   :  { %1614 = vmatprep.subr.mxu0 %v1654_v17 }
 0x168   :  { %1615 = vmatpush3.msra.mxu0 %v1394_v53 }
 0x169   :  { %1616 = vmatprep.subr.mxu0 %v1654_v17 }
 0x16a   :  { %1617 = vmatpush3.msra.mxu0 %v1393_v62 }
 0x16b   :  { %1618 = vmatprep.subr.mxu0 %v1654_v17 }
 0x16c   :  { %1619 = vmatpush3.msra.mxu0 %v1392_v11 }
 0x16d   :  { %1620 = vmatprep.subr.mxu0 %v1654_v17 }
 0x16e   :  { %1621 = vmatpush3.msra.mxu0 %v1391_v54 }
 0x187   :  { %v957_v32 = vpop.f32.mrf.mxu0 }
 0x188   :  { %v958_v37 = vadd.f32 %v957_v32, %v554_v33 }
 0x189   :  { %v1028_v35 = vpop.f32.mrf.mxu1  ;;  %v959_v36 = vpop.f32.mrf.mxu0 }
 0x18a   :  { %v960_v38 = vadd.f32 %v959_v36, %v558_v34  ;;  %v1029_v40 = vadd.f32 %v1028_v35, %v958_v37 }
 0x18b   :  { %v1030_v39 = vpop.f32.mrf.mxu1 }
 0x18c   :  { %v1031_v44 = vadd.f32 %v1030_v39, %v960_v38 }
 0x1ca   :  { %v1099_v42 = vpop.f32.mrf.mxu0  ;;  %v1170_v43 = vpop.f32.mrf.mxu1 }
 0x1cb   :  { %v1100_v45 = vadd.f32 %v1099_v42, %v1029_v40 }
 0x1cc   :  { %v1101_v46 = vpop.f32.mrf.mxu0  ;;  %v1172_v49 = vpop.f32.mrf.mxu1 }
 0x1cd   :  { %v1102_v47 = vadd.f32 %v1101_v46, %v1031_v44  ;;  %v1171_v48 = vadd.f32 %v1170_v43, %v1100_v45 }
 0x1cf   :  { %v1173_v41 = vadd.f32 %v1172_v49, %v1102_v47  ;;  %v1177_v8 = vmax.f32 %v1171_v48, 0.0 }
 0x1d1   :  { %v1178_v51 = vmax.f32 %v1173_v41, 0.0 }
 0x1d3   :  { %1384 = vmatprep.mubr.f32.mxu1 %v1178_v51 }
 0x1d4   :  { %1385 = vmatmul.mubr.f32.vlgmr.msra.gmra.mxu1 %v1177_v8 }
 0x20f   :  { %v1535_v55 = vpop.f32.mrf.mxu0 }
 0x211   :  { %v1536_v3 = vpop.f32.mrf.mxu0 }
 0x212   :  { %v1537_v56 = vadd.f32 %v1536_v3, %v1535_v55 }
 0x214   :  { %v1317_v16 = vadd.f32 %v1537_v56, %v1501_v57 }
 0x294   :  { %v1570_v25 = vpop.f32.mrf.mxu1 }
 0x296   :  { %v1571_v28 = vpop.f32.mrf.mxu1 }
 0x297   :  { %v1572_v21 = vadd.f32 %v1571_v28, %v1570_v25 }
 0x299   :  { %v1387_v58 = vadd.f32 %v1572_v21, %v1317_v16 }
 0x29b   :  { %v1390_v59 = vmax.f32 %v1387_v58, 0.0 }
 0x29d   :  { %1623 = vmatmul.mubr.f32.vlgmr.msra.gmra.mxu0 %v1390_v59 }
 0x35d   :  { %v1480_v61 = vpop.f32.mrf.mxu0 }
 0x35e   :  { %v1481_v63 = vadd.f32 %v1502_v60, %v1480_v61 }
 0x35f   :  { %v1624_v0 = vpop.f32.mrf.mxu0 }
 0x360   :  { %v1484_v1 = vmax.f32 %v1481_v63, 0.0 }
 0x362   :  { %1486 = vst.msk [vmem:[#allocation2] sm:$0x3] %vm1485_vm1, %v1484_v1 }
 0x363   :  { %1642 = shalt.err (!%p1639_p4)
}
 0x364   :  { %1496 = dma.vmem_to_hbm [thread:$0]  %s1494_s26, 32, %s3574_s7, [#allocation3]  }
 0x365   :  { %1651 = dma.done.wait [#allocation3], 32  }
 0x366   :  { %1652 = vsyncadd [#allocation3], 4294967264 }
 0x367   :  { %1500 = vsyncpa [#allocation3], 1 }

// kernel: dnn_forward.2
= control target key start
LH: loop header
LB: loop body
LE: loop exit
PB: predicated region body
PF: predicated region fallthrough
CT: control target
= control target key end

     0   :  { %8 = vsyncpa [#allocation3], 0  ;;  %s21087_s0 = inlined_call_operand.vmem [shape: f32[2,150528], index: 0, kind: input, shape index: {}]   ;;  %s21088_s1 = inlined_call_operand.hbm [shape: bf16[150528,1024], index: 1, kind: input, shape index: {}]   ;;  %s21089_s2 = inlined_call_operand.vmem [shape: f32[1,1024], index: 2, kind: input, shape index: {}]   ;;  %s21090_s3 = inlined_call_operand.vmem [shape: f32[2,1024], index: 3, kind: output, shape index: {}]  }
   0x1   :  { %10 = vsyncpa [#allocation3 + $0x1], 0  ;;  %s18566_s12 = smov 0   ;;  %s18568_s13 = smov 0  }
   0x2   :  { %s18570_s14 = smov 0   ;;  %s18572_s15 = smov 0  }
   0x3   :  { %s18574_s16 = smov 0   ;;  %s18576_s17 = smov 0  }
   0x4   :  { %s18578_s18 = smov 0   ;;  %s18580_s19 = smov 0  }
   0x5 LB: > { %s13855_s20 = sadd.s32 4294967295, %s18538_s19   ;;  %s25_s21 = sadd.s32 1, %s18530_s17  ;;  %s18538_s19 = sphi %s18580_s19, %s16_s19   ;;  %s18534_s18 = sphi %s18578_s18, %s21143_s18   ;;  %s18530_s17 = sphi %s18576_s17, %s21142_s17   ;;  %s18526_s16 = sphi %s18574_s16, %s21141_s16   ;;  %s18522_s15 = sphi %s18572_s15, %s21140_s15   ;;  %s18518_s14 = sphi %s18570_s14, %s21139_s14   ;;  %s18514_s13 = sphi %s18568_s13, %s21138_s13   ;;  %s18510_s12 = sphi %s18566_s12, %s21137_s12  }
   0x6   : > { %p26_p0 = scmp.ge.s32.totalorder %s25_s21, 21  ;;  %s28_s22 = sadd.s32 1, %s18534_s18 }
   0x7   : > { %s63_s23 = sadd.s32 1, %s18518_s14  ;;  %p70_p1 = scmp.ne.s32.totalorder %s18518_s14, %s18514_s13 }
   0x8   : > { %s21145_s21 = smov (%p26_p0, %s25_s21), 0  ;;  %s21147_s22 = smov (!%p26_p0, %s28_s22), %s18534_s18 }
   0x9   : > { %s58_s24 = ssub.s32 %s18530_s17, %s21145_s21  ;;  %p71_p2 = scmp.eq.s32.totalorder %s18538_s19, 0 }
   0xa   : > { %p30_p3 = scmp.ge.s32.totalorder %s21147_s22, 2  ;;  %p76_p4 = scmp.ne.s32.totalorder %s18514_s13, %s18510_s12 }
   0xb   : > { %p18617_p5 = por %p71_p2, %p70_p1  ;;  %p77_p6 = scmp.eq.s32.totalorder %s13855_s20, 0 }
   0xc   : > { %s21149_s22 = smov (%p30_p3, %s21147_s22), 0  ;;  %p15672_p8 = scmp.lt.s32.totalorder %s18538_s19, 42 }
   0xd   : > { %p18623_p7 = por %p77_p6, %p76_p4  ;;  %s59_s27 = ssub.s32 %s18534_s18, %s21149_s22 }
   0xe   : > { %s60_s28 = sor.u32 %s59_s27, %s58_s24  ;;  %s161_s29 = sand.u32 1, %s18518_s14  }
   0xf   : > { %p61_p9 = scmp.eq.s32.totalorder %s60_s28, 0  ;;  %s15664_s30 = smul.u32 14336, %s161_s29 }
  0x10   : > { %s13859_s4 = sshll.u32 %s18534_s18, 2  ;;  %s15663_s6 = smul.u32 7168, %s18530_s17 }
  0x11   : > { %s18633_s5 = scalar_select %p61_p9, %s18518_s14, %s63_s23  }
  0x12   : > { %s165_s7 = scalar_lea.vmem [#allocation2], %s15664_s30  ;;  %p18638_p10 = pnand %p15672_p8, %p18617_p5 }
  0x13   : > { %s175_s8 = sshll.u32 %s165_s7, 4  ;;  %s172_s10 = sadd.s32 %s15663_s6, %s13859_s4  ;;  %s176_s8 = int_to_ptr.vmem [resolvable:$true] %s175_s8 }
  0x14   : > { %s13861_s11 = sshll.u32 %s172_s10, 6  ;;  %s162_s27 = scalar_lea.sflag [#allocation3], %s161_s29 }
  0x15   : > { %s174_s24 = scalar_lea.hbm %s21088_s1, %s13861_s11  ;;  %p18446_p11 = pneg %p18638_p10 }
  0x16   : > { %s18457_s23 = scalar_lea.vmem %s176_s8, 229376  ;;  %s18540_s25 = smov [#allocation2]  }
  0x17   : > { %p18458_p12 = scmp.ne.s32.totalorder %s176_s8, %s18457_s23  ;;  %s18462_s28 = sshll.u32 %s18540_s25, 4  ;;  %s18463_s28 = int_to_ptr.vmem [resolvable:$false] %s18462_s28 }
  0x18   : > { %s18464_s30 = scalar_lea.vmem %s18463_s28, 458752  ;;  %p18465_p1 = scmp.lt.s32.totalorder %s176_s8, %s18463_s28 }
  0x19   : > { %p18460_p13 = pnand %p18458_p12, %p18446_p11  ;;  %p18466_p2 = scmp.lt.s32.totalorder %s18464_s30, %s18457_s23 }
  0x1b   : > { %p18461_p0 = pneg %p18460_p13  ;;  %p18467_p3 = por %p18466_p2, %p18465_p1 }
  0x1d   : > { %p18468_p4 = pnand %p18467_p3, %p18461_p0 }
  0x1f   : > { %18471 = shalt.err (!%p18468_p4)
}
  0x20   : > { %s18541_s4 = smov 512   ;;  %s18542_s29 = smov 256  }
  0x21   : > { %s18543_s6 = smov 16   ;;  %p13862_p5 = scmp.ge.s32.totalorder %s18538_s19, 1 }
  0x22   : > { %15671 = dma.hbm_to_vmem [thread:$0]  (!%p18638_p10), %s174_s24, 229376, %s176_s8, %s162_s27, %s18541_s4, %s18542_s29, %s18543_s6  }
  0x23   : > { %p191_p6 = scmp.lt.s32.totalorder %s18538_s19, 43 }
  0x25   : > { %p192_p8 = pnand %p13862_p5, %p191_p6 }
  0x27   : > { %195 = sbr.rel (%p192_p8) target bundleno = 2077 (0x81d), region = 32 }
  0x2c   : > { %s197_s7 = sand.u32 1, %s18514_s13  }
  0x2d   : > { %s15665_s10 = smul.u32 14336, %s197_s7  ;;  %s198_s11 = scalar_lea.sflag [#allocation3], %s197_s7 }
  0x2f   : > { %s18652_s12 = scalar_lea.vmem [#allocation2], %s15665_s10 }
  0x30   : > { %18505 = dma.done.wait (%p18623_p7), %s198_s11, 229376  }
  0x31   : > { %18507 = vsyncadd (%p18623_p7), %s198_s11, 4294737920  ;;  %s233_s9 = smul.u32 56, %s18522_s15  ;;  %s13864_s8 = sshll.u32 %s18526_s16, 2 }
  0x32   : > { %p242_p9 = scmp.lt.s32.totalorder %s13864_s8, 7  ;;  %p13867_p7 = scmp.ne.s32.totalorder %s18522_s15, 0 }
  0x33   : > { %p234_p10 = scmp.lt.s32.totalorder %s233_s9, 1175 }
  0x34   : > { %s21151_s8 = smov (!%p242_p9, %s13864_s8), 7  ;;  %255 = sbr.rel (%p13867_p7) target bundleno = 59 (0x3b), region = 40 }
  0x35   : > { %s21153_s9 = smov (!%p234_p10, %s233_s9), 1175  ;;  %s244_s27 = scalar_lea.vmem %s21089_s2, %s21151_s8 }
  0x36   : > { %s13866_s23 = sshll.u32 %s21151_s8, 1  ;;  %s13863_s25 = sshll.u32 %s21153_s9, 1 }
  0x37   : > { %s18670_s30 = scalar_lea.vmem %s21090_s3, %s13866_s23  ;;  %s18675_s29 = scalar_lea.vmem %s21087_s0, %s13863_s25 }
  0x39   : > { %v18544_v0 = vmov 0.0  }
  0x3a   : > { %256 = vst [vmem:[%s18670_s30] sm:$0xff] %v18544_v0 }
  0x3b PF: > { %v15742_v1 = vld [vmem:[%s18652_s12 + $0xe4] ss:$16 sps:$4 sm:$0xff]   ;;  %v15746_v3 = vld [vmem:[%s18652_s12 + $0xe0] ss:$16 sps:$4 sm:$0xff]   ;;  %v18545_v37 = vmov 1983009808   ;;  %v290_v39 = vlaneseq }
  0x3c   : > { %v15744_v2 = vld [vmem:[%s18652_s12 + $0x2e4] ss:$16 sps:$4 sm:$0xff]   ;;  %11388 = vmatprep.subr.bf16.mxu0 %v15742_v1  ;;  %v15747_v4 = vld [vmem:[%s18652_s12 + $0x2e0] ss:$16 sps:$4 sm:$0xff]   ;;  %v288_v38 = vunpack.c.l.s4 %v18545_v37  ;;  %p15660_p11 = scmp.ne.s32.totalorder %s18522_s15, 20 }
  0x3d   : > { %11429 = vmatprep.subr.bf16.mxu1 %v15744_v2  ;;  %v15748_v5 = vld [vmem:[%s18652_s12 + $0xc4] ss:$16 sps:$4 sm:$0xff]   ;;  %11389 = vmatpush1.bf16.msra.mxu0 %v15746_v3  ;;  %v15752_v7 = vld [vmem:[%s18652_s12 + $0xc0] ss:$16 sps:$4 sm:$0xff]   ;;  %v18718_v44 = vshrl.u32 %v290_v39, 7 }
  0x3e   : > { %11430 = vmatpush1.bf16.msra.mxu1 %v15747_v4  ;;  %v15750_v6 = vld [vmem:[%s18652_s12 + $0x2c4] ss:$16 sps:$4 sm:$0xff]   ;;  %11390 = vmatprep.subr.bf16.mxu0 %v15748_v5  ;;  %v15753_v8 = vld [vmem:[%s18652_s12 + $0x2c0] ss:$16 sps:$4 sm:$0xff]   ;;  %v289_v43 = vunpack.c.0.s8 %v288_v38 }
  0x3f   : > { %11431 = vmatprep.subr.bf16.mxu1 %v15750_v6  ;;  %v15754_v9 = vld [vmem:[%s18652_s12 + $0xa4] ss:$16 sps:$4 sm:$0xff]   ;;  %v15758_v11 = vld [vmem:[%s18652_s12 + $0xa0] ss:$16 sps:$4 sm:$0xff]   ;;  %21110 = vst [vmem:[#allocation5_spill] sm:$0xff] %v18718_v44 }
  0x40   : > { %v15756_v10 = vld [vmem:[%s18652_s12 + $0x2a4] ss:$16 sps:$4 sm:$0xff]   ;;  %v15759_v12 = vld [vmem:[%s18652_s12 + $0x2a0] ss:$16 sps:$4 sm:$0xff]   ;;  %v18726_v50 = vsub.s32 %v289_v43, %v18718_v44  ;;  %v259_v43 = vld [vmem:[%s18675_s29 + $0x8] sm:$0xff] }
  0x41   : > { %11391 = vmatpush1.bf16.msra.mxu0 %v15752_v7  ;;  %v15760_v13 = vld [vmem:[%s18652_s12 + $0x84] ss:$16 sps:$4 sm:$0xff]   ;;  %v15764_v15 = vld [vmem:[%s18652_s12 + $0x80] ss:$16 sps:$4 sm:$0xff]  }
  0x42   : > { %11432 = vmatpush1.bf16.msra.mxu1 %v15753_v8  ;;  %11392 = vmatprep.subr.bf16.mxu0 %v15754_v9  ;;  %v15762_v14 = vld [vmem:[%s18652_s12 + $0x284] ss:$16 sps:$4 sm:$0xff]   ;;  %v15765_v16 = vld [vmem:[%s18652_s12 + $0x280] ss:$16 sps:$4 sm:$0xff]   ;;  %21111 = vst [vmem:[#allocation6_spill] sm:$0xff] %v18726_v50 }
  0x43   : > { %11433 = vmatprep.subr.bf16.mxu1 %v15756_v10  ;;  %v15766_v17 = vld [vmem:[%s18652_s12 + $0x64] ss:$16 sps:$4 sm:$0xff]   ;;  %v15770_v19 = vld [vmem:[%s18652_s12 + $0x60] ss:$16 sps:$4 sm:$0xff]  }
  0x44   : > { %v15768_v18 = vld [vmem:[%s18652_s12 + $0x264] ss:$16 sps:$4 sm:$0xff]   ;;  %v15771_v20 = vld [vmem:[%s18652_s12 + $0x260] ss:$16 sps:$4 sm:$0xff]  }
  0x45   : > { %11393 = vmatpush1.bf16.msra.mxu0 %v15758_v11  ;;  %v15772_v21 = vld [vmem:[%s18652_s12 + $0x44] ss:$16 sps:$4 sm:$0xff]   ;;  %v15776_v23 = vld [vmem:[%s18652_s12 + $0x40] ss:$16 sps:$4 sm:$0xff]  }
  0x46   : > { %11434 = vmatpush1.bf16.msra.mxu1 %v15759_v12  ;;  %11394 = vmatprep.subr.bf16.mxu0 %v15760_v13  ;;  %v15774_v22 = vld [vmem:[%s18652_s12 + $0x244] ss:$16 sps:$4 sm:$0xff]   ;;  %v15777_v24 = vld [vmem:[%s18652_s12 + $0x240] ss:$16 sps:$4 sm:$0xff]  }
  0x47   : > { %11435 = vmatprep.subr.bf16.mxu1 %v15762_v14  ;;  %v15778_v25 = vld [vmem:[%s18652_s12 + $0x24] ss:$16 sps:$4 sm:$0xff]   ;;  %v15782_v27 = vld [vmem:[%s18652_s12 + $0x20] ss:$16 sps:$4 sm:$0xff]  }
  0x48   : > { %v15780_v26 = vld [vmem:[%s18652_s12 + $0x224] ss:$16 sps:$4 sm:$0xff]   ;;  %v15783_v28 = vld [vmem:[%s18652_s12 + $0x220] ss:$16 sps:$4 sm:$0xff]  }
  0x49   : > { %11395 = vmatpush1.bf16.msra.mxu0 %v15764_v15  ;;  %v15784_v29 = vld [vmem:[%s18652_s12 + $0x4] ss:$16 sps:$4 sm:$0xff]   ;;  %v15788_v31 = vld [vmem:[%s18652_s12] ss:$16 sps:$4 sm:$0xff]  }
  0x4a   : > { %11436 = vmatpush1.bf16.msra.mxu1 %v15765_v16  ;;  %11396 = vmatprep.subr.bf16.mxu0 %v15766_v17  ;;  %v15786_v30 = vld [vmem:[%s18652_s12 + $0x204] ss:$16 sps:$4 sm:$0xff]   ;;  %v15789_v32 = vld [vmem:[%s18652_s12 + $0x200] ss:$16 sps:$4 sm:$0xff]  }
  0x4b   : > { %11437 = vmatprep.subr.bf16.mxu1 %v15768_v18  ;;  %v15790_v33 = vld [vmem:[%s18652_s12 + $0x1e4] ss:$16 sps:$4 sm:$0xff]   ;;  %v15794_v35 = vld [vmem:[%s18652_s12 + $0x1e0] ss:$16 sps:$4 sm:$0xff]  }
  0x4c   : > { %v15792_v34 = vld [vmem:[%s18652_s12 + $0x3e4] ss:$16 sps:$4 sm:$0xff]   ;;  %v15795_v36 = vld [vmem:[%s18652_s12 + $0x3e0] ss:$16 sps:$4 sm:$0xff]  }
  0x4d   : > { %11397 = vmatpush1.bf16.msra.mxu0 %v15770_v19  ;;  %v15796_v40 = vld [vmem:[%s18652_s12 + $0x1c4] ss:$16 sps:$4 sm:$0xff]   ;;  %v15800_v42 = vld [vmem:[%s18652_s12 + $0x1c0] ss:$16 sps:$4 sm:$0xff]  }
  0x4e   : > { %11438 = vmatpush1.bf16.msra.mxu1 %v15771_v20  ;;  %11398 = vmatprep.subr.bf16.mxu0 %v15772_v21  ;;  %v15798_v41 = vld [vmem:[%s18652_s12 + $0x3c4] ss:$16 sps:$4 sm:$0xff]   ;;  %v15801_v45 = vld [vmem:[%s18652_s12 + $0x3c0] ss:$16 sps:$4 sm:$0xff]  }
  0x4f   : > { %11439 = vmatprep.subr.bf16.mxu1 %v15774_v22  ;;  %v15802_v46 = vld [vmem:[%s18652_s12 + $0x1a4] ss:$16 sps:$4 sm:$0xff]   ;;  %v15806_v48 = vld [vmem:[%s18652_s12 + $0x1a0] ss:$16 sps:$4 sm:$0xff]  }
  0x50   : > { %v15804_v47 = vld [vmem:[%s18652_s12 + $0x3a4] ss:$16 sps:$4 sm:$0xff]   ;;  %v15807_v49 = vld [vmem:[%s18652_s12 + $0x3a0] ss:$16 sps:$4 sm:$0xff]  }
  0x51   : > { %11399 = vmatpush1.bf16.msra.mxu0 %v15776_v23  ;;  %v15808_v51 = vld [vmem:[%s18652_s12 + $0x184] ss:$16 sps:$4 sm:$0xff]   ;;  %v15812_v54 = vld [vmem:[%s18652_s12 + $0x180] ss:$16 sps:$4 sm:$0xff]  }
  0x52   : > { %11440 = vmatpush1.bf16.msra.mxu1 %v15777_v24  ;;  %11400 = vmatprep.subr.bf16.mxu0 %v15778_v25  ;;  %v15810_v52 = vld [vmem:[%s18652_s12 + $0x384] ss:$16 sps:$4 sm:$0xff]   ;;  %v15813_v57 = vld [vmem:[%s18652_s12 + $0x380] ss:$16 sps:$4 sm:$0xff]  }
  0x53   : > { %11441 = vmatprep.subr.bf16.mxu1 %v15780_v26  ;;  %v258_v53 = vld [vmem:[%s18675_s29] sm:$0xff] }
  0x54   : > { %v293_v55 = vrot.slane %v258_v53, %v18726_v50  ;;  %v286_v56 = vcombine.high %v258_v53, %v258_v53  ;;  %v15814_v58 = vld [vmem:[%s18652_s12 + $0x164] ss:$16 sps:$4 sm:$0xff]   ;;  %v15818_v62 = vld [vmem:[%s18652_s12 + $0x160] ss:$16 sps:$4 sm:$0xff]  }
  0x55   : > { %11401 = vmatpush1.bf16.msra.mxu0 %v15782_v27  ;;  %v15816_v59 = vld [vmem:[%s18652_s12 + $0x364] ss:$16 sps:$4 sm:$0xff]   ;;  %v15819_v1 = vld [vmem:[%s18652_s12 + $0x360] ss:$16 sps:$4 sm:$0xff]  }
  0x56   : > { %11442 = vmatpush1.bf16.msra.mxu1 %v15783_v28  ;;  %11402 = vmatprep.subr.bf16.mxu0 %v15784_v29  ;;  %v301_v60 = vcombine.high %v293_v55, %v293_v55  ;;  %v300_v61 = vrot.slane %v286_v56, %v18726_v50  ;;  %v15820_v2 = vld [vmem:[%s18652_s12 + $0x144] ss:$16 sps:$4 sm:$0xff]   ;;  %v15824_v5 = vld [vmem:[%s18652_s12 + $0x140] ss:$16 sps:$4 sm:$0xff]   ;;  %v18759_v17 = vpack.c.bf16 %v293_v55, %v293_v55 }
  0x57   : > { %11443 = vmatprep.subr.bf16.mxu1 %v15786_v30  ;;  %v15822_v3 = vld [vmem:[%s18652_s12 + $0x344] ss:$16 sps:$4 sm:$0xff]   ;;  %v15825_v6 = vld [vmem:[%s18652_s12 + $0x340] ss:$16 sps:$4 sm:$0xff]  }
  0x58   : > { %v18738_v63 = vpack.c.bf16 %v301_v60, %v301_v60  ;;  %v302_v0 = vcombine.high %v300_v61, %v300_v61  ;;  %v15826_v7 = vld [vmem:[%s18652_s12 + $0x124] ss:$16 sps:$4 sm:$0xff]   ;;  %v15830_v9 = vld [vmem:[%s18652_s12 + $0x120] ss:$16 sps:$4 sm:$0xff]   ;;  %v18761_v18 = vpack.c.bf16 %v300_v61, %v300_v61 }
  0x59   : > { %11403 = vmatpush1.bf16.msra.mxu0 %v15788_v31  ;;  %v15828_v8 = vld [vmem:[%s18652_s12 + $0x324] ss:$16 sps:$4 sm:$0xff]   ;;  %v15831_v10 = vld [vmem:[%s18652_s12 + $0x320] ss:$16 sps:$4 sm:$0xff]  }
  0x5a   : > { %11444 = vmatpush1.bf16.msra.mxu1 %v15789_v32  ;;  %11404 = vmatprep.subr.bf16.mxu0 %v15790_v33  ;;  %v18743_v4 = vpack.c.bf16 %v302_v0, %v302_v0  ;;  %v15832_v11 = vld [vmem:[%s18652_s12 + $0x104] ss:$16 sps:$4 sm:$0xff]   ;;  %v15836_v13 = vld [vmem:[%s18652_s12 + $0x100] ss:$16 sps:$4 sm:$0xff]  }
  0x5b   : > { %11445 = vmatprep.subr.bf16.mxu1 %v15792_v34  ;;  %11420 = vmatprep.mubr.bf16.mxu0 %v18738_v63  ;;  %v15834_v12 = vld [vmem:[%s18652_s12 + $0x304] ss:$16 sps:$4 sm:$0xff]   ;;  %v15837_v14 = vld [vmem:[%s18652_s12 + $0x300] ss:$16 sps:$4 sm:$0xff]  }
  0x5c   : > { %11461 = vmatprep.mubr.bf16.mxu1 %v18743_v4  ;;  %v15841_v15 = vld [vmem:[%s18652_s12 + $0x4e4] ss:$16 sps:$4 sm:$0xff]   ;;  %v15839_v19 = vld [vmem:[%s18652_s12 + $0x4e0] ss:$16 sps:$4 sm:$0xff]  }
  0x5d   : > { %11405 = vmatpush2.bf16.msra.mxu0 %v15794_v35  ;;  %v15844_v16 = vld [vmem:[%s18652_s12 + $0x6e4] ss:$16 sps:$4 sm:$0xff]   ;;  %v15842_v20 = vld [vmem:[%s18652_s12 + $0x6e0] ss:$16 sps:$4 sm:$0xff]  }
  0x5e   : > { %11446 = vmatpush2.bf16.msra.mxu1 %v15795_v36  ;;  %11406 = vmatprep.subr.bf16.mxu0 %v15796_v40  ;;  %v15847_v21 = vld [vmem:[%s18652_s12 + $0x4c4] ss:$16 sps:$4 sm:$0xff]   ;;  %v15845_v23 = vld [vmem:[%s18652_s12 + $0x4c0] ss:$16 sps:$4 sm:$0xff]  }
  0x5f   : > { %11447 = vmatprep.subr.bf16.mxu1 %v15798_v41  ;;  %v15850_v22 = vld [vmem:[%s18652_s12 + $0x6c4] ss:$16 sps:$4 sm:$0xff]   ;;  %v15848_v24 = vld [vmem:[%s18652_s12 + $0x6c0] ss:$16 sps:$4 sm:$0xff]  }
  0x60   : > { %v15853_v25 = vld [vmem:[%s18652_s12 + $0x4a4] ss:$16 sps:$4 sm:$0xff]   ;;  %v15851_v27 = vld [vmem:[%s18652_s12 + $0x4a0] ss:$16 sps:$4 sm:$0xff]  }
  0x61   : > { %11407 = vmatpush2.bf16.msra.mxu0 %v15800_v42  ;;  %v15856_v26 = vld [vmem:[%s18652_s12 + $0x6a4] ss:$16 sps:$4 sm:$0xff]   ;;  %v15854_v28 = vld [vmem:[%s18652_s12 + $0x6a0] ss:$16 sps:$4 sm:$0xff]  }
  0x62   : > { %11448 = vmatpush2.bf16.msra.mxu1 %v15801_v45  ;;  %11408 = vmatprep.subr.bf16.mxu0 %v15802_v46  ;;  %v15859_v29 = vld [vmem:[%s18652_s12 + $0x484] ss:$16 sps:$4 sm:$0xff]   ;;  %v15857_v31 = vld [vmem:[%s18652_s12 + $0x480] ss:$16 sps:$4 sm:$0xff]   ;;  %v18791_v45 = vrot.slane %v259_v43, %v18726_v50  ;;  %v303_v46 = vcombine.high %v259_v43, %v259_v43 }
  0x63   : > { %11449 = vmatprep.subr.bf16.mxu1 %v15804_v47  ;;  %v15862_v30 = vld [vmem:[%s18652_s12 + $0x684] ss:$16 sps:$4 sm:$0xff]   ;;  %v15860_v32 = vld [vmem:[%s18652_s12 + $0x680] ss:$16 sps:$4 sm:$0xff]  }
  0x64   : > { %v15865_v33 = vld [vmem:[%s18652_s12 + $0x464] ss:$16 sps:$4 sm:$0xff]   ;;  %v15863_v35 = vld [vmem:[%s18652_s12 + $0x460] ss:$16 sps:$4 sm:$0xff]  }
  0x65   : > { %11409 = vmatpush2.bf16.msra.mxu0 %v15806_v48  ;;  %v15868_v34 = vld [vmem:[%s18652_s12 + $0x664] ss:$16 sps:$4 sm:$0xff]   ;;  %v15866_v36 = vld [vmem:[%s18652_s12 + $0x660] ss:$16 sps:$4 sm:$0xff]  }
  0x66   : > { %11450 = vmatpush2.bf16.msra.mxu1 %v15807_v49  ;;  %11410 = vmatprep.subr.bf16.mxu0 %v15808_v51  ;;  %v15871_v37 = vld [vmem:[%s18652_s12 + $0x444] ss:$16 sps:$4 sm:$0xff]   ;;  %v15869_v39 = vld [vmem:[%s18652_s12 + $0x440] ss:$16 sps:$4 sm:$0xff]   ;;  %v318_v49 = vcombine.high %v18791_v45, %v18791_v45  ;;  %v18798_v51 = vrot.slane %v303_v46, %v18726_v50 }
  0x67   : > { %11451 = vmatprep.subr.bf16.mxu1 %v15810_v52  ;;  %v15874_v38 = vld [vmem:[%s18652_s12 + $0x644] ss:$16 sps:$4 sm:$0xff]   ;;  %v15872_v40 = vld [vmem:[%s18652_s12 + $0x640] ss:$16 sps:$4 sm:$0xff]  }
  0x68   : > { %v15877_v41 = vld [vmem:[%s18652_s12 + $0x424] ss:$16 sps:$4 sm:$0xff]   ;;  %v15875_v47 = vld [vmem:[%s18652_s12 + $0x420] ss:$16 sps:$4 sm:$0xff]   ;;  %v319_v55 = vcombine.high %v18798_v51, %v18798_v51 }
  0x69   : > { %11411 = vmatpush2.bf16.msra.mxu0 %v15812_v54  ;;  %v15880_v42 = vld [vmem:[%s18652_s12 + $0x624] ss:$16 sps:$4 sm:$0xff]   ;;  %v15878_v48 = vld [vmem:[%s18652_s12 + $0x620] ss:$16 sps:$4 sm:$0xff]   ;;  %v18802_v54 = vpack.c.bf16 %v318_v49, %v318_v49 }
  0x6a   : > { %11452 = vmatpush2.bf16.msra.mxu1 %v15813_v57  ;;  %11412 = vmatprep.subr.bf16.mxu0 %v15814_v58  ;;  %v15883_v52 = vld [vmem:[%s18652_s12 + $0x404] ss:$16 sps:$4 sm:$0xff]   ;;  %v15881_v56 = vld [vmem:[%s18652_s12 + $0x400] ss:$16 sps:$4 sm:$0xff]   ;;  %v18808_v58 = vpack.c.bf16 %v319_v55, %v319_v55 }
  0x6b   : > { %11453 = vmatprep.subr.bf16.mxu1 %v15816_v59  ;;  %v15886_v53 = vld [vmem:[%s18652_s12 + $0x604] ss:$16 sps:$4 sm:$0xff]   ;;  %v15884_v57 = vld [vmem:[%s18652_s12 + $0x600] ss:$16 sps:$4 sm:$0xff]  }
  0x6c   : > { %v15889_v59 = vld [vmem:[%s18652_s12 + $0x5e4] ss:$16 sps:$4 sm:$0xff]   ;;  %v15887_v61 = vld [vmem:[%s18652_s12 + $0x5e0] ss:$16 sps:$4 sm:$0xff]  }
  0x6d   : > { %11413 = vmatpush2.bf16.msra.mxu0 %v15818_v62  ;;  %v15892_v60 = vld [vmem:[%s18652_s12 + $0x7e4] ss:$16 sps:$4 sm:$0xff]   ;;  %v15890_v62 = vld [vmem:[%s18652_s12 + $0x7e0] ss:$16 sps:$4 sm:$0xff]  }
  0x6e   : > { %11454 = vmatpush2.bf16.msra.mxu1 %v15819_v1  ;;  %11414 = vmatprep.subr.bf16.mxu0 %v15820_v2  ;;  %v15895_v0 = vld [vmem:[%s18652_s12 + $0x5c4] ss:$16 sps:$4 sm:$0xff]   ;;  %v15893_v2 = vld [vmem:[%s18652_s12 + $0x5c0] ss:$16 sps:$4 sm:$0xff]  }
  0x6f   : > { %11455 = vmatprep.subr.bf16.mxu1 %v15822_v3  ;;  %v15898_v1 = vld [vmem:[%s18652_s12 + $0x7c4] ss:$16 sps:$4 sm:$0xff]   ;;  %v15896_v3 = vld [vmem:[%s18652_s12 + $0x7c0] ss:$16 sps:$4 sm:$0xff]  }
  0x70   : > { %v15945_v46 = vld [vmem:[%s18652_s12 + $0xac0] ss:$16 sps:$4 sm:$0xff]  }
  0x71   : > { %11415 = vmatpush2.bf16.msra.mxu0 %v15824_v5  ;;  %v15901_v5 = vld [vmem:[%s18652_s12 + $0x5a4] ss:$16 sps:$4 sm:$0xff]   ;;  %v15951_v55 = vld [vmem:[%s18652_s12 + $0xaa0] ss:$16 sps:$4 sm:$0xff]  }
  0x72   : > { %11456 = vmatpush2.bf16.msra.mxu1 %v15825_v6  ;;  %11416 = vmatprep.subr.bf16.mxu0 %v15826_v7  ;;  %v15904_v6 = vld [vmem:[%s18652_s12 + $0x7a4] ss:$16 sps:$4 sm:$0xff]   ;;  %v15899_v7 = vld [vmem:[%s18652_s12 + $0x5a0] ss:$16 sps:$4 sm:$0xff]  }
  0x73   : > { %11457 = vmatprep.subr.bf16.mxu1 %v15828_v8  ;;  %v15902_v8 = vld [vmem:[%s18652_s12 + $0x7a0] ss:$16 sps:$4 sm:$0xff]  }
  0x74   : > { %v16727_v44 = vld [vmem:[%s18652_s12 + $0x2aa0] ss:$16 sps:$4 sm:$0xff]  }
  0x75   : > { %11417 = vmatpush2.bf16.msra.mxu0 %v15830_v9  ;;  %v15907_v9 = vld [vmem:[%s18652_s12 + $0x584] ss:$16 sps:$4 sm:$0xff]  }
  0x76   : > { %11458 = vmatpush2.bf16.msra.mxu1 %v15831_v10  ;;  %11418 = vmatprep.subr.bf16.mxu0 %v15832_v11  ;;  %v15910_v10 = vld [vmem:[%s18652_s12 + $0x784] ss:$16 sps:$4 sm:$0xff]   ;;  %v15905_v11 = vld [vmem:[%s18652_s12 + $0x580] ss:$16 sps:$4 sm:$0xff]  }
  0x77   : > { %11459 = vmatprep.subr.bf16.mxu1 %v15834_v12  ;;  %v15908_v12 = vld [vmem:[%s18652_s12 + $0x780] ss:$16 sps:$4 sm:$0xff]  }
  0x79   : > { %11419 = vmatpush2.bf16.msra.mxu0 %v15836_v13  ;;  %v15913_v13 = vld [vmem:[%s18652_s12 + $0x564] ss:$16 sps:$4 sm:$0xff]  }
  0x7a   : > { %11460 = vmatpush2.bf16.msra.mxu1 %v15837_v14  ;;  %11470 = vmatprep.subr.bf16.mxu0 %v15841_v15  ;;  %v15916_v14 = vld [vmem:[%s18652_s12 + $0x764] ss:$16 sps:$4 sm:$0xff]   ;;  %v15911_v15 = vld [vmem:[%s18652_s12 + $0x560] ss:$16 sps:$4 sm:$0xff]  }
  0x7b   : > { %11511 = vmatprep.subr.bf16.mxu1 %v15844_v16  ;;  %v15914_v16 = vld [vmem:[%s18652_s12 + $0x760] ss:$16 sps:$4 sm:$0xff]  }
  0x7c   : > { %11421 = vmatmul.mubr.bf16.vlgmr.msra.gmra.mxu0 %v18759_v17 }
  0x7d   : > { %11462 = vmatmul.mubr.bf16.vlgmr.msra.gmra.mxu1 %v18761_v18  ;;  %11471 = vmatpush1.bf16.msra.mxu0 %v15839_v19  ;;  %v15919_v19 = vld [vmem:[%s18652_s12 + $0x544] ss:$16 sps:$4 sm:$0xff]  }
  0x7e   : > { %11512 = vmatpush1.bf16.msra.mxu1 %v15842_v20  ;;  %11472 = vmatprep.subr.bf16.mxu0 %v15847_v21  ;;  %v15922_v20 = vld [vmem:[%s18652_s12 + $0x744] ss:$16 sps:$4 sm:$0xff]   ;;  %v15917_v21 = vld [vmem:[%s18652_s12 + $0x540] ss:$16 sps:$4 sm:$0xff]  }
  0x7f   : > { %11513 = vmatprep.subr.bf16.mxu1 %v15850_v22  ;;  %11502 = vmatprep.mubr.bf16.mxu0 %v18802_v54  ;;  %v15920_v22 = vld [vmem:[%s18652_s12 + $0x740] ss:$16 sps:$4 sm:$0xff]  }
  0x80   : > { %11543 = vmatprep.mubr.bf16.mxu1 %v18808_v58 }
  0x81   : > { %11473 = vmatpush1.bf16.msra.mxu0 %v15845_v23  ;;  %v15925_v23 = vld [vmem:[%s18652_s12 + $0x524] ss:$16 sps:$4 sm:$0xff]  }
  0x82   : > { %11514 = vmatpush1.bf16.msra.mxu1 %v15848_v24  ;;  %11474 = vmatprep.subr.bf16.mxu0 %v15853_v25  ;;  %v15928_v24 = vld [vmem:[%s18652_s12 + $0x724] ss:$16 sps:$4 sm:$0xff]   ;;  %v15923_v25 = vld [vmem:[%s18652_s12 + $0x520] ss:$16 sps:$4 sm:$0xff]  }
  0x83   : > { %11515 = vmatprep.subr.bf16.mxu1 %v15856_v26  ;;  %v15926_v26 = vld [vmem:[%s18652_s12 + $0x720] ss:$16 sps:$4 sm:$0xff]  }
  0x85   : > { %11475 = vmatpush1.bf16.msra.mxu0 %v15851_v27  ;;  %v15931_v27 = vld [vmem:[%s18652_s12 + $0x504] ss:$16 sps:$4 sm:$0xff]  }
  0x86   : > { %11516 = vmatpush1.bf16.msra.mxu1 %v15854_v28  ;;  %11476 = vmatprep.subr.bf16.mxu0 %v15859_v29  ;;  %v15934_v28 = vld [vmem:[%s18652_s12 + $0x704] ss:$16 sps:$4 sm:$0xff]   ;;  %v15929_v29 = vld [vmem:[%s18652_s12 + $0x500] ss:$16 sps:$4 sm:$0xff]  }
  0x87   : > { %11517 = vmatprep.subr.bf16.mxu1 %v15862_v30  ;;  %v15932_v30 = vld [vmem:[%s18652_s12 + $0x700] ss:$16 sps:$4 sm:$0xff]  }
  0x89   : > { %11477 = vmatpush1.bf16.msra.mxu0 %v15857_v31  ;;  %v15938_v31 = vld [vmem:[%s18652_s12 + $0x8e4] ss:$16 sps:$4 sm:$0xff]  }
  0x8a   : > { %11518 = vmatpush1.bf16.msra.mxu1 %v15860_v32  ;;  %11478 = vmatprep.subr.bf16.mxu0 %v15865_v33  ;;  %v15941_v32 = vld [vmem:[%s18652_s12 + $0xae4] ss:$16 sps:$4 sm:$0xff]   ;;  %v18848_v33 = vpack.c.bf16 %v18791_v45, %v18791_v45 }
  0x8b   : > { %11519 = vmatprep.subr.bf16.mxu1 %v15868_v34  ;;  %v18852_v34 = vpack.c.bf16 %v18798_v51, %v18798_v51 }
  0x8d   : > { %11479 = vmatpush1.bf16.msra.mxu0 %v15863_v35  ;;  %v15936_v35 = vld [vmem:[%s18652_s12 + $0x8e0] ss:$16 sps:$4 sm:$0xff]  }
  0x8e   : > { %11520 = vmatpush1.bf16.msra.mxu1 %v15866_v36  ;;  %11480 = vmatprep.subr.bf16.mxu0 %v15871_v37  ;;  %v15939_v36 = vld [vmem:[%s18652_s12 + $0xae0] ss:$16 sps:$4 sm:$0xff]   ;;  %v15944_v37 = vld [vmem:[%s18652_s12 + $0x8c4] ss:$16 sps:$4 sm:$0xff]  }
  0x8f   : > { %11521 = vmatprep.subr.bf16.mxu1 %v15874_v38  ;;  %v260_v38 = vld [vmem:[%s18675_s29 + $0x10] sm:$0xff] }
  0x91   : > { %11481 = vmatpush1.bf16.msra.mxu0 %v15869_v39  ;;  %v15947_v39 = vld [vmem:[%s18652_s12 + $0xac4] ss:$16 sps:$4 sm:$0xff]  }
  0x92   : > { %11522 = vmatpush1.bf16.msra.mxu1 %v15872_v40  ;;  %11482 = vmatprep.subr.bf16.mxu0 %v15877_v41  ;;  %v18860_v40 = vrot.slane %v260_v38, %v18726_v50  ;;  %v320_v41 = vcombine.high %v260_v38, %v260_v38  ;;  %v16011_v38 = vld [vmem:[%s18652_s12 + $0xb60] ss:$16 sps:$4 sm:$0xff]  }
  0x93   : > { %11523 = vmatprep.subr.bf16.mxu1 %v15880_v42  ;;  %v15942_v42 = vld [vmem:[%s18652_s12 + $0x8c0] ss:$16 sps:$4 sm:$0xff]  }
  0x94   : > { %v335_v43 = vcombine.high %v18860_v40, %v18860_v40  ;;  %v18868_v45 = vrot.slane %v320_v41, %v18726_v50  ;;  %v16019_v41 = vld [vmem:[%s18652_s12 + $0xb44] ss:$16 sps:$4 sm:$0xff]  }
  0x95   : > { %11483 = vmatpush1.bf16.msra.mxu0 %v15875_v47  ;;  %v15950_v47 = vld [vmem:[%s18652_s12 + $0x8a4] ss:$16 sps:$4 sm:$0xff]  }
  0x96   : > { %11524 = vmatpush1.bf16.msra.mxu1 %v15878_v48  ;;  %11484 = vmatprep.subr.bf16.mxu0 %v15883_v52  ;;  %v15953_v48 = vld [vmem:[%s18652_s12 + $0xaa4] ss:$16 sps:$4 sm:$0xff]   ;;  %v18873_v49 = vpack.c.bf16 %v335_v43, %v335_v43  ;;  %v336_v51 = vcombine.high %v18868_v45, %v18868_v45  ;;  %v15948_v52 = vld [vmem:[%s18652_s12 + $0x8a0] ss:$16 sps:$4 sm:$0xff]  }
  0x97   : > { %11525 = vmatprep.subr.bf16.mxu1 %v15886_v53  ;;  %v16017_v43 = vld [vmem:[%s18652_s12 + $0xb40] ss:$16 sps:$4 sm:$0xff]  }
  0x98   : > { %v18879_v53 = vpack.c.bf16 %v336_v51, %v336_v51 }
  0x99   : > { %11485 = vmatpush1.bf16.msra.mxu0 %v15881_v56  ;;  %v15956_v56 = vld [vmem:[%s18652_s12 + $0x884] ss:$16 sps:$4 sm:$0xff]  }
  0x9a   : > { %11526 = vmatpush1.bf16.msra.mxu1 %v15884_v57  ;;  %11486 = vmatprep.subr.bf16.mxu0 %v15889_v59  ;;  %v15959_v57 = vld [vmem:[%s18652_s12 + $0xa84] ss:$16 sps:$4 sm:$0xff]   ;;  %v15954_v59 = vld [vmem:[%s18652_s12 + $0x880] ss:$16 sps:$4 sm:$0xff]  }
  0x9b   : > { %11527 = vmatprep.subr.bf16.mxu1 %v15892_v60  ;;  %v15957_v60 = vld [vmem:[%s18652_s12 + $0xa80] ss:$16 sps:$4 sm:$0xff]  }
  0x9d   : > { %11487 = vmatpush2.bf16.msra.mxu0 %v15887_v61  ;;  %v15962_v61 = vld [vmem:[%s18652_s12 + $0x864] ss:$16 sps:$4 sm:$0xff]  }
  0x9e   : > { %11528 = vmatpush2.bf16.msra.mxu1 %v15890_v62  ;;  %11488 = vmatprep.subr.bf16.mxu0 %v15895_v0  ;;  %v15965_v62 = vld [vmem:[%s18652_s12 + $0xa64] ss:$16 sps:$4 sm:$0xff]   ;;  %v15960_v0 = vld [vmem:[%s18652_s12 + $0x860] ss:$16 sps:$4 sm:$0xff]  }
  0x9f   : > { %11529 = vmatprep.subr.bf16.mxu1 %v15898_v1  ;;  %v15963_v1 = vld [vmem:[%s18652_s12 + $0xa60] ss:$16 sps:$4 sm:$0xff]  }
  0xa1   : > { %11489 = vmatpush2.bf16.msra.mxu0 %v15893_v2  ;;  %v15968_v2 = vld [vmem:[%s18652_s12 + $0x844] ss:$16 sps:$4 sm:$0xff]  }
  0xa2   : > { %11530 = vmatpush2.bf16.msra.mxu1 %v15896_v3  ;;  %11490 = vmatprep.subr.bf16.mxu0 %v15901_v5  ;;  %v15971_v3 = vld [vmem:[%s18652_s12 + $0xa44] ss:$16 sps:$4 sm:$0xff]   ;;  %v15966_v5 = vld [vmem:[%s18652_s12 + $0x840] ss:$16 sps:$4 sm:$0xff]  }
  0xa3   : > { %11531 = vmatprep.subr.bf16.mxu1 %v15904_v6  ;;  %v15969_v6 = vld [vmem:[%s18652_s12 + $0xa40] ss:$16 sps:$4 sm:$0xff]  }
  0xa5   : > { %11491 = vmatpush2.bf16.msra.mxu0 %v15899_v7  ;;  %v15974_v7 = vld [vmem:[%s18652_s12 + $0x824] ss:$16 sps:$4 sm:$0xff]  }
  0xa6   : > { %11532 = vmatpush2.bf16.msra.mxu1 %v15902_v8  ;;  %11492 = vmatprep.subr.bf16.mxu0 %v15907_v9  ;;  %v15977_v8 = vld [vmem:[%s18652_s12 + $0xa24] ss:$16 sps:$4 sm:$0xff]   ;;  %v15972_v9 = vld [vmem:[%s18652_s12 + $0x820] ss:$16 sps:$4 sm:$0xff]  }
  0xa7   : > { %11533 = vmatprep.subr.bf16.mxu1 %v15910_v10  ;;  %v15975_v10 = vld [vmem:[%s18652_s12 + $0xa20] ss:$16 sps:$4 sm:$0xff]  }
  0xa9   : > { %11493 = vmatpush2.bf16.msra.mxu0 %v15905_v11  ;;  %v15980_v11 = vld [vmem:[%s18652_s12 + $0x804] ss:$16 sps:$4 sm:$0xff]  }
  0xaa   : > { %11534 = vmatpush2.bf16.msra.mxu1 %v15908_v12  ;;  %11494 = vmatprep.subr.bf16.mxu0 %v15913_v13  ;;  %v15983_v12 = vld [vmem:[%s18652_s12 + $0xa04] ss:$16 sps:$4 sm:$0xff]   ;;  %v15978_v13 = vld [vmem:[%s18652_s12 + $0x800] ss:$16 sps:$4 sm:$0xff]  }
  0xab   : > { %11535 = vmatprep.subr.bf16.mxu1 %v15916_v14  ;;  %v15981_v14 = vld [vmem:[%s18652_s12 + $0xa00] ss:$16 sps:$4 sm:$0xff]  }
  0xad   : > { %11495 = vmatpush2.bf16.msra.mxu0 %v15911_v15  ;;  %v15986_v15 = vld [vmem:[%s18652_s12 + $0x9e4] ss:$16 sps:$4 sm:$0xff]  }
  0xae   : > { %11536 = vmatpush2.bf16.msra.mxu1 %v15914_v16  ;;  %11496 = vmatprep.subr.bf16.mxu0 %v15919_v19  ;;  %v15989_v16 = vld [vmem:[%s18652_s12 + $0xbe4] ss:$16 sps:$4 sm:$0xff]   ;;  %v15984_v19 = vld [vmem:[%s18652_s12 + $0x9e0] ss:$16 sps:$4 sm:$0xff]  }
  0xaf   : > { %11537 = vmatprep.subr.bf16.mxu1 %v15922_v20  ;;  %v15987_v20 = vld [vmem:[%s18652_s12 + $0xbe0] ss:$16 sps:$4 sm:$0xff]  }
  0xb1   : > { %11497 = vmatpush2.bf16.msra.mxu0 %v15917_v21  ;;  %v15992_v21 = vld [vmem:[%s18652_s12 + $0x9c4] ss:$16 sps:$4 sm:$0xff]  }
  0xb2   : > { %11538 = vmatpush2.bf16.msra.mxu1 %v15920_v22  ;;  %11498 = vmatprep.subr.bf16.mxu0 %v15925_v23  ;;  %v15995_v22 = vld [vmem:[%s18652_s12 + $0xbc4] ss:$16 sps:$4 sm:$0xff]   ;;  %v15990_v23 = vld [vmem:[%s18652_s12 + $0x9c0] ss:$16 sps:$4 sm:$0xff]  }
  0xb3   : > { %11539 = vmatprep.subr.bf16.mxu1 %v15928_v24  ;;  %v15993_v24 = vld [vmem:[%s18652_s12 + $0xbc0] ss:$16 sps:$4 sm:$0xff]  }
  0xb5   : > { %11499 = vmatpush2.bf16.msra.mxu0 %v15923_v25  ;;  %v15998_v25 = vld [vmem:[%s18652_s12 + $0x9a4] ss:$16 sps:$4 sm:$0xff]  }
  0xb6   : > { %11540 = vmatpush2.bf16.msra.mxu1 %v15926_v26  ;;  %11500 = vmatprep.subr.bf16.mxu0 %v15931_v27  ;;  %v16001_v26 = vld [vmem:[%s18652_s12 + $0xba4] ss:$16 sps:$4 sm:$0xff]   ;;  %v15996_v27 = vld [vmem:[%s18652_s12 + $0x9a0] ss:$16 sps:$4 sm:$0xff]  }
  0xb7   : > { %11541 = vmatprep.subr.bf16.mxu1 %v15934_v28  ;;  %v15999_v28 = vld [vmem:[%s18652_s12 + $0xba0] ss:$16 sps:$4 sm:$0xff]  }
  0xb9   : > { %11501 = vmatpush2.bf16.msra.mxu0 %v15929_v29  ;;  %v16004_v29 = vld [vmem:[%s18652_s12 + $0x984] ss:$16 sps:$4 sm:$0xff]  }
  0xba   : > { %11542 = vmatpush2.bf16.msra.mxu1 %v15932_v30  ;;  %11552 = vmatprep.subr.bf16.mxu0 %v15938_v31  ;;  %v16007_v30 = vld [vmem:[%s18652_s12 + $0xb84] ss:$16 sps:$4 sm:$0xff]   ;;  %v16002_v31 = vld [vmem:[%s18652_s12 + $0x980] ss:$16 sps:$4 sm:$0xff]  }
  0xbb   : > { %11593 = vmatprep.subr.bf16.mxu1 %v15941_v32  ;;  %v16005_v32 = vld [vmem:[%s18652_s12 + $0xb80] ss:$16 sps:$4 sm:$0xff]  }
  0xbc   : > { %11503 = vmatmul.mubr.bf16.vlgmr.msra.gmra.mxu0 %v18848_v33 }
  0xbd   : > { %11544 = vmatmul.mubr.bf16.vlgmr.msra.gmra.mxu1 %v18852_v34  ;;  %11553 = vmatpush1.bf16.msra.mxu0 %v15936_v35  ;;  %v16010_v35 = vld [vmem:[%s18652_s12 + $0x964] ss:$16 sps:$4 sm:$0xff]  }
  0xbe   : > { %11594 = vmatpush1.bf16.msra.mxu1 %v15939_v36  ;;  %11554 = vmatprep.subr.bf16.mxu0 %v15944_v37  ;;  %v16013_v36 = vld [vmem:[%s18652_s12 + $0xb64] ss:$16 sps:$4 sm:$0xff]   ;;  %v16008_v37 = vld [vmem:[%s18652_s12 + $0x960] ss:$16 sps:$4 sm:$0xff]  }
  0xbf   : > { %11595 = vmatprep.subr.bf16.mxu1 %v15947_v39  ;;  %11584 = vmatprep.mubr.bf16.mxu0 %v18873_v49  ;;  %v16016_v39 = vld [vmem:[%s18652_s12 + $0x944] ss:$16 sps:$4 sm:$0xff]  }
  0xc0   : > { %11625 = vmatprep.mubr.bf16.mxu1 %v18879_v53 }
  0xc1   : > { %11555 = vmatpush1.bf16.msra.mxu0 %v15942_v42  ;;  %v16014_v42 = vld [vmem:[%s18652_s12 + $0x940] ss:$16 sps:$4 sm:$0xff]  }
  0xc2   : > { %11596 = vmatpush1.bf16.msra.mxu1 %v15945_v46  ;;  %11556 = vmatprep.subr.bf16.mxu0 %v15950_v47  ;;  %v261_v46 = vld [vmem:[%s18675_s29 + $0x18] sm:$0xff]  ;;  %v16022_v47 = vld [vmem:[%s18652_s12 + $0x924] ss:$16 sps:$4 sm:$0xff]  }
  0xc3   : > { %11597 = vmatprep.subr.bf16.mxu1 %v15953_v48  ;;  %v16025_v48 = vld [vmem:[%s18652_s12 + $0xb24] ss:$16 sps:$4 sm:$0xff]   ;;  %v337_v51 = vcombine.high %v261_v46, %v261_v46 }
  0xc5   : > { %11557 = vmatpush1.bf16.msra.mxu0 %v15948_v52  ;;  %v16020_v52 = vld [vmem:[%s18652_s12 + $0x920] ss:$16 sps:$4 sm:$0xff]  }
  0xc6   : > { %11598 = vmatpush1.bf16.msra.mxu1 %v15951_v55  ;;  %11558 = vmatprep.subr.bf16.mxu0 %v15956_v56  ;;  %v16023_v55 = vld [vmem:[%s18652_s12 + $0xb20] ss:$16 sps:$4 sm:$0xff]   ;;  %v16028_v56 = vld [vmem:[%s18652_s12 + $0x904] ss:$16 sps:$4 sm:$0xff]  }
  0xc7   : > { %11599 = vmatprep.subr.bf16.mxu1 %v15959_v57  ;;  %v16031_v57 = vld [vmem:[%s18652_s12 + $0xb04] ss:$16 sps:$4 sm:$0xff]  }
  0xc9   : > { %11559 = vmatpush1.bf16.msra.mxu0 %v15954_v59  ;;  %v18935_v59 = vrot.slane %v261_v46, %v18726_v50  ;;  %v16081_v46 = vld [vmem:[%s18652_s12 + $0xde0] ss:$16 sps:$4 sm:$0xff]  }
  0xca   : > { %11600 = vmatpush1.bf16.msra.mxu1 %v15957_v60  ;;  %11560 = vmatprep.subr.bf16.mxu0 %v15962_v61  ;;  %v18938_v60 = vrot.slane %v337_v51, %v18726_v50  ;;  %v16026_v61 = vld [vmem:[%s18652_s12 + $0x900] ss:$16 sps:$4 sm:$0xff]   ;;  %v16092_v51 = vld [vmem:[%s18652_s12 + $0xfc4] ss:$16 sps:$4 sm:$0xff]  }
  0xcb   : > { %11601 = vmatprep.subr.bf16.mxu1 %v15965_v62  ;;  %v16029_v62 = vld [vmem:[%s18652_s12 + $0xb00] ss:$16 sps:$4 sm:$0xff]  }
  0xcd   : > { %11561 = vmatpush1.bf16.msra.mxu0 %v15960_v0  ;;  %v16035_v0 = vld [vmem:[%s18652_s12 + $0xce4] ss:$16 sps:$4 sm:$0xff]  }
  0xce   : > { %11602 = vmatpush1.bf16.msra.mxu1 %v15963_v1  ;;  %11562 = vmatprep.subr.bf16.mxu0 %v15968_v2  ;;  %v16038_v1 = vld [vmem:[%s18652_s12 + $0xee4] ss:$16 sps:$4 sm:$0xff]   ;;  %v352_v2 = vcombine.high %v18935_v59, %v18935_v59 }
  0xcf   : > { %11603 = vmatprep.subr.bf16.mxu1 %v15971_v3  ;;  %v353_v3 = vcombine.high %v18938_v60, %v18938_v60 }
  0xd1   : > { %11563 = vmatpush1.bf16.msra.mxu0 %v15966_v5  ;;  %v18950_v5 = vpack.c.bf16 %v18860_v40, %v18860_v40  ;;  %v18962_v40 = vpack.c.bf16 %v353_v3, %v353_v3  ;;  %v16102_v3 = vld [vmem:[%s18652_s12 + $0xf80] ss:$16 sps:$4 sm:$0xff]  }
  0xd2   : > { %11604 = vmatpush1.bf16.msra.mxu1 %v15969_v6  ;;  %11564 = vmatprep.subr.bf16.mxu0 %v15974_v7  ;;  %v18954_v6 = vpack.c.bf16 %v18868_v45, %v18868_v45  ;;  %v16033_v7 = vld [vmem:[%s18652_s12 + $0xce0] ss:$16 sps:$4 sm:$0xff]  }
  0xd3   : > { %11605 = vmatprep.subr.bf16.mxu1 %v15977_v8  ;;  %v16036_v8 = vld [vmem:[%s18652_s12 + $0xee0] ss:$16 sps:$4 sm:$0xff]  }
  0xd4   : > { %v16039_v45 = vld [vmem:[%s18652_s12 + $0xcc0] ss:$16 sps:$4 sm:$0xff]  }
  0xd5   : > { %11565 = vmatpush1.bf16.msra.mxu0 %v15972_v9  ;;  %v16041_v9 = vld [vmem:[%s18652_s12 + $0xcc4] ss:$16 sps:$4 sm:$0xff]  }
  0xd6   : > { %11606 = vmatpush1.bf16.msra.mxu1 %v15975_v10  ;;  %11566 = vmatprep.subr.bf16.mxu0 %v15980_v11  ;;  %v16044_v10 = vld [vmem:[%s18652_s12 + $0xec4] ss:$16 sps:$4 sm:$0xff]   ;;  %v18960_v11 = vpack.c.bf16 %v352_v2, %v352_v2  ;;  %v16099_v2 = vld [vmem:[%s18652_s12 + $0xd80] ss:$16 sps:$4 sm:$0xff]  }
  0xd7   : > { %11607 = vmatprep.subr.bf16.mxu1 %v15983_v12  ;;  %v16042_v12 = vld [vmem:[%s18652_s12 + $0xec0] ss:$16 sps:$4 sm:$0xff]  }
  0xd9   : > { %11567 = vmatpush1.bf16.msra.mxu0 %v15978_v13  ;;  %v16047_v13 = vld [vmem:[%s18652_s12 + $0xca4] ss:$16 sps:$4 sm:$0xff]  }
  0xda   : > { %11608 = vmatpush1.bf16.msra.mxu1 %v15981_v14  ;;  %11568 = vmatprep.subr.bf16.mxu0 %v15986_v15  ;;  %v16050_v14 = vld [vmem:[%s18652_s12 + $0xea4] ss:$16 sps:$4 sm:$0xff]   ;;  %v16045_v15 = vld [vmem:[%s18652_s12 + $0xca0] ss:$16 sps:$4 sm:$0xff]  }
  0xdb   : > { %11609 = vmatprep.subr.bf16.mxu1 %v15989_v16  ;;  %v16048_v16 = vld [vmem:[%s18652_s12 + $0xea0] ss:$16 sps:$4 sm:$0xff]  }
  0xdd   : > { %11569 = vmatpush2.bf16.msra.mxu0 %v15984_v19  ;;  %v16053_v19 = vld [vmem:[%s18652_s12 + $0xc84] ss:$16 sps:$4 sm:$0xff]  }
  0xde   : > { %11610 = vmatpush2.bf16.msra.mxu1 %v15987_v20  ;;  %11570 = vmatprep.subr.bf16.mxu0 %v15992_v21  ;;  %v16056_v20 = vld [vmem:[%s18652_s12 + $0xe84] ss:$16 sps:$4 sm:$0xff]   ;;  %v16051_v21 = vld [vmem:[%s18652_s12 + $0xc80] ss:$16 sps:$4 sm:$0xff]  }
  0xdf   : > { %11611 = vmatprep.subr.bf16.mxu1 %v15995_v22  ;;  %v16054_v22 = vld [vmem:[%s18652_s12 + $0xe80] ss:$16 sps:$4 sm:$0xff]  }
  0xe1   : > { %11571 = vmatpush2.bf16.msra.mxu0 %v15990_v23  ;;  %v16059_v23 = vld [vmem:[%s18652_s12 + $0xc64] ss:$16 sps:$4 sm:$0xff]  }
  0xe2   : > { %11612 = vmatpush2.bf16.msra.mxu1 %v15993_v24  ;;  %11572 = vmatprep.subr.bf16.mxu0 %v15998_v25  ;;  %v16062_v24 = vld [vmem:[%s18652_s12 + $0xe64] ss:$16 sps:$4 sm:$0xff]   ;;  %v16057_v25 = vld [vmem:[%s18652_s12 + $0xc60] ss:$16 sps:$4 sm:$0xff]  }
  0xe3   : > { %11613 = vmatprep.subr.bf16.mxu1 %v16001_v26  ;;  %v16060_v26 = vld [vmem:[%s18652_s12 + $0xe60] ss:$16 sps:$4 sm:$0xff]  }
  0xe5   : > { %11573 = vmatpush2.bf16.msra.mxu0 %v15996_v27  ;;  %v16065_v27 = vld [vmem:[%s18652_s12 + $0xc44] ss:$16 sps:$4 sm:$0xff]  }
  0xe6   : > { %11614 = vmatpush2.bf16.msra.mxu1 %v15999_v28  ;;  %11574 = vmatprep.subr.bf16.mxu0 %v16004_v29  ;;  %v16068_v28 = vld [vmem:[%s18652_s12 + $0xe44] ss:$16 sps:$4 sm:$0xff]   ;;  %v16063_v29 = vld [vmem:[%s18652_s12 + $0xc40] ss:$16 sps:$4 sm:$0xff]  }
  0xe7   : > { %11615 = vmatprep.subr.bf16.mxu1 %v16007_v30  ;;  %v16066_v30 = vld [vmem:[%s18652_s12 + $0xe40] ss:$16 sps:$4 sm:$0xff]  }
  0xe9   : > { %11575 = vmatpush2.bf16.msra.mxu0 %v16002_v31  ;;  %v16071_v31 = vld [vmem:[%s18652_s12 + $0xc24] ss:$16 sps:$4 sm:$0xff]  }
  0xea   : > { %11616 = vmatpush2.bf16.msra.mxu1 %v16005_v32  ;;  %11576 = vmatprep.subr.bf16.mxu0 %v16010_v35  ;;  %v16074_v32 = vld [vmem:[%s18652_s12 + $0xe24] ss:$16 sps:$4 sm:$0xff]   ;;  %v16069_v35 = vld [vmem:[%s18652_s12 + $0xc20] ss:$16 sps:$4 sm:$0xff]  }
  0xeb   : > { %11617 = vmatprep.subr.bf16.mxu1 %v16013_v36  ;;  %v16072_v36 = vld [vmem:[%s18652_s12 + $0xe20] ss:$16 sps:$4 sm:$0xff]  }
  0xed   : > { %11577 = vmatpush2.bf16.msra.mxu0 %v16008_v37  ;;  %v16077_v37 = vld [vmem:[%s18652_s12 + $0xc04] ss:$16 sps:$4 sm:$0xff]  }
  0xee   : > { %11618 = vmatpush2.bf16.msra.mxu1 %v16011_v38  ;;  %11578 = vmatprep.subr.bf16.mxu0 %v16016_v39  ;;  %v16080_v38 = vld [vmem:[%s18652_s12 + $0xe04] ss:$16 sps:$4 sm:$0xff]   ;;  %v16075_v39 = vld [vmem:[%s18652_s12 + $0xc00] ss:$16 sps:$4 sm:$0xff]  }
  0xef   : > { %11619 = vmatprep.subr.bf16.mxu1 %v16019_v41  ;;  %v16078_v41 = vld [vmem:[%s18652_s12 + $0xe00] ss:$16 sps:$4 sm:$0xff]  }
  0xf1   : > { %11579 = vmatpush2.bf16.msra.mxu0 %v16014_v42  ;;  %v16083_v42 = vld [vmem:[%s18652_s12 + $0xde4] ss:$16 sps:$4 sm:$0xff]  }
  0xf2   : > { %11620 = vmatpush2.bf16.msra.mxu1 %v16017_v43  ;;  %11580 = vmatprep.subr.bf16.mxu0 %v16022_v47  ;;  %v16086_v43 = vld [vmem:[%s18652_s12 + $0xfe4] ss:$16 sps:$4 sm:$0xff]   ;;  %v16084_v47 = vld [vmem:[%s18652_s12 + $0xfe0] ss:$16 sps:$4 sm:$0xff]  }
  0xf3   : > { %11621 = vmatprep.subr.bf16.mxu1 %v16025_v48  ;;  %v16089_v48 = vld [vmem:[%s18652_s12 + $0xdc4] ss:$16 sps:$4 sm:$0xff]  }
  0xf5   : > { %11581 = vmatpush2.bf16.msra.mxu0 %v16020_v52  ;;  %v16087_v52 = vld [vmem:[%s18652_s12 + $0xdc0] ss:$16 sps:$4 sm:$0xff]  }
  0xf6   : > { %11622 = vmatpush2.bf16.msra.mxu1 %v16023_v55  ;;  %11582 = vmatprep.subr.bf16.mxu0 %v16028_v56  ;;  %v16090_v55 = vld [vmem:[%s18652_s12 + $0xfc0] ss:$16 sps:$4 sm:$0xff]   ;;  %v16095_v56 = vld [vmem:[%s18652_s12 + $0xda4] ss:$16 sps:$4 sm:$0xff]  }
  0xf7   : > { %11623 = vmatprep.subr.bf16.mxu1 %v16031_v57  ;;  %v16098_v57 = vld [vmem:[%s18652_s12 + $0xfa4] ss:$16 sps:$4 sm:$0xff]  }
  0xf9   : > { %11583 = vmatpush2.bf16.msra.mxu0 %v16026_v61  ;;  %v16093_v61 = vld [vmem:[%s18652_s12 + $0xda0] ss:$16 sps:$4 sm:$0xff]  }
  0xfa   : > { %11624 = vmatpush2.bf16.msra.mxu1 %v16029_v62  ;;  %11634 = vmatprep.subr.bf16.mxu0 %v16035_v0  ;;  %v16096_v62 = vld [vmem:[%s18652_s12 + $0xfa0] ss:$16 sps:$4 sm:$0xff]   ;;  %v16101_v0 = vld [vmem:[%s18652_s12 + $0xd84] ss:$16 sps:$4 sm:$0xff]  }
  0xfb   : > { %11675 = vmatprep.subr.bf16.mxu1 %v16038_v1  ;;  %v16104_v1 = vld [vmem:[%s18652_s12 + $0xf84] ss:$16 sps:$4 sm:$0xff]  }
  0xfc   : > { %11585 = vmatmul.mubr.bf16.vlgmr.msra.gmra.mxu0 %v18950_v5 }
  0xfd   : > { %11626 = vmatmul.mubr.bf16.vlgmr.msra.gmra.mxu1 %v18954_v6  ;;  %11635 = vmatpush1.bf16.msra.mxu0 %v16033_v7  ;;  %v16107_v7 = vld [vmem:[%s18652_s12 + $0xd64] ss:$16 sps:$4 sm:$0xff]  }
  0xfe   : > { %11676 = vmatpush1.bf16.msra.mxu1 %v16036_v8  ;;  %11636 = vmatprep.subr.bf16.mxu0 %v16041_v9  ;;  %v16110_v8 = vld [vmem:[%s18652_s12 + $0xf64] ss:$16 sps:$4 sm:$0xff]   ;;  %v16105_v9 = vld [vmem:[%s18652_s12 + $0xd60] ss:$16 sps:$4 sm:$0xff]  }
  0xff   : > { %11677 = vmatprep.subr.bf16.mxu1 %v16044_v10  ;;  %11666 = vmatprep.mubr.bf16.mxu0 %v18960_v11  ;;  %v16108_v10 = vld [vmem:[%s18652_s12 + $0xf60] ss:$16 sps:$4 sm:$0xff]  }
 0x100   : > { %11707 = vmatprep.mubr.bf16.mxu1 %v18962_v40 }
 0x101   : > { %11637 = vmatpush1.bf16.msra.mxu0 %v16039_v45  ;;  %v16113_v45 = vld [vmem:[%s18652_s12 + $0xd44] ss:$16 sps:$4 sm:$0xff]  }
 0x102   : > { %11678 = vmatpush1.bf16.msra.mxu1 %v16042_v12  ;;  %11638 = vmatprep.subr.bf16.mxu0 %v16047_v13  ;;  %v16116_v12 = vld [vmem:[%s18652_s12 + $0xf44] ss:$16 sps:$4 sm:$0xff]   ;;  %v16111_v13 = vld [vmem:[%s18652_s12 + $0xd40] ss:$16 sps:$4 sm:$0xff]  }
 0x103   : > { %11679 = vmatprep.subr.bf16.mxu1 %v16050_v14  ;;  %v262_v14 = vld [vmem:[%s18675_s29 + $0x20] sm:$0xff] }
 0x105   : > { %11639 = vmatpush1.bf16.msra.mxu0 %v16045_v15  ;;  %v16114_v15 = vld [vmem:[%s18652_s12 + $0xf40] ss:$16 sps:$4 sm:$0xff]  }
 0x106   : > { %11680 = vmatpush1.bf16.msra.mxu1 %v16048_v16  ;;  %11640 = vmatprep.subr.bf16.mxu0 %v16053_v19  ;;  %v16119_v16 = vld [vmem:[%s18652_s12 + $0xd24] ss:$16 sps:$4 sm:$0xff]  }
 0x107   : > { %11681 = vmatprep.subr.bf16.mxu1 %v16056_v20  ;;  %v16122_v19 = vld [vmem:[%s18652_s12 + $0xf24] ss:$16 sps:$4 sm:$0xff]   ;;  %v354_v20 = vcombine.high %v262_v14, %v262_v14 }
 0x109   : > { %11641 = vmatpush1.bf16.msra.mxu0 %v16051_v21  ;;  %v16117_v21 = vld [vmem:[%s18652_s12 + $0xd20] ss:$16 sps:$4 sm:$0xff]  }
 0x10a   : > { %11682 = vmatpush1.bf16.msra.mxu1 %v16054_v22  ;;  %11642 = vmatprep.subr.bf16.mxu0 %v16059_v23  ;;  %v16120_v22 = vld [vmem:[%s18652_s12 + $0xf20] ss:$16 sps:$4 sm:$0xff]   ;;  %v16125_v23 = vld [vmem:[%s18652_s12 + $0xd04] ss:$16 sps:$4 sm:$0xff]  }
 0x10b   : > { %11683 = vmatprep.subr.bf16.mxu1 %v16062_v24  ;;  %v16128_v24 = vld [vmem:[%s18652_s12 + $0xf04] ss:$16 sps:$4 sm:$0xff]  }
 0x10d   : > { %11643 = vmatpush1.bf16.msra.mxu0 %v16057_v25  ;;  %v19026_v25 = vrot.slane %v262_v14, %v18726_v50  ;;  %v16157_v14 = vld [vmem:[%s18652_s12 + $0x1260] ss:$16 sps:$4 sm:$0xff]  }
 0x10e   : > { %11684 = vmatpush1.bf16.msra.mxu1 %v16060_v26  ;;  %11644 = vmatprep.subr.bf16.mxu0 %v16065_v27  ;;  %v19029_v26 = vrot.slane %v354_v20, %v18726_v50  ;;  %v16123_v27 = vld [vmem:[%s18652_s12 + $0xd00] ss:$16 sps:$4 sm:$0xff]  }
 0x10f   : > { %11685 = vmatprep.subr.bf16.mxu1 %v16068_v28  ;;  %v16126_v28 = vld [vmem:[%s18652_s12 + $0xf00] ss:$16 sps:$4 sm:$0xff]  }
 0x110   : > { %v16163_v20 = vld [vmem:[%s18652_s12 + $0x1240] ss:$16 sps:$4 sm:$0xff]  }
 0x111   : > { %11645 = vmatpush1.bf16.msra.mxu0 %v16063_v29  ;;  %v16132_v29 = vld [vmem:[%s18652_s12 + $0x10e4] ss:$16 sps:$4 sm:$0xff]  }
 0x112   : > { %11686 = vmatpush1.bf16.msra.mxu1 %v16066_v30  ;;  %11646 = vmatprep.subr.bf16.mxu0 %v16071_v31  ;;  %v16135_v30 = vld [vmem:[%s18652_s12 + $0x12e4] ss:$16 sps:$4 sm:$0xff]   ;;  %v369_v31 = vcombine.high %v19026_v25, %v19026_v25 }
 0x113   : > { %11687 = vmatprep.subr.bf16.mxu1 %v16074_v32  ;;  %v370_v32 = vcombine.high %v19029_v26, %v19029_v26 }
 0x115   : > { %11647 = vmatpush1.bf16.msra.mxu0 %v16069_v35  ;;  %v19041_v35 = vpack.c.bf16 %v18935_v59, %v18935_v59  ;;  %v19053_v59 = vpack.c.bf16 %v370_v32, %v370_v32  ;;  %v16183_v32 = vld [vmem:[%s18652_s12 + $0x13e4] ss:$16 sps:$4 sm:$0xff]  }
 0x116   : > { %11688 = vmatpush1.bf16.msra.mxu1 %v16072_v36  ;;  %11648 = vmatprep.subr.bf16.mxu0 %v16077_v37  ;;  %v19045_v36 = vpack.c.bf16 %v18938_v60, %v18938_v60  ;;  %v16130_v37 = vld [vmem:[%s18652_s12 + $0x10e0] ss:$16 sps:$4 sm:$0xff]  }
 0x117   : > { %11689 = vmatprep.subr.bf16.mxu1 %v16080_v38  ;;  %v16133_v38 = vld [vmem:[%s18652_s12 + $0x12e0] ss:$16 sps:$4 sm:$0xff]  }
 0x118   : > { %v16136_v60 = vld [vmem:[%s18652_s12 + $0x10c0] ss:$16 sps:$4 sm:$0xff]  }
 0x119   : > { %11649 = vmatpush1.bf16.msra.mxu0 %v16075_v39  ;;  %v16138_v39 = vld [vmem:[%s18652_s12 + $0x10c4] ss:$16 sps:$4 sm:$0xff]  }
 0x11a   : > { %11690 = vmatpush1.bf16.msra.mxu1 %v16078_v41  ;;  %11650 = vmatprep.subr.bf16.mxu0 %v16083_v42  ;;  %v16141_v41 = vld [vmem:[%s18652_s12 + $0x12c4] ss:$16 sps:$4 sm:$0xff]   ;;  %v19051_v42 = vpack.c.bf16 %v369_v31, %v369_v31 }
 0x11b   : > { %11691 = vmatprep.subr.bf16.mxu1 %v16086_v43  ;;  %v16180_v31 = vld [vmem:[%s18652_s12 + $0x11e4] ss:$16 sps:$4 sm:$0xff]  }
 0x11d   : > { %11651 = vmatpush2.bf16.msra.mxu0 %v16081_v46 }
 0x11e   : > { %11692 = vmatpush2.bf16.msra.mxu1 %v16084_v47  ;;  %11652 = vmatprep.subr.bf16.mxu0 %v16089_v48  ;;  %v16139_v48 = vld [vmem:[%s18652_s12 + $0x12c0] ss:$16 sps:$4 sm:$0xff]  }
 0x11f   : > { %11693 = vmatprep.subr.bf16.mxu1 %v16092_v51  ;;  %v16144_v51 = vld [vmem:[%s18652_s12 + $0x10a4] ss:$16 sps:$4 sm:$0xff]  }
 0x121   : > { %11653 = vmatpush2.bf16.msra.mxu0 %v16087_v52 }
 0x122   : > { %11694 = vmatpush2.bf16.msra.mxu1 %v16090_v55  ;;  %11654 = vmatprep.subr.bf16.mxu0 %v16095_v56  ;;  %v16147_v56 = vld [vmem:[%s18652_s12 + $0x12a4] ss:$16 sps:$4 sm:$0xff]  }
 0x123   : > { %11695 = vmatprep.subr.bf16.mxu1 %v16098_v57 }
 0x125   : > { %11655 = vmatpush2.bf16.msra.mxu0 %v16093_v61  ;;  %v16142_v61 = vld [vmem:[%s18652_s12 + $0x10a0] ss:$16 sps:$4 sm:$0xff]  }
 0x126   : > { %11696 = vmatpush2.bf16.msra.mxu1 %v16096_v62  ;;  %11656 = vmatprep.subr.bf16.mxu0 %v16101_v0 }
 0x127   : > { %11697 = vmatprep.subr.bf16.mxu1 %v16104_v1  ;;  %v16145_v1 = vld [vmem:[%s18652_s12 + $0x12a0] ss:$16 sps:$4 sm:$0xff]  }
 0x129   : > { %11657 = vmatpush2.bf16.msra.mxu0 %v16099_v2 }
 0x12a   : > { %11698 = vmatpush2.bf16.msra.mxu1 %v16102_v3  ;;  %11658 = vmatprep.subr.bf16.mxu0 %v16107_v7  ;;  %v16150_v7 = vld [vmem:[%s18652_s12 + $0x1084] ss:$16 sps:$4 sm:$0xff]  }
 0x12b   : > { %11699 = vmatprep.subr.bf16.mxu1 %v16110_v8  ;;  %v16153_v8 = vld [vmem:[%s18652_s12 + $0x1284] ss:$16 sps:$4 sm:$0xff]  }
 0x12d   : > { %11659 = vmatpush2.bf16.msra.mxu0 %v16105_v9  ;;  %v16148_v9 = vld [vmem:[%s18652_s12 + $0x1080] ss:$16 sps:$4 sm:$0xff]  }
 0x12e   : > { %11700 = vmatpush2.bf16.msra.mxu1 %v16108_v10  ;;  %11660 = vmatprep.subr.bf16.mxu0 %v16113_v45  ;;  %v16151_v10 = vld [vmem:[%s18652_s12 + $0x1280] ss:$16 sps:$4 sm:$0xff]   ;;  %v16156_v45 = vld [vmem:[%s18652_s12 + $0x1064] ss:$16 sps:$4 sm:$0xff]  }
 0x12f   : > { %11701 = vmatprep.subr.bf16.mxu1 %v16116_v12  ;;  %v16159_v12 = vld [vmem:[%s18652_s12 + $0x1264] ss:$16 sps:$4 sm:$0xff]  }
 0x131   : > { %11661 = vmatpush2.bf16.msra.mxu0 %v16111_v13  ;;  %v16154_v13 = vld [vmem:[%s18652_s12 + $0x1060] ss:$16 sps:$4 sm:$0xff]  }
 0x132   : > { %11702 = vmatpush2.bf16.msra.mxu1 %v16114_v15  ;;  %11662 = vmatprep.subr.bf16.mxu0 %v16119_v16  ;;  %v16162_v15 = vld [vmem:[%s18652_s12 + $0x1044] ss:$16 sps:$4 sm:$0xff]  }
 0x133   : > { %11703 = vmatprep.subr.bf16.mxu1 %v16122_v19  ;;  %v16165_v16 = vld [vmem:[%s18652_s12 + $0x1244] ss:$16 sps:$4 sm:$0xff]   ;;  %v16160_v19 = vld [vmem:[%s18652_s12 + $0x1040] ss:$16 sps:$4 sm:$0xff]  }
 0x135   : > { %11663 = vmatpush2.bf16.msra.mxu0 %v16117_v21  ;;  %v16168_v21 = vld [vmem:[%s18652_s12 + $0x1024] ss:$16 sps:$4 sm:$0xff]  }
 0x136   : > { %11704 = vmatpush2.bf16.msra.mxu1 %v16120_v22  ;;  %11664 = vmatprep.subr.bf16.mxu0 %v16125_v23  ;;  %v16171_v22 = vld [vmem:[%s18652_s12 + $0x1224] ss:$16 sps:$4 sm:$0xff]   ;;  %v16166_v23 = vld [vmem:[%s18652_s12 + $0x1020] ss:$16 sps:$4 sm:$0xff]  }
 0x137   : > { %11705 = vmatprep.subr.bf16.mxu1 %v16128_v24  ;;  %v16169_v24 = vld [vmem:[%s18652_s12 + $0x1220] ss:$16 sps:$4 sm:$0xff]  }
 0x139   : > { %11665 = vmatpush2.bf16.msra.mxu0 %v16123_v27  ;;  %v16174_v27 = vld [vmem:[%s18652_s12 + $0x1004] ss:$16 sps:$4 sm:$0xff]  }
 0x13a   : > { %11706 = vmatpush2.bf16.msra.mxu1 %v16126_v28  ;;  %11716 = vmatprep.subr.bf16.mxu0 %v16132_v29  ;;  %v16177_v28 = vld [vmem:[%s18652_s12 + $0x1204] ss:$16 sps:$4 sm:$0xff]   ;;  %v16172_v29 = vld [vmem:[%s18652_s12 + $0x1000] ss:$16 sps:$4 sm:$0xff]  }
 0x13b   : > { %11757 = vmatprep.subr.bf16.mxu1 %v16135_v30  ;;  %v16175_v30 = vld [vmem:[%s18652_s12 + $0x1200] ss:$16 sps:$4 sm:$0xff]  }
 0x13c   : > { %v11422_v43 = vpop.f32.mrf.mxu0  ;;  %11667 = vmatmul.mubr.bf16.vlgmr.msra.gmra.mxu0 %v19041_v35 }
 0x13d   : > { %v11463_v46 = vpop.f32.mrf.mxu1  ;;  %11708 = vmatmul.mubr.bf16.vlgmr.msra.gmra.mxu1 %v19045_v36  ;;  %11717 = vmatpush1.bf16.msra.mxu0 %v16130_v37  ;;  %v16178_v37 = vld [vmem:[%s18652_s12 + $0x11e0] ss:$16 sps:$4 sm:$0xff]  }
 0x13e   : > { %v19058_v47 = vadd.f32 %v11463_v46, %v11422_v43  ;;  %11758 = vmatpush1.bf16.msra.mxu1 %v16133_v38  ;;  %v11424_v52 = vpop.f32.mrf.mxu0  ;;  %11718 = vmatprep.subr.bf16.mxu0 %v16138_v39  ;;  %v16181_v38 = vld [vmem:[%s18652_s12 + $0x13e0] ss:$16 sps:$4 sm:$0xff]   ;;  %v16186_v39 = vld [vmem:[%s18652_s12 + $0x11c4] ss:$16 sps:$4 sm:$0xff]  }
 0x13f   : > { %v11465_v55 = vpop.f32.mrf.mxu1  ;;  %11759 = vmatprep.subr.bf16.mxu1 %v16141_v41  ;;  %11748 = vmatprep.mubr.bf16.mxu0 %v19051_v42  ;;  %v16189_v41 = vld [vmem:[%s18652_s12 + $0x13c4] ss:$16 sps:$4 sm:$0xff]   ;;  %v16184_v43 = vld [vmem:[%s18652_s12 + $0x11c0] ss:$16 sps:$4 sm:$0xff]  }
 0x140   : > { %v19063_v57 = vadd.f32 %v11465_v55, %v11424_v52  ;;  %11789 = vmatprep.mubr.bf16.mxu1 %v19053_v59  ;;  %v11426_v62 = vpop.f32.mrf.mxu0  ;;  %v16187_v46 = vld [vmem:[%s18652_s12 + $0x13c0] ss:$16 sps:$4 sm:$0xff]   ;;  %v16198_v55 = vld [vmem:[%s18652_s12 + $0x1184] ss:$16 sps:$4 sm:$0xff]  }
 0x141   : > { %v11467_v0 = vpop.f32.mrf.mxu1  ;;  %11719 = vmatpush1.bf16.msra.mxu0 %v16136_v60  ;;  %v16192_v60 = vld [vmem:[%s18652_s12 + $0x11a4] ss:$16 sps:$4 sm:$0xff]   ;;  %v16193_v52 = vld [vmem:[%s18652_s12 + $0x13a0] ss:$16 sps:$4 sm:$0xff]  }
 0x142   : > { %11760 = vmatpush1.bf16.msra.mxu1 %v16139_v48  ;;  %v11427_v2 = vpop.f32.mrf.mxu0  ;;  %11720 = vmatprep.subr.bf16.mxu0 %v16144_v51  ;;  %v16195_v48 = vld [vmem:[%s18652_s12 + $0x13a4] ss:$16 sps:$4 sm:$0xff]   ;;  %v16190_v51 = vld [vmem:[%s18652_s12 + $0x11a0] ss:$16 sps:$4 sm:$0xff]  }
 0x143   : > { %v11468_v3 = vpop.f32.mrf.mxu1  ;;  %11761 = vmatprep.subr.bf16.mxu1 %v16147_v56  ;;  %v16201_v56 = vld [vmem:[%s18652_s12 + $0x1384] ss:$16 sps:$4 sm:$0xff]   ;;  %v16199_v62 = vld [vmem:[%s18652_s12 + $0x1380] ss:$16 sps:$4 sm:$0xff]  }
 0x144   : > { %v16204_v0 = vld [vmem:[%s18652_s12 + $0x1164] ss:$16 sps:$4 sm:$0xff]   ;;  %v16202_v2 = vld [vmem:[%s18652_s12 + $0x1160] ss:$16 sps:$4 sm:$0xff]  }
 0x145   : > { %11721 = vmatpush1.bf16.msra.mxu0 %v16142_v61  ;;  %v16196_v61 = vld [vmem:[%s18652_s12 + $0x1180] ss:$16 sps:$4 sm:$0xff]  }
 0x146   : > { %11762 = vmatpush1.bf16.msra.mxu1 %v16145_v1  ;;  %11722 = vmatprep.subr.bf16.mxu0 %v16150_v7  ;;  %v16207_v1 = vld [vmem:[%s18652_s12 + $0x1364] ss:$16 sps:$4 sm:$0xff]   ;;  %v16205_v3 = vld [vmem:[%s18652_s12 + $0x1360] ss:$16 sps:$4 sm:$0xff]  }
 0x147   : > { %11763 = vmatprep.subr.bf16.mxu1 %v16153_v8  ;;  %v16210_v7 = vld [vmem:[%s18652_s12 + $0x1144] ss:$16 sps:$4 sm:$0xff]  }
 0x148   : > { %v16213_v8 = vld [vmem:[%s18652_s12 + $0x1344] ss:$16 sps:$4 sm:$0xff]  }
 0x149   : > { %11723 = vmatpush1.bf16.msra.mxu0 %v16148_v9  ;;  %v263_v9 = vld [vmem:[%s18675_s29 + $0x28] sm:$0xff] }
 0x14a   : > { %11764 = vmatpush1.bf16.msra.mxu1 %v16151_v10  ;;  %11724 = vmatprep.subr.bf16.mxu0 %v16156_v45  ;;  %v16208_v10 = vld [vmem:[%s18652_s12 + $0x1140] ss:$16 sps:$4 sm:$0xff]  }
 0x14b   : > { %11765 = vmatprep.subr.bf16.mxu1 %v16159_v12  ;;  %v16211_v45 = vld [vmem:[%s18652_s12 + $0x1340] ss:$16 sps:$4 sm:$0xff]   ;;  %v16216_v12 = vld [vmem:[%s18652_s12 + $0x1124] ss:$16 sps:$4 sm:$0xff]  }
 0x14d   : > { %11725 = vmatpush1.bf16.msra.mxu0 %v16154_v13  ;;  %v16219_v13 = vld [vmem:[%s18652_s12 + $0x1324] ss:$16 sps:$4 sm:$0xff]  }
 0x14e   : > { %11766 = vmatpush1.bf16.msra.mxu1 %v16157_v14  ;;  %11726 = vmatprep.subr.bf16.mxu0 %v16162_v15  ;;  %v371_v14 = vcombine.high %v263_v9, %v263_v9  ;;  %v16214_v15 = vld [vmem:[%s18652_s12 + $0x1120] ss:$16 sps:$4 sm:$0xff]  }
 0x14f   : > { %11767 = vmatprep.subr.bf16.mxu1 %v16165_v16  ;;  %v16217_v16 = vld [vmem:[%s18652_s12 + $0x1320] ss:$16 sps:$4 sm:$0xff]  }
 0x151   : > { %11727 = vmatpush1.bf16.msra.mxu0 %v16160_v19  ;;  %v16222_v19 = vld [vmem:[%s18652_s12 + $0x1104] ss:$16 sps:$4 sm:$0xff]  }
 0x152   : > { %11768 = vmatpush1.bf16.msra.mxu1 %v16163_v20  ;;  %11728 = vmatprep.subr.bf16.mxu0 %v16168_v21  ;;  %v16225_v20 = vld [vmem:[%s18652_s12 + $0x1304] ss:$16 sps:$4 sm:$0xff]   ;;  %v19121_v21 = vrot.slane %v263_v9, %v18726_v50 }
 0x153   : > { %11769 = vmatprep.subr.bf16.mxu1 %v16171_v22  ;;  %v19124_v22 = vrot.slane %v371_v14, %v18726_v50  ;;  %v16256_v14 = vld [vmem:[%s18652_s12 + $0x1664] ss:$16 sps:$4 sm:$0xff]  }
 0x155   : > { %11729 = vmatpush1.bf16.msra.mxu0 %v16166_v23  ;;  %v16220_v23 = vld [vmem:[%s18652_s12 + $0x1100] ss:$16 sps:$4 sm:$0xff]  }
 0x156   : > { %11770 = vmatpush1.bf16.msra.mxu1 %v16169_v24  ;;  %11730 = vmatprep.subr.bf16.mxu0 %v16174_v27  ;;  %v16223_v24 = vld [vmem:[%s18652_s12 + $0x1300] ss:$16 sps:$4 sm:$0xff]   ;;  %v16229_v27 = vld [vmem:[%s18652_s12 + $0x14e4] ss:$16 sps:$4 sm:$0xff]  }
 0x157   : > { %11771 = vmatprep.subr.bf16.mxu1 %v16177_v28  ;;  %v16232_v28 = vld [vmem:[%s18652_s12 + $0x16e4] ss:$16 sps:$4 sm:$0xff]  }
 0x159   : > { %11731 = vmatpush1.bf16.msra.mxu0 %v16172_v29  ;;  %v16227_v29 = vld [vmem:[%s18652_s12 + $0x14e0] ss:$16 sps:$4 sm:$0xff]  }
 0x15a   : > { %11772 = vmatpush1.bf16.msra.mxu1 %v16175_v30  ;;  %11732 = vmatprep.subr.bf16.mxu0 %v16180_v31  ;;  %v16230_v30 = vld [vmem:[%s18652_s12 + $0x16e0] ss:$16 sps:$4 sm:$0xff]   ;;  %v386_v31 = vcombine.high %v19121_v21, %v19121_v21 }
 0x15b   : > { %11773 = vmatprep.subr.bf16.mxu1 %v16183_v32  ;;  %v387_v32 = vcombine.high %v19124_v22, %v19124_v22 }
 0x15d   : > { %11733 = vmatpush2.bf16.msra.mxu0 %v16178_v37  ;;  %v19138_v37 = vpack.c.bf16 %v19026_v25, %v19026_v25 }
 0x15e   : > { %11774 = vmatpush2.bf16.msra.mxu1 %v16181_v38  ;;  %11734 = vmatprep.subr.bf16.mxu0 %v16186_v39  ;;  %v19142_v38 = vpack.c.bf16 %v19029_v26, %v19029_v26  ;;  %v16235_v39 = vld [vmem:[%s18652_s12 + $0x14c4] ss:$16 sps:$4 sm:$0xff]  }
 0x15f   : > { %11775 = vmatprep.subr.bf16.mxu1 %v16189_v41  ;;  %v16238_v41 = vld [vmem:[%s18652_s12 + $0x16c4] ss:$16 sps:$4 sm:$0xff]  }
 0x161   : > { %11735 = vmatpush2.bf16.msra.mxu0 %v16184_v43  ;;  %v16233_v43 = vld [vmem:[%s18652_s12 + $0x14c0] ss:$16 sps:$4 sm:$0xff]  }
 0x162   : > { %11776 = vmatpush2.bf16.msra.mxu1 %v16187_v46  ;;  %11736 = vmatprep.subr.bf16.mxu0 %v16192_v60  ;;  %v16236_v46 = vld [vmem:[%s18652_s12 + $0x16c0] ss:$16 sps:$4 sm:$0xff]   ;;  %v19148_v60 = vpack.c.bf16 %v386_v31, %v386_v31  ;;  %v16271_v31 = vld [vmem:[%s18652_s12 + $0x1404] ss:$16 sps:$4 sm:$0xff]  }
 0x163   : > { %11777 = vmatprep.subr.bf16.mxu1 %v16195_v48  ;;  %v19150_v48 = vpack.c.bf16 %v387_v32, %v387_v32  ;;  %v16274_v32 = vld [vmem:[%s18652_s12 + $0x1604] ss:$16 sps:$4 sm:$0xff]  }
 0x165   : > { %11737 = vmatpush2.bf16.msra.mxu0 %v16190_v51 }
 0x166   : > { %11778 = vmatpush2.bf16.msra.mxu1 %v16193_v52  ;;  %11738 = vmatprep.subr.bf16.mxu0 %v16198_v55 }
 0x167   : > { %11779 = vmatprep.subr.bf16.mxu1 %v16201_v56  ;;  %v16241_v56 = vld [vmem:[%s18652_s12 + $0x14a4] ss:$16 sps:$4 sm:$0xff]  }
 0x169   : > { %11739 = vmatpush2.bf16.msra.mxu0 %v16196_v61  ;;  %v16244_v61 = vld [vmem:[%s18652_s12 + $0x16a4] ss:$16 sps:$4 sm:$0xff]  }
 0x16a   : > { %11780 = vmatpush2.bf16.msra.mxu1 %v16199_v62  ;;  %11740 = vmatprep.subr.bf16.mxu0 %v16204_v0 }
 0x16b   : > { %11781 = vmatprep.subr.bf16.mxu1 %v16207_v1  ;;  %v16239_v1 = vld [vmem:[%s18652_s12 + $0x14a0] ss:$16 sps:$4 sm:$0xff]  }
 0x16d   : > { %11741 = vmatpush2.bf16.msra.mxu0 %v16202_v2  ;;  %v16242_v2 = vld [vmem:[%s18652_s12 + $0x16a0] ss:$16 sps:$4 sm:$0xff]  }
 0x16e   : > { %11782 = vmatpush2.bf16.msra.mxu1 %v16205_v3  ;;  %11742 = vmatprep.subr.bf16.mxu0 %v16210_v7 }
 0x16f   : > { %11783 = vmatprep.subr.bf16.mxu1 %v16213_v8 }
 0x171   : > { %11743 = vmatpush2.bf16.msra.mxu0 %v16208_v10  ;;  %v16250_v10 = vld [vmem:[%s18652_s12 + $0x1684] ss:$16 sps:$4 sm:$0xff]  }
 0x172   : > { %11784 = vmatpush2.bf16.msra.mxu1 %v16211_v45  ;;  %11744 = vmatprep.subr.bf16.mxu0 %v16216_v12  ;;  %v16245_v45 = vld [vmem:[%s18652_s12 + $0x1480] ss:$16 sps:$4 sm:$0xff]  }
 0x173   : > { %11785 = vmatprep.subr.bf16.mxu1 %v16219_v13  ;;  %v16248_v12 = vld [vmem:[%s18652_s12 + $0x1680] ss:$16 sps:$4 sm:$0xff]   ;;  %v16253_v13 = vld [vmem:[%s18652_s12 + $0x1464] ss:$16 sps:$4 sm:$0xff]  }
 0x175   : > { %11745 = vmatpush2.bf16.msra.mxu0 %v16214_v15  ;;  %v16251_v15 = vld [vmem:[%s18652_s12 + $0x1460] ss:$16 sps:$4 sm:$0xff]  }
 0x176   : > { %11786 = vmatpush2.bf16.msra.mxu1 %v16217_v16  ;;  %11746 = vmatprep.subr.bf16.mxu0 %v16222_v19  ;;  %v16254_v16 = vld [vmem:[%s18652_s12 + $0x1660] ss:$16 sps:$4 sm:$0xff]   ;;  %v16259_v19 = vld [vmem:[%s18652_s12 + $0x1444] ss:$16 sps:$4 sm:$0xff]  }
 0x177   : > { %11787 = vmatprep.subr.bf16.mxu1 %v16225_v20  ;;  %v16262_v20 = vld [vmem:[%s18652_s12 + $0x1644] ss:$16 sps:$4 sm:$0xff]  }
 0x179   : > { %11747 = vmatpush2.bf16.msra.mxu0 %v16220_v23  ;;  %v16257_v23 = vld [vmem:[%s18652_s12 + $0x1440] ss:$16 sps:$4 sm:$0xff]  }
 0x17a   : > { %11788 = vmatpush2.bf16.msra.mxu1 %v16223_v24  ;;  %11798 = vmatprep.subr.bf16.mxu0 %v16229_v27  ;;  %v16260_v24 = vld [vmem:[%s18652_s12 + $0x1640] ss:$16 sps:$4 sm:$0xff]   ;;  %v16265_v27 = vld [vmem:[%s18652_s12 + $0x1424] ss:$16 sps:$4 sm:$0xff]  }
 0x17b   : > { %11839 = vmatprep.subr.bf16.mxu1 %v16232_v28  ;;  %v16268_v28 = vld [vmem:[%s18652_s12 + $0x1624] ss:$16 sps:$4 sm:$0xff]  }
 0x17c   : > { %v11504_v25 = vpop.f32.mrf.mxu0  ;;  %11749 = vmatmul.mubr.bf16.vlgmr.msra.gmra.mxu0 %v19138_v37 }
 0x17d   : > { %v11545_v51 = vpop.f32.mrf.mxu1  ;;  %11790 = vmatmul.mubr.bf16.vlgmr.msra.gmra.mxu1 %v19142_v38  ;;  %v11505_v26 = vadd.f32 %v11504_v25, %v19058_v47  ;;  %11799 = vmatpush1.bf16.msra.mxu0 %v16227_v29  ;;  %v16263_v29 = vld [vmem:[%s18652_s12 + $0x1420] ss:$16 sps:$4 sm:$0xff]  }
 0x17e   : > { %11840 = vmatpush1.bf16.msra.mxu1 %v16230_v30  ;;  %v11506_v52 = vpop.f32.mrf.mxu0  ;;  %11800 = vmatprep.subr.bf16.mxu0 %v16235_v39  ;;  %v16266_v30 = vld [vmem:[%s18652_s12 + $0x1620] ss:$16 sps:$4 sm:$0xff]  }
 0x17f   : > { %v11547_v55 = vpop.f32.mrf.mxu1  ;;  %11841 = vmatprep.subr.bf16.mxu1 %v16238_v41  ;;  %v19157_v62 = vadd.f32 %v11545_v51, %v11505_v26  ;;  %v11507_v0 = vadd.f32 %v11506_v52, %v19063_v57  ;;  %11830 = vmatprep.mubr.bf16.mxu0 %v19148_v60  ;;  %v16247_v57 = vld [vmem:[%s18652_s12 + $0x1484] ss:$16 sps:$4 sm:$0xff]   ;;  %v16269_v39 = vld [vmem:[%s18652_s12 + $0x1400] ss:$16 sps:$4 sm:$0xff]  }
 0x180   : > { %11871 = vmatprep.mubr.bf16.mxu1 %v19150_v48  ;;  %v11508_v47 = vpop.f32.mrf.mxu0  ;;  %v16272_v41 = vld [vmem:[%s18652_s12 + $0x1600] ss:$16 sps:$4 sm:$0xff]   ;;  %v16283_v26 = vld [vmem:[%s18652_s12 + $0x15c4] ss:$16 sps:$4 sm:$0xff]  }
 0x181   : > { %v11549_v3 = vpop.f32.mrf.mxu1  ;;  %v19164_v7 = vadd.f32 %v11547_v55, %v11507_v0  ;;  %11801 = vmatpush1.bf16.msra.mxu0 %v16233_v43  ;;  %v16277_v43 = vld [vmem:[%s18652_s12 + $0x15e4] ss:$16 sps:$4 sm:$0xff]   ;;  %v16275_v25 = vld [vmem:[%s18652_s12 + $0x15e0] ss:$16 sps:$4 sm:$0xff]  }
 0x182   : > { %11842 = vmatpush1.bf16.msra.mxu1 %v16236_v46  ;;  %v11509_v8 = vpop.f32.mrf.mxu0  ;;  %11802 = vmatprep.subr.bf16.mxu0 %v16241_v56  ;;  %v16280_v46 = vld [vmem:[%s18652_s12 + $0x17e4] ss:$16 sps:$4 sm:$0xff]   ;;  %v16278_v51 = vld [vmem:[%s18652_s12 + $0x17e0] ss:$16 sps:$4 sm:$0xff]  }
 0x183   : > { %v11550_v9 = vpop.f32.mrf.mxu1  ;;  %11843 = vmatprep.subr.bf16.mxu1 %v16244_v61  ;;  %v16286_v52 = vld [vmem:[%s18652_s12 + $0x17c4] ss:$16 sps:$4 sm:$0xff]   ;;  %v16281_v55 = vld [vmem:[%s18652_s12 + $0x15c0] ss:$16 sps:$4 sm:$0xff]  }
 0x184   : > { %v16284_v56 = vld [vmem:[%s18652_s12 + $0x17c0] ss:$16 sps:$4 sm:$0xff]   ;;  %v16289_v61 = vld [vmem:[%s18652_s12 + $0x15a4] ss:$16 sps:$4 sm:$0xff]  }
 0x185   : > { %11803 = vmatpush1.bf16.msra.mxu0 %v16239_v1  ;;  %v16292_v0 = vld [vmem:[%s18652_s12 + $0x17a4] ss:$16 sps:$4 sm:$0xff]   ;;  %v16287_v1 = vld [vmem:[%s18652_s12 + $0x15a0] ss:$16 sps:$4 sm:$0xff]  }
 0x186   : > { %11844 = vmatpush1.bf16.msra.mxu1 %v16242_v2  ;;  %11804 = vmatprep.subr.bf16.mxu0 %v16247_v57  ;;  %v16290_v2 = vld [vmem:[%s18652_s12 + $0x17a0] ss:$16 sps:$4 sm:$0xff]   ;;  %v16295_v47 = vld [vmem:[%s18652_s12 + $0x1584] ss:$16 sps:$4 sm:$0xff]  }
 0x187   : > { %11845 = vmatprep.subr.bf16.mxu1 %v16250_v10  ;;  %v16298_v3 = vld [vmem:[%s18652_s12 + $0x1784] ss:$16 sps:$4 sm:$0xff]   ;;  %v16293_v8 = vld [vmem:[%s18652_s12 + $0x1580] ss:$16 sps:$4 sm:$0xff]  }
 0x188   : > { %v16296_v9 = vld [vmem:[%s18652_s12 + $0x1780] ss:$16 sps:$4 sm:$0xff]   ;;  %v16301_v57 = vld [vmem:[%s18652_s12 + $0x1564] ss:$16 sps:$4 sm:$0xff]  }
 0x189   : > { %11805 = vmatpush1.bf16.msra.mxu0 %v16245_v45  ;;  %v16304_v10 = vld [vmem:[%s18652_s12 + $0x1764] ss:$16 sps:$4 sm:$0xff]   ;;  %v16299_v45 = vld [vmem:[%s18652_s12 + $0x1560] ss:$16 sps:$4 sm:$0xff]  }
 0x18a   : > { %11846 = vmatpush1.bf16.msra.mxu1 %v16248_v12  ;;  %11806 = vmatprep.subr.bf16.mxu0 %v16253_v13  ;;  %v16302_v12 = vld [vmem:[%s18652_s12 + $0x1760] ss:$16 sps:$4 sm:$0xff]   ;;  %v16307_v13 = vld [vmem:[%s18652_s12 + $0x1544] ss:$16 sps:$4 sm:$0xff]  }
 0x18b   : > { %11847 = vmatprep.subr.bf16.mxu1 %v16256_v14  ;;  %v16310_v14 = vld [vmem:[%s18652_s12 + $0x1744] ss:$16 sps:$4 sm:$0xff]  }
 0x18d   : > { %11807 = vmatpush1.bf16.msra.mxu0 %v16251_v15  ;;  %v264_v15 = vld [vmem:[%s18675_s29 + $0x30] sm:$0xff] }
 0x18e   : > { %11848 = vmatpush1.bf16.msra.mxu1 %v16254_v16  ;;  %11808 = vmatprep.subr.bf16.mxu0 %v16259_v19  ;;  %v16305_v16 = vld [vmem:[%s18652_s12 + $0x1540] ss:$16 sps:$4 sm:$0xff]  }
 0x18f   : > { %11849 = vmatprep.subr.bf16.mxu1 %v16262_v20  ;;  %v16308_v19 = vld [vmem:[%s18652_s12 + $0x1740] ss:$16 sps:$4 sm:$0xff]   ;;  %v16313_v20 = vld [vmem:[%s18652_s12 + $0x1524] ss:$16 sps:$4 sm:$0xff]  }
 0x191   : > { %11809 = vmatpush1.bf16.msra.mxu0 %v16257_v23  ;;  %v16316_v23 = vld [vmem:[%s18652_s12 + $0x1724] ss:$16 sps:$4 sm:$0xff]  }
 0x192   : > { %11850 = vmatpush1.bf16.msra.mxu1 %v16260_v24  ;;  %11810 = vmatprep.subr.bf16.mxu0 %v16265_v27  ;;  %v388_v24 = vcombine.high %v264_v15, %v264_v15  ;;  %v16311_v27 = vld [vmem:[%s18652_s12 + $0x1520] ss:$16 sps:$4 sm:$0xff]  }
 0x193   : > { %11851 = vmatprep.subr.bf16.mxu1 %v16268_v28  ;;  %v16314_v28 = vld [vmem:[%s18652_s12 + $0x1720] ss:$16 sps:$4 sm:$0xff]  }
 0x195   : > { %11811 = vmatpush1.bf16.msra.mxu0 %v16263_v29  ;;  %v16319_v29 = vld [vmem:[%s18652_s12 + $0x1504] ss:$16 sps:$4 sm:$0xff]  }
 0x196   : > { %11852 = vmatpush1.bf16.msra.mxu1 %v16266_v30  ;;  %11812 = vmatprep.subr.bf16.mxu0 %v16271_v31  ;;  %v16322_v30 = vld [vmem:[%s18652_s12 + $0x1704] ss:$16 sps:$4 sm:$0xff]   ;;  %v19218_v31 = vrot.slane %v264_v15, %v18726_v50  ;;  %v16339_v15 = vld [vmem:[%s18652_s12 + $0x1aa0] ss:$16 sps:$4 sm:$0xff]  }
 0x197   : > { %11853 = vmatprep.subr.bf16.mxu1 %v16274_v32  ;;  %v19221_v32 = vrot.slane %v388_v24, %v18726_v50  ;;  %v16347_v24 = vld [vmem:[%s18652_s12 + $0x1a84] ss:$16 sps:$4 sm:$0xff]  }
 0x199   : > { %11813 = vmatpush1.bf16.msra.mxu0 %v16269_v39  ;;  %v16317_v39 = vld [vmem:[%s18652_s12 + $0x1500] ss:$16 sps:$4 sm:$0xff]  }
 0x19a   : > { %11854 = vmatpush1.bf16.msra.mxu1 %v16272_v41  ;;  %11814 = vmatprep.subr.bf16.mxu0 %v16277_v43  ;;  %v16320_v41 = vld [vmem:[%s18652_s12 + $0x1700] ss:$16 sps:$4 sm:$0xff]   ;;  %v16326_v43 = vld [vmem:[%s18652_s12 + $0x18e4] ss:$16 sps:$4 sm:$0xff]  }
 0x19b   : > { %11855 = vmatprep.subr.bf16.mxu1 %v16280_v46  ;;  %v16329_v46 = vld [vmem:[%s18652_s12 + $0x1ae4] ss:$16 sps:$4 sm:$0xff]  }
 0x19d   : > { %11815 = vmatpush2.bf16.msra.mxu0 %v16275_v25  ;;  %v16324_v25 = vld [vmem:[%s18652_s12 + $0x18e0] ss:$16 sps:$4 sm:$0xff]  }
 0x19e   : > { %11856 = vmatpush2.bf16.msra.mxu1 %v16278_v51  ;;  %11816 = vmatprep.subr.bf16.mxu0 %v16283_v26  ;;  %v16327_v51 = vld [vmem:[%s18652_s12 + $0x1ae0] ss:$16 sps:$4 sm:$0xff]   ;;  %v403_v26 = vcombine.high %v19218_v31, %v19218_v31 }
 0x19f   : > { %11857 = vmatprep.subr.bf16.mxu1 %v16286_v52  ;;  %v404_v52 = vcombine.high %v19221_v32, %v19221_v32 }
 0x1a1   : > { %11817 = vmatpush2.bf16.msra.mxu0 %v16281_v55  ;;  %v19235_v55 = vpack.c.bf16 %v19121_v21, %v19121_v21 }
 0x1a2   : > { %11858 = vmatpush2.bf16.msra.mxu1 %v16284_v56  ;;  %11818 = vmatprep.subr.bf16.mxu0 %v16289_v61  ;;  %v19239_v56 = vpack.c.bf16 %v19124_v22, %v19124_v22  ;;  %v16332_v61 = vld [vmem:[%s18652_s12 + $0x18c4] ss:$16 sps:$4 sm:$0xff]  }
 0x1a3   : > { %11859 = vmatprep.subr.bf16.mxu1 %v16292_v0  ;;  %v16335_v0 = vld [vmem:[%s18652_s12 + $0x1ac4] ss:$16 sps:$4 sm:$0xff]  }
 0x1a5   : > { %11819 = vmatpush2.bf16.msra.mxu0 %v16287_v1  ;;  %v16330_v1 = vld [vmem:[%s18652_s12 + $0x18c0] ss:$16 sps:$4 sm:$0xff]  }
 0x1a6   : > { %11860 = vmatpush2.bf16.msra.mxu1 %v16290_v2  ;;  %11820 = vmatprep.subr.bf16.mxu0 %v16295_v47  ;;  %v16333_v2 = vld [vmem:[%s18652_s12 + $0x1ac0] ss:$16 sps:$4 sm:$0xff]   ;;  %v19245_v47 = vpack.c.bf16 %v403_v26, %v403_v26  ;;  %v16362_v26 = vld [vmem:[%s18652_s12 + $0x1824] ss:$16 sps:$4 sm:$0xff]  }
 0x1a7   : > { %11861 = vmatprep.subr.bf16.mxu1 %v16298_v3  ;;  %v19247_v3 = vpack.c.bf16 %v404_v52, %v404_v52  ;;  %v16365_v52 = vld [vmem:[%s18652_s12 + $0x1a24] ss:$16 sps:$4 sm:$0xff]  }
 0x1a9   : > { %11821 = vmatpush2.bf16.msra.mxu0 %v16293_v8 }
 0x1aa   : > { %11862 = vmatpush2.bf16.msra.mxu1 %v16296_v9  ;;  %11822 = vmatprep.subr.bf16.mxu0 %v16301_v57 }
 0x1ab   : > { %11863 = vmatprep.subr.bf16.mxu1 %v16304_v10  ;;  %v16338_v10 = vld [vmem:[%s18652_s12 + $0x18a4] ss:$16 sps:$4 sm:$0xff]  }
 0x1ad   : > { %11823 = vmatpush2.bf16.msra.mxu0 %v16299_v45  ;;  %v16341_v45 = vld [vmem:[%s18652_s12 + $0x1aa4] ss:$16 sps:$4 sm:$0xff]  }
 0x1ae   : > { %11864 = vmatpush2.bf16.msra.mxu1 %v16302_v12  ;;  %11824 = vmatprep.subr.bf16.mxu0 %v16307_v13 }
 0x1af   : > { %11865 = vmatprep.subr.bf16.mxu1 %v16310_v14  ;;  %v16336_v14 = vld [vmem:[%s18652_s12 + $0x18a0] ss:$16 sps:$4 sm:$0xff]  }
 0x1b1   : > { %11825 = vmatpush2.bf16.msra.mxu0 %v16305_v16 }
 0x1b2   : > { %11866 = vmatpush2.bf16.msra.mxu1 %v16308_v19  ;;  %11826 = vmatprep.subr.bf16.mxu0 %v16313_v20 }
 0x1b3   : > { %11867 = vmatprep.subr.bf16.mxu1 %v16316_v23 }
 0x1b5   : > { %11827 = vmatpush2.bf16.msra.mxu0 %v16311_v27  ;;  %v16342_v27 = vld [vmem:[%s18652_s12 + $0x1880] ss:$16 sps:$4 sm:$0xff]  }
 0x1b6   : > { %11868 = vmatpush2.bf16.msra.mxu1 %v16314_v28  ;;  %11828 = vmatprep.subr.bf16.mxu0 %v16319_v29  ;;  %v16345_v28 = vld [vmem:[%s18652_s12 + $0x1a80] ss:$16 sps:$4 sm:$0xff]   ;;  %v16350_v29 = vld [vmem:[%s18652_s12 + $0x1864] ss:$16 sps:$4 sm:$0xff]  }
 0x1b7   : > { %11869 = vmatprep.subr.bf16.mxu1 %v16322_v30  ;;  %v16353_v30 = vld [vmem:[%s18652_s12 + $0x1a64] ss:$16 sps:$4 sm:$0xff]  }
 0x1b9   : > { %11829 = vmatpush2.bf16.msra.mxu0 %v16317_v39  ;;  %v16348_v39 = vld [vmem:[%s18652_s12 + $0x1860] ss:$16 sps:$4 sm:$0xff]  }
 0x1ba   : > { %11870 = vmatpush2.bf16.msra.mxu1 %v16320_v41  ;;  %11880 = vmatprep.subr.bf16.mxu0 %v16326_v43  ;;  %v16351_v41 = vld [vmem:[%s18652_s12 + $0x1a60] ss:$16 sps:$4 sm:$0xff]   ;;  %v16356_v43 = vld [vmem:[%s18652_s12 + $0x1844] ss:$16 sps:$4 sm:$0xff]  }
 0x1bb   : > { %11921 = vmatprep.subr.bf16.mxu1 %v16329_v46  ;;  %v16359_v46 = vld [vmem:[%s18652_s12 + $0x1a44] ss:$16 sps:$4 sm:$0xff]  }
 0x1bc   : > { %v11586_v21 = vpop.f32.mrf.mxu0  ;;  %11831 = vmatmul.mubr.bf16.vlgmr.msra.gmra.mxu0 %v19235_v55 }
 0x1bd   : > { %v11627_v8 = vpop.f32.mrf.mxu1  ;;  %11872 = vmatmul.mubr.bf16.vlgmr.msra.gmra.mxu1 %v19239_v56  ;;  %v11587_v22 = vadd.f32 %v11586_v21, %v19157_v62  ;;  %11881 = vmatpush1.bf16.msra.mxu0 %v16324_v25  ;;  %v16354_v25 = vld [vmem:[%s18652_s12 + $0x1840] ss:$16 sps:$4 sm:$0xff]  }
 0x1be   : > { %11922 = vmatpush1.bf16.msra.mxu1 %v16327_v51  ;;  %v11588_v9 = vpop.f32.mrf.mxu0  ;;  %11882 = vmatprep.subr.bf16.mxu0 %v16332_v61  ;;  %v16357_v51 = vld [vmem:[%s18652_s12 + $0x1a40] ss:$16 sps:$4 sm:$0xff]  }
 0x1bf   : > { %v11629_v57 = vpop.f32.mrf.mxu1  ;;  %11923 = vmatprep.subr.bf16.mxu1 %v16335_v0  ;;  %v19254_v12 = vadd.f32 %v11627_v8, %v11587_v22  ;;  %v11589_v13 = vadd.f32 %v11588_v9, %v19164_v7  ;;  %11912 = vmatprep.mubr.bf16.mxu0 %v19245_v47  ;;  %v16344_v7 = vld [vmem:[%s18652_s12 + $0x1884] ss:$16 sps:$4 sm:$0xff]   ;;  %v16360_v61 = vld [vmem:[%s18652_s12 + $0x1820] ss:$16 sps:$4 sm:$0xff]  }
 0x1c0   : > { %11953 = vmatprep.mubr.bf16.mxu1 %v19247_v3  ;;  %v11590_v62 = vpop.f32.mrf.mxu0  ;;  %v16363_v0 = vld [vmem:[%s18652_s12 + $0x1a20] ss:$16 sps:$4 sm:$0xff]   ;;  %v16374_v22 = vld [vmem:[%s18652_s12 + $0x19e4] ss:$16 sps:$4 sm:$0xff]  }
 0x1c1   : > { %v11631_v16 = vpop.f32.mrf.mxu1  ;;  %v19261_v19 = vadd.f32 %v11629_v57, %v11589_v13  ;;  %11883 = vmatpush1.bf16.msra.mxu0 %v16330_v1  ;;  %v16368_v1 = vld [vmem:[%s18652_s12 + $0x1804] ss:$16 sps:$4 sm:$0xff]   ;;  %v16366_v21 = vld [vmem:[%s18652_s12 + $0x1800] ss:$16 sps:$4 sm:$0xff]  }
 0x1c2   : > { %11924 = vmatpush1.bf16.msra.mxu1 %v16333_v2  ;;  %v11591_v20 = vpop.f32.mrf.mxu0  ;;  %11884 = vmatprep.subr.bf16.mxu0 %v16338_v10  ;;  %v16371_v2 = vld [vmem:[%s18652_s12 + $0x1a04] ss:$16 sps:$4 sm:$0xff]   ;;  %v16369_v8 = vld [vmem:[%s18652_s12 + $0x1a00] ss:$16 sps:$4 sm:$0xff]  }
 0x1c3   : > { %v11632_v23 = vpop.f32.mrf.mxu1  ;;  %11925 = vmatprep.subr.bf16.mxu1 %v16341_v45  ;;  %v16377_v9 = vld [vmem:[%s18652_s12 + $0x1be4] ss:$16 sps:$4 sm:$0xff]   ;;  %v16372_v57 = vld [vmem:[%s18652_s12 + $0x19e0] ss:$16 sps:$4 sm:$0xff]  }
 0x1c4   : > { %v16375_v10 = vld [vmem:[%s18652_s12 + $0x1be0] ss:$16 sps:$4 sm:$0xff]   ;;  %v16380_v45 = vld [vmem:[%s18652_s12 + $0x19c4] ss:$16 sps:$4 sm:$0xff]  }
 0x1c5   : > { %11885 = vmatpush1.bf16.msra.mxu0 %v16336_v14  ;;  %v16383_v13 = vld [vmem:[%s18652_s12 + $0x1bc4] ss:$16 sps:$4 sm:$0xff]   ;;  %v16378_v14 = vld [vmem:[%s18652_s12 + $0x19c0] ss:$16 sps:$4 sm:$0xff]  }
 0x1c6   : > { %11926 = vmatpush1.bf16.msra.mxu1 %v16339_v15  ;;  %11886 = vmatprep.subr.bf16.mxu0 %v16344_v7  ;;  %v16381_v15 = vld [vmem:[%s18652_s12 + $0x1bc0] ss:$16 sps:$4 sm:$0xff]   ;;  %v16386_v62 = vld [vmem:[%s18652_s12 + $0x19a4] ss:$16 sps:$4 sm:$0xff]  }
 0x1c7   : > { %11927 = vmatprep.subr.bf16.mxu1 %v16347_v24  ;;  %v16389_v16 = vld [vmem:[%s18652_s12 + $0x1ba4] ss:$16 sps:$4 sm:$0xff]   ;;  %v16384_v20 = vld [vmem:[%s18652_s12 + $0x19a0] ss:$16 sps:$4 sm:$0xff]  }
 0x1c8   : > { %v16387_v23 = vld [vmem:[%s18652_s12 + $0x1ba0] ss:$16 sps:$4 sm:$0xff]   ;;  %v16392_v7 = vld [vmem:[%s18652_s12 + $0x1984] ss:$16 sps:$4 sm:$0xff]  }
 0x1c9   : > { %11887 = vmatpush1.bf16.msra.mxu0 %v16342_v27  ;;  %v16395_v24 = vld [vmem:[%s18652_s12 + $0x1b84] ss:$16 sps:$4 sm:$0xff]   ;;  %v16390_v27 = vld [vmem:[%s18652_s12 + $0x1980] ss:$16 sps:$4 sm:$0xff]  }
 0x1ca   : > { %11928 = vmatpush1.bf16.msra.mxu1 %v16345_v28  ;;  %11888 = vmatprep.subr.bf16.mxu0 %v16350_v29  ;;  %v16393_v28 = vld [vmem:[%s18652_s12 + $0x1b80] ss:$16 sps:$4 sm:$0xff]   ;;  %v16398_v29 = vld [vmem:[%s18652_s12 + $0x1964] ss:$16 sps:$4 sm:$0xff]  }
 0x1cb   : > { %11929 = vmatprep.subr.bf16.mxu1 %v16353_v30  ;;  %v16401_v30 = vld [vmem:[%s18652_s12 + $0x1b64] ss:$16 sps:$4 sm:$0xff]  }
 0x1cd   : > { %11889 = vmatpush1.bf16.msra.mxu0 %v16348_v39  ;;  %v16396_v39 = vld [vmem:[%s18652_s12 + $0x1960] ss:$16 sps:$4 sm:$0xff]  }
 0x1ce   : > { %11930 = vmatpush1.bf16.msra.mxu1 %v16351_v41  ;;  %11890 = vmatprep.subr.bf16.mxu0 %v16356_v43  ;;  %v16399_v41 = vld [vmem:[%s18652_s12 + $0x1b60] ss:$16 sps:$4 sm:$0xff]   ;;  %v16404_v43 = vld [vmem:[%s18652_s12 + $0x1944] ss:$16 sps:$4 sm:$0xff]  }
 0x1cf   : > { %11931 = vmatprep.subr.bf16.mxu1 %v16359_v46  ;;  %v16407_v46 = vld [vmem:[%s18652_s12 + $0x1b44] ss:$16 sps:$4 sm:$0xff]  }
 0x1d1   : > { %11891 = vmatpush1.bf16.msra.mxu0 %v16354_v25  ;;  %v265_v25 = vld [vmem:[%s18675_s29 + $0x38] sm:$0xff] }
 0x1d2   : > { %11932 = vmatpush1.bf16.msra.mxu1 %v16357_v51  ;;  %11892 = vmatprep.subr.bf16.mxu0 %v16362_v26  ;;  %v16402_v51 = vld [vmem:[%s18652_s12 + $0x1940] ss:$16 sps:$4 sm:$0xff]  }
 0x1d3   : > { %11933 = vmatprep.subr.bf16.mxu1 %v16365_v52  ;;  %v16405_v26 = vld [vmem:[%s18652_s12 + $0x1b40] ss:$16 sps:$4 sm:$0xff]   ;;  %v16410_v52 = vld [vmem:[%s18652_s12 + $0x1924] ss:$16 sps:$4 sm:$0xff]  }
 0x1d5   : > { %11893 = vmatpush1.bf16.msra.mxu0 %v16360_v61  ;;  %v16413_v61 = vld [vmem:[%s18652_s12 + $0x1b24] ss:$16 sps:$4 sm:$0xff]  }
 0x1d6   : > { %11934 = vmatpush1.bf16.msra.mxu1 %v16363_v0  ;;  %11894 = vmatprep.subr.bf16.mxu0 %v16368_v1  ;;  %v405_v0 = vcombine.high %v265_v25, %v265_v25  ;;  %v16408_v1 = vld [vmem:[%s18652_s12 + $0x1920] ss:$16 sps:$4 sm:$0xff]  }
 0x1d7   : > { %11935 = vmatprep.subr.bf16.mxu1 %v16371_v2  ;;  %v16411_v2 = vld [vmem:[%s18652_s12 + $0x1b20] ss:$16 sps:$4 sm:$0xff]  }
 0x1d9   : > { %11895 = vmatpush1.bf16.msra.mxu0 %v16366_v21  ;;  %v16416_v21 = vld [vmem:[%s18652_s12 + $0x1904] ss:$16 sps:$4 sm:$0xff]  }
 0x1da   : > { %11936 = vmatpush1.bf16.msra.mxu1 %v16369_v8  ;;  %11896 = vmatprep.subr.bf16.mxu0 %v16374_v22  ;;  %v16419_v8 = vld [vmem:[%s18652_s12 + $0x1b04] ss:$16 sps:$4 sm:$0xff]   ;;  %v19315_v22 = vrot.slane %v265_v25, %v18726_v50 }
 0x1db   : > { %11937 = vmatprep.subr.bf16.mxu1 %v16377_v9  ;;  %v19318_v9 = vrot.slane %v405_v0, %v18726_v50  ;;  %v16438_v25 = vld [vmem:[%s18652_s12 + $0x1ea4] ss:$16 sps:$4 sm:$0xff]  }
 0x1dd   : > { %11897 = vmatpush2.bf16.msra.mxu0 %v16372_v57  ;;  %v16414_v57 = vld [vmem:[%s18652_s12 + $0x1900] ss:$16 sps:$4 sm:$0xff]  }
 0x1de   : > { %11938 = vmatpush2.bf16.msra.mxu1 %v16375_v10  ;;  %11898 = vmatprep.subr.bf16.mxu0 %v16380_v45  ;;  %v16417_v10 = vld [vmem:[%s18652_s12 + $0x1b00] ss:$16 sps:$4 sm:$0xff]   ;;  %v16423_v45 = vld [vmem:[%s18652_s12 + $0x1ce4] ss:$16 sps:$4 sm:$0xff]  }
 0x1df   : > { %11939 = vmatprep.subr.bf16.mxu1 %v16383_v13  ;;  %v16426_v13 = vld [vmem:[%s18652_s12 + $0x1ee4] ss:$16 sps:$4 sm:$0xff]  }
 0x1e1   : > { %11899 = vmatpush2.bf16.msra.mxu0 %v16378_v14  ;;  %v16421_v14 = vld [vmem:[%s18652_s12 + $0x1ce0] ss:$16 sps:$4 sm:$0xff]  }
 0x1e2   : > { %11940 = vmatpush2.bf16.msra.mxu1 %v16381_v15  ;;  %11900 = vmatprep.subr.bf16.mxu0 %v16386_v62  ;;  %v16424_v15 = vld [vmem:[%s18652_s12 + $0x1ee0] ss:$16 sps:$4 sm:$0xff]   ;;  %v420_v62 = vcombine.high %v19315_v22, %v19315_v22 }
 0x1e3   : > { %11941 = vmatprep.subr.bf16.mxu1 %v16389_v16  ;;  %v421_v16 = vcombine.high %v19318_v9, %v19318_v9 }
 0x1e5   : > { %11901 = vmatpush2.bf16.msra.mxu0 %v16384_v20  ;;  %v19332_v20 = vpack.c.bf16 %v19218_v31, %v19218_v31 }
 0x1e6   : > { %11942 = vmatpush2.bf16.msra.mxu1 %v16387_v23  ;;  %11902 = vmatprep.subr.bf16.mxu0 %v16392_v7  ;;  %v19336_v23 = vpack.c.bf16 %v19221_v32, %v19221_v32  ;;  %v16429_v7 = vld [vmem:[%s18652_s12 + $0x1cc4] ss:$16 sps:$4 sm:$0xff]  }
 0x1e7   : > { %11943 = vmatprep.subr.bf16.mxu1 %v16395_v24  ;;  %v16432_v24 = vld [vmem:[%s18652_s12 + $0x1ec4] ss:$16 sps:$4 sm:$0xff]  }
 0x1e9   : > { %11903 = vmatpush2.bf16.msra.mxu0 %v16390_v27  ;;  %v16427_v27 = vld [vmem:[%s18652_s12 + $0x1cc0] ss:$16 sps:$4 sm:$0xff]  }
 0x1ea   : > { %11944 = vmatpush2.bf16.msra.mxu1 %v16393_v28  ;;  %11904 = vmatprep.subr.bf16.mxu0 %v16398_v29  ;;  %v16430_v28 = vld [vmem:[%s18652_s12 + $0x1ec0] ss:$16 sps:$4 sm:$0xff]   ;;  %v19342_v29 = vpack.c.bf16 %v420_v62, %v420_v62  ;;  %v16453_v62 = vld [vmem:[%s18652_s12 + $0x1c44] ss:$16 sps:$4 sm:$0xff]  }
 0x1eb   : > { %11945 = vmatprep.subr.bf16.mxu1 %v16401_v30  ;;  %v19344_v30 = vpack.c.bf16 %v421_v16, %v421_v16  ;;  %v16456_v16 = vld [vmem:[%s18652_s12 + $0x1e44] ss:$16 sps:$4 sm:$0xff]  }
 0x1ed   : > { %11905 = vmatpush2.bf16.msra.mxu0 %v16396_v39 }
 0x1ee   : > { %11946 = vmatpush2.bf16.msra.mxu1 %v16399_v41  ;;  %11906 = vmatprep.subr.bf16.mxu0 %v16404_v43 }
 0x1ef   : > { %11947 = vmatprep.subr.bf16.mxu1 %v16407_v46  ;;  %v16435_v46 = vld [vmem:[%s18652_s12 + $0x1ca4] ss:$16 sps:$4 sm:$0xff]  }
 0x1f1   : > { %11907 = vmatpush2.bf16.msra.mxu0 %v16402_v51 }
 0x1f2   : > { %11948 = vmatpush2.bf16.msra.mxu1 %v16405_v26  ;;  %11908 = vmatprep.subr.bf16.mxu0 %v16410_v52  ;;  %v16433_v52 = vld [vmem:[%s18652_s12 + $0x1ca0] ss:$16 sps:$4 sm:$0xff]  }
 0x1f3   : > { %11949 = vmatprep.subr.bf16.mxu1 %v16413_v61  ;;  %v16436_v61 = vld [vmem:[%s18652_s12 + $0x1ea0] ss:$16 sps:$4 sm:$0xff]  }
 0x1f5   : > { %11909 = vmatpush2.bf16.msra.mxu0 %v16408_v1 }
 0x1f6   : > { %11950 = vmatpush2.bf16.msra.mxu1 %v16411_v2  ;;  %11910 = vmatprep.subr.bf16.mxu0 %v16416_v21 }
 0x1f7   : > { %11951 = vmatprep.subr.bf16.mxu1 %v16419_v8  ;;  %v16444_v8 = vld [vmem:[%s18652_s12 + $0x1e84] ss:$16 sps:$4 sm:$0xff]  }
 0x1f9   : > { %11911 = vmatpush2.bf16.msra.mxu0 %v16414_v57  ;;  %v16439_v57 = vld [vmem:[%s18652_s12 + $0x1c80] ss:$16 sps:$4 sm:$0xff]  }
 0x1fa   : > { %11952 = vmatpush2.bf16.msra.mxu1 %v16417_v10  ;;  %11962 = vmatprep.subr.bf16.mxu0 %v16423_v45  ;;  %v16442_v10 = vld [vmem:[%s18652_s12 + $0x1e80] ss:$16 sps:$4 sm:$0xff]   ;;  %v16447_v45 = vld [vmem:[%s18652_s12 + $0x1c64] ss:$16 sps:$4 sm:$0xff]  }
 0x1fb   : > { %12003 = vmatprep.subr.bf16.mxu1 %v16426_v13  ;;  %v16450_v13 = vld [vmem:[%s18652_s12 + $0x1e64] ss:$16 sps:$4 sm:$0xff]  }
 0x1fc   : > { %v11668_v31 = vpop.f32.mrf.mxu0  ;;  %11913 = vmatmul.mubr.bf16.vlgmr.msra.gmra.mxu0 %v19332_v20 }
 0x1fd   : > { %v11709_v39 = vpop.f32.mrf.mxu1  ;;  %11954 = vmatmul.mubr.bf16.vlgmr.msra.gmra.mxu1 %v19336_v23  ;;  %v11669_v32 = vadd.f32 %v11668_v31, %v19254_v12  ;;  %11963 = vmatpush1.bf16.msra.mxu0 %v16421_v14  ;;  %v16445_v14 = vld [vmem:[%s18652_s12 + $0x1c60] ss:$16 sps:$4 sm:$0xff]  }
 0x1fe   : > { %12004 = vmatpush1.bf16.msra.mxu1 %v16424_v15  ;;  %v11670_v41 = vpop.f32.mrf.mxu0  ;;  %11964 = vmatprep.subr.bf16.mxu0 %v16429_v7  ;;  %v16448_v15 = vld [vmem:[%s18652_s12 + $0x1e60] ss:$16 sps:$4 sm:$0xff]  }
 0x1ff   : > { %v11711_v43 = vpop.f32.mrf.mxu1  ;;  %12005 = vmatprep.subr.bf16.mxu1 %v16432_v24  ;;  %v19351_v51 = vadd.f32 %v11709_v39, %v11669_v32  ;;  %v11671_v26 = vadd.f32 %v11670_v41, %v19261_v19  ;;  %11994 = vmatprep.mubr.bf16.mxu0 %v19342_v29  ;;  %v16441_v19 = vld [vmem:[%s18652_s12 + $0x1c84] ss:$16 sps:$4 sm:$0xff]   ;;  %v16451_v7 = vld [vmem:[%s18652_s12 + $0x1c40] ss:$16 sps:$4 sm:$0xff]  }
 0x200   : > { %12035 = vmatprep.mubr.bf16.mxu1 %v19344_v30  ;;  %v11672_v12 = vpop.f32.mrf.mxu0  ;;  %v16454_v24 = vld [vmem:[%s18652_s12 + $0x1e40] ss:$16 sps:$4 sm:$0xff]   ;;  %v16465_v32 = vld [vmem:[%s18652_s12 + $0x1c04] ss:$16 sps:$4 sm:$0xff]  }
 0x201   : > { %v11713_v0 = vpop.f32.mrf.mxu1  ;;  %v19358_v1 = vadd.f32 %v11711_v43, %v11671_v26  ;;  %11965 = vmatpush1.bf16.msra.mxu0 %v16427_v27  ;;  %v16459_v27 = vld [vmem:[%s18652_s12 + $0x1c24] ss:$16 sps:$4 sm:$0xff]   ;;  %v16457_v31 = vld [vmem:[%s18652_s12 + $0x1c20] ss:$16 sps:$4 sm:$0xff]  }
 0x202   : > { %12006 = vmatpush1.bf16.msra.mxu1 %v16430_v28  ;;  %v11673_v2 = vpop.f32.mrf.mxu0  ;;  %11966 = vmatprep.subr.bf16.mxu0 %v16435_v46  ;;  %v16462_v28 = vld [vmem:[%s18652_s12 + $0x1e24] ss:$16 sps:$4 sm:$0xff]   ;;  %v16460_v39 = vld [vmem:[%s18652_s12 + $0x1e20] ss:$16 sps:$4 sm:$0xff]  }
 0x203   : > { %v11714_v21 = vpop.f32.mrf.mxu1  ;;  %12007 = vmatprep.subr.bf16.mxu1 %v16438_v25  ;;  %v16468_v41 = vld [vmem:[%s18652_s12 + $0x1e04] ss:$16 sps:$4 sm:$0xff]   ;;  %v16463_v43 = vld [vmem:[%s18652_s12 + $0x1c00] ss:$16 sps:$4 sm:$0xff]  }
 0x204   : > { %v16466_v46 = vld [vmem:[%s18652_s12 + $0x1e00] ss:$16 sps:$4 sm:$0xff]   ;;  %v16471_v25 = vld [vmem:[%s18652_s12 + $0x1de4] ss:$16 sps:$4 sm:$0xff]  }
 0x205   : > { %11967 = vmatpush1.bf16.msra.mxu0 %v16433_v52  ;;  %v16474_v26 = vld [vmem:[%s18652_s12 + $0x1fe4] ss:$16 sps:$4 sm:$0xff]   ;;  %v16469_v52 = vld [vmem:[%s18652_s12 + $0x1de0] ss:$16 sps:$4 sm:$0xff]  }
 0x206   : > { %12008 = vmatpush1.bf16.msra.mxu1 %v16436_v61  ;;  %11968 = vmatprep.subr.bf16.mxu0 %v16441_v19  ;;  %v16472_v61 = vld [vmem:[%s18652_s12 + $0x1fe0] ss:$16 sps:$4 sm:$0xff]   ;;  %v16477_v12 = vld [vmem:[%s18652_s12 + $0x1dc4] ss:$16 sps:$4 sm:$0xff]  }
 0x207   : > { %12009 = vmatprep.subr.bf16.mxu1 %v16444_v8  ;;  %v16480_v0 = vld [vmem:[%s18652_s12 + $0x1fc4] ss:$16 sps:$4 sm:$0xff]   ;;  %v16475_v2 = vld [vmem:[%s18652_s12 + $0x1dc0] ss:$16 sps:$4 sm:$0xff]  }
 0x208   : > { %v16478_v21 = vld [vmem:[%s18652_s12 + $0x1fc0] ss:$16 sps:$4 sm:$0xff]   ;;  %v16483_v19 = vld [vmem:[%s18652_s12 + $0x1da4] ss:$16 sps:$4 sm:$0xff]  }
 0x209   : > { %11969 = vmatpush1.bf16.msra.mxu0 %v16439_v57  ;;  %v16486_v8 = vld [vmem:[%s18652_s12 + $0x1fa4] ss:$16 sps:$4 sm:$0xff]   ;;  %v16481_v57 = vld [vmem:[%s18652_s12 + $0x1da0] ss:$16 sps:$4 sm:$0xff]  }
 0x20a   : > { %12010 = vmatpush1.bf16.msra.mxu1 %v16442_v10  ;;  %11970 = vmatprep.subr.bf16.mxu0 %v16447_v45  ;;  %v16484_v10 = vld [vmem:[%s18652_s12 + $0x1fa0] ss:$16 sps:$4 sm:$0xff]   ;;  %v16489_v45 = vld [vmem:[%s18652_s12 + $0x1d84] ss:$16 sps:$4 sm:$0xff]  }
 0x20b   : > { %12011 = vmatprep.subr.bf16.mxu1 %v16450_v13  ;;  %v16492_v13 = vld [vmem:[%s18652_s12 + $0x1f84] ss:$16 sps:$4 sm:$0xff]  }
 0x20d   : > { %11971 = vmatpush1.bf16.msra.mxu0 %v16445_v14  ;;  %v16487_v14 = vld [vmem:[%s18652_s12 + $0x1d80] ss:$16 sps:$4 sm:$0xff]  }
 0x20e   : > { %12012 = vmatpush1.bf16.msra.mxu1 %v16448_v15  ;;  %11972 = vmatprep.subr.bf16.mxu0 %v16453_v62  ;;  %v16490_v15 = vld [vmem:[%s18652_s12 + $0x1f80] ss:$16 sps:$4 sm:$0xff]   ;;  %v16495_v62 = vld [vmem:[%s18652_s12 + $0x1d64] ss:$16 sps:$4 sm:$0xff]  }
 0x20f   : > { %12013 = vmatprep.subr.bf16.mxu1 %v16456_v16  ;;  %v16498_v16 = vld [vmem:[%s18652_s12 + $0x1f64] ss:$16 sps:$4 sm:$0xff]  }
 0x211   : > { %11973 = vmatpush1.bf16.msra.mxu0 %v16451_v7  ;;  %v16493_v7 = vld [vmem:[%s18652_s12 + $0x1d60] ss:$16 sps:$4 sm:$0xff]  }
 0x212   : > { %12014 = vmatpush1.bf16.msra.mxu1 %v16454_v24  ;;  %11974 = vmatprep.subr.bf16.mxu0 %v16459_v27  ;;  %v16496_v24 = vld [vmem:[%s18652_s12 + $0x1f60] ss:$16 sps:$4 sm:$0xff]   ;;  %v16501_v27 = vld [vmem:[%s18652_s12 + $0x1d44] ss:$16 sps:$4 sm:$0xff]  }
 0x213   : > { %12015 = vmatprep.subr.bf16.mxu1 %v16462_v28  ;;  %v16504_v28 = vld [vmem:[%s18652_s12 + $0x1f44] ss:$16 sps:$4 sm:$0xff]  }
 0x215   : > { %11975 = vmatpush1.bf16.msra.mxu0 %v16457_v31  ;;  %v266_v31 = vld [vmem:[%s18675_s29 + $0x40] sm:$0xff] }
 0x216   : > { %12016 = vmatpush1.bf16.msra.mxu1 %v16460_v39  ;;  %11976 = vmatprep.subr.bf16.mxu0 %v16465_v32  ;;  %v16499_v39 = vld [vmem:[%s18652_s12 + $0x1d40] ss:$16 sps:$4 sm:$0xff]  }
 0x217   : > { %12017 = vmatprep.subr.bf16.mxu1 %v16468_v41  ;;  %v16502_v32 = vld [vmem:[%s18652_s12 + $0x1f40] ss:$16 sps:$4 sm:$0xff]   ;;  %v16507_v41 = vld [vmem:[%s18652_s12 + $0x1d24] ss:$16 sps:$4 sm:$0xff]  }
 0x219   : > { %11977 = vmatpush1.bf16.msra.mxu0 %v16463_v43  ;;  %v16510_v43 = vld [vmem:[%s18652_s12 + $0x1f24] ss:$16 sps:$4 sm:$0xff]  }
 0x21a   : > { %12018 = vmatpush1.bf16.msra.mxu1 %v16466_v46  ;;  %11978 = vmatprep.subr.bf16.mxu0 %v16471_v25  ;;  %v422_v46 = vcombine.high %v266_v31, %v266_v31  ;;  %v16505_v25 = vld [vmem:[%s18652_s12 + $0x1d20] ss:$16 sps:$4 sm:$0xff]  }
 0x21b   : > { %12019 = vmatprep.subr.bf16.mxu1 %v16474_v26  ;;  %v16508_v26 = vld [vmem:[%s18652_s12 + $0x1f20] ss:$16 sps:$4 sm:$0xff]  }
 0x21d   : > { %11979 = vmatpush2.bf16.msra.mxu0 %v16469_v52  ;;  %v16513_v52 = vld [vmem:[%s18652_s12 + $0x1d04] ss:$16 sps:$4 sm:$0xff]  }
 0x21e   : > { %12020 = vmatpush2.bf16.msra.mxu1 %v16472_v61  ;;  %11980 = vmatprep.subr.bf16.mxu0 %v16477_v12  ;;  %v16516_v61 = vld [vmem:[%s18652_s12 + $0x1f04] ss:$16 sps:$4 sm:$0xff]   ;;  %v19412_v12 = vrot.slane %v266_v31, %v18726_v50 }
 0x21f   : > { %12021 = vmatprep.subr.bf16.mxu1 %v16480_v0  ;;  %v19415_v0 = vrot.slane %v422_v46, %v18726_v50 }
 0x221   : > { %11981 = vmatpush2.bf16.msra.mxu0 %v16475_v2  ;;  %v16511_v2 = vld [vmem:[%s18652_s12 + $0x1d00] ss:$16 sps:$4 sm:$0xff]  }
 0x222   : > { %12022 = vmatpush2.bf16.msra.mxu1 %v16478_v21  ;;  %11982 = vmatprep.subr.bf16.mxu0 %v16483_v19  ;;  %v16514_v21 = vld [vmem:[%s18652_s12 + $0x1f00] ss:$16 sps:$4 sm:$0xff]   ;;  %v16520_v19 = vld [vmem:[%s18652_s12 + $0x20e4] ss:$16 sps:$4 sm:$0xff]  }
 0x223   : > { %12023 = vmatprep.subr.bf16.mxu1 %v16486_v8  ;;  %v16523_v8 = vld [vmem:[%s18652_s12 + $0x22e4] ss:$16 sps:$4 sm:$0xff]  }
 0x225   : > { %11983 = vmatpush2.bf16.msra.mxu0 %v16481_v57  ;;  %v16518_v57 = vld [vmem:[%s18652_s12 + $0x20e0] ss:$16 sps:$4 sm:$0xff]  }
 0x226   : > { %12024 = vmatpush2.bf16.msra.mxu1 %v16484_v10  ;;  %11984 = vmatprep.subr.bf16.mxu0 %v16489_v45  ;;  %v16521_v10 = vld [vmem:[%s18652_s12 + $0x22e0] ss:$16 sps:$4 sm:$0xff]   ;;  %v437_v45 = vcombine.high %v19412_v12, %v19412_v12 }
 0x227   : > { %12025 = vmatprep.subr.bf16.mxu1 %v16492_v13  ;;  %v438_v13 = vcombine.high %v19415_v0, %v19415_v0 }
 0x229   : > { %11985 = vmatpush2.bf16.msra.mxu0 %v16487_v14  ;;  %v19429_v14 = vpack.c.bf16 %v19315_v22, %v19315_v22 }
 0x22a   : > { %12026 = vmatpush2.bf16.msra.mxu1 %v16490_v15  ;;  %11986 = vmatprep.subr.bf16.mxu0 %v16495_v62  ;;  %v19433_v15 = vpack.c.bf16 %v19318_v9, %v19318_v9  ;;  %v16526_v62 = vld [vmem:[%s18652_s12 + $0x20c4] ss:$16 sps:$4 sm:$0xff]  }
 0x22b   : > { %12027 = vmatprep.subr.bf16.mxu1 %v16498_v16  ;;  %v16529_v16 = vld [vmem:[%s18652_s12 + $0x22c4] ss:$16 sps:$4 sm:$0xff]  }
 0x22d   : > { %11987 = vmatpush2.bf16.msra.mxu0 %v16493_v7  ;;  %v16524_v7 = vld [vmem:[%s18652_s12 + $0x20c0] ss:$16 sps:$4 sm:$0xff]  }
 0x22e   : > { %12028 = vmatpush2.bf16.msra.mxu1 %v16496_v24  ;;  %11988 = vmatprep.subr.bf16.mxu0 %v16501_v27  ;;  %v16527_v24 = vld [vmem:[%s18652_s12 + $0x22c0] ss:$16 sps:$4 sm:$0xff]   ;;  %v19439_v27 = vpack.c.bf16 %v437_v45, %v437_v45  ;;  %v16544_v45 = vld [vmem:[%s18652_s12 + $0x2064] ss:$16 sps:$4 sm:$0xff]  }
 0x22f   : > { %12029 = vmatprep.subr.bf16.mxu1 %v16504_v28  ;;  %v19441_v28 = vpack.c.bf16 %v438_v13, %v438_v13  ;;  %v16547_v13 = vld [vmem:[%s18652_s12 + $0x2264] ss:$16 sps:$4 sm:$0xff]  }
 0x231   : > { %11989 = vmatpush2.bf16.msra.mxu0 %v16499_v39 }
 0x232   : > { %12030 = vmatpush2.bf16.msra.mxu1 %v16502_v32  ;;  %11990 = vmatprep.subr.bf16.mxu0 %v16507_v41  ;;  %v16532_v41 = vld [vmem:[%s18652_s12 + $0x20a4] ss:$16 sps:$4 sm:$0xff]  }
 0x233   : > { %12031 = vmatprep.subr.bf16.mxu1 %v16510_v43  ;;  %v16535_v43 = vld [vmem:[%s18652_s12 + $0x22a4] ss:$16 sps:$4 sm:$0xff]  }
 0x235   : > { %11991 = vmatpush2.bf16.msra.mxu0 %v16505_v25 }
 0x236   : > { %12032 = vmatpush2.bf16.msra.mxu1 %v16508_v26  ;;  %11992 = vmatprep.subr.bf16.mxu0 %v16513_v52  ;;  %v16530_v26 = vld [vmem:[%s18652_s12 + $0x20a0] ss:$16 sps:$4 sm:$0xff]  }
 0x237   : > { %12033 = vmatprep.subr.bf16.mxu1 %v16516_v61  ;;  %v16533_v52 = vld [vmem:[%s18652_s12 + $0x22a0] ss:$16 sps:$4 sm:$0xff]  }
 0x239   : > { %11993 = vmatpush2.bf16.msra.mxu0 %v16511_v2 }
 0x23a   : > { %12034 = vmatpush2.bf16.msra.mxu1 %v16514_v21  ;;  %12044 = vmatprep.subr.bf16.mxu0 %v16520_v19 }
 0x23b   : > { %12085 = vmatprep.subr.bf16.mxu1 %v16523_v8  ;;  %v16541_v8 = vld [vmem:[%s18652_s12 + $0x2284] ss:$16 sps:$4 sm:$0xff]  }
 0x23c   : > { %v11750_v22 = vpop.f32.mrf.mxu0  ;;  %11995 = vmatmul.mubr.bf16.vlgmr.msra.gmra.mxu0 %v19429_v14 }
 0x23d   : > { %v11791_v31 = vpop.f32.mrf.mxu1  ;;  %12036 = vmatmul.mubr.bf16.vlgmr.msra.gmra.mxu1 %v19433_v15  ;;  %v11751_v9 = vadd.f32 %v11750_v22, %v19351_v51  ;;  %12045 = vmatpush1.bf16.msra.mxu0 %v16518_v57  ;;  %v16536_v57 = vld [vmem:[%s18652_s12 + $0x2080] ss:$16 sps:$4 sm:$0xff]  }
 0x23e   : > { %12086 = vmatpush1.bf16.msra.mxu1 %v16521_v10  ;;  %v11752_v39 = vpop.f32.mrf.mxu0  ;;  %12046 = vmatprep.subr.bf16.mxu0 %v16526_v62  ;;  %v16539_v10 = vld [vmem:[%s18652_s12 + $0x2280] ss:$16 sps:$4 sm:$0xff]  }
 0x23f   : > { %v11793_v32 = vpop.f32.mrf.mxu1  ;;  %12087 = vmatprep.subr.bf16.mxu1 %v16529_v16  ;;  %v19448_v46 = vadd.f32 %v11791_v31, %v11751_v9  ;;  %v11753_v25 = vadd.f32 %v11752_v39, %v19358_v1  ;;  %12076 = vmatprep.mubr.bf16.mxu0 %v19439_v27  ;;  %v16538_v1 = vld [vmem:[%s18652_s12 + $0x2084] ss:$16 sps:$4 sm:$0xff]   ;;  %v16542_v62 = vld [vmem:[%s18652_s12 + $0x2060] ss:$16 sps:$4 sm:$0xff]  }
 0x240   : > { %12117 = vmatprep.mubr.bf16.mxu1 %v19441_v28  ;;  %v11754_v51 = vpop.f32.mrf.mxu0  ;;  %v16545_v16 = vld [vmem:[%s18652_s12 + $0x2260] ss:$16 sps:$4 sm:$0xff]   ;;  %v16556_v9 = vld [vmem:[%s18652_s12 + $0x2024] ss:$16 sps:$4 sm:$0xff]  }
 0x241   : > { %v11795_v61 = vpop.f32.mrf.mxu1  ;;  %v19455_v2 = vadd.f32 %v11793_v32, %v11753_v25  ;;  %12047 = vmatpush1.bf16.msra.mxu0 %v16524_v7  ;;  %v16550_v7 = vld [vmem:[%s18652_s12 + $0x2044] ss:$16 sps:$4 sm:$0xff]   ;;  %v16548_v22 = vld [vmem:[%s18652_s12 + $0x2040] ss:$16 sps:$4 sm:$0xff]  }
 0x242   : > { %12088 = vmatpush1.bf16.msra.mxu1 %v16527_v24  ;;  %v11755_v21 = vpop.f32.mrf.mxu0  ;;  %12048 = vmatprep.subr.bf16.mxu0 %v16532_v41  ;;  %v16553_v24 = vld [vmem:[%s18652_s12 + $0x2244] ss:$16 sps:$4 sm:$0xff]   ;;  %v16551_v31 = vld [vmem:[%s18652_s12 + $0x2240] ss:$16 sps:$4 sm:$0xff]  }
 0x243   : > { %v11796_v19 = vpop.f32.mrf.mxu1  ;;  %12089 = vmatprep.subr.bf16.mxu1 %v16535_v43  ;;  %v16559_v39 = vld [vmem:[%s18652_s12 + $0x2224] ss:$16 sps:$4 sm:$0xff]   ;;  %v16554_v32 = vld [vmem:[%s18652_s12 + $0x2020] ss:$16 sps:$4 sm:$0xff]  }
 0x244   : > { %v16557_v41 = vld [vmem:[%s18652_s12 + $0x2220] ss:$16 sps:$4 sm:$0xff]   ;;  %v16562_v43 = vld [vmem:[%s18652_s12 + $0x2004] ss:$16 sps:$4 sm:$0xff]  }
 0x245   : > { %12049 = vmatpush1.bf16.msra.mxu0 %v16530_v26  ;;  %v16565_v25 = vld [vmem:[%s18652_s12 + $0x2204] ss:$16 sps:$4 sm:$0xff]   ;;  %v16560_v26 = vld [vmem:[%s18652_s12 + $0x2000] ss:$16 sps:$4 sm:$0xff]  }
 0x246   : > { %12090 = vmatpush1.bf16.msra.mxu1 %v16533_v52  ;;  %12050 = vmatprep.subr.bf16.mxu0 %v16538_v1  ;;  %v16563_v52 = vld [vmem:[%s18652_s12 + $0x2200] ss:$16 sps:$4 sm:$0xff]   ;;  %v16568_v51 = vld [vmem:[%s18652_s12 + $0x21e4] ss:$16 sps:$4 sm:$0xff]  }
 0x247   : > { %12091 = vmatprep.subr.bf16.mxu1 %v16541_v8  ;;  %v16571_v61 = vld [vmem:[%s18652_s12 + $0x23e4] ss:$16 sps:$4 sm:$0xff]   ;;  %v16566_v21 = vld [vmem:[%s18652_s12 + $0x21e0] ss:$16 sps:$4 sm:$0xff]  }
 0x248   : > { %v16569_v19 = vld [vmem:[%s18652_s12 + $0x23e0] ss:$16 sps:$4 sm:$0xff]   ;;  %v16574_v1 = vld [vmem:[%s18652_s12 + $0x21c4] ss:$16 sps:$4 sm:$0xff]  }
 0x249   : > { %12051 = vmatpush1.bf16.msra.mxu0 %v16536_v57  ;;  %v16577_v8 = vld [vmem:[%s18652_s12 + $0x23c4] ss:$16 sps:$4 sm:$0xff]   ;;  %v16572_v57 = vld [vmem:[%s18652_s12 + $0x21c0] ss:$16 sps:$4 sm:$0xff]  }
 0x24a   : > { %12092 = vmatpush1.bf16.msra.mxu1 %v16539_v10  ;;  %12052 = vmatprep.subr.bf16.mxu0 %v16544_v45  ;;  %v16575_v10 = vld [vmem:[%s18652_s12 + $0x23c0] ss:$16 sps:$4 sm:$0xff]   ;;  %v16580_v45 = vld [vmem:[%s18652_s12 + $0x21a4] ss:$16 sps:$4 sm:$0xff]  }
 0x24b   : > { %12093 = vmatprep.subr.bf16.mxu1 %v16547_v13  ;;  %v16583_v13 = vld [vmem:[%s18652_s12 + $0x23a4] ss:$16 sps:$4 sm:$0xff]  }
 0x24d   : > { %12053 = vmatpush1.bf16.msra.mxu0 %v16542_v62  ;;  %v16578_v62 = vld [vmem:[%s18652_s12 + $0x21a0] ss:$16 sps:$4 sm:$0xff]  }
 0x24e   : > { %12094 = vmatpush1.bf16.msra.mxu1 %v16545_v16  ;;  %12054 = vmatprep.subr.bf16.mxu0 %v16550_v7  ;;  %v16581_v16 = vld [vmem:[%s18652_s12 + $0x23a0] ss:$16 sps:$4 sm:$0xff]   ;;  %v16586_v7 = vld [vmem:[%s18652_s12 + $0x2184] ss:$16 sps:$4 sm:$0xff]  }
 0x24f   : > { %12095 = vmatprep.subr.bf16.mxu1 %v16553_v24  ;;  %v16589_v24 = vld [vmem:[%s18652_s12 + $0x2384] ss:$16 sps:$4 sm:$0xff]  }
 0x251   : > { %12055 = vmatpush1.bf16.msra.mxu0 %v16548_v22  ;;  %v16584_v22 = vld [vmem:[%s18652_s12 + $0x2180] ss:$16 sps:$4 sm:$0xff]  }
 0x252   : > { %12096 = vmatpush1.bf16.msra.mxu1 %v16551_v31  ;;  %12056 = vmatprep.subr.bf16.mxu0 %v16556_v9  ;;  %v16587_v31 = vld [vmem:[%s18652_s12 + $0x2380] ss:$16 sps:$4 sm:$0xff]   ;;  %v16592_v9 = vld [vmem:[%s18652_s12 + $0x2164] ss:$16 sps:$4 sm:$0xff]  }
 0x253   : > { %12097 = vmatprep.subr.bf16.mxu1 %v16559_v39  ;;  %v16595_v39 = vld [vmem:[%s18652_s12 + $0x2364] ss:$16 sps:$4 sm:$0xff]  }
 0x255   : > { %12057 = vmatpush1.bf16.msra.mxu0 %v16554_v32  ;;  %v16590_v32 = vld [vmem:[%s18652_s12 + $0x2160] ss:$16 sps:$4 sm:$0xff]  }
 0x256   : > { %12098 = vmatpush1.bf16.msra.mxu1 %v16557_v41  ;;  %12058 = vmatprep.subr.bf16.mxu0 %v16562_v43  ;;  %v16593_v41 = vld [vmem:[%s18652_s12 + $0x2360] ss:$16 sps:$4 sm:$0xff]   ;;  %v16598_v43 = vld [vmem:[%s18652_s12 + $0x2144] ss:$16 sps:$4 sm:$0xff]  }
 0x257   : > { %12099 = vmatprep.subr.bf16.mxu1 %v16565_v25  ;;  %v16601_v25 = vld [vmem:[%s18652_s12 + $0x2344] ss:$16 sps:$4 sm:$0xff]  }
 0x259   : > { %12059 = vmatpush1.bf16.msra.mxu0 %v16560_v26  ;;  %v267_v26 = vld [vmem:[%s18675_s29 + $0x48] sm:$0xff] }
 0x25a   : > { %12100 = vmatpush1.bf16.msra.mxu1 %v16563_v52  ;;  %12060 = vmatprep.subr.bf16.mxu0 %v16568_v51  ;;  %v16596_v52 = vld [vmem:[%s18652_s12 + $0x2140] ss:$16 sps:$4 sm:$0xff]  }
 0x25b   : > { %12101 = vmatprep.subr.bf16.mxu1 %v16571_v61  ;;  %v16599_v51 = vld [vmem:[%s18652_s12 + $0x2340] ss:$16 sps:$4 sm:$0xff]   ;;  %v16604_v61 = vld [vmem:[%s18652_s12 + $0x2124] ss:$16 sps:$4 sm:$0xff]  }
 0x25d   : > { %12061 = vmatpush2.bf16.msra.mxu0 %v16566_v21  ;;  %v16607_v21 = vld [vmem:[%s18652_s12 + $0x2324] ss:$16 sps:$4 sm:$0xff]  }
 0x25e   : > { %12102 = vmatpush2.bf16.msra.mxu1 %v16569_v19  ;;  %12062 = vmatprep.subr.bf16.mxu0 %v16574_v1  ;;  %v439_v19 = vcombine.high %v267_v26, %v267_v26  ;;  %v16602_v1 = vld [vmem:[%s18652_s12 + $0x2120] ss:$16 sps:$4 sm:$0xff]  }
 0x25f   : > { %12103 = vmatprep.subr.bf16.mxu1 %v16577_v8  ;;  %v16605_v8 = vld [vmem:[%s18652_s12 + $0x2320] ss:$16 sps:$4 sm:$0xff]  }
 0x261   : > { %12063 = vmatpush2.bf16.msra.mxu0 %v16572_v57  ;;  %v16610_v57 = vld [vmem:[%s18652_s12 + $0x2104] ss:$16 sps:$4 sm:$0xff]  }
 0x262   : > { %12104 = vmatpush2.bf16.msra.mxu1 %v16575_v10  ;;  %12064 = vmatprep.subr.bf16.mxu0 %v16580_v45  ;;  %v16613_v10 = vld [vmem:[%s18652_s12 + $0x2304] ss:$16 sps:$4 sm:$0xff]   ;;  %v19509_v45 = vrot.slane %v267_v26, %v18726_v50  ;;  %v16621_v26 = vld [vmem:[%s18652_s12 + $0x24c0] ss:$16 sps:$4 sm:$0xff]  }
 0x263   : > { %12105 = vmatprep.subr.bf16.mxu1 %v16583_v13  ;;  %v19512_v13 = vrot.slane %v439_v19, %v18726_v50 }
 0x265   : > { %12065 = vmatpush2.bf16.msra.mxu0 %v16578_v62  ;;  %v16608_v62 = vld [vmem:[%s18652_s12 + $0x2100] ss:$16 sps:$4 sm:$0xff]  }
 0x266   : > { %12106 = vmatpush2.bf16.msra.mxu1 %v16581_v16  ;;  %12066 = vmatprep.subr.bf16.mxu0 %v16586_v7  ;;  %v16611_v16 = vld [vmem:[%s18652_s12 + $0x2300] ss:$16 sps:$4 sm:$0xff]   ;;  %v16617_v7 = vld [vmem:[%s18652_s12 + $0x24e4] ss:$16 sps:$4 sm:$0xff]  }
 0x267   : > { %12107 = vmatprep.subr.bf16.mxu1 %v16589_v24  ;;  %v16620_v24 = vld [vmem:[%s18652_s12 + $0x26e4] ss:$16 sps:$4 sm:$0xff]  }
 0x269   : > { %12067 = vmatpush2.bf16.msra.mxu0 %v16584_v22  ;;  %v16615_v22 = vld [vmem:[%s18652_s12 + $0x24e0] ss:$16 sps:$4 sm:$0xff]  }
 0x26a   : > { %12108 = vmatpush2.bf16.msra.mxu1 %v16587_v31  ;;  %12068 = vmatprep.subr.bf16.mxu0 %v16592_v9  ;;  %v16618_v31 = vld [vmem:[%s18652_s12 + $0x26e0] ss:$16 sps:$4 sm:$0xff]   ;;  %v454_v9 = vcombine.high %v19509_v45, %v19509_v45 }
 0x26b   : > { %12109 = vmatprep.subr.bf16.mxu1 %v16595_v39  ;;  %v455_v39 = vcombine.high %v19512_v13, %v19512_v13 }
 0x26d   : > { %12069 = vmatpush2.bf16.msra.mxu0 %v16590_v32  ;;  %v19526_v32 = vpack.c.bf16 %v19412_v12, %v19412_v12 }
 0x26e   : > { %12110 = vmatpush2.bf16.msra.mxu1 %v16593_v41  ;;  %12070 = vmatprep.subr.bf16.mxu0 %v16598_v43  ;;  %v19530_v41 = vpack.c.bf16 %v19415_v0, %v19415_v0  ;;  %v16623_v43 = vld [vmem:[%s18652_s12 + $0x24c4] ss:$16 sps:$4 sm:$0xff]  }
 0x26f   : > { %12111 = vmatprep.subr.bf16.mxu1 %v16601_v25  ;;  %v16626_v25 = vld [vmem:[%s18652_s12 + $0x26c4] ss:$16 sps:$4 sm:$0xff]  }
 0x271   : > { %12071 = vmatpush2.bf16.msra.mxu0 %v16596_v52  ;;  %v16624_v52 = vld [vmem:[%s18652_s12 + $0x26c0] ss:$16 sps:$4 sm:$0xff]  }
 0x272   : > { %12112 = vmatpush2.bf16.msra.mxu1 %v16599_v51  ;;  %12072 = vmatprep.subr.bf16.mxu0 %v16604_v61  ;;  %v19536_v51 = vpack.c.bf16 %v454_v9, %v454_v9  ;;  %v19538_v61 = vpack.c.bf16 %v455_v39, %v455_v39  ;;  %v16638_v39 = vld [vmem:[%s18652_s12 + $0x2684] ss:$16 sps:$4 sm:$0xff]  }
 0x273   : > { %12113 = vmatprep.subr.bf16.mxu1 %v16607_v21 }
 0x275   : > { %12073 = vmatpush2.bf16.msra.mxu0 %v16602_v1 }
 0x276   : > { %12114 = vmatpush2.bf16.msra.mxu1 %v16605_v8  ;;  %12074 = vmatprep.subr.bf16.mxu0 %v16610_v57  ;;  %v16629_v8 = vld [vmem:[%s18652_s12 + $0x24a4] ss:$16 sps:$4 sm:$0xff]  }
 0x277   : > { %12115 = vmatprep.subr.bf16.mxu1 %v16613_v10  ;;  %v16632_v57 = vld [vmem:[%s18652_s12 + $0x26a4] ss:$16 sps:$4 sm:$0xff]  }
 0x279   : > { %12075 = vmatpush2.bf16.msra.mxu0 %v16608_v62 }
 0x27a   : > { %12116 = vmatpush2.bf16.msra.mxu1 %v16611_v16  ;;  %12126 = vmatprep.subr.bf16.mxu0 %v16617_v7  ;;  %v16627_v16 = vld [vmem:[%s18652_s12 + $0x24a0] ss:$16 sps:$4 sm:$0xff]  }
 0x27b   : > { %12167 = vmatprep.subr.bf16.mxu1 %v16620_v24  ;;  %v16630_v7 = vld [vmem:[%s18652_s12 + $0x26a0] ss:$16 sps:$4 sm:$0xff]  }
 0x27c   : > { %v11832_v12 = vpop.f32.mrf.mxu0  ;;  %12077 = vmatmul.mubr.bf16.vlgmr.msra.gmra.mxu0 %v19526_v32 }
 0x27d   : > { %v11873_v21 = vpop.f32.mrf.mxu1  ;;  %12118 = vmatmul.mubr.bf16.vlgmr.msra.gmra.mxu1 %v19530_v41  ;;  %v11833_v0 = vadd.f32 %v11832_v12, %v19448_v46  ;;  %12127 = vmatpush1.bf16.msra.mxu0 %v16615_v22  ;;  %v16639_v12 = vld [vmem:[%s18652_s12 + $0x2460] ss:$16 sps:$4 sm:$0xff]  }
 0x27e   : > { %12168 = vmatpush1.bf16.msra.mxu1 %v16618_v31  ;;  %v11834_v19 = vpop.f32.mrf.mxu0  ;;  %12128 = vmatprep.subr.bf16.mxu0 %v16623_v43  ;;  %v16633_v43 = vld [vmem:[%s18652_s12 + $0x2480] ss:$16 sps:$4 sm:$0xff]  }
 0x27f   : > { %v11875_v1 = vpop.f32.mrf.mxu1  ;;  %12169 = vmatprep.subr.bf16.mxu1 %v16626_v25  ;;  %v19545_v10 = vadd.f32 %v11873_v21, %v11833_v0  ;;  %v11835_v62 = vadd.f32 %v11834_v19, %v19455_v2  ;;  %12158 = vmatprep.mubr.bf16.mxu0 %v19536_v51  ;;  %v16635_v2 = vld [vmem:[%s18652_s12 + $0x2484] ss:$16 sps:$4 sm:$0xff]   ;;  %v16636_v25 = vld [vmem:[%s18652_s12 + $0x2680] ss:$16 sps:$4 sm:$0xff]  }
 0x280   : > { %12199 = vmatprep.mubr.bf16.mxu1 %v19538_v61  ;;  %v11836_v46 = vpop.f32.mrf.mxu0  ;;  %v16642_v21 = vld [vmem:[%s18652_s12 + $0x2660] ss:$16 sps:$4 sm:$0xff]   ;;  %v16647_v0 = vld [vmem:[%s18652_s12 + $0x2444] ss:$16 sps:$4 sm:$0xff]  }
 0x281   : > { %v11877_v24 = vpop.f32.mrf.mxu1  ;;  %v19552_v22 = vadd.f32 %v11875_v1, %v11835_v62  ;;  %12129 = vmatpush1.bf16.msra.mxu0 %v16621_v26  ;;  %v16641_v26 = vld [vmem:[%s18652_s12 + $0x2464] ss:$16 sps:$4 sm:$0xff]   ;;  %v16645_v1 = vld [vmem:[%s18652_s12 + $0x2440] ss:$16 sps:$4 sm:$0xff]  }
 0x282   : > { %12170 = vmatpush1.bf16.msra.mxu1 %v16624_v52  ;;  %v11837_v31 = vpop.f32.mrf.mxu0  ;;  %12130 = vmatprep.subr.bf16.mxu0 %v16629_v8  ;;  %v16644_v52 = vld [vmem:[%s18652_s12 + $0x2664] ss:$16 sps:$4 sm:$0xff]   ;;  %v16648_v8 = vld [vmem:[%s18652_s12 + $0x2640] ss:$16 sps:$4 sm:$0xff]  }
 0x283   : > { %v11878_v9 = vpop.f32.mrf.mxu1  ;;  %12171 = vmatprep.subr.bf16.mxu1 %v16632_v57  ;;  %v16650_v19 = vld [vmem:[%s18652_s12 + $0x2644] ss:$16 sps:$4 sm:$0xff]   ;;  %v16657_v31 = vld [vmem:[%s18652_s12 + $0x2400] ss:$16 sps:$4 sm:$0xff]  }
 0x284   : > { %v16653_v57 = vld [vmem:[%s18652_s12 + $0x2424] ss:$16 sps:$4 sm:$0xff]   ;;  %v16660_v9 = vld [vmem:[%s18652_s12 + $0x2600] ss:$16 sps:$4 sm:$0xff]  }
 0x285   : > { %12131 = vmatpush1.bf16.msra.mxu0 %v16627_v16  ;;  %v16656_v62 = vld [vmem:[%s18652_s12 + $0x2624] ss:$16 sps:$4 sm:$0xff]   ;;  %v16651_v16 = vld [vmem:[%s18652_s12 + $0x2420] ss:$16 sps:$4 sm:$0xff]  }
 0x286   : > { %12172 = vmatpush1.bf16.msra.mxu1 %v16630_v7  ;;  %12132 = vmatprep.subr.bf16.mxu0 %v16635_v2  ;;  %v16654_v7 = vld [vmem:[%s18652_s12 + $0x2620] ss:$16 sps:$4 sm:$0xff]   ;;  %v16659_v46 = vld [vmem:[%s18652_s12 + $0x2404] ss:$16 sps:$4 sm:$0xff]  }
 0x287   : > { %12173 = vmatprep.subr.bf16.mxu1 %v16638_v39  ;;  %v16662_v24 = vld [vmem:[%s18652_s12 + $0x2604] ss:$16 sps:$4 sm:$0xff]  }
 0x288   : > { %v16665_v2 = vld [vmem:[%s18652_s12 + $0x25e4] ss:$16 sps:$4 sm:$0xff]  }
 0x289   : > { %12133 = vmatpush1.bf16.msra.mxu0 %v16633_v43  ;;  %v16668_v39 = vld [vmem:[%s18652_s12 + $0x27e4] ss:$16 sps:$4 sm:$0xff]   ;;  %v16663_v43 = vld [vmem:[%s18652_s12 + $0x25e0] ss:$16 sps:$4 sm:$0xff]  }
 0x28a   : > { %12174 = vmatpush1.bf16.msra.mxu1 %v16636_v25  ;;  %12134 = vmatprep.subr.bf16.mxu0 %v16641_v26  ;;  %v16666_v25 = vld [vmem:[%s18652_s12 + $0x27e0] ss:$16 sps:$4 sm:$0xff]   ;;  %v16671_v26 = vld [vmem:[%s18652_s12 + $0x25c4] ss:$16 sps:$4 sm:$0xff]  }
 0x28b   : > { %12175 = vmatprep.subr.bf16.mxu1 %v16644_v52  ;;  %v16674_v52 = vld [vmem:[%s18652_s12 + $0x27c4] ss:$16 sps:$4 sm:$0xff]  }
 0x28d   : > { %12135 = vmatpush1.bf16.msra.mxu0 %v16639_v12  ;;  %v16669_v12 = vld [vmem:[%s18652_s12 + $0x25c0] ss:$16 sps:$4 sm:$0xff]  }
 0x28e   : > { %12176 = vmatpush1.bf16.msra.mxu1 %v16642_v21  ;;  %12136 = vmatprep.subr.bf16.mxu0 %v16647_v0  ;;  %v16672_v21 = vld [vmem:[%s18652_s12 + $0x27c0] ss:$16 sps:$4 sm:$0xff]   ;;  %v16677_v0 = vld [vmem:[%s18652_s12 + $0x25a4] ss:$16 sps:$4 sm:$0xff]  }
 0x28f   : > { %12177 = vmatprep.subr.bf16.mxu1 %v16650_v19  ;;  %v16680_v19 = vld [vmem:[%s18652_s12 + $0x27a4] ss:$16 sps:$4 sm:$0xff]  }
 0x291   : > { %12137 = vmatpush1.bf16.msra.mxu0 %v16645_v1  ;;  %v16675_v1 = vld [vmem:[%s18652_s12 + $0x25a0] ss:$16 sps:$4 sm:$0xff]  }
 0x292   : > { %12178 = vmatpush1.bf16.msra.mxu1 %v16648_v8  ;;  %12138 = vmatprep.subr.bf16.mxu0 %v16653_v57  ;;  %v16678_v8 = vld [vmem:[%s18652_s12 + $0x27a0] ss:$16 sps:$4 sm:$0xff]   ;;  %v16683_v57 = vld [vmem:[%s18652_s12 + $0x2584] ss:$16 sps:$4 sm:$0xff]  }
 0x293   : > { %12179 = vmatprep.subr.bf16.mxu1 %v16656_v62  ;;  %v16686_v62 = vld [vmem:[%s18652_s12 + $0x2784] ss:$16 sps:$4 sm:$0xff]  }
 0x295   : > { %12139 = vmatpush1.bf16.msra.mxu0 %v16651_v16  ;;  %v16681_v16 = vld [vmem:[%s18652_s12 + $0x2580] ss:$16 sps:$4 sm:$0xff]  }
 0x296   : > { %12180 = vmatpush1.bf16.msra.mxu1 %v16654_v7  ;;  %12140 = vmatprep.subr.bf16.mxu0 %v16659_v46  ;;  %v16684_v7 = vld [vmem:[%s18652_s12 + $0x2780] ss:$16 sps:$4 sm:$0xff]   ;;  %v16689_v46 = vld [vmem:[%s18652_s12 + $0x2564] ss:$16 sps:$4 sm:$0xff]  }
 0x297   : > { %12181 = vmatprep.subr.bf16.mxu1 %v16662_v24  ;;  %v16692_v24 = vld [vmem:[%s18652_s12 + $0x2764] ss:$16 sps:$4 sm:$0xff]  }
 0x299   : > { %12141 = vmatpush1.bf16.msra.mxu0 %v16657_v31  ;;  %v16687_v31 = vld [vmem:[%s18652_s12 + $0x2560] ss:$16 sps:$4 sm:$0xff]  }
 0x29a   : > { %12182 = vmatpush1.bf16.msra.mxu1 %v16660_v9  ;;  %12142 = vmatprep.subr.bf16.mxu0 %v16665_v2  ;;  %v16690_v9 = vld [vmem:[%s18652_s12 + $0x2760] ss:$16 sps:$4 sm:$0xff]   ;;  %v16695_v2 = vld [vmem:[%s18652_s12 + $0x2544] ss:$16 sps:$4 sm:$0xff]  }
 0x29b   : > { %12183 = vmatprep.subr.bf16.mxu1 %v16668_v39  ;;  %v16698_v39 = vld [vmem:[%s18652_s12 + $0x2744] ss:$16 sps:$4 sm:$0xff]  }
 0x29d   : > { %12143 = vmatpush2.bf16.msra.mxu0 %v16663_v43  ;;  %v268_v43 = vld [vmem:[%s18675_s29 + $0x50] sm:$0xff] }
 0x29e   : > { %12184 = vmatpush2.bf16.msra.mxu1 %v16666_v25  ;;  %12144 = vmatprep.subr.bf16.mxu0 %v16671_v26  ;;  %v16693_v25 = vld [vmem:[%s18652_s12 + $0x2540] ss:$16 sps:$4 sm:$0xff]  }
 0x29f   : > { %12185 = vmatprep.subr.bf16.mxu1 %v16674_v52  ;;  %v16696_v26 = vld [vmem:[%s18652_s12 + $0x2740] ss:$16 sps:$4 sm:$0xff]   ;;  %v16701_v52 = vld [vmem:[%s18652_s12 + $0x2524] ss:$16 sps:$4 sm:$0xff]  }
 0x2a1   : > { %12145 = vmatpush2.bf16.msra.mxu0 %v16669_v12  ;;  %v16704_v12 = vld [vmem:[%s18652_s12 + $0x2724] ss:$16 sps:$4 sm:$0xff]  }
 0x2a2   : > { %12186 = vmatpush2.bf16.msra.mxu1 %v16672_v21  ;;  %12146 = vmatprep.subr.bf16.mxu0 %v16677_v0  ;;  %v456_v21 = vcombine.high %v268_v43, %v268_v43  ;;  %v16699_v0 = vld [vmem:[%s18652_s12 + $0x2520] ss:$16 sps:$4 sm:$0xff]  }
 0x2a3   : > { %12187 = vmatprep.subr.bf16.mxu1 %v16680_v19  ;;  %v16702_v19 = vld [vmem:[%s18652_s12 + $0x2720] ss:$16 sps:$4 sm:$0xff]  }
 0x2a5   : > { %12147 = vmatpush2.bf16.msra.mxu0 %v16675_v1  ;;  %v16707_v1 = vld [vmem:[%s18652_s12 + $0x2504] ss:$16 sps:$4 sm:$0xff]  }
 0x2a6   : > { %12188 = vmatpush2.bf16.msra.mxu1 %v16678_v8  ;;  %12148 = vmatprep.subr.bf16.mxu0 %v16683_v57  ;;  %v16710_v8 = vld [vmem:[%s18652_s12 + $0x2704] ss:$16 sps:$4 sm:$0xff]   ;;  %v19606_v57 = vrot.slane %v268_v43, %v18726_v50  ;;  %v19623_v43 = vpack.c.bf16 %v19509_v45, %v19509_v45 }
 0x2a7   : > { %12189 = vmatprep.subr.bf16.mxu1 %v16686_v62  ;;  %v19609_v62 = vrot.slane %v456_v21, %v18726_v50  ;;  %v16721_v21 = vld [vmem:[%s18652_s12 + $0x2ac0] ss:$16 sps:$4 sm:$0xff]  }
 0x2a9   : > { %12149 = vmatpush2.bf16.msra.mxu0 %v16681_v16  ;;  %v16705_v16 = vld [vmem:[%s18652_s12 + $0x2500] ss:$16 sps:$4 sm:$0xff]  }
 0x2aa   : > { %12190 = vmatpush2.bf16.msra.mxu1 %v16684_v7  ;;  %12150 = vmatprep.subr.bf16.mxu0 %v16689_v46  ;;  %v16708_v7 = vld [vmem:[%s18652_s12 + $0x2700] ss:$16 sps:$4 sm:$0xff]   ;;  %v16714_v46 = vld [vmem:[%s18652_s12 + $0x28e4] ss:$16 sps:$4 sm:$0xff]  }
 0x2ab   : > { %12191 = vmatprep.subr.bf16.mxu1 %v16692_v24  ;;  %v16717_v24 = vld [vmem:[%s18652_s12 + $0x2ae4] ss:$16 sps:$4 sm:$0xff]  }
 0x2ad   : > { %12151 = vmatpush2.bf16.msra.mxu0 %v16687_v31  ;;  %v16712_v31 = vld [vmem:[%s18652_s12 + $0x28e0] ss:$16 sps:$4 sm:$0xff]  }
 0x2ae   : > { %12192 = vmatpush2.bf16.msra.mxu1 %v16690_v9  ;;  %12152 = vmatprep.subr.bf16.mxu0 %v16695_v2  ;;  %v16715_v9 = vld [vmem:[%s18652_s12 + $0x2ae0] ss:$16 sps:$4 sm:$0xff]   ;;  %v471_v2 = vcombine.high %v19606_v57, %v19606_v57 }
 0x2af   : > { %12193 = vmatprep.subr.bf16.mxu1 %v16698_v39  ;;  %v472_v39 = vcombine.high %v19609_v62, %v19609_v62 }
 0x2b1   : > { %12153 = vmatpush2.bf16.msra.mxu0 %v16693_v25  ;;  %v19627_v25 = vpack.c.bf16 %v19512_v13, %v19512_v13 }
 0x2b2   : > { %12194 = vmatpush2.bf16.msra.mxu1 %v16696_v26  ;;  %12154 = vmatprep.subr.bf16.mxu0 %v16701_v52  ;;  %v16720_v26 = vld [vmem:[%s18652_s12 + $0x28c4] ss:$16 sps:$4 sm:$0xff]  }
 0x2b3   : > { %12195 = vmatprep.subr.bf16.mxu1 %v16704_v12  ;;  %21112 = vst [vmem:[#allocation7_spill] sm:$0xff] %v19627_v25  ;;  %v16723_v52 = vld [vmem:[%s18652_s12 + $0x2ac4] ss:$16 sps:$4 sm:$0xff]   ;;  %v16718_v12 = vld [vmem:[%s18652_s12 + $0x28c0] ss:$16 sps:$4 sm:$0xff]  }
 0x2b5   : > { %12155 = vmatpush2.bf16.msra.mxu0 %v16699_v0  ;;  %v19633_v0 = vpack.c.bf16 %v471_v2, %v471_v2 }
 0x2b6   : > { %12196 = vmatpush2.bf16.msra.mxu1 %v16702_v19  ;;  %12156 = vmatprep.subr.bf16.mxu0 %v16707_v1  ;;  %v19635_v19 = vpack.c.bf16 %v472_v39, %v472_v39  ;;  %v16724_v39 = vld [vmem:[%s18652_s12 + $0x28a0] ss:$16 sps:$4 sm:$0xff]  }
 0x2b7   : > { %12197 = vmatprep.subr.bf16.mxu1 %v16710_v8  ;;  %21113 = vst [vmem:[#allocation8_spill] sm:$0xff] %v19633_v0 }
 0x2b8   : > { %21114 = vst [vmem:[#allocation9_spill] sm:$0xff] %v19635_v19 }
 0x2b9   : > { %12157 = vmatpush2.bf16.msra.mxu0 %v16705_v16 }
 0x2ba   : > { %12198 = vmatpush2.bf16.msra.mxu1 %v16708_v7  ;;  %12208 = vmatprep.subr.bf16.mxu0 %v16714_v46  ;;  %v16726_v7 = vld [vmem:[%s18652_s12 + $0x28a4] ss:$16 sps:$4 sm:$0xff]  }
 0x2bb   : > { %12249 = vmatprep.subr.bf16.mxu1 %v16717_v24  ;;  %v16729_v46 = vld [vmem:[%s18652_s12 + $0x2aa4] ss:$16 sps:$4 sm:$0xff]  }
 0x2bc   : > { %v11914_v45 = vpop.f32.mrf.mxu0  ;;  %12159 = vmatmul.mubr.bf16.vlgmr.msra.gmra.mxu0 %v19623_v43 }
 0x2bd   : > { %v11955_v1 = vpop.f32.mrf.mxu1  ;;  %12200 = vmatmul.mubr.bf16.vlgmr.msra.gmra.mxu1 %v19627_v25  ;;  %v11915_v13 = vadd.f32 %v11914_v45, %v19545_v10  ;;  %12209 = vmatpush1.bf16.msra.mxu0 %v16712_v31  ;;  %v16735_v45 = vld [vmem:[%s18652_s12 + $0x2a84] ss:$16 sps:$4 sm:$0xff]   ;;  %v16821_v25 = vld [vmem:[%s18652_s12 + $0x2ca0] ss:$16 sps:$4 sm:$0xff]  }
 0x2be   : > { %12250 = vmatpush1.bf16.msra.mxu1 %v16715_v9  ;;  %v11916_v8 = vpop.f32.mrf.mxu0  ;;  %12210 = vmatprep.subr.bf16.mxu0 %v16720_v26 }
 0x2bf   : > { %v11957_v16 = vpop.f32.mrf.mxu1  ;;  %12251 = vmatprep.subr.bf16.mxu1 %v16723_v52  ;;  %v19642_v24 = vadd.f32 %v11955_v1, %v11915_v13  ;;  %v11917_v2 = vadd.f32 %v11916_v8, %v19552_v22  ;;  %12240 = vmatprep.mubr.bf16.mxu0 %v19633_v0  ;;  %v16732_v22 = vld [vmem:[%s18652_s12 + $0x2884] ss:$16 sps:$4 sm:$0xff]   ;;  %v16730_v1 = vld [vmem:[%s18652_s12 + $0x2880] ss:$16 sps:$4 sm:$0xff]  }
 0x2c0   : > { %12281 = vmatprep.mubr.bf16.mxu1 %v19635_v19  ;;  %v11918_v10 = vpop.f32.mrf.mxu0  ;;  %v16733_v13 = vld [vmem:[%s18652_s12 + $0x2a80] ss:$16 sps:$4 sm:$0xff]  }
 0x2c1   : > { %v11959_v31 = vpop.f32.mrf.mxu1  ;;  %v19649_v9 = vadd.f32 %v11957_v16, %v11917_v2  ;;  %12211 = vmatpush1.bf16.msra.mxu0 %v16718_v12  ;;  %v16738_v12 = vld [vmem:[%s18652_s12 + $0x2864] ss:$16 sps:$4 sm:$0xff]   ;;  %v16736_v8 = vld [vmem:[%s18652_s12 + $0x2860] ss:$16 sps:$4 sm:$0xff]  }
 0x2c2   : > { %12252 = vmatpush1.bf16.msra.mxu1 %v16721_v21  ;;  %v11919_v26 = vpop.f32.mrf.mxu0  ;;  %12212 = vmatprep.subr.bf16.mxu0 %v16726_v7  ;;  %v16741_v21 = vld [vmem:[%s18652_s12 + $0x2a64] ss:$16 sps:$4 sm:$0xff]   ;;  %v16739_v16 = vld [vmem:[%s18652_s12 + $0x2a60] ss:$16 sps:$4 sm:$0xff]  }
 0x2c3   : > { %v11960_v52 = vpop.f32.mrf.mxu1  ;;  %12253 = vmatprep.subr.bf16.mxu1 %v16729_v46  ;;  %v16744_v7 = vld [vmem:[%s18652_s12 + $0x2844] ss:$16 sps:$4 sm:$0xff]   ;;  %v16742_v46 = vld [vmem:[%s18652_s12 + $0x2840] ss:$16 sps:$4 sm:$0xff]  }
 0x2c4   : > { %v16745_v2 = vld [vmem:[%s18652_s12 + $0x2a40] ss:$16 sps:$4 sm:$0xff]   ;;  %v16753_v10 = vld [vmem:[%s18652_s12 + $0x2a24] ss:$16 sps:$4 sm:$0xff]  }
 0x2c5   : > { %12213 = vmatpush1.bf16.msra.mxu0 %v16724_v39  ;;  %v16750_v39 = vld [vmem:[%s18652_s12 + $0x2824] ss:$16 sps:$4 sm:$0xff]   ;;  %v16748_v31 = vld [vmem:[%s18652_s12 + $0x2820] ss:$16 sps:$4 sm:$0xff]  }
 0x2c6   : > { %12254 = vmatpush1.bf16.msra.mxu1 %v16727_v44  ;;  %12214 = vmatprep.subr.bf16.mxu0 %v16732_v22  ;;  %v16747_v44 = vld [vmem:[%s18652_s12 + $0x2a44] ss:$16 sps:$4 sm:$0xff]   ;;  %v16751_v26 = vld [vmem:[%s18652_s12 + $0x2a20] ss:$16 sps:$4 sm:$0xff]  }
 0x2c7   : > { %12255 = vmatprep.subr.bf16.mxu1 %v16735_v45  ;;  %v16756_v52 = vld [vmem:[%s18652_s12 + $0x2804] ss:$16 sps:$4 sm:$0xff]   ;;  %v16754_v45 = vld [vmem:[%s18652_s12 + $0x2800] ss:$16 sps:$4 sm:$0xff]  }
 0x2c8   : > { %v16759_v22 = vld [vmem:[%s18652_s12 + $0x2a04] ss:$16 sps:$4 sm:$0xff]  }
 0x2c9   : > { %12215 = vmatpush1.bf16.msra.mxu0 %v16730_v1  ;;  %v16757_v1 = vld [vmem:[%s18652_s12 + $0x2a00] ss:$16 sps:$4 sm:$0xff]  }
 0x2ca   : > { %12256 = vmatpush1.bf16.msra.mxu1 %v16733_v13  ;;  %12216 = vmatprep.subr.bf16.mxu0 %v16738_v12  ;;  %v16762_v13 = vld [vmem:[%s18652_s12 + $0x29e4] ss:$16 sps:$4 sm:$0xff]  }
 0x2cb   : > { %12257 = vmatprep.subr.bf16.mxu1 %v16741_v21  ;;  %v16765_v12 = vld [vmem:[%s18652_s12 + $0x2be4] ss:$16 sps:$4 sm:$0xff]   ;;  %v16760_v21 = vld [vmem:[%s18652_s12 + $0x29e0] ss:$16 sps:$4 sm:$0xff]  }
 0x2cd   : > { %12217 = vmatpush1.bf16.msra.mxu0 %v16736_v8  ;;  %v16763_v8 = vld [vmem:[%s18652_s12 + $0x2be0] ss:$16 sps:$4 sm:$0xff]  }
 0x2ce   : > { %12258 = vmatpush1.bf16.msra.mxu1 %v16739_v16  ;;  %12218 = vmatprep.subr.bf16.mxu0 %v16744_v7  ;;  %v16768_v16 = vld [vmem:[%s18652_s12 + $0x29c4] ss:$16 sps:$4 sm:$0xff]  }
 0x2cf   : > { %12259 = vmatprep.subr.bf16.mxu1 %v16747_v44  ;;  %v16771_v7 = vld [vmem:[%s18652_s12 + $0x2bc4] ss:$16 sps:$4 sm:$0xff]   ;;  %v16766_v44 = vld [vmem:[%s18652_s12 + $0x29c0] ss:$16 sps:$4 sm:$0xff]  }
 0x2d1   : > { %12219 = vmatpush1.bf16.msra.mxu0 %v16742_v46  ;;  %v16769_v46 = vld [vmem:[%s18652_s12 + $0x2bc0] ss:$16 sps:$4 sm:$0xff]  }
 0x2d2   : > { %12260 = vmatpush1.bf16.msra.mxu1 %v16745_v2  ;;  %12220 = vmatprep.subr.bf16.mxu0 %v16750_v39  ;;  %v16774_v2 = vld [vmem:[%s18652_s12 + $0x29a4] ss:$16 sps:$4 sm:$0xff]  }
 0x2d3   : > { %12261 = vmatprep.subr.bf16.mxu1 %v16753_v10  ;;  %v16777_v39 = vld [vmem:[%s18652_s12 + $0x2ba4] ss:$16 sps:$4 sm:$0xff]   ;;  %v16772_v10 = vld [vmem:[%s18652_s12 + $0x29a0] ss:$16 sps:$4 sm:$0xff]  }
 0x2d5   : > { %12221 = vmatpush1.bf16.msra.mxu0 %v16748_v31  ;;  %v16775_v31 = vld [vmem:[%s18652_s12 + $0x2ba0] ss:$16 sps:$4 sm:$0xff]  }
 0x2d6   : > { %12262 = vmatpush1.bf16.msra.mxu1 %v16751_v26  ;;  %12222 = vmatprep.subr.bf16.mxu0 %v16756_v52  ;;  %v16780_v26 = vld [vmem:[%s18652_s12 + $0x2984] ss:$16 sps:$4 sm:$0xff]  }
 0x2d7   : > { %12263 = vmatprep.subr.bf16.mxu1 %v16759_v22  ;;  %v16783_v52 = vld [vmem:[%s18652_s12 + $0x2b84] ss:$16 sps:$4 sm:$0xff]   ;;  %v16778_v22 = vld [vmem:[%s18652_s12 + $0x2980] ss:$16 sps:$4 sm:$0xff]  }
 0x2d9   : > { %12223 = vmatpush1.bf16.msra.mxu0 %v16754_v45  ;;  %v16781_v45 = vld [vmem:[%s18652_s12 + $0x2b80] ss:$16 sps:$4 sm:$0xff]  }
 0x2da   : > { %12264 = vmatpush1.bf16.msra.mxu1 %v16757_v1  ;;  %12224 = vmatprep.subr.bf16.mxu0 %v16762_v13  ;;  %v16786_v1 = vld [vmem:[%s18652_s12 + $0x2964] ss:$16 sps:$4 sm:$0xff]  }
 0x2db   : > { %12265 = vmatprep.subr.bf16.mxu1 %v16765_v12  ;;  %v16789_v13 = vld [vmem:[%s18652_s12 + $0x2b64] ss:$16 sps:$4 sm:$0xff]   ;;  %v16784_v12 = vld [vmem:[%s18652_s12 + $0x2960] ss:$16 sps:$4 sm:$0xff]  }
 0x2dd   : > { %12225 = vmatpush2.bf16.msra.mxu0 %v16760_v21  ;;  %v16787_v21 = vld [vmem:[%s18652_s12 + $0x2b60] ss:$16 sps:$4 sm:$0xff]  }
 0x2de   : > { %12266 = vmatpush2.bf16.msra.mxu1 %v16763_v8  ;;  %12226 = vmatprep.subr.bf16.mxu0 %v16768_v16  ;;  %v16792_v8 = vld [vmem:[%s18652_s12 + $0x2944] ss:$16 sps:$4 sm:$0xff]  }
 0x2df   : > { %12267 = vmatprep.subr.bf16.mxu1 %v16771_v7  ;;  %v16795_v16 = vld [vmem:[%s18652_s12 + $0x2b44] ss:$16 sps:$4 sm:$0xff]   ;;  %v269_v7 = vld [vmem:[%s18675_s29 + $0x58] sm:$0xff] }
 0x2e1   : > { %12227 = vmatpush2.bf16.msra.mxu0 %v16766_v44  ;;  %v16790_v44 = vld [vmem:[%s18652_s12 + $0x2940] ss:$16 sps:$4 sm:$0xff]  }
 0x2e2   : > { %12268 = vmatpush2.bf16.msra.mxu1 %v16769_v46  ;;  %12228 = vmatprep.subr.bf16.mxu0 %v16774_v2  ;;  %v16793_v46 = vld [vmem:[%s18652_s12 + $0x2b40] ss:$16 sps:$4 sm:$0xff]   ;;  %v16798_v2 = vld [vmem:[%s18652_s12 + $0x2924] ss:$16 sps:$4 sm:$0xff]  }
 0x2e3   : > { %12269 = vmatprep.subr.bf16.mxu1 %v16777_v39  ;;  %v16801_v39 = vld [vmem:[%s18652_s12 + $0x2b24] ss:$16 sps:$4 sm:$0xff]  }
 0x2e5   : > { %12229 = vmatpush2.bf16.msra.mxu0 %v16772_v10  ;;  %v473_v10 = vcombine.high %v269_v7, %v269_v7 }
 0x2e6   : > { %12270 = vmatpush2.bf16.msra.mxu1 %v16775_v31  ;;  %12230 = vmatprep.subr.bf16.mxu0 %v16780_v26  ;;  %v16796_v31 = vld [vmem:[%s18652_s12 + $0x2920] ss:$16 sps:$4 sm:$0xff]  }
 0x2e7   : > { %12271 = vmatprep.subr.bf16.mxu1 %v16783_v52  ;;  %v16799_v26 = vld [vmem:[%s18652_s12 + $0x2b20] ss:$16 sps:$4 sm:$0xff]   ;;  %v16804_v52 = vld [vmem:[%s18652_s12 + $0x2904] ss:$16 sps:$4 sm:$0xff]  }
 0x2e9   : > { %12231 = vmatpush2.bf16.msra.mxu0 %v16778_v22  ;;  %v16807_v22 = vld [vmem:[%s18652_s12 + $0x2b04] ss:$16 sps:$4 sm:$0xff]  }
 0x2ea   : > { %12272 = vmatpush2.bf16.msra.mxu1 %v16781_v45  ;;  %12232 = vmatprep.subr.bf16.mxu0 %v16786_v1  ;;  %v19703_v45 = vrot.slane %v269_v7, %v18726_v50  ;;  %v19706_v1 = vrot.slane %v473_v10, %v18726_v50  ;;  %v16817_v10 = vld [vmem:[%s18652_s12 + $0x2cc4] ss:$16 sps:$4 sm:$0xff]  }
 0x2eb   : > { %12273 = vmatprep.subr.bf16.mxu1 %v16789_v13  ;;  %v16802_v13 = vld [vmem:[%s18652_s12 + $0x2900] ss:$16 sps:$4 sm:$0xff]  }
 0x2ec   : > { %v488_v7 = vcombine.high %v19703_v45, %v19703_v45 }
 0x2ed   : > { %12233 = vmatpush2.bf16.msra.mxu0 %v16784_v12  ;;  %v16805_v12 = vld [vmem:[%s18652_s12 + $0x2b00] ss:$16 sps:$4 sm:$0xff]  }
 0x2ee   : > { %12274 = vmatpush2.bf16.msra.mxu1 %v16787_v21  ;;  %12234 = vmatprep.subr.bf16.mxu0 %v16792_v8  ;;  %v16811_v21 = vld [vmem:[%s18652_s12 + $0x2ce4] ss:$16 sps:$4 sm:$0xff]  }
 0x2ef   : > { %12275 = vmatprep.subr.bf16.mxu1 %v16795_v16  ;;  %v16814_v8 = vld [vmem:[%s18652_s12 + $0x2ee4] ss:$16 sps:$4 sm:$0xff]   ;;  %v16809_v16 = vld [vmem:[%s18652_s12 + $0x2ce0] ss:$16 sps:$4 sm:$0xff]  }
 0x2f1   : > { %12235 = vmatpush2.bf16.msra.mxu0 %v16790_v44  ;;  %v16812_v44 = vld [vmem:[%s18652_s12 + $0x2ee0] ss:$16 sps:$4 sm:$0xff]  }
 0x2f2   : > { %12276 = vmatpush2.bf16.msra.mxu1 %v16793_v46  ;;  %12236 = vmatprep.subr.bf16.mxu0 %v16798_v2  ;;  %v489_v46 = vcombine.high %v19706_v1, %v19706_v1  ;;  %v19720_v2 = vpack.c.bf16 %v19606_v57, %v19606_v57 }
 0x2f3   : > { %12277 = vmatprep.subr.bf16.mxu1 %v16801_v39  ;;  %v19724_v39 = vpack.c.bf16 %v19609_v62, %v19609_v62 }
 0x2f4   : > { %21115 = vst [vmem:[#allocation10_spill] sm:$0xff] %v19720_v2  ;;  %v19732_v19 = vpack.c.bf16 %v489_v46, %v489_v46 }
 0x2f5   : > { %12237 = vmatpush2.bf16.msra.mxu0 %v16796_v31  ;;  %21116 = vst [vmem:[#allocation11_spill] sm:$0xff] %v19724_v39  ;;  %v16820_v31 = vld [vmem:[%s18652_s12 + $0x2ec4] ss:$16 sps:$4 sm:$0xff]  }
 0x2f6   : > { %12278 = vmatpush2.bf16.msra.mxu1 %v16799_v26  ;;  %12238 = vmatprep.subr.bf16.mxu0 %v16804_v52  ;;  %v16815_v26 = vld [vmem:[%s18652_s12 + $0x2cc0] ss:$16 sps:$4 sm:$0xff]   ;;  %21118 = vst [vmem:[#allocation13_spill] sm:$0xff] %v19732_v19 }
 0x2f7   : > { %12279 = vmatprep.subr.bf16.mxu1 %v16807_v22  ;;  %v16818_v52 = vld [vmem:[%s18652_s12 + $0x2ec0] ss:$16 sps:$4 sm:$0xff]   ;;  %v19730_v22 = vpack.c.bf16 %v488_v7, %v488_v7 }
 0x2f9   : > { %12239 = vmatpush2.bf16.msra.mxu0 %v16802_v13  ;;  %21117 = vst [vmem:[#allocation12_spill] sm:$0xff] %v19730_v22 }
 0x2fa   : > { %12280 = vmatpush2.bf16.msra.mxu1 %v16805_v12  ;;  %12290 = vmatprep.subr.bf16.mxu0 %v16811_v21  ;;  %v16823_v21 = vld [vmem:[%s18652_s12 + $0x2ca4] ss:$16 sps:$4 sm:$0xff]  }
 0x2fb   : > { %12331 = vmatprep.subr.bf16.mxu1 %v16814_v8  ;;  %v16826_v8 = vld [vmem:[%s18652_s12 + $0x2ea4] ss:$16 sps:$4 sm:$0xff]  }
 0x2fc   : > { %v11996_v57 = vpop.f32.mrf.mxu0  ;;  %12241 = vmatmul.mubr.bf16.vlgmr.msra.gmra.mxu0 %v19720_v2  ;;  %v16824_v2 = vld [vmem:[%s18652_s12 + $0x2ea0] ss:$16 sps:$4 sm:$0xff]  }
 0x2fd   : > { %v12037_v0 = vpop.f32.mrf.mxu1  ;;  %12282 = vmatmul.mubr.bf16.vlgmr.msra.gmra.mxu1 %v19724_v39  ;;  %v11997_v62 = vadd.f32 %v11996_v57, %v19642_v24  ;;  %12291 = vmatpush1.bf16.msra.mxu0 %v16809_v16  ;;  %v16827_v57 = vld [vmem:[%s18652_s12 + $0x2c80] ss:$16 sps:$4 sm:$0xff]  }
 0x2fe   : > { %12332 = vmatpush1.bf16.msra.mxu1 %v16812_v44  ;;  %v11998_v13 = vpop.f32.mrf.mxu0  ;;  %12292 = vmatprep.subr.bf16.mxu0 %v16817_v10  ;;  %v16918_v39 = vld [vmem:[%s18652_s12 + $0x30a0] ss:$16 sps:$4 sm:$0xff]  }
 0x2ff   : > { %v12039_v12 = vpop.f32.mrf.mxu1  ;;  %12333 = vmatprep.subr.bf16.mxu1 %v16820_v31  ;;  %v19739_v7 = vadd.f32 %v12037_v0, %v11997_v62  ;;  %v11999_v46 = vadd.f32 %v11998_v13, %v19649_v9  ;;  %12322 = vmatprep.mubr.bf16.mxu0 %v19730_v22  ;;  %v16829_v9 = vld [vmem:[%s18652_s12 + $0x2c84] ss:$16 sps:$4 sm:$0xff]   ;;  %v16830_v62 = vld [vmem:[%s18652_s12 + $0x2e80] ss:$16 sps:$4 sm:$0xff]  }
 0x300   : > { %12363 = vmatprep.mubr.bf16.mxu1 %v19732_v19  ;;  %v12000_v24 = vpop.f32.mrf.mxu0  ;;  %v16832_v31 = vld [vmem:[%s18652_s12 + $0x2e84] ss:$16 sps:$4 sm:$0xff]   ;;  %v16833_v13 = vld [vmem:[%s18652_s12 + $0x2c60] ss:$16 sps:$4 sm:$0xff]  }
 0x301   : > { %v12041_v16 = vpop.f32.mrf.mxu1  ;;  %v19746_v44 = vadd.f32 %v12039_v12, %v11999_v46  ;;  %12293 = vmatpush1.bf16.msra.mxu0 %v16815_v26  ;;  %v16835_v26 = vld [vmem:[%s18652_s12 + $0x2c64] ss:$16 sps:$4 sm:$0xff]   ;;  %v16836_v12 = vld [vmem:[%s18652_s12 + $0x2e60] ss:$16 sps:$4 sm:$0xff]  }
 0x302   : > { %12334 = vmatpush1.bf16.msra.mxu1 %v16818_v52  ;;  %v12001_v0 = vpop.f32.mrf.mxu0  ;;  %12294 = vmatprep.subr.bf16.mxu0 %v16823_v21  ;;  %v16838_v52 = vld [vmem:[%s18652_s12 + $0x2e64] ss:$16 sps:$4 sm:$0xff]   ;;  %v16839_v21 = vld [vmem:[%s18652_s12 + $0x2c40] ss:$16 sps:$4 sm:$0xff]  }
 0x303   : > { %v12042_v10 = vpop.f32.mrf.mxu1  ;;  %12335 = vmatprep.subr.bf16.mxu1 %v16826_v8  ;;  %v16842_v8 = vld [vmem:[%s18652_s12 + $0x2e40] ss:$16 sps:$4 sm:$0xff]   ;;  %v16847_v46 = vld [vmem:[%s18652_s12 + $0x2c24] ss:$16 sps:$4 sm:$0xff]  }
 0x304   : > { %v16850_v24 = vld [vmem:[%s18652_s12 + $0x2e24] ss:$16 sps:$4 sm:$0xff]   ;;  %v16845_v16 = vld [vmem:[%s18652_s12 + $0x2c20] ss:$16 sps:$4 sm:$0xff]  }
 0x305   : > { %12295 = vmatpush1.bf16.msra.mxu0 %v16821_v25  ;;  %v16841_v25 = vld [vmem:[%s18652_s12 + $0x2c44] ss:$16 sps:$4 sm:$0xff]   ;;  %v16848_v0 = vld [vmem:[%s18652_s12 + $0x2e20] ss:$16 sps:$4 sm:$0xff]  }
 0x306   : > { %12336 = vmatpush1.bf16.msra.mxu1 %v16824_v2  ;;  %12296 = vmatprep.subr.bf16.mxu0 %v16829_v9  ;;  %v16844_v2 = vld [vmem:[%s18652_s12 + $0x2e44] ss:$16 sps:$4 sm:$0xff]  }
 0x307   : > { %12337 = vmatprep.subr.bf16.mxu1 %v16832_v31  ;;  %v16853_v10 = vld [vmem:[%s18652_s12 + $0x2c04] ss:$16 sps:$4 sm:$0xff]   ;;  %v16851_v31 = vld [vmem:[%s18652_s12 + $0x2c00] ss:$16 sps:$4 sm:$0xff]  }
 0x308   : > { %v16856_v9 = vld [vmem:[%s18652_s12 + $0x2e04] ss:$16 sps:$4 sm:$0xff]  }
 0x309   : > { %12297 = vmatpush1.bf16.msra.mxu0 %v16827_v57  ;;  %v16854_v57 = vld [vmem:[%s18652_s12 + $0x2e00] ss:$16 sps:$4 sm:$0xff]  }
 0x30a   : > { %12338 = vmatpush1.bf16.msra.mxu1 %v16830_v62  ;;  %12298 = vmatprep.subr.bf16.mxu0 %v16835_v26  ;;  %v16859_v62 = vld [vmem:[%s18652_s12 + $0x2de4] ss:$16 sps:$4 sm:$0xff]  }
 0x30b   : > { %12339 = vmatprep.subr.bf16.mxu1 %v16838_v52  ;;  %v16862_v26 = vld [vmem:[%s18652_s12 + $0x2fe4] ss:$16 sps:$4 sm:$0xff]   ;;  %v16857_v52 = vld [vmem:[%s18652_s12 + $0x2de0] ss:$16 sps:$4 sm:$0xff]  }
 0x30d   : > { %12299 = vmatpush1.bf16.msra.mxu0 %v16833_v13  ;;  %v16860_v13 = vld [vmem:[%s18652_s12 + $0x2fe0] ss:$16 sps:$4 sm:$0xff]  }
 0x30e   : > { %12340 = vmatpush1.bf16.msra.mxu1 %v16836_v12  ;;  %12300 = vmatprep.subr.bf16.mxu0 %v16841_v25  ;;  %v16865_v12 = vld [vmem:[%s18652_s12 + $0x2dc4] ss:$16 sps:$4 sm:$0xff]  }
 0x30f   : > { %12341 = vmatprep.subr.bf16.mxu1 %v16844_v2  ;;  %v16868_v25 = vld [vmem:[%s18652_s12 + $0x2fc4] ss:$16 sps:$4 sm:$0xff]   ;;  %v16863_v2 = vld [vmem:[%s18652_s12 + $0x2dc0] ss:$16 sps:$4 sm:$0xff]  }
 0x311   : > { %12301 = vmatpush1.bf16.msra.mxu0 %v16839_v21  ;;  %v16866_v21 = vld [vmem:[%s18652_s12 + $0x2fc0] ss:$16 sps:$4 sm:$0xff]  }
 0x312   : > { %12342 = vmatpush1.bf16.msra.mxu1 %v16842_v8  ;;  %12302 = vmatprep.subr.bf16.mxu0 %v16847_v46  ;;  %v16871_v8 = vld [vmem:[%s18652_s12 + $0x2da4] ss:$16 sps:$4 sm:$0xff]  }
 0x313   : > { %12343 = vmatprep.subr.bf16.mxu1 %v16850_v24  ;;  %v16874_v46 = vld [vmem:[%s18652_s12 + $0x2fa4] ss:$16 sps:$4 sm:$0xff]   ;;  %v16869_v24 = vld [vmem:[%s18652_s12 + $0x2da0] ss:$16 sps:$4 sm:$0xff]  }
 0x315   : > { %12303 = vmatpush1.bf16.msra.mxu0 %v16845_v16  ;;  %v16872_v16 = vld [vmem:[%s18652_s12 + $0x2fa0] ss:$16 sps:$4 sm:$0xff]  }
 0x316   : > { %12344 = vmatpush1.bf16.msra.mxu1 %v16848_v0  ;;  %12304 = vmatprep.subr.bf16.mxu0 %v16853_v10  ;;  %v16877_v0 = vld [vmem:[%s18652_s12 + $0x2d84] ss:$16 sps:$4 sm:$0xff]  }
 0x317   : > { %12345 = vmatprep.subr.bf16.mxu1 %v16856_v9  ;;  %v16880_v10 = vld [vmem:[%s18652_s12 + $0x2f84] ss:$16 sps:$4 sm:$0xff]   ;;  %v16875_v9 = vld [vmem:[%s18652_s12 + $0x2d80] ss:$16 sps:$4 sm:$0xff]  }
 0x319   : > { %12305 = vmatpush1.bf16.msra.mxu0 %v16851_v31  ;;  %v16878_v31 = vld [vmem:[%s18652_s12 + $0x2f80] ss:$16 sps:$4 sm:$0xff]  }
 0x31a   : > { %12346 = vmatpush1.bf16.msra.mxu1 %v16854_v57  ;;  %12306 = vmatprep.subr.bf16.mxu0 %v16859_v62  ;;  %v16883_v57 = vld [vmem:[%s18652_s12 + $0x2d64] ss:$16 sps:$4 sm:$0xff]  }
 0x31b   : > { %12347 = vmatprep.subr.bf16.mxu1 %v16862_v26  ;;  %v16886_v62 = vld [vmem:[%s18652_s12 + $0x2f64] ss:$16 sps:$4 sm:$0xff]   ;;  %v16881_v26 = vld [vmem:[%s18652_s12 + $0x2d60] ss:$16 sps:$4 sm:$0xff]  }
 0x31d   : > { %12307 = vmatpush2.bf16.msra.mxu0 %v16857_v52  ;;  %v16884_v52 = vld [vmem:[%s18652_s12 + $0x2f60] ss:$16 sps:$4 sm:$0xff]  }
 0x31e   : > { %12348 = vmatpush2.bf16.msra.mxu1 %v16860_v13  ;;  %12308 = vmatprep.subr.bf16.mxu0 %v16865_v12  ;;  %v16889_v13 = vld [vmem:[%s18652_s12 + $0x2d44] ss:$16 sps:$4 sm:$0xff]  }
 0x31f   : > { %12349 = vmatprep.subr.bf16.mxu1 %v16868_v25  ;;  %v16892_v12 = vld [vmem:[%s18652_s12 + $0x2f44] ss:$16 sps:$4 sm:$0xff]  }
 0x320   : > { %v270_v25 = vld [vmem:[%s18675_s29 + $0x60] sm:$0xff] }
 0x321   : > { %12309 = vmatpush2.bf16.msra.mxu0 %v16863_v2  ;;  %v16887_v2 = vld [vmem:[%s18652_s12 + $0x2d40] ss:$16 sps:$4 sm:$0xff]  }
 0x322   : > { %12350 = vmatpush2.bf16.msra.mxu1 %v16866_v21  ;;  %12310 = vmatprep.subr.bf16.mxu0 %v16871_v8  ;;  %v16890_v21 = vld [vmem:[%s18652_s12 + $0x2f40] ss:$16 sps:$4 sm:$0xff]   ;;  %v16895_v8 = vld [vmem:[%s18652_s12 + $0x2d24] ss:$16 sps:$4 sm:$0xff]  }
 0x323   : > { %12351 = vmatprep.subr.bf16.mxu1 %v16874_v46  ;;  %v16898_v46 = vld [vmem:[%s18652_s12 + $0x2f24] ss:$16 sps:$4 sm:$0xff]  }
 0x325   : > { %12311 = vmatpush2.bf16.msra.mxu0 %v16869_v24  ;;  %v490_v24 = vcombine.high %v270_v25, %v270_v25 }
 0x326   : > { %12352 = vmatpush2.bf16.msra.mxu1 %v16872_v16  ;;  %12312 = vmatprep.subr.bf16.mxu0 %v16877_v0  ;;  %v16893_v16 = vld [vmem:[%s18652_s12 + $0x2d20] ss:$16 sps:$4 sm:$0xff]  }
 0x327   : > { %12353 = vmatprep.subr.bf16.mxu1 %v16880_v10  ;;  %v16896_v0 = vld [vmem:[%s18652_s12 + $0x2f20] ss:$16 sps:$4 sm:$0xff]   ;;  %v16901_v10 = vld [vmem:[%s18652_s12 + $0x2d04] ss:$16 sps:$4 sm:$0xff]  }
 0x329   : > { %12313 = vmatpush2.bf16.msra.mxu0 %v16875_v9  ;;  %v16904_v9 = vld [vmem:[%s18652_s12 + $0x2f04] ss:$16 sps:$4 sm:$0xff]  }
 0x32a   : > { %12354 = vmatpush2.bf16.msra.mxu1 %v16878_v31  ;;  %12314 = vmatprep.subr.bf16.mxu0 %v16883_v57  ;;  %v19800_v31 = vrot.slane %v270_v25, %v18726_v50  ;;  %v19803_v57 = vrot.slane %v490_v24, %v18726_v50  ;;  %v16914_v24 = vld [vmem:[%s18652_s12 + $0x30c4] ss:$16 sps:$4 sm:$0xff]  }
 0x32b   : > { %12355 = vmatprep.subr.bf16.mxu1 %v16886_v62  ;;  %v16899_v62 = vld [vmem:[%s18652_s12 + $0x2d00] ss:$16 sps:$4 sm:$0xff]  }
 0x32c   : > { %v505_v25 = vcombine.high %v19800_v31, %v19800_v31 }
 0x32d   : > { %12315 = vmatpush2.bf16.msra.mxu0 %v16881_v26  ;;  %v16902_v26 = vld [vmem:[%s18652_s12 + $0x2f00] ss:$16 sps:$4 sm:$0xff]  }
 0x32e   : > { %12356 = vmatpush2.bf16.msra.mxu1 %v16884_v52  ;;  %12316 = vmatprep.subr.bf16.mxu0 %v16889_v13  ;;  %v16908_v52 = vld [vmem:[%s18652_s12 + $0x30e4] ss:$16 sps:$4 sm:$0xff]  }
 0x32f   : > { %12357 = vmatprep.subr.bf16.mxu1 %v16892_v12  ;;  %v16911_v13 = vld [vmem:[%s18652_s12 + $0x32e4] ss:$16 sps:$4 sm:$0xff]   ;;  %v16906_v12 = vld [vmem:[%s18652_s12 + $0x30e0] ss:$16 sps:$4 sm:$0xff]  }
 0x331   : > { %12317 = vmatpush2.bf16.msra.mxu0 %v16887_v2  ;;  %v16909_v2 = vld [vmem:[%s18652_s12 + $0x32e0] ss:$16 sps:$4 sm:$0xff]  }
 0x332   : > { %12358 = vmatpush2.bf16.msra.mxu1 %v16890_v21  ;;  %12318 = vmatprep.subr.bf16.mxu0 %v16895_v8  ;;  %v506_v21 = vcombine.high %v19803_v57, %v19803_v57  ;;  %v19817_v8 = vpack.c.bf16 %v19703_v45, %v19703_v45 }
 0x333   : > { %12359 = vmatprep.subr.bf16.mxu1 %v16898_v46  ;;  %v19821_v46 = vpack.c.bf16 %v19706_v1, %v19706_v1 }
 0x334   : > { %21119 = vst [vmem:[#allocation14_spill] sm:$0xff] %v19817_v8  ;;  %v19829_v19 = vpack.c.bf16 %v506_v21, %v506_v21 }
 0x335   : > { %12319 = vmatpush2.bf16.msra.mxu0 %v16893_v16  ;;  %v16917_v16 = vld [vmem:[%s18652_s12 + $0x32c4] ss:$16 sps:$4 sm:$0xff]  }
 0x336   : > { %12360 = vmatpush2.bf16.msra.mxu1 %v16896_v0  ;;  %12320 = vmatprep.subr.bf16.mxu0 %v16901_v10  ;;  %v16912_v0 = vld [vmem:[%s18652_s12 + $0x30c0] ss:$16 sps:$4 sm:$0xff]   ;;  %21121 = vst [vmem:[#allocation16_spill] sm:$0xff] %v19829_v19 }
 0x337   : > { %12361 = vmatprep.subr.bf16.mxu1 %v16904_v9  ;;  %v16915_v10 = vld [vmem:[%s18652_s12 + $0x32c0] ss:$16 sps:$4 sm:$0xff]   ;;  %v19827_v9 = vpack.c.bf16 %v505_v25, %v505_v25 }
 0x339   : > { %12321 = vmatpush2.bf16.msra.mxu0 %v16899_v62  ;;  %21120 = vst [vmem:[#allocation15_spill] sm:$0xff] %v19827_v9 }
 0x33a   : > { %12362 = vmatpush2.bf16.msra.mxu1 %v16902_v26  ;;  %12372 = vmatprep.subr.bf16.mxu0 %v16908_v52  ;;  %v16920_v52 = vld [vmem:[%s18652_s12 + $0x30a4] ss:$16 sps:$4 sm:$0xff]  }
 0x33b   : > { %12413 = vmatprep.subr.bf16.mxu1 %v16911_v13  ;;  %v16923_v13 = vld [vmem:[%s18652_s12 + $0x32a4] ss:$16 sps:$4 sm:$0xff]  }
 0x33c   : > { %v12078_v45 = vpop.f32.mrf.mxu0  ;;  %12323 = vmatmul.mubr.bf16.vlgmr.msra.gmra.mxu0 %v19817_v8  ;;  %v16921_v8 = vld [vmem:[%s18652_s12 + $0x32a0] ss:$16 sps:$4 sm:$0xff]  }
 0x33d   : > { %v12119_v22 = vpop.f32.mrf.mxu1  ;;  %12364 = vmatmul.mubr.bf16.vlgmr.msra.gmra.mxu1 %v19821_v46  ;;  %v12079_v1 = vadd.f32 %v12078_v45, %v19739_v7  ;;  %12373 = vmatpush1.bf16.msra.mxu0 %v16906_v12  ;;  %v16924_v45 = vld [vmem:[%s18652_s12 + $0x3080] ss:$16 sps:$4 sm:$0xff]  }
 0x33e   : > { %12414 = vmatpush1.bf16.msra.mxu1 %v16909_v2  ;;  %v12080_v62 = vpop.f32.mrf.mxu0  ;;  %12374 = vmatprep.subr.bf16.mxu0 %v16914_v24 }
 0x33f   : > { %v12121_v26 = vpop.f32.mrf.mxu1  ;;  %12415 = vmatprep.subr.bf16.mxu1 %v16917_v16  ;;  %v19836_v25 = vadd.f32 %v12119_v22, %v12079_v1  ;;  %v12081_v21 = vadd.f32 %v12080_v62, %v19746_v44  ;;  %12404 = vmatprep.mubr.bf16.mxu0 %v19827_v9  ;;  %v16926_v44 = vld [vmem:[%s18652_s12 + $0x3084] ss:$16 sps:$4 sm:$0xff]   ;;  %v16927_v1 = vld [vmem:[%s18652_s12 + $0x3280] ss:$16 sps:$4 sm:$0xff]  }
 0x340   : > { %12445 = vmatprep.mubr.bf16.mxu1 %v19829_v19  ;;  %v12082_v7 = vpop.f32.mrf.mxu0  ;;  %v16929_v16 = vld [vmem:[%s18652_s12 + $0x3284] ss:$16 sps:$4 sm:$0xff]   ;;  %v16930_v62 = vld [vmem:[%s18652_s12 + $0x3060] ss:$16 sps:$4 sm:$0xff]  }
 0x341   : > { %v12123_v12 = vpop.f32.mrf.mxu1  ;;  %v19843_v2 = vadd.f32 %v12121_v26, %v12081_v21  ;;  %12375 = vmatpush1.bf16.msra.mxu0 %v16912_v0  ;;  %v16932_v0 = vld [vmem:[%s18652_s12 + $0x3064] ss:$16 sps:$4 sm:$0xff]   ;;  %v16933_v26 = vld [vmem:[%s18652_s12 + $0x3260] ss:$16 sps:$4 sm:$0xff]  }
 0x342   : > { %12416 = vmatpush1.bf16.msra.mxu1 %v16915_v10  ;;  %v12083_v22 = vpop.f32.mrf.mxu0  ;;  %12376 = vmatprep.subr.bf16.mxu0 %v16920_v52  ;;  %v16935_v10 = vld [vmem:[%s18652_s12 + $0x3264] ss:$16 sps:$4 sm:$0xff]   ;;  %v16936_v52 = vld [vmem:[%s18652_s12 + $0x3040] ss:$16 sps:$4 sm:$0xff]  }
 0x343   : > { %v12124_v24 = vpop.f32.mrf.mxu1  ;;  %12417 = vmatprep.subr.bf16.mxu1 %v16923_v13  ;;  %v16939_v13 = vld [vmem:[%s18652_s12 + $0x3240] ss:$16 sps:$4 sm:$0xff]   ;;  %v16944_v21 = vld [vmem:[%s18652_s12 + $0x3024] ss:$16 sps:$4 sm:$0xff]  }
 0x344   : > { %v16947_v7 = vld [vmem:[%s18652_s12 + $0x3224] ss:$16 sps:$4 sm:$0xff]   ;;  %v16942_v12 = vld [vmem:[%s18652_s12 + $0x3020] ss:$16 sps:$4 sm:$0xff]  }
 0x345   : > { %12377 = vmatpush1.bf16.msra.mxu0 %v16918_v39  ;;  %v16938_v39 = vld [vmem:[%s18652_s12 + $0x3044] ss:$16 sps:$4 sm:$0xff]   ;;  %v16945_v22 = vld [vmem:[%s18652_s12 + $0x3220] ss:$16 sps:$4 sm:$0xff]  }
 0x346   : > { %12418 = vmatpush1.bf16.msra.mxu1 %v16921_v8  ;;  %12378 = vmatprep.subr.bf16.mxu0 %v16926_v44  ;;  %v16941_v8 = vld [vmem:[%s18652_s12 + $0x3244] ss:$16 sps:$4 sm:$0xff]   ;;  %v17015_v9 = vld [vmem:[%s18652_s12 + $0x34a0] ss:$16 sps:$4 sm:$0xff]  }
 0x347   : > { %12419 = vmatprep.subr.bf16.mxu1 %v16929_v16  ;;  %v16950_v24 = vld [vmem:[%s18652_s12 + $0x3004] ss:$16 sps:$4 sm:$0xff]   ;;  %v16948_v16 = vld [vmem:[%s18652_s12 + $0x3000] ss:$16 sps:$4 sm:$0xff]  }
 0x348   : > { %v16953_v44 = vld [vmem:[%s18652_s12 + $0x3204] ss:$16 sps:$4 sm:$0xff]  }
 0x349   : > { %12379 = vmatpush1.bf16.msra.mxu0 %v16924_v45  ;;  %v16951_v45 = vld [vmem:[%s18652_s12 + $0x3200] ss:$16 sps:$4 sm:$0xff]  }
 0x34a   : > { %12420 = vmatpush1.bf16.msra.mxu1 %v16927_v1  ;;  %12380 = vmatprep.subr.bf16.mxu0 %v16932_v0  ;;  %v16956_v1 = vld [vmem:[%s18652_s12 + $0x31e4] ss:$16 sps:$4 sm:$0xff]  }
 0x34b   : > { %12421 = vmatprep.subr.bf16.mxu1 %v16935_v10  ;;  %v16959_v0 = vld [vmem:[%s18652_s12 + $0x33e4] ss:$16 sps:$4 sm:$0xff]   ;;  %v16954_v10 = vld [vmem:[%s18652_s12 + $0x31e0] ss:$16 sps:$4 sm:$0xff]  }
 0x34d   : > { %12381 = vmatpush1.bf16.msra.mxu0 %v16930_v62  ;;  %v16957_v62 = vld [vmem:[%s18652_s12 + $0x33e0] ss:$16 sps:$4 sm:$0xff]  }
 0x34e   : > { %12422 = vmatpush1.bf16.msra.mxu1 %v16933_v26  ;;  %12382 = vmatprep.subr.bf16.mxu0 %v16938_v39  ;;  %v16962_v26 = vld [vmem:[%s18652_s12 + $0x31c4] ss:$16 sps:$4 sm:$0xff]  }
 0x34f   : > { %12423 = vmatprep.subr.bf16.mxu1 %v16941_v8  ;;  %v16965_v39 = vld [vmem:[%s18652_s12 + $0x33c4] ss:$16 sps:$4 sm:$0xff]   ;;  %v16960_v8 = vld [vmem:[%s18652_s12 + $0x31c0] ss:$16 sps:$4 sm:$0xff]  }
 0x351   : > { %12383 = vmatpush1.bf16.msra.mxu0 %v16936_v52  ;;  %v16963_v52 = vld [vmem:[%s18652_s12 + $0x33c0] ss:$16 sps:$4 sm:$0xff]  }
 0x352   : > { %12424 = vmatpush1.bf16.msra.mxu1 %v16939_v13  ;;  %12384 = vmatprep.subr.bf16.mxu0 %v16944_v21  ;;  %v16968_v13 = vld [vmem:[%s18652_s12 + $0x31a4] ss:$16 sps:$4 sm:$0xff]  }
 0x353   : > { %12425 = vmatprep.subr.bf16.mxu1 %v16947_v7  ;;  %v16971_v21 = vld [vmem:[%s18652_s12 + $0x33a4] ss:$16 sps:$4 sm:$0xff]   ;;  %v16966_v7 = vld [vmem:[%s18652_s12 + $0x31a0] ss:$16 sps:$4 sm:$0xff]  }
 0x355   : > { %12385 = vmatpush1.bf16.msra.mxu0 %v16942_v12  ;;  %v16969_v12 = vld [vmem:[%s18652_s12 + $0x33a0] ss:$16 sps:$4 sm:$0xff]  }
 0x356   : > { %12426 = vmatpush1.bf16.msra.mxu1 %v16945_v22  ;;  %12386 = vmatprep.subr.bf16.mxu0 %v16950_v24  ;;  %v16974_v22 = vld [vmem:[%s18652_s12 + $0x3184] ss:$16 sps:$4 sm:$0xff]  }
 0x357   : > { %12427 = vmatprep.subr.bf16.mxu1 %v16953_v44  ;;  %v16977_v24 = vld [vmem:[%s18652_s12 + $0x3384] ss:$16 sps:$4 sm:$0xff]   ;;  %v16972_v44 = vld [vmem:[%s18652_s12 + $0x3180] ss:$16 sps:$4 sm:$0xff]  }
 0x359   : > { %12387 = vmatpush1.bf16.msra.mxu0 %v16948_v16  ;;  %v16975_v16 = vld [vmem:[%s18652_s12 + $0x3380] ss:$16 sps:$4 sm:$0xff]  }
 0x35a   : > { %12428 = vmatpush1.bf16.msra.mxu1 %v16951_v45  ;;  %12388 = vmatprep.subr.bf16.mxu0 %v16956_v1  ;;  %v16980_v45 = vld [vmem:[%s18652_s12 + $0x3164] ss:$16 sps:$4 sm:$0xff]  }
 0x35b   : > { %12429 = vmatprep.subr.bf16.mxu1 %v16959_v0  ;;  %v16983_v1 = vld [vmem:[%s18652_s12 + $0x3364] ss:$16 sps:$4 sm:$0xff]   ;;  %v16978_v0 = vld [vmem:[%s18652_s12 + $0x3160] ss:$16 sps:$4 sm:$0xff]  }
 0x35d   : > { %12389 = vmatpush2.bf16.msra.mxu0 %v16954_v10  ;;  %v16981_v10 = vld [vmem:[%s18652_s12 + $0x3360] ss:$16 sps:$4 sm:$0xff]  }
 0x35e   : > { %12430 = vmatpush2.bf16.msra.mxu1 %v16957_v62  ;;  %12390 = vmatprep.subr.bf16.mxu0 %v16962_v26  ;;  %v16986_v62 = vld [vmem:[%s18652_s12 + $0x3144] ss:$16 sps:$4 sm:$0xff]  }
 0x35f   : > { %12431 = vmatprep.subr.bf16.mxu1 %v16965_v39  ;;  %v16989_v26 = vld [vmem:[%s18652_s12 + $0x3344] ss:$16 sps:$4 sm:$0xff]   ;;  %v271_v39 = vld [vmem:[%s18675_s29 + $0x68] sm:$0xff] }
 0x361   : > { %12391 = vmatpush2.bf16.msra.mxu0 %v16960_v8  ;;  %v16984_v8 = vld [vmem:[%s18652_s12 + $0x3140] ss:$16 sps:$4 sm:$0xff]  }
 0x362   : > { %12432 = vmatpush2.bf16.msra.mxu1 %v16963_v52  ;;  %12392 = vmatprep.subr.bf16.mxu0 %v16968_v13  ;;  %v16987_v52 = vld [vmem:[%s18652_s12 + $0x3340] ss:$16 sps:$4 sm:$0xff]   ;;  %v16992_v13 = vld [vmem:[%s18652_s12 + $0x3124] ss:$16 sps:$4 sm:$0xff]  }
 0x363   : > { %12433 = vmatprep.subr.bf16.mxu1 %v16971_v21  ;;  %v16995_v21 = vld [vmem:[%s18652_s12 + $0x3324] ss:$16 sps:$4 sm:$0xff]  }
 0x365   : > { %12393 = vmatpush2.bf16.msra.mxu0 %v16966_v7  ;;  %v507_v7 = vcombine.high %v271_v39, %v271_v39 }
 0x366   : > { %12434 = vmatpush2.bf16.msra.mxu1 %v16969_v12  ;;  %12394 = vmatprep.subr.bf16.mxu0 %v16974_v22  ;;  %v16990_v12 = vld [vmem:[%s18652_s12 + $0x3120] ss:$16 sps:$4 sm:$0xff]  }
 0x367   : > { %12435 = vmatprep.subr.bf16.mxu1 %v16977_v24  ;;  %v16993_v22 = vld [vmem:[%s18652_s12 + $0x3320] ss:$16 sps:$4 sm:$0xff]   ;;  %v16998_v24 = vld [vmem:[%s18652_s12 + $0x3104] ss:$16 sps:$4 sm:$0xff]  }
 0x369   : > { %12395 = vmatpush2.bf16.msra.mxu0 %v16972_v44  ;;  %v17001_v44 = vld [vmem:[%s18652_s12 + $0x3304] ss:$16 sps:$4 sm:$0xff]  }
 0x36a   : > { %12436 = vmatpush2.bf16.msra.mxu1 %v16975_v16  ;;  %12396 = vmatprep.subr.bf16.mxu0 %v16980_v45  ;;  %v19897_v16 = vrot.slane %v271_v39, %v18726_v50  ;;  %v19900_v45 = vrot.slane %v507_v7, %v18726_v50  ;;  %v17011_v7 = vld [vmem:[%s18652_s12 + $0x34c4] ss:$16 sps:$4 sm:$0xff]  }
 0x36b   : > { %12437 = vmatprep.subr.bf16.mxu1 %v16983_v1  ;;  %v16996_v1 = vld [vmem:[%s18652_s12 + $0x3100] ss:$16 sps:$4 sm:$0xff]  }
 0x36c   : > { %v522_v39 = vcombine.high %v19897_v16, %v19897_v16 }
 0x36d   : > { %12397 = vmatpush2.bf16.msra.mxu0 %v16978_v0  ;;  %v16999_v0 = vld [vmem:[%s18652_s12 + $0x3300] ss:$16 sps:$4 sm:$0xff]  }
 0x36e   : > { %12438 = vmatpush2.bf16.msra.mxu1 %v16981_v10  ;;  %12398 = vmatprep.subr.bf16.mxu0 %v16986_v62  ;;  %v17005_v10 = vld [vmem:[%s18652_s12 + $0x34e4] ss:$16 sps:$4 sm:$0xff]  }
 0x36f   : > { %12439 = vmatprep.subr.bf16.mxu1 %v16989_v26  ;;  %v17008_v62 = vld [vmem:[%s18652_s12 + $0x36e4] ss:$16 sps:$4 sm:$0xff]   ;;  %v17003_v26 = vld [vmem:[%s18652_s12 + $0x34e0] ss:$16 sps:$4 sm:$0xff]  }
 0x371   : > { %12399 = vmatpush2.bf16.msra.mxu0 %v16984_v8  ;;  %v17006_v8 = vld [vmem:[%s18652_s12 + $0x36e0] ss:$16 sps:$4 sm:$0xff]  }
 0x372   : > { %12440 = vmatpush2.bf16.msra.mxu1 %v16987_v52  ;;  %12400 = vmatprep.subr.bf16.mxu0 %v16992_v13  ;;  %v523_v52 = vcombine.high %v19900_v45, %v19900_v45  ;;  %v19914_v13 = vpack.c.bf16 %v19800_v31, %v19800_v31 }
 0x373   : > { %12441 = vmatprep.subr.bf16.mxu1 %v16995_v21  ;;  %v19918_v21 = vpack.c.bf16 %v19803_v57, %v19803_v57 }
 0x374   : > { %21122 = vst [vmem:[#allocation17_spill] sm:$0xff] %v19914_v13  ;;  %v19926_v50 = vpack.c.bf16 %v523_v52, %v523_v52 }
 0x375   : > { %12401 = vmatpush2.bf16.msra.mxu0 %v16990_v12  ;;  %v17014_v12 = vld [vmem:[%s18652_s12 + $0x36c4] ss:$16 sps:$4 sm:$0xff]  }
 0x376   : > { %12442 = vmatpush2.bf16.msra.mxu1 %v16993_v22  ;;  %12402 = vmatprep.subr.bf16.mxu0 %v16998_v24  ;;  %v17009_v22 = vld [vmem:[%s18652_s12 + $0x34c0] ss:$16 sps:$4 sm:$0xff]  }
 0x377   : > { %12443 = vmatprep.subr.bf16.mxu1 %v17001_v44  ;;  %v17012_v24 = vld [vmem:[%s18652_s12 + $0x36c0] ss:$16 sps:$4 sm:$0xff]   ;;  %v19924_v44 = vpack.c.bf16 %v522_v39, %v522_v39 }
 0x379   : > { %12403 = vmatpush2.bf16.msra.mxu0 %v16996_v1 }
 0x37a   : > { %12444 = vmatpush2.bf16.msra.mxu1 %v16999_v0  ;;  %12454 = vmatprep.subr.bf16.mxu0 %v17005_v10  ;;  %v17017_v10 = vld [vmem:[%s18652_s12 + $0x34a4] ss:$16 sps:$4 sm:$0xff]  }
 0x37b   : > { %12495 = vmatprep.subr.bf16.mxu1 %v17008_v62  ;;  %v17020_v62 = vld [vmem:[%s18652_s12 + $0x36a4] ss:$16 sps:$4 sm:$0xff]  }
 0x37c   : > { %v12160_v31 = vpop.f32.mrf.mxu0  ;;  %12405 = vmatmul.mubr.bf16.vlgmr.msra.gmra.mxu0 %v19914_v13  ;;  %v17018_v13 = vld [vmem:[%s18652_s12 + $0x36a0] ss:$16 sps:$4 sm:$0xff]  }
 0x37d   : > { %v12201_v19 = vpop.f32.mrf.mxu1  ;;  %12446 = vmatmul.mubr.bf16.vlgmr.msra.gmra.mxu1 %v19918_v21  ;;  %v12161_v57 = vadd.f32 %v12160_v31, %v19836_v25  ;;  %12455 = vmatpush1.bf16.msra.mxu0 %v17003_v26  ;;  %v17021_v31 = vld [vmem:[%s18652_s12 + $0x3480] ss:$16 sps:$4 sm:$0xff]  }
 0x37e   : > { %12496 = vmatpush1.bf16.msra.mxu1 %v17006_v8  ;;  %v12162_v1 = vpop.f32.mrf.mxu0  ;;  %12456 = vmatprep.subr.bf16.mxu0 %v17011_v7 }
 0x37f   : > { %v12203_v0 = vpop.f32.mrf.mxu1  ;;  %12497 = vmatprep.subr.bf16.mxu1 %v17014_v12  ;;  %v19933_v39 = vadd.f32 %v12201_v19, %v12161_v57  ;;  %v12163_v52 = vadd.f32 %v12162_v1, %v19843_v2  ;;  %12486 = vmatprep.mubr.bf16.mxu0 %v19924_v44  ;;  %v17023_v2 = vld [vmem:[%s18652_s12 + $0x3484] ss:$16 sps:$4 sm:$0xff]   ;;  %v17024_v57 = vld [vmem:[%s18652_s12 + $0x3680] ss:$16 sps:$4 sm:$0xff]  }
 0x380   : > { %12527 = vmatprep.mubr.bf16.mxu1 %v19926_v50  ;;  %v12164_v25 = vpop.f32.mrf.mxu0  ;;  %v17026_v12 = vld [vmem:[%s18652_s12 + $0x3684] ss:$16 sps:$4 sm:$0xff]   ;;  %v17027_v1 = vld [vmem:[%s18652_s12 + $0x3460] ss:$16 sps:$4 sm:$0xff]  }
 0x381   : > { %v12205_v26 = vpop.f32.mrf.mxu1  ;;  %v19940_v8 = vadd.f32 %v12203_v0, %v12163_v52  ;;  %12457 = vmatpush1.bf16.msra.mxu0 %v17009_v22  ;;  %v17029_v22 = vld [vmem:[%s18652_s12 + $0x3464] ss:$16 sps:$4 sm:$0xff]   ;;  %v17030_v0 = vld [vmem:[%s18652_s12 + $0x3660] ss:$16 sps:$4 sm:$0xff]  }
 0x382   : > { %12498 = vmatpush1.bf16.msra.mxu1 %v17012_v24  ;;  %v12165_v19 = vpop.f32.mrf.mxu0  ;;  %12458 = vmatprep.subr.bf16.mxu0 %v17017_v10  ;;  %v17032_v24 = vld [vmem:[%s18652_s12 + $0x3664] ss:$16 sps:$4 sm:$0xff]   ;;  %v17033_v10 = vld [vmem:[%s18652_s12 + $0x3440] ss:$16 sps:$4 sm:$0xff]  }
 0x383   : > { %v12206_v7 = vpop.f32.mrf.mxu1  ;;  %12499 = vmatprep.subr.bf16.mxu1 %v17020_v62  ;;  %v17036_v62 = vld [vmem:[%s18652_s12 + $0x3640] ss:$16 sps:$4 sm:$0xff]   ;;  %v17041_v52 = vld [vmem:[%s18652_s12 + $0x3424] ss:$16 sps:$4 sm:$0xff]  }
 0x384   : > { %v17044_v25 = vld [vmem:[%s18652_s12 + $0x3624] ss:$16 sps:$4 sm:$0xff]   ;;  %v17039_v26 = vld [vmem:[%s18652_s12 + $0x3420] ss:$16 sps:$4 sm:$0xff]  }
 0x385   : > { %12459 = vmatpush1.bf16.msra.mxu0 %v17015_v9  ;;  %v17035_v9 = vld [vmem:[%s18652_s12 + $0x3444] ss:$16 sps:$4 sm:$0xff]   ;;  %v17042_v19 = vld [vmem:[%s18652_s12 + $0x3620] ss:$16 sps:$4 sm:$0xff]  }
 0x386   : > { %12500 = vmatpush1.bf16.msra.mxu1 %v17018_v13  ;;  %12460 = vmatprep.subr.bf16.mxu0 %v17023_v2  ;;  %v17038_v13 = vld [vmem:[%s18652_s12 + $0x3644] ss:$16 sps:$4 sm:$0xff]  }
 0x387   : > { %12501 = vmatprep.subr.bf16.mxu1 %v17026_v12  ;;  %v17047_v7 = vld [vmem:[%s18652_s12 + $0x3404] ss:$16 sps:$4 sm:$0xff]   ;;  %v17045_v12 = vld [vmem:[%s18652_s12 + $0x3400] ss:$16 sps:$4 sm:$0xff]  }
 0x388   : > { %v17050_v2 = vld [vmem:[%s18652_s12 + $0x3604] ss:$16 sps:$4 sm:$0xff]  }
 0x389   : > { %12461 = vmatpush1.bf16.msra.mxu0 %v17021_v31  ;;  %v17048_v31 = vld [vmem:[%s18652_s12 + $0x3600] ss:$16 sps:$4 sm:$0xff]  }
 0x38a   : > { %12502 = vmatpush1.bf16.msra.mxu1 %v17024_v57  ;;  %12462 = vmatprep.subr.bf16.mxu0 %v17029_v22  ;;  %v17053_v57 = vld [vmem:[%s18652_s12 + $0x35e4] ss:$16 sps:$4 sm:$0xff]  }
 0x38b   : > { %12503 = vmatprep.subr.bf16.mxu1 %v17032_v24  ;;  %v17056_v22 = vld [vmem:[%s18652_s12 + $0x37e4] ss:$16 sps:$4 sm:$0xff]   ;;  %v17051_v24 = vld [vmem:[%s18652_s12 + $0x35e0] ss:$16 sps:$4 sm:$0xff]  }
 0x38d   : > { %12463 = vmatpush1.bf16.msra.mxu0 %v17027_v1  ;;  %v17054_v1 = vld [vmem:[%s18652_s12 + $0x37e0] ss:$16 sps:$4 sm:$0xff]  }
 0x38e   : > { %12504 = vmatpush1.bf16.msra.mxu1 %v17030_v0  ;;  %12464 = vmatprep.subr.bf16.mxu0 %v17035_v9  ;;  %v17059_v0 = vld [vmem:[%s18652_s12 + $0x35c4] ss:$16 sps:$4 sm:$0xff]  }
 0x38f   : > { %12505 = vmatprep.subr.bf16.mxu1 %v17038_v13  ;;  %v17062_v9 = vld [vmem:[%s18652_s12 + $0x37c4] ss:$16 sps:$4 sm:$0xff]   ;;  %v17057_v13 = vld [vmem:[%s18652_s12 + $0x35c0] ss:$16 sps:$4 sm:$0xff]  }
 0x391   : > { %12465 = vmatpush1.bf16.msra.mxu0 %v17033_v10  ;;  %v17060_v10 = vld [vmem:[%s18652_s12 + $0x37c0] ss:$16 sps:$4 sm:$0xff]  }
 0x392   : > { %12506 = vmatpush1.bf16.msra.mxu1 %v17036_v62  ;;  %12466 = vmatprep.subr.bf16.mxu0 %v17041_v52  ;;  %v17065_v62 = vld [vmem:[%s18652_s12 + $0x35a4] ss:$16 sps:$4 sm:$0xff]  }
 0x393   : > { %12507 = vmatprep.subr.bf16.mxu1 %v17044_v25  ;;  %v17068_v52 = vld [vmem:[%s18652_s12 + $0x37a4] ss:$16 sps:$4 sm:$0xff]   ;;  %v17063_v25 = vld [vmem:[%s18652_s12 + $0x35a0] ss:$16 sps:$4 sm:$0xff]  }
 0x395   : > { %12467 = vmatpush1.bf16.msra.mxu0 %v17039_v26  ;;  %v17066_v26 = vld [vmem:[%s18652_s12 + $0x37a0] ss:$16 sps:$4 sm:$0xff]  }
 0x396   : > { %12508 = vmatpush1.bf16.msra.mxu1 %v17042_v19  ;;  %12468 = vmatprep.subr.bf16.mxu0 %v17047_v7  ;;  %v17071_v19 = vld [vmem:[%s18652_s12 + $0x3584] ss:$16 sps:$4 sm:$0xff]  }
 0x397   : > { %12509 = vmatprep.subr.bf16.mxu1 %v17050_v2  ;;  %v17074_v7 = vld [vmem:[%s18652_s12 + $0x3784] ss:$16 sps:$4 sm:$0xff]   ;;  %v17069_v2 = vld [vmem:[%s18652_s12 + $0x3580] ss:$16 sps:$4 sm:$0xff]  }
 0x399   : > { %12469 = vmatpush1.bf16.msra.mxu0 %v17045_v12  ;;  %v17072_v12 = vld [vmem:[%s18652_s12 + $0x3780] ss:$16 sps:$4 sm:$0xff]  }
 0x39a   : > { %12510 = vmatpush1.bf16.msra.mxu1 %v17048_v31  ;;  %12470 = vmatprep.subr.bf16.mxu0 %v17053_v57  ;;  %v17077_v31 = vld [vmem:[%s18652_s12 + $0x3564] ss:$16 sps:$4 sm:$0xff]  }
 0x39b   : > { %12511 = vmatprep.subr.bf16.mxu1 %v17056_v22  ;;  %v17080_v57 = vld [vmem:[%s18652_s12 + $0x3764] ss:$16 sps:$4 sm:$0xff]   ;;  %v17075_v22 = vld [vmem:[%s18652_s12 + $0x3560] ss:$16 sps:$4 sm:$0xff]  }
 0x39d   : > { %12471 = vmatpush2.bf16.msra.mxu0 %v17051_v24  ;;  %v17078_v24 = vld [vmem:[%s18652_s12 + $0x3760] ss:$16 sps:$4 sm:$0xff]  }
 0x39e   : > { %12512 = vmatpush2.bf16.msra.mxu1 %v17054_v1  ;;  %12472 = vmatprep.subr.bf16.mxu0 %v17059_v0  ;;  %v17083_v1 = vld [vmem:[%s18652_s12 + $0x3544] ss:$16 sps:$4 sm:$0xff]  }
 0x39f   : > { %12513 = vmatprep.subr.bf16.mxu1 %v17062_v9  ;;  %v17086_v0 = vld [vmem:[%s18652_s12 + $0x3744] ss:$16 sps:$4 sm:$0xff]   ;;  %v17081_v9 = vld [vmem:[%s18652_s12 + $0x3540] ss:$16 sps:$4 sm:$0xff]  }
 0x3a1   : > { %12473 = vmatpush2.bf16.msra.mxu0 %v17057_v13  ;;  %v17084_v13 = vld [vmem:[%s18652_s12 + $0x3740] ss:$16 sps:$4 sm:$0xff]  }
 0x3a2   : > { %12514 = vmatpush2.bf16.msra.mxu1 %v17060_v10  ;;  %12474 = vmatprep.subr.bf16.mxu0 %v17065_v62  ;;  %v17089_v10 = vld [vmem:[%s18652_s12 + $0x3524] ss:$16 sps:$4 sm:$0xff]  }
 0x3a3   : > { %12515 = vmatprep.subr.bf16.mxu1 %v17068_v52  ;;  %v17092_v62 = vld [vmem:[%s18652_s12 + $0x3724] ss:$16 sps:$4 sm:$0xff]   ;;  %v17087_v52 = vld [vmem:[%s18652_s12 + $0x3520] ss:$16 sps:$4 sm:$0xff]  }
 0x3a5   : > { %12475 = vmatpush2.bf16.msra.mxu0 %v17063_v25  ;;  %v17090_v25 = vld [vmem:[%s18652_s12 + $0x3720] ss:$16 sps:$4 sm:$0xff]  }
 0x3a6   : > { %12516 = vmatpush2.bf16.msra.mxu1 %v17066_v26  ;;  %12476 = vmatprep.subr.bf16.mxu0 %v17071_v19  ;;  %v17095_v26 = vld [vmem:[%s18652_s12 + $0x3504] ss:$16 sps:$4 sm:$0xff]  }
 0x3a7   : > { %12517 = vmatprep.subr.bf16.mxu1 %v17074_v7  ;;  %v17098_v19 = vld [vmem:[%s18652_s12 + $0x3704] ss:$16 sps:$4 sm:$0xff]   ;;  %v17093_v7 = vld [vmem:[%s18652_s12 + $0x3500] ss:$16 sps:$4 sm:$0xff]  }
 0x3a9   : > { %12477 = vmatpush2.bf16.msra.mxu0 %v17069_v2  ;;  %v17096_v2 = vld [vmem:[%s18652_s12 + $0x3700] ss:$16 sps:$4 sm:$0xff]  }
 0x3aa   : > { %12518 = vmatpush2.bf16.msra.mxu1 %v17072_v12  ;;  %12478 = vmatprep.subr.bf16.mxu0 %v17077_v31  ;;  %v17102_v12 = vld [vmem:[%s18652_s12 + $0xec] ss:$16 sps:$4 sm:$0xff]  }
 0x3ab   : > { %12519 = vmatprep.subr.bf16.mxu1 %v17080_v57  ;;  %v17105_v31 = vld [vmem:[%s18652_s12 + $0x2ec] ss:$16 sps:$4 sm:$0xff]   ;;  %v17100_v57 = vld [vmem:[%s18652_s12 + $0xe8] ss:$16 sps:$4 sm:$0xff]  }
 0x3ad   : > { %12479 = vmatpush2.bf16.msra.mxu0 %v17075_v22  ;;  %v17103_v22 = vld [vmem:[%s18652_s12 + $0x2e8] ss:$16 sps:$4 sm:$0xff]  }
 0x3ae   : > { %12520 = vmatpush2.bf16.msra.mxu1 %v17078_v24  ;;  %12480 = vmatprep.subr.bf16.mxu0 %v17083_v1  ;;  %v20000_v24 = vpack.c.bf16 %v19897_v16, %v19897_v16  ;;  %v20004_v1 = vpack.c.bf16 %v19900_v45, %v19900_v45 }
 0x3af   : > { %12521 = vmatprep.subr.bf16.mxu1 %v17086_v0  ;;  %v17108_v0 = vld [vmem:[%s18652_s12 + $0xcc] ss:$16 sps:$4 sm:$0xff]  }
 0x3b1   : > { %12481 = vmatpush2.bf16.msra.mxu0 %v17081_v9  ;;  %v17111_v9 = vld [vmem:[%s18652_s12 + $0x2cc] ss:$16 sps:$4 sm:$0xff]  }
 0x3b2   : > { %12522 = vmatpush2.bf16.msra.mxu1 %v17084_v13  ;;  %12482 = vmatprep.subr.bf16.mxu0 %v17089_v10  ;;  %v17106_v13 = vld [vmem:[%s18652_s12 + $0xc8] ss:$16 sps:$4 sm:$0xff]  }
 0x3b3   : > { %12523 = vmatprep.subr.bf16.mxu1 %v17092_v62  ;;  %v17109_v10 = vld [vmem:[%s18652_s12 + $0x2c8] ss:$16 sps:$4 sm:$0xff]  }
 0x3b5   : > { %12483 = vmatpush2.bf16.msra.mxu0 %v17087_v52 }
 0x3b6   : > { %12524 = vmatpush2.bf16.msra.mxu1 %v17090_v25  ;;  %12484 = vmatprep.subr.bf16.mxu0 %v17095_v26  ;;  %v17114_v26 = vld [vmem:[%s18652_s12 + $0xac] ss:$16 sps:$4 sm:$0xff]  }
 0x3b7   : > { %12525 = vmatprep.subr.bf16.mxu1 %v17098_v19  ;;  %v17117_v19 = vld [vmem:[%s18652_s12 + $0x2ac] ss:$16 sps:$4 sm:$0xff]  }
 0x3b9   : > { %12485 = vmatpush2.bf16.msra.mxu0 %v17093_v7 }
 0x3ba   : > { %12526 = vmatpush2.bf16.msra.mxu1 %v17096_v2  ;;  %12536 = vmatprep.subr.bf16.mxu0 %v17102_v12  ;;  %v17112_v12 = vld [vmem:[%s18652_s12 + $0xa8] ss:$16 sps:$4 sm:$0xff]  }
 0x3bb   : > { %12577 = vmatprep.subr.bf16.mxu1 %v17105_v31  ;;  %v17115_v31 = vld [vmem:[%s18652_s12 + $0x2a8] ss:$16 sps:$4 sm:$0xff]  }
 0x3bc   : > { %v12242_v62 = vpop.f32.mrf.mxu0  ;;  %12487 = vmatmul.mubr.bf16.vlgmr.msra.gmra.mxu0 %v20000_v24 }
 0x3bd   : > { %v12283_v52 = vpop.f32.mrf.mxu1  ;;  %12528 = vmatmul.mubr.bf16.vlgmr.msra.gmra.mxu1 %v20004_v1  ;;  %v12243_v16 = vadd.f32 %v12242_v62, %v19933_v39  ;;  %12537 = vmatpush1.bf16.msra.mxu0 %v17100_v57  ;;  %v17121_v62 = vld [vmem:[%s18652_s12 + $0x288] ss:$16 sps:$4 sm:$0xff]  }
 0x3be   : > { %12578 = vmatpush1.bf16.msra.mxu1 %v17103_v22  ;;  %v12244_v45 = vpop.f32.mrf.mxu0  ;;  %12538 = vmatprep.subr.bf16.mxu0 %v17108_v0 }
 0x3bf   : > { %v12285_v25 = vpop.f32.mrf.mxu1  ;;  %12579 = vmatprep.subr.bf16.mxu1 %v17111_v9  ;;  %v20015_v7 = vadd.f32 %v12283_v52, %v12243_v16  ;;  %v12245_v2 = vadd.f32 %v12244_v45, %v19940_v8  ;;  %12568 = vmatprep.mubr.bf16.mxu0 %v18738_v63  ;;  %v17120_v8 = vld [vmem:[%s18652_s12 + $0x8c] ss:$16 sps:$4 sm:$0xff]   ;;  %v17124_v52 = vld [vmem:[%s18652_s12 + $0x68] ss:$16 sps:$4 sm:$0xff]  }
 0x3c0   : > { %12609 = vmatprep.mubr.bf16.mxu1 %v18743_v4  ;;  %v12246_v39 = vpop.f32.mrf.mxu0  ;;  %v17123_v63 = vld [vmem:[%s18652_s12 + $0x28c] ss:$16 sps:$4 sm:$0xff]   ;;  %v17118_v4 = vld [vmem:[%s18652_s12 + $0x88] ss:$16 sps:$4 sm:$0xff]  }
 0x3c1   : > { %v12287_v57 = vpop.f32.mrf.mxu1  ;;  %v20022_v22 = vadd.f32 %v12285_v25, %v12245_v2  ;;  %12539 = vmatpush1.bf16.msra.mxu0 %v17106_v13  ;;  %v17126_v13 = vld [vmem:[%s18652_s12 + $0x6c] ss:$16 sps:$4 sm:$0xff]   ;;  %v17127_v16 = vld [vmem:[%s18652_s12 + $0x268] ss:$16 sps:$4 sm:$0xff]  }
 0x3c2   : > { %12580 = vmatpush1.bf16.msra.mxu1 %v17109_v10  ;;  %v12247_v0 = vpop.f32.mrf.mxu0  ;;  %12540 = vmatprep.subr.bf16.mxu0 %v17114_v26  ;;  %v17129_v10 = vld [vmem:[%s18652_s12 + $0x26c] ss:$16 sps:$4 sm:$0xff]   ;;  %v17130_v26 = vld [vmem:[%s18652_s12 + $0x48] ss:$16 sps:$4 sm:$0xff]  }
 0x3c3   : > { %v12288_v9 = vpop.f32.mrf.mxu1  ;;  %12581 = vmatprep.subr.bf16.mxu1 %v17117_v19  ;;  %v17132_v45 = vld [vmem:[%s18652_s12 + $0x4c] ss:$16 sps:$4 sm:$0xff]   ;;  %v17133_v19 = vld [vmem:[%s18652_s12 + $0x248] ss:$16 sps:$4 sm:$0xff]  }
 0x3c4   : > { %v17135_v25 = vld [vmem:[%s18652_s12 + $0x24c] ss:$16 sps:$4 sm:$0xff]   ;;  %v17139_v39 = vld [vmem:[%s18652_s12 + $0x228] ss:$16 sps:$4 sm:$0xff]  }
 0x3c5   : > { %12541 = vmatpush1.bf16.msra.mxu0 %v17112_v12  ;;  %v17138_v2 = vld [vmem:[%s18652_s12 + $0x2c] ss:$16 sps:$4 sm:$0xff]   ;;  %v17142_v9 = vld [vmem:[%s18652_s12 + $0x8] ss:$16 sps:$4 sm:$0xff]  }
 0x3c6   : > { %12582 = vmatpush1.bf16.msra.mxu1 %v17115_v31  ;;  %12542 = vmatprep.subr.bf16.mxu0 %v17120_v8  ;;  %v17141_v12 = vld [vmem:[%s18652_s12 + $0x22c] ss:$16 sps:$4 sm:$0xff]   ;;  %v17136_v31 = vld [vmem:[%s18652_s12 + $0x28] ss:$16 sps:$4 sm:$0xff]  }
 0x3c7   : > { %12583 = vmatprep.subr.bf16.mxu1 %v17123_v63  ;;  %v17144_v57 = vld [vmem:[%s18652_s12 + $0xc] ss:$16 sps:$4 sm:$0xff]   ;;  %v17145_v8 = vld [vmem:[%s18652_s12 + $0x208] ss:$16 sps:$4 sm:$0xff]  }
 0x3c8   : > { %v17147_v0 = vld [vmem:[%s18652_s12 + $0x20c] ss:$16 sps:$4 sm:$0xff]  }
 0x3c9   : > { %12543 = vmatpush1.bf16.msra.mxu0 %v17118_v4  ;;  %v17150_v63 = vld [vmem:[%s18652_s12 + $0x1ec] ss:$16 sps:$4 sm:$0xff]  }
 0x3ca   : > { %12584 = vmatpush1.bf16.msra.mxu1 %v17121_v62  ;;  %12544 = vmatprep.subr.bf16.mxu0 %v17126_v13  ;;  %v17153_v4 = vld [vmem:[%s18652_s12 + $0x3ec] ss:$16 sps:$4 sm:$0xff]   ;;  %v17148_v62 = vld [vmem:[%s18652_s12 + $0x1e8] ss:$16 sps:$4 sm:$0xff]  }
 0x3cb   : > { %12585 = vmatprep.subr.bf16.mxu1 %v17129_v10  ;;  %v17151_v13 = vld [vmem:[%s18652_s12 + $0x3e8] ss:$16 sps:$4 sm:$0xff]   ;;  %v17156_v10 = vld [vmem:[%s18652_s12 + $0x1cc] ss:$16 sps:$4 sm:$0xff]  }
 0x3cd   : > { %12545 = vmatpush1.bf16.msra.mxu0 %v17124_v52  ;;  %v17159_v52 = vld [vmem:[%s18652_s12 + $0x3cc] ss:$16 sps:$4 sm:$0xff]  }
 0x3ce   : > { %12586 = vmatpush1.bf16.msra.mxu1 %v17127_v16  ;;  %12546 = vmatprep.subr.bf16.mxu0 %v17132_v45  ;;  %v17154_v16 = vld [vmem:[%s18652_s12 + $0x1c8] ss:$16 sps:$4 sm:$0xff]  }
 0x3cf   : > { %12587 = vmatprep.subr.bf16.mxu1 %v17135_v25  ;;  %v17157_v45 = vld [vmem:[%s18652_s12 + $0x3c8] ss:$16 sps:$4 sm:$0xff]   ;;  %v17162_v25 = vld [vmem:[%s18652_s12 + $0x1ac] ss:$16 sps:$4 sm:$0xff]  }
 0x3d1   : > { %12547 = vmatpush1.bf16.msra.mxu0 %v17130_v26  ;;  %v17165_v26 = vld [vmem:[%s18652_s12 + $0x3ac] ss:$16 sps:$4 sm:$0xff]  }
 0x3d2   : > { %12588 = vmatpush1.bf16.msra.mxu1 %v17133_v19  ;;  %12548 = vmatprep.subr.bf16.mxu0 %v17138_v2  ;;  %v17160_v19 = vld [vmem:[%s18652_s12 + $0x1a8] ss:$16 sps:$4 sm:$0xff]  }
 0x3d3   : > { %12589 = vmatprep.subr.bf16.mxu1 %v17141_v12  ;;  %v17163_v2 = vld [vmem:[%s18652_s12 + $0x3a8] ss:$16 sps:$4 sm:$0xff]   ;;  %v17168_v12 = vld [vmem:[%s18652_s12 + $0x18c] ss:$16 sps:$4 sm:$0xff]  }
 0x3d5   : > { %12549 = vmatpush1.bf16.msra.mxu0 %v17136_v31  ;;  %v17171_v31 = vld [vmem:[%s18652_s12 + $0x38c] ss:$16 sps:$4 sm:$0xff]  }
 0x3d6   : > { %12590 = vmatpush1.bf16.msra.mxu1 %v17139_v39  ;;  %12550 = vmatprep.subr.bf16.mxu0 %v17144_v57  ;;  %v17166_v39 = vld [vmem:[%s18652_s12 + $0x188] ss:$16 sps:$4 sm:$0xff]  }
 0x3d7   : > { %12591 = vmatprep.subr.bf16.mxu1 %v17147_v0  ;;  %v17169_v57 = vld [vmem:[%s18652_s12 + $0x388] ss:$16 sps:$4 sm:$0xff]   ;;  %v17174_v0 = vld [vmem:[%s18652_s12 + $0x16c] ss:$16 sps:$4 sm:$0xff]  }
 0x3d9   : > { %12551 = vmatpush1.bf16.msra.mxu0 %v17142_v9  ;;  %v17177_v9 = vld [vmem:[%s18652_s12 + $0x36c] ss:$16 sps:$4 sm:$0xff]  }
 0x3da   : > { %12592 = vmatpush1.bf16.msra.mxu1 %v17145_v8  ;;  %12552 = vmatprep.subr.bf16.mxu0 %v17150_v63  ;;  %v17172_v8 = vld [vmem:[%s18652_s12 + $0x168] ss:$16 sps:$4 sm:$0xff]  }
 0x3db   : > { %12593 = vmatprep.subr.bf16.mxu1 %v17153_v4  ;;  %v17175_v63 = vld [vmem:[%s18652_s12 + $0x368] ss:$16 sps:$4 sm:$0xff]   ;;  %v17180_v4 = vld [vmem:[%s18652_s12 + $0x14c] ss:$16 sps:$4 sm:$0xff]  }
 0x3dd   : > { %12553 = vmatpush2.bf16.msra.mxu0 %v17148_v62  ;;  %v17183_v62 = vld [vmem:[%s18652_s12 + $0x34c] ss:$16 sps:$4 sm:$0xff]  }
 0x3de   : > { %12594 = vmatpush2.bf16.msra.mxu1 %v17151_v13  ;;  %12554 = vmatprep.subr.bf16.mxu0 %v17156_v10  ;;  %v17178_v13 = vld [vmem:[%s18652_s12 + $0x148] ss:$16 sps:$4 sm:$0xff]  }
 0x3df   : > { %12595 = vmatprep.subr.bf16.mxu1 %v17159_v52  ;;  %v17181_v10 = vld [vmem:[%s18652_s12 + $0x348] ss:$16 sps:$4 sm:$0xff]   ;;  %v17186_v52 = vld [vmem:[%s18652_s12 + $0x12c] ss:$16 sps:$4 sm:$0xff]  }
 0x3e1   : > { %12555 = vmatpush2.bf16.msra.mxu0 %v17154_v16  ;;  %v17189_v16 = vld [vmem:[%s18652_s12 + $0x32c] ss:$16 sps:$4 sm:$0xff]  }
 0x3e2   : > { %12596 = vmatpush2.bf16.msra.mxu1 %v17157_v45  ;;  %12556 = vmatprep.subr.bf16.mxu0 %v17162_v25  ;;  %v17184_v45 = vld [vmem:[%s18652_s12 + $0x128] ss:$16 sps:$4 sm:$0xff]  }
 0x3e3   : > { %12597 = vmatprep.subr.bf16.mxu1 %v17165_v26  ;;  %v17187_v25 = vld [vmem:[%s18652_s12 + $0x328] ss:$16 sps:$4 sm:$0xff]   ;;  %v17192_v26 = vld [vmem:[%s18652_s12 + $0x10c] ss:$16 sps:$4 sm:$0xff]  }
 0x3e5   : > { %12557 = vmatpush2.bf16.msra.mxu0 %v17160_v19  ;;  %v17195_v19 = vld [vmem:[%s18652_s12 + $0x30c] ss:$16 sps:$4 sm:$0xff]  }
 0x3e6   : > { %12598 = vmatpush2.bf16.msra.mxu1 %v17163_v2  ;;  %12558 = vmatprep.subr.bf16.mxu0 %v17168_v12  ;;  %v17190_v2 = vld [vmem:[%s18652_s12 + $0x108] ss:$16 sps:$4 sm:$0xff]  }
 0x3e7   : > { %12599 = vmatprep.subr.bf16.mxu1 %v17171_v31  ;;  %v17193_v12 = vld [vmem:[%s18652_s12 + $0x308] ss:$16 sps:$4 sm:$0xff]   ;;  %v17198_v31 = vld [vmem:[%s18652_s12 + $0x4ec] ss:$16 sps:$4 sm:$0xff]  }
 0x3e9   : > { %12559 = vmatpush2.bf16.msra.mxu0 %v17166_v39  ;;  %v17201_v39 = vld [vmem:[%s18652_s12 + $0x6ec] ss:$16 sps:$4 sm:$0xff]  }
 0x3ea   : > { %12600 = vmatpush2.bf16.msra.mxu1 %v17169_v57  ;;  %12560 = vmatprep.subr.bf16.mxu0 %v17174_v0  ;;  %v17196_v57 = vld [vmem:[%s18652_s12 + $0x4e8] ss:$16 sps:$4 sm:$0xff]  }
 0x3eb   : > { %12601 = vmatprep.subr.bf16.mxu1 %v17177_v9  ;;  %v17199_v0 = vld [vmem:[%s18652_s12 + $0x6e8] ss:$16 sps:$4 sm:$0xff]   ;;  %v17204_v9 = vld [vmem:[%s18652_s12 + $0x4cc] ss:$16 sps:$4 sm:$0xff]  }
 0x3ed   : > { %12561 = vmatpush2.bf16.msra.mxu0 %v17172_v8  ;;  %v17207_v8 = vld [vmem:[%s18652_s12 + $0x6cc] ss:$16 sps:$4 sm:$0xff]  }
 0x3ee   : > { %12602 = vmatpush2.bf16.msra.mxu1 %v17175_v63  ;;  %12562 = vmatprep.subr.bf16.mxu0 %v17180_v4  ;;  %v17202_v63 = vld [vmem:[%s18652_s12 + $0x4c8] ss:$16 sps:$4 sm:$0xff]  }
 0x3ef   : > { %12603 = vmatprep.subr.bf16.mxu1 %v17183_v62  ;;  %v17205_v4 = vld [vmem:[%s18652_s12 + $0x6c8] ss:$16 sps:$4 sm:$0xff]  }
 0x3f1   : > { %12563 = vmatpush2.bf16.msra.mxu0 %v17178_v13 }
 0x3f2   : > { %12604 = vmatpush2.bf16.msra.mxu1 %v17181_v10  ;;  %12564 = vmatprep.subr.bf16.mxu0 %v17186_v52 }
 0x3f3   : > { %12605 = vmatprep.subr.bf16.mxu1 %v17189_v16 }
 0x3f5   : > { %12565 = vmatpush2.bf16.msra.mxu0 %v17184_v45  ;;  %v17210_v45 = vld [vmem:[%s18652_s12 + $0x4ac] ss:$16 sps:$4 sm:$0xff]  }
 0x3f6   : > { %12606 = vmatpush2.bf16.msra.mxu1 %v17187_v25  ;;  %12566 = vmatprep.subr.bf16.mxu0 %v17192_v26  ;;  %v17213_v25 = vld [vmem:[%s18652_s12 + $0x6ac] ss:$16 sps:$4 sm:$0xff]  }
 0x3f7   : > { %12607 = vmatprep.subr.bf16.mxu1 %v17195_v19 }
 0x3f9   : > { %12567 = vmatpush2.bf16.msra.mxu0 %v17190_v2  ;;  %v17208_v2 = vld [vmem:[%s18652_s12 + $0x4a8] ss:$16 sps:$4 sm:$0xff]  }
 0x3fa   : > { %12608 = vmatpush2.bf16.msra.mxu1 %v17193_v12  ;;  %12618 = vmatprep.subr.bf16.mxu0 %v17198_v31  ;;  %v17211_v12 = vld [vmem:[%s18652_s12 + $0x6a8] ss:$16 sps:$4 sm:$0xff]  }
 0x3fb   : > { %12659 = vmatprep.subr.bf16.mxu1 %v17201_v39 }
 0x3fc   : > { %v12324_v62 = vpop.f32.mrf.mxu0  ;;  %12569 = vmatmul.mubr.bf16.vlgmr.msra.gmra.mxu0 %v18759_v17 }
 0x3fd   : > { %v12365_v13 = vpop.f32.mrf.mxu1  ;;  %12610 = vmatmul.mubr.bf16.vlgmr.msra.gmra.mxu1 %v18761_v18  ;;  %v12325_v10 = vadd.f32 %v12324_v62, %v20015_v7  ;;  %12619 = vmatpush1.bf16.msra.mxu0 %v17196_v57  ;;  %v17217_v57 = vld [vmem:[%s18652_s12 + $0x688] ss:$16 sps:$4 sm:$0xff]   ;;  %v17231_v62 = vld [vmem:[%s18652_s12 + $0x64c] ss:$16 sps:$4 sm:$0xff]  }
 0x3fe   : > { %12660 = vmatpush1.bf16.msra.mxu1 %v17199_v0  ;;  %v12326_v52 = vpop.f32.mrf.mxu0  ;;  %12620 = vmatprep.subr.bf16.mxu0 %v17204_v9  ;;  %v17222_v0 = vld [vmem:[%s18652_s12 + $0x46c] ss:$16 sps:$4 sm:$0xff]  }
 0x3ff   : > { %v12367_v16 = vpop.f32.mrf.mxu1  ;;  %12661 = vmatprep.subr.bf16.mxu1 %v17207_v8  ;;  %v20089_v26 = vadd.f32 %v12365_v13, %v12325_v10  ;;  %v12327_v17 = vadd.f32 %v12326_v52, %v20022_v22  ;;  %12650 = vmatprep.mubr.bf16.mxu0 %v18802_v54  ;;  %v17216_v54 = vld [vmem:[%s18652_s12 + $0x48c] ss:$16 sps:$4 sm:$0xff]   ;;  %v17214_v22 = vld [vmem:[%s18652_s12 + $0x488] ss:$16 sps:$4 sm:$0xff]  }
 0x400   : > { %12691 = vmatprep.mubr.bf16.mxu1 %v18808_v58  ;;  %v12328_v18 = vpop.f32.mrf.mxu0  ;;  %v17219_v58 = vld [vmem:[%s18652_s12 + $0x68c] ss:$16 sps:$4 sm:$0xff]   ;;  %v17220_v8 = vld [vmem:[%s18652_s12 + $0x468] ss:$16 sps:$4 sm:$0xff]  }
 0x401   : > { %v12369_v7 = vpop.f32.mrf.mxu1  ;;  %v20094_v19 = vadd.f32 %v12367_v16, %v12327_v17  ;;  %12621 = vmatpush1.bf16.msra.mxu0 %v17202_v63  ;;  %v17225_v9 = vld [vmem:[%s18652_s12 + $0x66c] ss:$16 sps:$4 sm:$0xff]   ;;  %v17223_v63 = vld [vmem:[%s18652_s12 + $0x668] ss:$16 sps:$4 sm:$0xff]  }
 0x402   : > { %12662 = vmatpush1.bf16.msra.mxu1 %v17205_v4  ;;  %v12329_v31 = vpop.f32.mrf.mxu0  ;;  %12622 = vmatprep.subr.bf16.mxu0 %v17210_v45  ;;  %v17228_v4 = vld [vmem:[%s18652_s12 + $0x44c] ss:$16 sps:$4 sm:$0xff]   ;;  %v17226_v13 = vld [vmem:[%s18652_s12 + $0x448] ss:$16 sps:$4 sm:$0xff]  }
 0x403   : > { %v12370_v39 = vpop.f32.mrf.mxu1  ;;  %12663 = vmatprep.subr.bf16.mxu1 %v17213_v25  ;;  %v17229_v10 = vld [vmem:[%s18652_s12 + $0x648] ss:$16 sps:$4 sm:$0xff]   ;;  %v17234_v52 = vld [vmem:[%s18652_s12 + $0x42c] ss:$16 sps:$4 sm:$0xff]  }
 0x404   : > { %v17237_v16 = vld [vmem:[%s18652_s12 + $0x62c] ss:$16 sps:$4 sm:$0xff]   ;;  %v17232_v45 = vld [vmem:[%s18652_s12 + $0x428] ss:$16 sps:$4 sm:$0xff]  }
 0x405   : > { %12623 = vmatpush1.bf16.msra.mxu0 %v17208_v2  ;;  %v17235_v25 = vld [vmem:[%s18652_s12 + $0x628] ss:$16 sps:$4 sm:$0xff]   ;;  %v17240_v17 = vld [vmem:[%s18652_s12 + $0x40c] ss:$16 sps:$4 sm:$0xff]  }
 0x406   : > { %12664 = vmatpush1.bf16.msra.mxu1 %v17211_v12  ;;  %12624 = vmatprep.subr.bf16.mxu0 %v17216_v54  ;;  %v17243_v18 = vld [vmem:[%s18652_s12 + $0x60c] ss:$16 sps:$4 sm:$0xff]   ;;  %v17238_v7 = vld [vmem:[%s18652_s12 + $0x408] ss:$16 sps:$4 sm:$0xff]  }
 0x407   : > { %12665 = vmatprep.subr.bf16.mxu1 %v17219_v58  ;;  %v17241_v2 = vld [vmem:[%s18652_s12 + $0x608] ss:$16 sps:$4 sm:$0xff]   ;;  %v17246_v12 = vld [vmem:[%s18652_s12 + $0x5ec] ss:$16 sps:$4 sm:$0xff]  }
 0x408   : > { %v17249_v31 = vld [vmem:[%s18652_s12 + $0x7ec] ss:$16 sps:$4 sm:$0xff]   ;;  %v17244_v39 = vld [vmem:[%s18652_s12 + $0x5e8] ss:$16 sps:$4 sm:$0xff]  }
 0x409   : > { %12625 = vmatpush1.bf16.msra.mxu0 %v17214_v22  ;;  %v17247_v54 = vld [vmem:[%s18652_s12 + $0x7e8] ss:$16 sps:$4 sm:$0xff]   ;;  %v17252_v58 = vld [vmem:[%s18652_s12 + $0x5cc] ss:$16 sps:$4 sm:$0xff]  }
 0x40a   : > { %12666 = vmatpush1.bf16.msra.mxu1 %v17217_v57  ;;  %12626 = vmatprep.subr.bf16.mxu0 %v17222_v0  ;;  %v17255_v22 = vld [vmem:[%s18652_s12 + $0x7cc] ss:$16 sps:$4 sm:$0xff]   ;;  %v17250_v57 = vld [vmem:[%s18652_s12 + $0x5c8] ss:$16 sps:$4 sm:$0xff]  }
 0x40b   : > { %12667 = vmatprep.subr.bf16.mxu1 %v17225_v9  ;;  %v17253_v0 = vld [vmem:[%s18652_s12 + $0x7c8] ss:$16 sps:$4 sm:$0xff]   ;;  %v17258_v9 = vld [vmem:[%s18652_s12 + $0x5ac] ss:$16 sps:$4 sm:$0xff]  }
 0x40d   : > { %12627 = vmatpush1.bf16.msra.mxu0 %v17220_v8  ;;  %v17261_v8 = vld [vmem:[%s18652_s12 + $0x7ac] ss:$16 sps:$4 sm:$0xff]  }
 0x40e   : > { %12668 = vmatpush1.bf16.msra.mxu1 %v17223_v63  ;;  %12628 = vmatprep.subr.bf16.mxu0 %v17228_v4  ;;  %v17256_v63 = vld [vmem:[%s18652_s12 + $0x5a8] ss:$16 sps:$4 sm:$0xff]  }
 0x40f   : > { %12669 = vmatprep.subr.bf16.mxu1 %v17231_v62  ;;  %v17259_v4 = vld [vmem:[%s18652_s12 + $0x7a8] ss:$16 sps:$4 sm:$0xff]   ;;  %v17264_v62 = vld [vmem:[%s18652_s12 + $0x58c] ss:$16 sps:$4 sm:$0xff]  }
 0x411   : > { %12629 = vmatpush1.bf16.msra.mxu0 %v17226_v13  ;;  %v17267_v13 = vld [vmem:[%s18652_s12 + $0x78c] ss:$16 sps:$4 sm:$0xff]  }
 0x412   : > { %12670 = vmatpush1.bf16.msra.mxu1 %v17229_v10  ;;  %12630 = vmatprep.subr.bf16.mxu0 %v17234_v52  ;;  %v17262_v10 = vld [vmem:[%s18652_s12 + $0x588] ss:$16 sps:$4 sm:$0xff]  }
 0x413   : > { %12671 = vmatprep.subr.bf16.mxu1 %v17237_v16  ;;  %v17265_v52 = vld [vmem:[%s18652_s12 + $0x788] ss:$16 sps:$4 sm:$0xff]   ;;  %v17270_v16 = vld [vmem:[%s18652_s12 + $0x56c] ss:$16 sps:$4 sm:$0xff]  }
 0x415   : > { %12631 = vmatpush1.bf16.msra.mxu0 %v17232_v45  ;;  %v17273_v45 = vld [vmem:[%s18652_s12 + $0x76c] ss:$16 sps:$4 sm:$0xff]  }
 0x416   : > { %12672 = vmatpush1.bf16.msra.mxu1 %v17235_v25  ;;  %12632 = vmatprep.subr.bf16.mxu0 %v17240_v17  ;;  %v17268_v25 = vld [vmem:[%s18652_s12 + $0x568] ss:$16 sps:$4 sm:$0xff]  }
 0x417   : > { %12673 = vmatprep.subr.bf16.mxu1 %v17243_v18  ;;  %v17271_v17 = vld [vmem:[%s18652_s12 + $0x768] ss:$16 sps:$4 sm:$0xff]   ;;  %v17276_v18 = vld [vmem:[%s18652_s12 + $0x54c] ss:$16 sps:$4 sm:$0xff]  }
 0x419   : > { %12633 = vmatpush1.bf16.msra.mxu0 %v17238_v7  ;;  %v17279_v7 = vld [vmem:[%s18652_s12 + $0x74c] ss:$16 sps:$4 sm:$0xff]  }
 0x41a   : > { %12674 = vmatpush1.bf16.msra.mxu1 %v17241_v2  ;;  %12634 = vmatprep.subr.bf16.mxu0 %v17246_v12  ;;  %v17274_v2 = vld [vmem:[%s18652_s12 + $0x548] ss:$16 sps:$4 sm:$0xff]  }
 0x41b   : > { %12675 = vmatprep.subr.bf16.mxu1 %v17249_v31  ;;  %v17277_v12 = vld [vmem:[%s18652_s12 + $0x748] ss:$16 sps:$4 sm:$0xff]   ;;  %v17282_v31 = vld [vmem:[%s18652_s12 + $0x52c] ss:$16 sps:$4 sm:$0xff]  }
 0x41d   : > { %12635 = vmatpush2.bf16.msra.mxu0 %v17244_v39  ;;  %v17285_v39 = vld [vmem:[%s18652_s12 + $0x72c] ss:$16 sps:$4 sm:$0xff]  }
 0x41e   : > { %12676 = vmatpush2.bf16.msra.mxu1 %v17247_v54  ;;  %12636 = vmatprep.subr.bf16.mxu0 %v17252_v58  ;;  %v17280_v54 = vld [vmem:[%s18652_s12 + $0x528] ss:$16 sps:$4 sm:$0xff]  }
 0x41f   : > { %12677 = vmatprep.subr.bf16.mxu1 %v17255_v22  ;;  %v17283_v58 = vld [vmem:[%s18652_s12 + $0x728] ss:$16 sps:$4 sm:$0xff]   ;;  %v17288_v22 = vld [vmem:[%s18652_s12 + $0x50c] ss:$16 sps:$4 sm:$0xff]  }
 0x421   : > { %12637 = vmatpush2.bf16.msra.mxu0 %v17250_v57  ;;  %v17291_v57 = vld [vmem:[%s18652_s12 + $0x70c] ss:$16 sps:$4 sm:$0xff]  }
 0x422   : > { %12678 = vmatpush2.bf16.msra.mxu1 %v17253_v0  ;;  %12638 = vmatprep.subr.bf16.mxu0 %v17258_v9  ;;  %v17286_v0 = vld [vmem:[%s18652_s12 + $0x508] ss:$16 sps:$4 sm:$0xff]  }
 0x423   : > { %12679 = vmatprep.subr.bf16.mxu1 %v17261_v8  ;;  %v17289_v9 = vld [vmem:[%s18652_s12 + $0x708] ss:$16 sps:$4 sm:$0xff]   ;;  %v17294_v8 = vld [vmem:[%s18652_s12 + $0x8ec] ss:$16 sps:$4 sm:$0xff]  }
 0x425   : > { %12639 = vmatpush2.bf16.msra.mxu0 %v17256_v63  ;;  %v17297_v63 = vld [vmem:[%s18652_s12 + $0xaec] ss:$16 sps:$4 sm:$0xff]  }
 0x426   : > { %12680 = vmatpush2.bf16.msra.mxu1 %v17259_v4  ;;  %12640 = vmatprep.subr.bf16.mxu0 %v17264_v62  ;;  %v17292_v4 = vld [vmem:[%s18652_s12 + $0x8e8] ss:$16 sps:$4 sm:$0xff]  }
 0x427   : > { %12681 = vmatprep.subr.bf16.mxu1 %v17267_v13  ;;  %v17295_v62 = vld [vmem:[%s18652_s12 + $0xae8] ss:$16 sps:$4 sm:$0xff]   ;;  %v17300_v13 = vld [vmem:[%s18652_s12 + $0x8cc] ss:$16 sps:$4 sm:$0xff]  }
 0x429   : > { %12641 = vmatpush2.bf16.msra.mxu0 %v17262_v10  ;;  %v17303_v10 = vld [vmem:[%s18652_s12 + $0xacc] ss:$16 sps:$4 sm:$0xff]  }
 0x42a   : > { %12682 = vmatpush2.bf16.msra.mxu1 %v17265_v52  ;;  %12642 = vmatprep.subr.bf16.mxu0 %v17270_v16 }
 0x42b   : > { %12683 = vmatprep.subr.bf16.mxu1 %v17273_v45 }
 0x42d   : > { %12643 = vmatpush2.bf16.msra.mxu0 %v17268_v25  ;;  %v17298_v25 = vld [vmem:[%s18652_s12 + $0x8c8] ss:$16 sps:$4 sm:$0xff]  }
 0x42e   : > { %12684 = vmatpush2.bf16.msra.mxu1 %v17271_v17  ;;  %12644 = vmatprep.subr.bf16.mxu0 %v17276_v18  ;;  %v17301_v17 = vld [vmem:[%s18652_s12 + $0xac8] ss:$16 sps:$4 sm:$0xff]  }
 0x42f   : > { %12685 = vmatprep.subr.bf16.mxu1 %v17279_v7 }
 0x431   : > { %12645 = vmatpush2.bf16.msra.mxu0 %v17274_v2  ;;  %v17306_v2 = vld [vmem:[%s18652_s12 + $0x8ac] ss:$16 sps:$4 sm:$0xff]  }
 0x432   : > { %12686 = vmatpush2.bf16.msra.mxu1 %v17277_v12  ;;  %12646 = vmatprep.subr.bf16.mxu0 %v17282_v31  ;;  %v17309_v12 = vld [vmem:[%s18652_s12 + $0xaac] ss:$16 sps:$4 sm:$0xff]  }
 0x433   : > { %12687 = vmatprep.subr.bf16.mxu1 %v17285_v39 }
 0x435   : > { %12647 = vmatpush2.bf16.msra.mxu0 %v17280_v54  ;;  %v17304_v54 = vld [vmem:[%s18652_s12 + $0x8a8] ss:$16 sps:$4 sm:$0xff]  }
 0x436   : > { %12688 = vmatpush2.bf16.msra.mxu1 %v17283_v58  ;;  %12648 = vmatprep.subr.bf16.mxu0 %v17288_v22  ;;  %v17307_v58 = vld [vmem:[%s18652_s12 + $0xaa8] ss:$16 sps:$4 sm:$0xff]  }
 0x437   : > { %12689 = vmatprep.subr.bf16.mxu1 %v17291_v57 }
 0x439   : > { %12649 = vmatpush2.bf16.msra.mxu0 %v17286_v0  ;;  %v17313_v0 = vld [vmem:[%s18652_s12 + $0xa88] ss:$16 sps:$4 sm:$0xff]  }
 0x43a   : > { %12690 = vmatpush2.bf16.msra.mxu1 %v17289_v9  ;;  %12700 = vmatprep.subr.bf16.mxu0 %v17294_v8  ;;  %v17318_v9 = vld [vmem:[%s18652_s12 + $0x86c] ss:$16 sps:$4 sm:$0xff]  }
 0x43b   : > { %12741 = vmatprep.subr.bf16.mxu1 %v17297_v63  ;;  %v17321_v8 = vld [vmem:[%s18652_s12 + $0xa6c] ss:$16 sps:$4 sm:$0xff]   ;;  %v17316_v63 = vld [vmem:[%s18652_s12 + $0x868] ss:$16 sps:$4 sm:$0xff]  }
 0x43c   : > { %v12406_v52 = vpop.f32.mrf.mxu0  ;;  %12651 = vmatmul.mubr.bf16.vlgmr.msra.gmra.mxu0 %v18848_v33 }
 0x43d   : > { %v12447_v16 = vpop.f32.mrf.mxu1  ;;  %12692 = vmatmul.mubr.bf16.vlgmr.msra.gmra.mxu1 %v18852_v34  ;;  %v12407_v45 = vadd.f32 %v12406_v52, %v20089_v26  ;;  %12701 = vmatpush1.bf16.msra.mxu0 %v17292_v4  ;;  %v17319_v4 = vld [vmem:[%s18652_s12 + $0xa68] ss:$16 sps:$4 sm:$0xff]  }
 0x43e   : > { %12742 = vmatpush1.bf16.msra.mxu1 %v17295_v62  ;;  %v12408_v18 = vpop.f32.mrf.mxu0  ;;  %12702 = vmatprep.subr.bf16.mxu0 %v17300_v13  ;;  %v17324_v62 = vld [vmem:[%s18652_s12 + $0x84c] ss:$16 sps:$4 sm:$0xff]   ;;  %v17325_v52 = vld [vmem:[%s18652_s12 + $0xa48] ss:$16 sps:$4 sm:$0xff]  }
 0x43f   : > { %v12449_v7 = vpop.f32.mrf.mxu1  ;;  %12743 = vmatprep.subr.bf16.mxu1 %v17303_v10  ;;  %v20163_v31 = vadd.f32 %v12447_v16, %v12407_v45  ;;  %v12409_v33 = vadd.f32 %v12408_v18, %v20094_v19  ;;  %12732 = vmatprep.mubr.bf16.mxu0 %v18873_v49  ;;  %v17312_v49 = vld [vmem:[%s18652_s12 + $0x88c] ss:$16 sps:$4 sm:$0xff]   ;;  %v17310_v19 = vld [vmem:[%s18652_s12 + $0x888] ss:$16 sps:$4 sm:$0xff]  }
 0x440   : > { %12773 = vmatprep.mubr.bf16.mxu1 %v18879_v53  ;;  %v12410_v34 = vpop.f32.mrf.mxu0  ;;  %v17315_v53 = vld [vmem:[%s18652_s12 + $0xa8c] ss:$16 sps:$4 sm:$0xff]   ;;  %v17322_v10 = vld [vmem:[%s18652_s12 + $0x848] ss:$16 sps:$4 sm:$0xff]  }
 0x441   : > { %v12451_v26 = vpop.f32.mrf.mxu1  ;;  %v20168_v39 = vadd.f32 %v12449_v7, %v12409_v33  ;;  %12703 = vmatpush1.bf16.msra.mxu0 %v17298_v25  ;;  %v17327_v13 = vld [vmem:[%s18652_s12 + $0xa4c] ss:$16 sps:$4 sm:$0xff]   ;;  %v17328_v25 = vld [vmem:[%s18652_s12 + $0x828] ss:$16 sps:$4 sm:$0xff]  }
 0x442   : > { %12744 = vmatpush1.bf16.msra.mxu1 %v17301_v17  ;;  %v12411_v22 = vpop.f32.mrf.mxu0  ;;  %12704 = vmatprep.subr.bf16.mxu0 %v17306_v2  ;;  %v17330_v16 = vld [vmem:[%s18652_s12 + $0x82c] ss:$16 sps:$4 sm:$0xff]   ;;  %v17331_v17 = vld [vmem:[%s18652_s12 + $0xa28] ss:$16 sps:$4 sm:$0xff]  }
 0x443   : > { %v12452_v57 = vpop.f32.mrf.mxu1  ;;  %12745 = vmatprep.subr.bf16.mxu1 %v17309_v12  ;;  %v17333_v45 = vld [vmem:[%s18652_s12 + $0xa2c] ss:$16 sps:$4 sm:$0xff]   ;;  %v17334_v2 = vld [vmem:[%s18652_s12 + $0x808] ss:$16 sps:$4 sm:$0xff]  }
 0x444   : > { %v17336_v18 = vld [vmem:[%s18652_s12 + $0x80c] ss:$16 sps:$4 sm:$0xff]   ;;  %v17337_v12 = vld [vmem:[%s18652_s12 + $0xa08] ss:$16 sps:$4 sm:$0xff]  }
 0x445   : > { %12705 = vmatpush1.bf16.msra.mxu0 %v17304_v54  ;;  %v17339_v7 = vld [vmem:[%s18652_s12 + $0xa0c] ss:$16 sps:$4 sm:$0xff]   ;;  %v17340_v26 = vld [vmem:[%s18652_s12 + $0x9e8] ss:$16 sps:$4 sm:$0xff]  }
 0x446   : > { %12746 = vmatpush1.bf16.msra.mxu1 %v17307_v58  ;;  %12706 = vmatprep.subr.bf16.mxu0 %v17312_v49  ;;  %v17342_v33 = vld [vmem:[%s18652_s12 + $0x9ec] ss:$16 sps:$4 sm:$0xff]   ;;  %v17343_v54 = vld [vmem:[%s18652_s12 + $0xbe8] ss:$16 sps:$4 sm:$0xff]  }
 0x447   : > { %12747 = vmatprep.subr.bf16.mxu1 %v17315_v53  ;;  %v17345_v34 = vld [vmem:[%s18652_s12 + $0xbec] ss:$16 sps:$4 sm:$0xff]   ;;  %v17346_v57 = vld [vmem:[%s18652_s12 + $0x9c8] ss:$16 sps:$4 sm:$0xff]  }
 0x448   : > { %v17348_v58 = vld [vmem:[%s18652_s12 + $0x9cc] ss:$16 sps:$4 sm:$0xff]   ;;  %v17349_v49 = vld [vmem:[%s18652_s12 + $0xbc8] ss:$16 sps:$4 sm:$0xff]  }
 0x449   : > { %12707 = vmatpush1.bf16.msra.mxu0 %v17310_v19  ;;  %v17351_v22 = vld [vmem:[%s18652_s12 + $0xbcc] ss:$16 sps:$4 sm:$0xff]  }
 0x44a   : > { %12748 = vmatpush1.bf16.msra.mxu1 %v17313_v0  ;;  %12708 = vmatprep.subr.bf16.mxu0 %v17318_v9  ;;  %v17354_v53 = vld [vmem:[%s18652_s12 + $0x9ac] ss:$16 sps:$4 sm:$0xff]   ;;  %v17352_v0 = vld [vmem:[%s18652_s12 + $0x9a8] ss:$16 sps:$4 sm:$0xff]  }
 0x44b   : > { %12749 = vmatprep.subr.bf16.mxu1 %v17321_v8  ;;  %v17357_v19 = vld [vmem:[%s18652_s12 + $0xbac] ss:$16 sps:$4 sm:$0xff]   ;;  %v17355_v9 = vld [vmem:[%s18652_s12 + $0xba8] ss:$16 sps:$4 sm:$0xff]  }
 0x44c   : > { %v17360_v8 = vld [vmem:[%s18652_s12 + $0x98c] ss:$16 sps:$4 sm:$0xff]  }
 0x44d   : > { %12709 = vmatpush1.bf16.msra.mxu0 %v17316_v63  ;;  %v17363_v63 = vld [vmem:[%s18652_s12 + $0xb8c] ss:$16 sps:$4 sm:$0xff]  }
 0x44e   : > { %12750 = vmatpush1.bf16.msra.mxu1 %v17319_v4  ;;  %12710 = vmatprep.subr.bf16.mxu0 %v17324_v62  ;;  %v17358_v4 = vld [vmem:[%s18652_s12 + $0x988] ss:$16 sps:$4 sm:$0xff]  }
 0x44f   : > { %12751 = vmatprep.subr.bf16.mxu1 %v17327_v13  ;;  %v17361_v62 = vld [vmem:[%s18652_s12 + $0xb88] ss:$16 sps:$4 sm:$0xff]   ;;  %v17366_v13 = vld [vmem:[%s18652_s12 + $0x96c] ss:$16 sps:$4 sm:$0xff]  }
 0x451   : > { %12711 = vmatpush1.bf16.msra.mxu0 %v17322_v10  ;;  %v17369_v10 = vld [vmem:[%s18652_s12 + $0xb6c] ss:$16 sps:$4 sm:$0xff]  }
 0x452   : > { %12752 = vmatpush1.bf16.msra.mxu1 %v17325_v52  ;;  %12712 = vmatprep.subr.bf16.mxu0 %v17330_v16  ;;  %v17364_v52 = vld [vmem:[%s18652_s12 + $0x968] ss:$16 sps:$4 sm:$0xff]  }
 0x453   : > { %12753 = vmatprep.subr.bf16.mxu1 %v17333_v45  ;;  %v17367_v16 = vld [vmem:[%s18652_s12 + $0xb68] ss:$16 sps:$4 sm:$0xff]   ;;  %v17372_v45 = vld [vmem:[%s18652_s12 + $0x94c] ss:$16 sps:$4 sm:$0xff]  }
 0x455   : > { %12713 = vmatpush1.bf16.msra.mxu0 %v17328_v25  ;;  %v17375_v25 = vld [vmem:[%s18652_s12 + $0xb4c] ss:$16 sps:$4 sm:$0xff]  }
 0x456   : > { %12754 = vmatpush1.bf16.msra.mxu1 %v17331_v17  ;;  %12714 = vmatprep.subr.bf16.mxu0 %v17336_v18  ;;  %v17370_v17 = vld [vmem:[%s18652_s12 + $0x948] ss:$16 sps:$4 sm:$0xff]  }
 0x457   : > { %12755 = vmatprep.subr.bf16.mxu1 %v17339_v7  ;;  %v17373_v18 = vld [vmem:[%s18652_s12 + $0xb48] ss:$16 sps:$4 sm:$0xff]   ;;  %v17378_v7 = vld [vmem:[%s18652_s12 + $0x92c] ss:$16 sps:$4 sm:$0xff]  }
 0x459   : > { %12715 = vmatpush1.bf16.msra.mxu0 %v17334_v2  ;;  %v17381_v2 = vld [vmem:[%s18652_s12 + $0xb2c] ss:$16 sps:$4 sm:$0xff]  }
 0x45a   : > { %12756 = vmatpush1.bf16.msra.mxu1 %v17337_v12  ;;  %12716 = vmatprep.subr.bf16.mxu0 %v17342_v33  ;;  %v17376_v12 = vld [vmem:[%s18652_s12 + $0x928] ss:$16 sps:$4 sm:$0xff]  }
 0x45b   : > { %12757 = vmatprep.subr.bf16.mxu1 %v17345_v34  ;;  %v17379_v33 = vld [vmem:[%s18652_s12 + $0xb28] ss:$16 sps:$4 sm:$0xff]   ;;  %v17384_v34 = vld [vmem:[%s18652_s12 + $0x90c] ss:$16 sps:$4 sm:$0xff]  }
 0x45d   : > { %12717 = vmatpush2.bf16.msra.mxu0 %v17340_v26  ;;  %v17387_v26 = vld [vmem:[%s18652_s12 + $0xb0c] ss:$16 sps:$4 sm:$0xff]  }
 0x45e   : > { %12758 = vmatpush2.bf16.msra.mxu1 %v17343_v54  ;;  %12718 = vmatprep.subr.bf16.mxu0 %v17348_v58  ;;  %v17382_v54 = vld [vmem:[%s18652_s12 + $0x908] ss:$16 sps:$4 sm:$0xff]  }
 0x45f   : > { %12759 = vmatprep.subr.bf16.mxu1 %v17351_v22  ;;  %v17385_v58 = vld [vmem:[%s18652_s12 + $0xb08] ss:$16 sps:$4 sm:$0xff]   ;;  %v17390_v22 = vld [vmem:[%s18652_s12 + $0xcec] ss:$16 sps:$4 sm:$0xff]  }
 0x461   : > { %12719 = vmatpush2.bf16.msra.mxu0 %v17346_v57  ;;  %v17393_v57 = vld [vmem:[%s18652_s12 + $0xeec] ss:$16 sps:$4 sm:$0xff]  }
 0x462   : > { %12760 = vmatpush2.bf16.msra.mxu1 %v17349_v49  ;;  %12720 = vmatprep.subr.bf16.mxu0 %v17354_v53  ;;  %v17388_v49 = vld [vmem:[%s18652_s12 + $0xce8] ss:$16 sps:$4 sm:$0xff]  }
 0x463   : > { %12761 = vmatprep.subr.bf16.mxu1 %v17357_v19  ;;  %v17391_v53 = vld [vmem:[%s18652_s12 + $0xee8] ss:$16 sps:$4 sm:$0xff]   ;;  %v17396_v19 = vld [vmem:[%s18652_s12 + $0xccc] ss:$16 sps:$4 sm:$0xff]  }
 0x465   : > { %12721 = vmatpush2.bf16.msra.mxu0 %v17352_v0  ;;  %v17399_v0 = vld [vmem:[%s18652_s12 + $0xecc] ss:$16 sps:$4 sm:$0xff]  }
 0x466   : > { %12762 = vmatpush2.bf16.msra.mxu1 %v17355_v9  ;;  %12722 = vmatprep.subr.bf16.mxu0 %v17360_v8 }
 0x467   : > { %12763 = vmatprep.subr.bf16.mxu1 %v17363_v63 }
 0x469   : > { %12723 = vmatpush2.bf16.msra.mxu0 %v17358_v4  ;;  %v17394_v4 = vld [vmem:[%s18652_s12 + $0xcc8] ss:$16 sps:$4 sm:$0xff]  }
 0x46a   : > { %12764 = vmatpush2.bf16.msra.mxu1 %v17361_v62  ;;  %12724 = vmatprep.subr.bf16.mxu0 %v17366_v13  ;;  %v17397_v62 = vld [vmem:[%s18652_s12 + $0xec8] ss:$16 sps:$4 sm:$0xff]  }
 0x46b   : > { %12765 = vmatprep.subr.bf16.mxu1 %v17369_v10 }
 0x46d   : > { %12725 = vmatpush2.bf16.msra.mxu0 %v17364_v52  ;;  %v17402_v52 = vld [vmem:[%s18652_s12 + $0xcac] ss:$16 sps:$4 sm:$0xff]  }
 0x46e   : > { %12766 = vmatpush2.bf16.msra.mxu1 %v17367_v16  ;;  %12726 = vmatprep.subr.bf16.mxu0 %v17372_v45  ;;  %v17405_v16 = vld [vmem:[%s18652_s12 + $0xeac] ss:$16 sps:$4 sm:$0xff]  }
 0x46f   : > { %12767 = vmatprep.subr.bf16.mxu1 %v17375_v25 }
 0x471   : > { %12727 = vmatpush2.bf16.msra.mxu0 %v17370_v17  ;;  %v17400_v17 = vld [vmem:[%s18652_s12 + $0xca8] ss:$16 sps:$4 sm:$0xff]  }
 0x472   : > { %12768 = vmatpush2.bf16.msra.mxu1 %v17373_v18  ;;  %12728 = vmatprep.subr.bf16.mxu0 %v17378_v7  ;;  %v17403_v18 = vld [vmem:[%s18652_s12 + $0xea8] ss:$16 sps:$4 sm:$0xff]  }
 0x473   : > { %12769 = vmatprep.subr.bf16.mxu1 %v17381_v2 }
 0x475   : > { %12729 = vmatpush2.bf16.msra.mxu0 %v17376_v12  ;;  %v17406_v12 = vld [vmem:[%s18652_s12 + $0xc88] ss:$16 sps:$4 sm:$0xff]  }
 0x476   : > { %12770 = vmatpush2.bf16.msra.mxu1 %v17379_v33  ;;  %12730 = vmatprep.subr.bf16.mxu0 %v17384_v34  ;;  %v17409_v33 = vld [vmem:[%s18652_s12 + $0xe88] ss:$16 sps:$4 sm:$0xff]   ;;  %v17414_v34 = vld [vmem:[%s18652_s12 + $0xc6c] ss:$16 sps:$4 sm:$0xff]  }
 0x477   : > { %12771 = vmatprep.subr.bf16.mxu1 %v17387_v26  ;;  %v17417_v26 = vld [vmem:[%s18652_s12 + $0xe6c] ss:$16 sps:$4 sm:$0xff]  }
 0x479   : > { %12731 = vmatpush2.bf16.msra.mxu0 %v17382_v54  ;;  %v17412_v54 = vld [vmem:[%s18652_s12 + $0xc68] ss:$16 sps:$4 sm:$0xff]  }
 0x47a   : > { %12772 = vmatpush2.bf16.msra.mxu1 %v17385_v58  ;;  %12782 = vmatprep.subr.bf16.mxu0 %v17390_v22  ;;  %v17415_v58 = vld [vmem:[%s18652_s12 + $0xe68] ss:$16 sps:$4 sm:$0xff]   ;;  %v17420_v22 = vld [vmem:[%s18652_s12 + $0xc4c] ss:$16 sps:$4 sm:$0xff]  }
 0x47b   : > { %12823 = vmatprep.subr.bf16.mxu1 %v17393_v57  ;;  %v17423_v57 = vld [vmem:[%s18652_s12 + $0xe4c] ss:$16 sps:$4 sm:$0xff]  }
 0x47c   : > { %v12488_v9 = vpop.f32.mrf.mxu0  ;;  %12733 = vmatmul.mubr.bf16.vlgmr.msra.gmra.mxu0 %v18950_v5 }
 0x47d   : > { %v12529_v8 = vpop.f32.mrf.mxu1  ;;  %12774 = vmatmul.mubr.bf16.vlgmr.msra.gmra.mxu1 %v18954_v6  ;;  %v12489_v63 = vadd.f32 %v12488_v9, %v20163_v31  ;;  %12783 = vmatpush1.bf16.msra.mxu0 %v17388_v49  ;;  %v17418_v49 = vld [vmem:[%s18652_s12 + $0xc48] ss:$16 sps:$4 sm:$0xff]  }
 0x47e   : > { %12824 = vmatpush1.bf16.msra.mxu1 %v17391_v53  ;;  %v12490_v13 = vpop.f32.mrf.mxu0  ;;  %12784 = vmatprep.subr.bf16.mxu0 %v17396_v19  ;;  %v17421_v53 = vld [vmem:[%s18652_s12 + $0xe48] ss:$16 sps:$4 sm:$0xff]   ;;  %v17426_v19 = vld [vmem:[%s18652_s12 + $0xc2c] ss:$16 sps:$4 sm:$0xff]  }
 0x47f   : > { %v12531_v10 = vpop.f32.mrf.mxu1  ;;  %12825 = vmatprep.subr.bf16.mxu1 %v17399_v0  ;;  %v20237_v45 = vadd.f32 %v12529_v8, %v12489_v63  ;;  %v12491_v5 = vadd.f32 %v12490_v13, %v20168_v39  ;;  %12814 = vmatprep.mubr.bf16.mxu0 %v18960_v11  ;;  %v17408_v11 = vld [vmem:[%s18652_s12 + $0xc8c] ss:$16 sps:$4 sm:$0xff]   ;;  %v17424_v9 = vld [vmem:[%s18652_s12 + $0xc28] ss:$16 sps:$4 sm:$0xff]  }
 0x480   : > { %12855 = vmatprep.mubr.bf16.mxu1 %v18962_v40  ;;  %v12492_v6 = vpop.f32.mrf.mxu0  ;;  %v17411_v40 = vld [vmem:[%s18652_s12 + $0xe8c] ss:$16 sps:$4 sm:$0xff]   ;;  %v17427_v8 = vld [vmem:[%s18652_s12 + $0xe28] ss:$16 sps:$4 sm:$0xff]  }
 0x481   : > { %v12533_v31 = vpop.f32.mrf.mxu1  ;;  %v20242_v25 = vadd.f32 %v12531_v10, %v12491_v5  ;;  %12785 = vmatpush1.bf16.msra.mxu0 %v17394_v4  ;;  %v17429_v0 = vld [vmem:[%s18652_s12 + $0xe2c] ss:$16 sps:$4 sm:$0xff]   ;;  %v17433_v13 = vld [vmem:[%s18652_s12 + $0xe08] ss:$16 sps:$4 sm:$0xff]  }
 0x482   : > { %12826 = vmatpush1.bf16.msra.mxu1 %v17397_v62  ;;  %v12493_v7 = vpop.f32.mrf.mxu0  ;;  %12786 = vmatprep.subr.bf16.mxu0 %v17402_v52  ;;  %v17432_v63 = vld [vmem:[%s18652_s12 + $0xc0c] ss:$16 sps:$4 sm:$0xff]   ;;  %v17430_v62 = vld [vmem:[%s18652_s12 + $0xc08] ss:$16 sps:$4 sm:$0xff]  }
 0x483   : > { %v12534_v2 = vpop.f32.mrf.mxu1  ;;  %12827 = vmatprep.subr.bf16.mxu1 %v17405_v16  ;;  %v13688_v39 = vcombine.low %v20237_v45, %v20242_v25  ;;  %v17435_v4 = vld [vmem:[%s18652_s12 + $0xe0c] ss:$16 sps:$4 sm:$0xff]   ;;  %v17436_v16 = vld [vmem:[%s18652_s12 + $0xde8] ss:$16 sps:$4 sm:$0xff]  }
 0x484   : > { %v17438_v10 = vld [vmem:[%s18652_s12 + $0xdec] ss:$16 sps:$4 sm:$0xff]   ;;  %v17439_v5 = vld [vmem:[%s18652_s12 + $0xfe8] ss:$16 sps:$4 sm:$0xff]  }
 0x485   : > { %12787 = vmatpush1.bf16.msra.mxu0 %v17400_v17  ;;  %v17441_v52 = vld [vmem:[%s18652_s12 + $0xfec] ss:$16 sps:$4 sm:$0xff]   ;;  %v17442_v17 = vld [vmem:[%s18652_s12 + $0xdc8] ss:$16 sps:$4 sm:$0xff]  }
 0x486   : > { %12828 = vmatpush1.bf16.msra.mxu1 %v17403_v18  ;;  %12788 = vmatprep.subr.bf16.mxu0 %v17408_v11  ;;  %v17444_v6 = vld [vmem:[%s18652_s12 + $0xdcc] ss:$16 sps:$4 sm:$0xff]   ;;  %v17445_v18 = vld [vmem:[%s18652_s12 + $0xfc8] ss:$16 sps:$4 sm:$0xff]  }
 0x487   : > { %12829 = vmatprep.subr.bf16.mxu1 %v17411_v40  ;;  %v17447_v31 = vld [vmem:[%s18652_s12 + $0xfcc] ss:$16 sps:$4 sm:$0xff]   ;;  %v17448_v11 = vld [vmem:[%s18652_s12 + $0xda8] ss:$16 sps:$4 sm:$0xff]  }
 0x488   : > { %v17450_v7 = vld [vmem:[%s18652_s12 + $0xdac] ss:$16 sps:$4 sm:$0xff]   ;;  %v17451_v40 = vld [vmem:[%s18652_s12 + $0xfa8] ss:$16 sps:$4 sm:$0xff]  }
 0x489   : > { %12789 = vmatpush1.bf16.msra.mxu0 %v17406_v12  ;;  %v17453_v2 = vld [vmem:[%s18652_s12 + $0xfac] ss:$16 sps:$4 sm:$0xff]  }
 0x48a   : > { %12830 = vmatpush1.bf16.msra.mxu1 %v17409_v33  ;;  %12790 = vmatprep.subr.bf16.mxu0 %v17414_v34  ;;  %v17456_v12 = vld [vmem:[%s18652_s12 + $0xd8c] ss:$16 sps:$4 sm:$0xff]   ;;  %v17454_v34 = vld [vmem:[%s18652_s12 + $0xd88] ss:$16 sps:$4 sm:$0xff]  }
 0x48b   : > { %12831 = vmatprep.subr.bf16.mxu1 %v17417_v26  ;;  %v17459_v33 = vld [vmem:[%s18652_s12 + $0xf8c] ss:$16 sps:$4 sm:$0xff]   ;;  %v17457_v26 = vld [vmem:[%s18652_s12 + $0xf88] ss:$16 sps:$4 sm:$0xff]  }
 0x48d   : > { %12791 = vmatpush1.bf16.msra.mxu0 %v17412_v54  ;;  %v17462_v54 = vld [vmem:[%s18652_s12 + $0xd6c] ss:$16 sps:$4 sm:$0xff]  }
 0x48e   : > { %12832 = vmatpush1.bf16.msra.mxu1 %v17415_v58  ;;  %12792 = vmatprep.subr.bf16.mxu0 %v17420_v22  ;;  %v17465_v58 = vld [vmem:[%s18652_s12 + $0xf6c] ss:$16 sps:$4 sm:$0xff]   ;;  %v17460_v22 = vld [vmem:[%s18652_s12 + $0xd68] ss:$16 sps:$4 sm:$0xff]  }
 0x48f   : > { %12833 = vmatprep.subr.bf16.mxu1 %v17423_v57  ;;  %v17463_v57 = vld [vmem:[%s18652_s12 + $0xf68] ss:$16 sps:$4 sm:$0xff]  }
 0x491   : > { %12793 = vmatpush1.bf16.msra.mxu0 %v17418_v49  ;;  %v17468_v49 = vld [vmem:[%s18652_s12 + $0xd4c] ss:$16 sps:$4 sm:$0xff]  }
 0x492   : > { %12834 = vmatpush1.bf16.msra.mxu1 %v17421_v53  ;;  %12794 = vmatprep.subr.bf16.mxu0 %v17426_v19  ;;  %v17471_v53 = vld [vmem:[%s18652_s12 + $0xf4c] ss:$16 sps:$4 sm:$0xff]   ;;  %v17466_v19 = vld [vmem:[%s18652_s12 + $0xd48] ss:$16 sps:$4 sm:$0xff]  }
 0x493   : > { %12835 = vmatprep.subr.bf16.mxu1 %v17429_v0  ;;  %v17469_v0 = vld [vmem:[%s18652_s12 + $0xf48] ss:$16 sps:$4 sm:$0xff]  }
 0x495   : > { %12795 = vmatpush1.bf16.msra.mxu0 %v17424_v9  ;;  %v17474_v9 = vld [vmem:[%s18652_s12 + $0xd2c] ss:$16 sps:$4 sm:$0xff]  }
 0x496   : > { %12836 = vmatpush1.bf16.msra.mxu1 %v17427_v8  ;;  %12796 = vmatprep.subr.bf16.mxu0 %v17432_v63  ;;  %v17477_v8 = vld [vmem:[%s18652_s12 + $0xf2c] ss:$16 sps:$4 sm:$0xff]   ;;  %v17472_v63 = vld [vmem:[%s18652_s12 + $0xd28] ss:$16 sps:$4 sm:$0xff]  }
 0x497   : > { %12837 = vmatprep.subr.bf16.mxu1 %v17435_v4  ;;  %v17475_v4 = vld [vmem:[%s18652_s12 + $0xf28] ss:$16 sps:$4 sm:$0xff]  }
 0x499   : > { %12797 = vmatpush1.bf16.msra.mxu0 %v17430_v62  ;;  %v17480_v62 = vld [vmem:[%s18652_s12 + $0xd0c] ss:$16 sps:$4 sm:$0xff]  }
 0x49a   : > { %12838 = vmatpush1.bf16.msra.mxu1 %v17433_v13  ;;  %12798 = vmatprep.subr.bf16.mxu0 %v17438_v10  ;;  %v17483_v13 = vld [vmem:[%s18652_s12 + $0xf0c] ss:$16 sps:$4 sm:$0xff]   ;;  %v17478_v10 = vld [vmem:[%s18652_s12 + $0xd08] ss:$16 sps:$4 sm:$0xff]  }
 0x49b   : > { %12839 = vmatprep.subr.bf16.mxu1 %v17441_v52  ;;  %v17481_v52 = vld [vmem:[%s18652_s12 + $0xf08] ss:$16 sps:$4 sm:$0xff]  }
 0x49d   : > { %12799 = vmatpush2.bf16.msra.mxu0 %v17436_v16  ;;  %v17486_v16 = vld [vmem:[%s18652_s12 + $0x10ec] ss:$16 sps:$4 sm:$0xff]  }
 0x49e   : > { %12840 = vmatpush2.bf16.msra.mxu1 %v17439_v5  ;;  %12800 = vmatprep.subr.bf16.mxu0 %v17444_v6  ;;  %v17489_v5 = vld [vmem:[%s18652_s12 + $0x12ec] ss:$16 sps:$4 sm:$0xff]   ;;  %v17484_v6 = vld [vmem:[%s18652_s12 + $0x10e8] ss:$16 sps:$4 sm:$0xff]  }
 0x49f   : > { %12841 = vmatprep.subr.bf16.mxu1 %v17447_v31  ;;  %v17487_v31 = vld [vmem:[%s18652_s12 + $0x12e8] ss:$16 sps:$4 sm:$0xff]  }
 0x4a1   : > { %12801 = vmatpush2.bf16.msra.mxu0 %v17442_v17  ;;  %v17492_v17 = vld [vmem:[%s18652_s12 + $0x10cc] ss:$16 sps:$4 sm:$0xff]  }
 0x4a2   : > { %12842 = vmatpush2.bf16.msra.mxu1 %v17445_v18  ;;  %12802 = vmatprep.subr.bf16.mxu0 %v17450_v7  ;;  %v17495_v18 = vld [vmem:[%s18652_s12 + $0x12cc] ss:$16 sps:$4 sm:$0xff]  }
 0x4a3   : > { %12843 = vmatprep.subr.bf16.mxu1 %v17453_v2 }
 0x4a5   : > { %12803 = vmatpush2.bf16.msra.mxu0 %v17448_v11 }
 0x4a6   : > { %12844 = vmatpush2.bf16.msra.mxu1 %v17451_v40  ;;  %12804 = vmatprep.subr.bf16.mxu0 %v17456_v12  ;;  %v17490_v40 = vld [vmem:[%s18652_s12 + $0x10c8] ss:$16 sps:$4 sm:$0xff]  }
 0x4a7   : > { %12845 = vmatprep.subr.bf16.mxu1 %v17459_v33  ;;  %v17493_v12 = vld [vmem:[%s18652_s12 + $0x12c8] ss:$16 sps:$4 sm:$0xff]  }
 0x4a9   : > { %12805 = vmatpush2.bf16.msra.mxu0 %v17454_v34 }
 0x4aa   : > { %12846 = vmatpush2.bf16.msra.mxu1 %v17457_v26  ;;  %12806 = vmatprep.subr.bf16.mxu0 %v17462_v54  ;;  %v17498_v26 = vld [vmem:[%s18652_s12 + $0x10ac] ss:$16 sps:$4 sm:$0xff]  }
 0x4ab   : > { %12847 = vmatprep.subr.bf16.mxu1 %v17465_v58  ;;  %v17501_v54 = vld [vmem:[%s18652_s12 + $0x12ac] ss:$16 sps:$4 sm:$0xff]  }
 0x4ad   : > { %12807 = vmatpush2.bf16.msra.mxu0 %v17460_v22  ;;  %v17496_v22 = vld [vmem:[%s18652_s12 + $0x10a8] ss:$16 sps:$4 sm:$0xff]  }
 0x4ae   : > { %12848 = vmatpush2.bf16.msra.mxu1 %v17463_v57  ;;  %12808 = vmatprep.subr.bf16.mxu0 %v17468_v49  ;;  %v17499_v57 = vld [vmem:[%s18652_s12 + $0x12a8] ss:$16 sps:$4 sm:$0xff]  }
 0x4af   : > { %12849 = vmatprep.subr.bf16.mxu1 %v17471_v53 }
 0x4b1   : > { %12809 = vmatpush2.bf16.msra.mxu0 %v17466_v19  ;;  %v17504_v19 = vld [vmem:[%s18652_s12 + $0x108c] ss:$16 sps:$4 sm:$0xff]  }
 0x4b2   : > { %12850 = vmatpush2.bf16.msra.mxu1 %v17469_v0  ;;  %12810 = vmatprep.subr.bf16.mxu0 %v17474_v9  ;;  %v17505_v0 = vld [vmem:[%s18652_s12 + $0x1288] ss:$16 sps:$4 sm:$0xff]   ;;  %v17510_v9 = vld [vmem:[%s18652_s12 + $0x106c] ss:$16 sps:$4 sm:$0xff]  }
 0x4b3   : > { %12851 = vmatprep.subr.bf16.mxu1 %v17477_v8  ;;  %v17513_v8 = vld [vmem:[%s18652_s12 + $0x126c] ss:$16 sps:$4 sm:$0xff]  }
 0x4b5   : > { %12811 = vmatpush2.bf16.msra.mxu0 %v17472_v63  ;;  %v17508_v63 = vld [vmem:[%s18652_s12 + $0x1068] ss:$16 sps:$4 sm:$0xff]  }
 0x4b6   : > { %12852 = vmatpush2.bf16.msra.mxu1 %v17475_v4  ;;  %12812 = vmatprep.subr.bf16.mxu0 %v17480_v62  ;;  %v17511_v4 = vld [vmem:[%s18652_s12 + $0x1268] ss:$16 sps:$4 sm:$0xff]   ;;  %v17516_v62 = vld [vmem:[%s18652_s12 + $0x104c] ss:$16 sps:$4 sm:$0xff]  }
 0x4b7   : > { %12853 = vmatprep.subr.bf16.mxu1 %v17483_v13  ;;  %v17519_v13 = vld [vmem:[%s18652_s12 + $0x124c] ss:$16 sps:$4 sm:$0xff]  }
 0x4b9   : > { %12813 = vmatpush2.bf16.msra.mxu0 %v17478_v10  ;;  %v17514_v10 = vld [vmem:[%s18652_s12 + $0x1048] ss:$16 sps:$4 sm:$0xff]  }
 0x4ba   : > { %12854 = vmatpush2.bf16.msra.mxu1 %v17481_v52  ;;  %12864 = vmatprep.subr.bf16.mxu0 %v17486_v16  ;;  %v17517_v52 = vld [vmem:[%s18652_s12 + $0x1248] ss:$16 sps:$4 sm:$0xff]   ;;  %v17522_v16 = vld [vmem:[%s18652_s12 + $0x102c] ss:$16 sps:$4 sm:$0xff]  }
 0x4bb   : > { %12905 = vmatprep.subr.bf16.mxu1 %v17489_v5  ;;  %v17525_v5 = vld [vmem:[%s18652_s12 + $0x122c] ss:$16 sps:$4 sm:$0xff]  }
 0x4bc   : > { %v12570_v7 = vpop.f32.mrf.mxu0  ;;  %12815 = vmatmul.mubr.bf16.vlgmr.msra.gmra.mxu0 %v19041_v35 }
 0x4bd   : > { %v12611_v2 = vpop.f32.mrf.mxu1  ;;  %12856 = vmatmul.mubr.bf16.vlgmr.msra.gmra.mxu1 %v19045_v36  ;;  %12865 = vmatpush1.bf16.msra.mxu0 %v17484_v6  ;;  %v17520_v6 = vld [vmem:[%s18652_s12 + $0x1028] ss:$16 sps:$4 sm:$0xff]  }
 0x4be   : > { %v20308_v11 = vadd.f32 %v12611_v2, %v12570_v7  ;;  %12906 = vmatpush1.bf16.msra.mxu1 %v17487_v31  ;;  %v12572_v33 = vpop.f32.mrf.mxu0  ;;  %12866 = vmatprep.subr.bf16.mxu0 %v17492_v17  ;;  %v17523_v31 = vld [vmem:[%s18652_s12 + $0x1228] ss:$16 sps:$4 sm:$0xff]   ;;  %v17528_v17 = vld [vmem:[%s18652_s12 + $0x100c] ss:$16 sps:$4 sm:$0xff]  }
 0x4bf   : > { %v12613_v34 = vpop.f32.mrf.mxu1  ;;  %12907 = vmatprep.subr.bf16.mxu1 %v17495_v18  ;;  %12896 = vmatprep.mubr.bf16.mxu0 %v19051_v42  ;;  %v17507_v42 = vld [vmem:[%s18652_s12 + $0x128c] ss:$16 sps:$4 sm:$0xff]   ;;  %v17526_v7 = vld [vmem:[%s18652_s12 + $0x1008] ss:$16 sps:$4 sm:$0xff]  }
 0x4c0   : > { %v20314_v58 = vadd.f32 %v12613_v34, %v12572_v33  ;;  %12937 = vmatprep.mubr.bf16.mxu1 %v19053_v59  ;;  %v12574_v35 = vpop.f32.mrf.mxu0  ;;  %v17502_v59 = vld [vmem:[%s18652_s12 + $0x1088] ss:$16 sps:$4 sm:$0xff]   ;;  %v17531_v18 = vld [vmem:[%s18652_s12 + $0x120c] ss:$16 sps:$4 sm:$0xff]  }
 0x4c1   : > { %v12615_v36 = vpop.f32.mrf.mxu1  ;;  %12867 = vmatpush1.bf16.msra.mxu0 %v17490_v40  ;;  %v17529_v2 = vld [vmem:[%s18652_s12 + $0x1208] ss:$16 sps:$4 sm:$0xff]   ;;  %v17534_v40 = vld [vmem:[%s18652_s12 + $0x11ec] ss:$16 sps:$4 sm:$0xff]  }
 0x4c2   : > { %12908 = vmatpush1.bf16.msra.mxu1 %v17493_v12  ;;  %v12575_v49 = vpop.f32.mrf.mxu0  ;;  %12868 = vmatprep.subr.bf16.mxu0 %v17498_v26  ;;  %v17537_v12 = vld [vmem:[%s18652_s12 + $0x13ec] ss:$16 sps:$4 sm:$0xff]   ;;  %v17532_v33 = vld [vmem:[%s18652_s12 + $0x11e8] ss:$16 sps:$4 sm:$0xff]  }
 0x4c3   : > { %v12616_v53 = vpop.f32.mrf.mxu1  ;;  %12909 = vmatprep.subr.bf16.mxu1 %v17501_v54  ;;  %v17535_v34 = vld [vmem:[%s18652_s12 + $0x13e8] ss:$16 sps:$4 sm:$0xff]   ;;  %v17540_v26 = vld [vmem:[%s18652_s12 + $0x11cc] ss:$16 sps:$4 sm:$0xff]  }
 0x4c4   : > { %v17543_v54 = vld [vmem:[%s18652_s12 + $0x13cc] ss:$16 sps:$4 sm:$0xff]   ;;  %v17538_v35 = vld [vmem:[%s18652_s12 + $0x11c8] ss:$16 sps:$4 sm:$0xff]  }
 0x4c5   : > { %12869 = vmatpush1.bf16.msra.mxu0 %v17496_v22  ;;  %v17541_v36 = vld [vmem:[%s18652_s12 + $0x13c8] ss:$16 sps:$4 sm:$0xff]   ;;  %v17546_v22 = vld [vmem:[%s18652_s12 + $0x11ac] ss:$16 sps:$4 sm:$0xff]  }
 0x4c6   : > { %12910 = vmatpush1.bf16.msra.mxu1 %v17499_v57  ;;  %12870 = vmatprep.subr.bf16.mxu0 %v17504_v19  ;;  %v17549_v57 = vld [vmem:[%s18652_s12 + $0x13ac] ss:$16 sps:$4 sm:$0xff]   ;;  %v17544_v49 = vld [vmem:[%s18652_s12 + $0x11a8] ss:$16 sps:$4 sm:$0xff]  }
 0x4c7   : > { %12911 = vmatprep.subr.bf16.mxu1 %v17507_v42  ;;  %v17547_v53 = vld [vmem:[%s18652_s12 + $0x13a8] ss:$16 sps:$4 sm:$0xff]   ;;  %v17552_v19 = vld [vmem:[%s18652_s12 + $0x118c] ss:$16 sps:$4 sm:$0xff]  }
 0x4c8   : > { %v17555_v42 = vld [vmem:[%s18652_s12 + $0x138c] ss:$16 sps:$4 sm:$0xff]  }
 0x4c9   : > { %12871 = vmatpush1.bf16.msra.mxu0 %v17502_v59  ;;  %v17550_v59 = vld [vmem:[%s18652_s12 + $0x1188] ss:$16 sps:$4 sm:$0xff]  }
 0x4ca   : > { %12912 = vmatpush1.bf16.msra.mxu1 %v17505_v0  ;;  %12872 = vmatprep.subr.bf16.mxu0 %v17510_v9  ;;  %v17553_v0 = vld [vmem:[%s18652_s12 + $0x1388] ss:$16 sps:$4 sm:$0xff]   ;;  %v17558_v9 = vld [vmem:[%s18652_s12 + $0x116c] ss:$16 sps:$4 sm:$0xff]  }
 0x4cb   : > { %12913 = vmatprep.subr.bf16.mxu1 %v17513_v8  ;;  %v17561_v8 = vld [vmem:[%s18652_s12 + $0x136c] ss:$16 sps:$4 sm:$0xff]  }
 0x4cd   : > { %12873 = vmatpush1.bf16.msra.mxu0 %v17508_v63  ;;  %v17556_v63 = vld [vmem:[%s18652_s12 + $0x1168] ss:$16 sps:$4 sm:$0xff]  }
 0x4ce   : > { %12914 = vmatpush1.bf16.msra.mxu1 %v17511_v4  ;;  %12874 = vmatprep.subr.bf16.mxu0 %v17516_v62  ;;  %v17559_v4 = vld [vmem:[%s18652_s12 + $0x1368] ss:$16 sps:$4 sm:$0xff]   ;;  %v17564_v62 = vld [vmem:[%s18652_s12 + $0x114c] ss:$16 sps:$4 sm:$0xff]  }
 0x4cf   : > { %12915 = vmatprep.subr.bf16.mxu1 %v17519_v13  ;;  %v17567_v13 = vld [vmem:[%s18652_s12 + $0x134c] ss:$16 sps:$4 sm:$0xff]  }
 0x4d1   : > { %12875 = vmatpush1.bf16.msra.mxu0 %v17514_v10  ;;  %v17562_v10 = vld [vmem:[%s18652_s12 + $0x1148] ss:$16 sps:$4 sm:$0xff]  }
 0x4d2   : > { %12916 = vmatpush1.bf16.msra.mxu1 %v17517_v52  ;;  %12876 = vmatprep.subr.bf16.mxu0 %v17522_v16  ;;  %v17565_v52 = vld [vmem:[%s18652_s12 + $0x1348] ss:$16 sps:$4 sm:$0xff]   ;;  %v17570_v16 = vld [vmem:[%s18652_s12 + $0x112c] ss:$16 sps:$4 sm:$0xff]  }
 0x4d3   : > { %12917 = vmatprep.subr.bf16.mxu1 %v17525_v5  ;;  %v17573_v5 = vld [vmem:[%s18652_s12 + $0x132c] ss:$16 sps:$4 sm:$0xff]  }
 0x4d5   : > { %12877 = vmatpush1.bf16.msra.mxu0 %v17520_v6  ;;  %v17568_v6 = vld [vmem:[%s18652_s12 + $0x1128] ss:$16 sps:$4 sm:$0xff]  }
 0x4d6   : > { %12918 = vmatpush1.bf16.msra.mxu1 %v17523_v31  ;;  %12878 = vmatprep.subr.bf16.mxu0 %v17528_v17  ;;  %v17571_v31 = vld [vmem:[%s18652_s12 + $0x1328] ss:$16 sps:$4 sm:$0xff]   ;;  %v17576_v17 = vld [vmem:[%s18652_s12 + $0x110c] ss:$16 sps:$4 sm:$0xff]  }
 0x4d7   : > { %12919 = vmatprep.subr.bf16.mxu1 %v17531_v18  ;;  %v17579_v18 = vld [vmem:[%s18652_s12 + $0x130c] ss:$16 sps:$4 sm:$0xff]  }
 0x4d9   : > { %12879 = vmatpush1.bf16.msra.mxu0 %v17526_v7  ;;  %v17574_v7 = vld [vmem:[%s18652_s12 + $0x1108] ss:$16 sps:$4 sm:$0xff]  }
 0x4da   : > { %12920 = vmatpush1.bf16.msra.mxu1 %v17529_v2  ;;  %12880 = vmatprep.subr.bf16.mxu0 %v17534_v40  ;;  %v17577_v2 = vld [vmem:[%s18652_s12 + $0x1308] ss:$16 sps:$4 sm:$0xff]   ;;  %v17582_v40 = vld [vmem:[%s18652_s12 + $0x14ec] ss:$16 sps:$4 sm:$0xff]  }
 0x4db   : > { %12921 = vmatprep.subr.bf16.mxu1 %v17537_v12  ;;  %v17585_v12 = vld [vmem:[%s18652_s12 + $0x16ec] ss:$16 sps:$4 sm:$0xff]  }
 0x4dd   : > { %12881 = vmatpush2.bf16.msra.mxu0 %v17532_v33  ;;  %v17580_v33 = vld [vmem:[%s18652_s12 + $0x14e8] ss:$16 sps:$4 sm:$0xff]  }
 0x4de   : > { %12922 = vmatpush2.bf16.msra.mxu1 %v17535_v34  ;;  %12882 = vmatprep.subr.bf16.mxu0 %v17540_v26  ;;  %v17583_v34 = vld [vmem:[%s18652_s12 + $0x16e8] ss:$16 sps:$4 sm:$0xff]   ;;  %v17588_v26 = vld [vmem:[%s18652_s12 + $0x14cc] ss:$16 sps:$4 sm:$0xff]  }
 0x4df   : > { %12923 = vmatprep.subr.bf16.mxu1 %v17543_v54  ;;  %v17591_v54 = vld [vmem:[%s18652_s12 + $0x16cc] ss:$16 sps:$4 sm:$0xff]  }
 0x4e1   : > { %12883 = vmatpush2.bf16.msra.mxu0 %v17538_v35 }
 0x4e2   : > { %12924 = vmatpush2.bf16.msra.mxu1 %v17541_v36  ;;  %12884 = vmatprep.subr.bf16.mxu0 %v17546_v22 }
 0x4e3   : > { %12925 = vmatprep.subr.bf16.mxu1 %v17549_v57  ;;  %v17586_v57 = vld [vmem:[%s18652_s12 + $0x14c8] ss:$16 sps:$4 sm:$0xff]  }
 0x4e5   : > { %12885 = vmatpush2.bf16.msra.mxu0 %v17544_v49  ;;  %v17589_v49 = vld [vmem:[%s18652_s12 + $0x16c8] ss:$16 sps:$4 sm:$0xff]  }
 0x4e6   : > { %12926 = vmatpush2.bf16.msra.mxu1 %v17547_v53  ;;  %12886 = vmatprep.subr.bf16.mxu0 %v17552_v19 }
 0x4e7   : > { %12927 = vmatprep.subr.bf16.mxu1 %v17555_v42  ;;  %v17594_v42 = vld [vmem:[%s18652_s12 + $0x14ac] ss:$16 sps:$4 sm:$0xff]  }
 0x4e9   : > { %12887 = vmatpush2.bf16.msra.mxu0 %v17550_v59  ;;  %v17597_v59 = vld [vmem:[%s18652_s12 + $0x16ac] ss:$16 sps:$4 sm:$0xff]  }
 0x4ea   : > { %12928 = vmatpush2.bf16.msra.mxu1 %v17553_v0  ;;  %12888 = vmatprep.subr.bf16.mxu0 %v17558_v9 }
 0x4eb   : > { %12929 = vmatprep.subr.bf16.mxu1 %v17561_v8  ;;  %v17592_v8 = vld [vmem:[%s18652_s12 + $0x14a8] ss:$16 sps:$4 sm:$0xff]  }
 0x4ed   : > { %12889 = vmatpush2.bf16.msra.mxu0 %v17556_v63  ;;  %v17595_v63 = vld [vmem:[%s18652_s12 + $0x16a8] ss:$16 sps:$4 sm:$0xff]  }
 0x4ee   : > { %12930 = vmatpush2.bf16.msra.mxu1 %v17559_v4  ;;  %12890 = vmatprep.subr.bf16.mxu0 %v17564_v62 }
 0x4ef   : > { %12931 = vmatprep.subr.bf16.mxu1 %v17567_v13  ;;  %v17601_v13 = vld [vmem:[%s18652_s12 + $0x1688] ss:$16 sps:$4 sm:$0xff]  }
 0x4f1   : > { %12891 = vmatpush2.bf16.msra.mxu0 %v17562_v10  ;;  %v17606_v10 = vld [vmem:[%s18652_s12 + $0x146c] ss:$16 sps:$4 sm:$0xff]  }
 0x4f2   : > { %12932 = vmatpush2.bf16.msra.mxu1 %v17565_v52  ;;  %12892 = vmatprep.subr.bf16.mxu0 %v17570_v16  ;;  %v17609_v52 = vld [vmem:[%s18652_s12 + $0x166c] ss:$16 sps:$4 sm:$0xff]   ;;  %v17604_v16 = vld [vmem:[%s18652_s12 + $0x1468] ss:$16 sps:$4 sm:$0xff]  }
 0x4f3   : > { %12933 = vmatprep.subr.bf16.mxu1 %v17573_v5  ;;  %v17607_v5 = vld [vmem:[%s18652_s12 + $0x1668] ss:$16 sps:$4 sm:$0xff]  }
 0x4f5   : > { %12893 = vmatpush2.bf16.msra.mxu0 %v17568_v6  ;;  %v17612_v6 = vld [vmem:[%s18652_s12 + $0x144c] ss:$16 sps:$4 sm:$0xff]  }
 0x4f6   : > { %12934 = vmatpush2.bf16.msra.mxu1 %v17571_v31  ;;  %12894 = vmatprep.subr.bf16.mxu0 %v17576_v17  ;;  %v17615_v31 = vld [vmem:[%s18652_s12 + $0x164c] ss:$16 sps:$4 sm:$0xff]   ;;  %v17610_v17 = vld [vmem:[%s18652_s12 + $0x1448] ss:$16 sps:$4 sm:$0xff]  }
 0x4f7   : > { %12935 = vmatprep.subr.bf16.mxu1 %v17579_v18  ;;  %v17613_v18 = vld [vmem:[%s18652_s12 + $0x1648] ss:$16 sps:$4 sm:$0xff]  }
 0x4f9   : > { %12895 = vmatpush2.bf16.msra.mxu0 %v17574_v7  ;;  %v17618_v7 = vld [vmem:[%s18652_s12 + $0x142c] ss:$16 sps:$4 sm:$0xff]  }
 0x4fa   : > { %12936 = vmatpush2.bf16.msra.mxu1 %v17577_v2  ;;  %12946 = vmatprep.subr.bf16.mxu0 %v17582_v40  ;;  %v17621_v2 = vld [vmem:[%s18652_s12 + $0x162c] ss:$16 sps:$4 sm:$0xff]   ;;  %v17616_v40 = vld [vmem:[%s18652_s12 + $0x1428] ss:$16 sps:$4 sm:$0xff]  }
 0x4fb   : > { %12987 = vmatprep.subr.bf16.mxu1 %v17585_v12  ;;  %v17619_v12 = vld [vmem:[%s18652_s12 + $0x1628] ss:$16 sps:$4 sm:$0xff]  }
 0x4fc   : > { %v12652_v35 = vpop.f32.mrf.mxu0  ;;  %12897 = vmatmul.mubr.bf16.vlgmr.msra.gmra.mxu0 %v19138_v37 }
 0x4fd   : > { %v12693_v36 = vpop.f32.mrf.mxu1  ;;  %12938 = vmatmul.mubr.bf16.vlgmr.msra.gmra.mxu1 %v19142_v38  ;;  %v12653_v22 = vadd.f32 %v12652_v35, %v20308_v11  ;;  %12947 = vmatpush1.bf16.msra.mxu0 %v17580_v33  ;;  %v17624_v33 = vld [vmem:[%s18652_s12 + $0x140c] ss:$16 sps:$4 sm:$0xff]  }
 0x4fe   : > { %12988 = vmatpush1.bf16.msra.mxu1 %v17583_v34  ;;  %v12654_v53 = vpop.f32.mrf.mxu0  ;;  %12948 = vmatprep.subr.bf16.mxu0 %v17588_v26  ;;  %v17627_v34 = vld [vmem:[%s18652_s12 + $0x160c] ss:$16 sps:$4 sm:$0xff]   ;;  %v17622_v26 = vld [vmem:[%s18652_s12 + $0x1408] ss:$16 sps:$4 sm:$0xff]  }
 0x4ff   : > { %v12695_v19 = vpop.f32.mrf.mxu1  ;;  %12989 = vmatprep.subr.bf16.mxu1 %v17591_v54  ;;  %v20385_v0 = vadd.f32 %v12693_v36, %v12653_v22  ;;  %v12655_v37 = vadd.f32 %v12654_v53, %v20314_v58  ;;  %12978 = vmatprep.mubr.bf16.mxu0 %v19148_v60  ;;  %v17600_v60 = vld [vmem:[%s18652_s12 + $0x148c] ss:$16 sps:$4 sm:$0xff]   ;;  %v17598_v58 = vld [vmem:[%s18652_s12 + $0x1488] ss:$16 sps:$4 sm:$0xff]  }
 0x500   : > { %13019 = vmatprep.mubr.bf16.mxu1 %v19150_v48  ;;  %v12656_v38 = vpop.f32.mrf.mxu0  ;;  %v17603_v48 = vld [vmem:[%s18652_s12 + $0x168c] ss:$16 sps:$4 sm:$0xff]   ;;  %v17625_v54 = vld [vmem:[%s18652_s12 + $0x1608] ss:$16 sps:$4 sm:$0xff]  }
 0x501   : > { %v12697_v11 = vpop.f32.mrf.mxu1  ;;  %v20390_v9 = vadd.f32 %v12695_v19, %v12655_v37  ;;  %12949 = vmatpush1.bf16.msra.mxu0 %v17586_v57  ;;  %v17630_v35 = vld [vmem:[%s18652_s12 + $0x15ec] ss:$16 sps:$4 sm:$0xff]   ;;  %v17628_v22 = vld [vmem:[%s18652_s12 + $0x15e8] ss:$16 sps:$4 sm:$0xff]  }
 0x502   : > { %12990 = vmatpush1.bf16.msra.mxu1 %v17589_v49  ;;  %v12657_v4 = vpop.f32.mrf.mxu0  ;;  %12950 = vmatprep.subr.bf16.mxu0 %v17594_v42  ;;  %v17633_v36 = vld [vmem:[%s18652_s12 + $0x17ec] ss:$16 sps:$4 sm:$0xff]   ;;  %v17631_v57 = vld [vmem:[%s18652_s12 + $0x17e8] ss:$16 sps:$4 sm:$0xff]  }
 0x503   : > { %v12698_v62 = vpop.f32.mrf.mxu1  ;;  %12991 = vmatprep.subr.bf16.mxu1 %v17597_v59  ;;  %v17636_v49 = vld [vmem:[%s18652_s12 + $0x15cc] ss:$16 sps:$4 sm:$0xff]   ;;  %v17634_v19 = vld [vmem:[%s18652_s12 + $0x15c8] ss:$16 sps:$4 sm:$0xff]  }
 0x504   : > { %v17639_v53 = vld [vmem:[%s18652_s12 + $0x17cc] ss:$16 sps:$4 sm:$0xff]   ;;  %v17637_v42 = vld [vmem:[%s18652_s12 + $0x17c8] ss:$16 sps:$4 sm:$0xff]  }
 0x505   : > { %12951 = vmatpush1.bf16.msra.mxu0 %v17592_v8  ;;  %v17642_v59 = vld [vmem:[%s18652_s12 + $0x15ac] ss:$16 sps:$4 sm:$0xff]   ;;  %v17640_v38 = vld [vmem:[%s18652_s12 + $0x15a8] ss:$16 sps:$4 sm:$0xff]  }
 0x506   : > { %12992 = vmatpush1.bf16.msra.mxu1 %v17595_v63  ;;  %12952 = vmatprep.subr.bf16.mxu0 %v17600_v60  ;;  %v17645_v37 = vld [vmem:[%s18652_s12 + $0x17ac] ss:$16 sps:$4 sm:$0xff]   ;;  %v17643_v11 = vld [vmem:[%s18652_s12 + $0x17a8] ss:$16 sps:$4 sm:$0xff]  }
 0x507   : > { %12993 = vmatprep.subr.bf16.mxu1 %v17603_v48  ;;  %v17648_v8 = vld [vmem:[%s18652_s12 + $0x158c] ss:$16 sps:$4 sm:$0xff]   ;;  %v17646_v4 = vld [vmem:[%s18652_s12 + $0x1588] ss:$16 sps:$4 sm:$0xff]  }
 0x508   : > { %v17651_v63 = vld [vmem:[%s18652_s12 + $0x178c] ss:$16 sps:$4 sm:$0xff]   ;;  %v17649_v62 = vld [vmem:[%s18652_s12 + $0x1788] ss:$16 sps:$4 sm:$0xff]  }
 0x509   : > { %12953 = vmatpush1.bf16.msra.mxu0 %v17598_v58  ;;  %v17654_v60 = vld [vmem:[%s18652_s12 + $0x156c] ss:$16 sps:$4 sm:$0xff]   ;;  %v17652_v58 = vld [vmem:[%s18652_s12 + $0x1568] ss:$16 sps:$4 sm:$0xff]  }
 0x50a   : > { %12994 = vmatpush1.bf16.msra.mxu1 %v17601_v13  ;;  %12954 = vmatprep.subr.bf16.mxu0 %v17606_v10  ;;  %v17657_v48 = vld [vmem:[%s18652_s12 + $0x176c] ss:$16 sps:$4 sm:$0xff]   ;;  %v17655_v13 = vld [vmem:[%s18652_s12 + $0x1768] ss:$16 sps:$4 sm:$0xff]  }
 0x50b   : > { %12995 = vmatprep.subr.bf16.mxu1 %v17609_v52  ;;  %v17660_v10 = vld [vmem:[%s18652_s12 + $0x154c] ss:$16 sps:$4 sm:$0xff]  }
 0x50c   : > { %v17663_v52 = vld [vmem:[%s18652_s12 + $0x174c] ss:$16 sps:$4 sm:$0xff]  }
 0x50d   : > { %12955 = vmatpush1.bf16.msra.mxu0 %v17604_v16  ;;  %v17658_v16 = vld [vmem:[%s18652_s12 + $0x1548] ss:$16 sps:$4 sm:$0xff]  }
 0x50e   : > { %12996 = vmatpush1.bf16.msra.mxu1 %v17607_v5  ;;  %12956 = vmatprep.subr.bf16.mxu0 %v17612_v6  ;;  %v17661_v5 = vld [vmem:[%s18652_s12 + $0x1748] ss:$16 sps:$4 sm:$0xff]   ;;  %v17666_v6 = vld [vmem:[%s18652_s12 + $0x152c] ss:$16 sps:$4 sm:$0xff]  }
 0x50f   : > { %12997 = vmatprep.subr.bf16.mxu1 %v17615_v31  ;;  %v17669_v31 = vld [vmem:[%s18652_s12 + $0x172c] ss:$16 sps:$4 sm:$0xff]  }
 0x511   : > { %12957 = vmatpush1.bf16.msra.mxu0 %v17610_v17  ;;  %v17664_v17 = vld [vmem:[%s18652_s12 + $0x1528] ss:$16 sps:$4 sm:$0xff]  }
 0x512   : > { %12998 = vmatpush1.bf16.msra.mxu1 %v17613_v18  ;;  %12958 = vmatprep.subr.bf16.mxu0 %v17618_v7  ;;  %v17667_v18 = vld [vmem:[%s18652_s12 + $0x1728] ss:$16 sps:$4 sm:$0xff]   ;;  %v17672_v7 = vld [vmem:[%s18652_s12 + $0x150c] ss:$16 sps:$4 sm:$0xff]  }
 0x513   : > { %12999 = vmatprep.subr.bf16.mxu1 %v17621_v2  ;;  %v17675_v2 = vld [vmem:[%s18652_s12 + $0x170c] ss:$16 sps:$4 sm:$0xff]  }
 0x515   : > { %12959 = vmatpush1.bf16.msra.mxu0 %v17616_v40  ;;  %v17670_v40 = vld [vmem:[%s18652_s12 + $0x1508] ss:$16 sps:$4 sm:$0xff]  }
 0x516   : > { %13000 = vmatpush1.bf16.msra.mxu1 %v17619_v12  ;;  %12960 = vmatprep.subr.bf16.mxu0 %v17624_v33  ;;  %v17673_v12 = vld [vmem:[%s18652_s12 + $0x1708] ss:$16 sps:$4 sm:$0xff]   ;;  %v17678_v33 = vld [vmem:[%s18652_s12 + $0x18ec] ss:$16 sps:$4 sm:$0xff]  }
 0x517   : > { %13001 = vmatprep.subr.bf16.mxu1 %v17627_v34  ;;  %v17681_v34 = vld [vmem:[%s18652_s12 + $0x1aec] ss:$16 sps:$4 sm:$0xff]  }
 0x519   : > { %12961 = vmatpush1.bf16.msra.mxu0 %v17622_v26  ;;  %v17676_v26 = vld [vmem:[%s18652_s12 + $0x18e8] ss:$16 sps:$4 sm:$0xff]  }
 0x51a   : > { %13002 = vmatpush1.bf16.msra.mxu1 %v17625_v54  ;;  %12962 = vmatprep.subr.bf16.mxu0 %v17630_v35  ;;  %v17679_v54 = vld [vmem:[%s18652_s12 + $0x1ae8] ss:$16 sps:$4 sm:$0xff]   ;;  %v17684_v35 = vld [vmem:[%s18652_s12 + $0x18cc] ss:$16 sps:$4 sm:$0xff]  }
 0x51b   : > { %13003 = vmatprep.subr.bf16.mxu1 %v17633_v36  ;;  %v17687_v36 = vld [vmem:[%s18652_s12 + $0x1acc] ss:$16 sps:$4 sm:$0xff]  }
 0x51d   : > { %12963 = vmatpush2.bf16.msra.mxu0 %v17628_v22 }
 0x51e   : > { %13004 = vmatpush2.bf16.msra.mxu1 %v17631_v57  ;;  %12964 = vmatprep.subr.bf16.mxu0 %v17636_v49 }
 0x51f   : > { %13005 = vmatprep.subr.bf16.mxu1 %v17639_v53  ;;  %v17682_v53 = vld [vmem:[%s18652_s12 + $0x18c8] ss:$16 sps:$4 sm:$0xff]  }
 0x521   : > { %12965 = vmatpush2.bf16.msra.mxu0 %v17634_v19  ;;  %v17685_v19 = vld [vmem:[%s18652_s12 + $0x1ac8] ss:$16 sps:$4 sm:$0xff]  }
 0x522   : > { %13006 = vmatpush2.bf16.msra.mxu1 %v17637_v42  ;;  %12966 = vmatprep.subr.bf16.mxu0 %v17642_v59 }
 0x523   : > { %13007 = vmatprep.subr.bf16.mxu1 %v17645_v37  ;;  %v17690_v37 = vld [vmem:[%s18652_s12 + $0x18ac] ss:$16 sps:$4 sm:$0xff]  }
 0x525   : > { %12967 = vmatpush2.bf16.msra.mxu0 %v17640_v38  ;;  %v17693_v38 = vld [vmem:[%s18652_s12 + $0x1aac] ss:$16 sps:$4 sm:$0xff]  }
 0x526   : > { %13008 = vmatpush2.bf16.msra.mxu1 %v17643_v11  ;;  %12968 = vmatprep.subr.bf16.mxu0 %v17648_v8 }
 0x527   : > { %13009 = vmatprep.subr.bf16.mxu1 %v17651_v63  ;;  %v17688_v63 = vld [vmem:[%s18652_s12 + $0x18a8] ss:$16 sps:$4 sm:$0xff]  }
 0x529   : > { %12969 = vmatpush2.bf16.msra.mxu0 %v17646_v4  ;;  %v17691_v4 = vld [vmem:[%s18652_s12 + $0x1aa8] ss:$16 sps:$4 sm:$0xff]  }
 0x52a   : > { %13010 = vmatpush2.bf16.msra.mxu1 %v17649_v62  ;;  %12970 = vmatprep.subr.bf16.mxu0 %v17654_v60 }
 0x52b   : > { %13011 = vmatprep.subr.bf16.mxu1 %v17657_v48  ;;  %v17697_v48 = vld [vmem:[%s18652_s12 + $0x1a88] ss:$16 sps:$4 sm:$0xff]  }
 0x52d   : > { %12971 = vmatpush2.bf16.msra.mxu0 %v17652_v58  ;;  %v17702_v58 = vld [vmem:[%s18652_s12 + $0x186c] ss:$16 sps:$4 sm:$0xff]  }
 0x52e   : > { %13012 = vmatpush2.bf16.msra.mxu1 %v17655_v13  ;;  %12972 = vmatprep.subr.bf16.mxu0 %v17660_v10  ;;  %v17705_v13 = vld [vmem:[%s18652_s12 + $0x1a6c] ss:$16 sps:$4 sm:$0xff]   ;;  %v17700_v10 = vld [vmem:[%s18652_s12 + $0x1868] ss:$16 sps:$4 sm:$0xff]  }
 0x52f   : > { %13013 = vmatprep.subr.bf16.mxu1 %v17663_v52  ;;  %v17703_v52 = vld [vmem:[%s18652_s12 + $0x1a68] ss:$16 sps:$4 sm:$0xff]  }
 0x531   : > { %12973 = vmatpush2.bf16.msra.mxu0 %v17658_v16  ;;  %v17708_v16 = vld [vmem:[%s18652_s12 + $0x184c] ss:$16 sps:$4 sm:$0xff]  }
 0x532   : > { %13014 = vmatpush2.bf16.msra.mxu1 %v17661_v5  ;;  %12974 = vmatprep.subr.bf16.mxu0 %v17666_v6  ;;  %v17711_v5 = vld [vmem:[%s18652_s12 + $0x1a4c] ss:$16 sps:$4 sm:$0xff]   ;;  %v17706_v6 = vld [vmem:[%s18652_s12 + $0x1848] ss:$16 sps:$4 sm:$0xff]  }
 0x533   : > { %13015 = vmatprep.subr.bf16.mxu1 %v17669_v31  ;;  %v17709_v31 = vld [vmem:[%s18652_s12 + $0x1a48] ss:$16 sps:$4 sm:$0xff]  }
 0x535   : > { %12975 = vmatpush2.bf16.msra.mxu0 %v17664_v17  ;;  %v17714_v17 = vld [vmem:[%s18652_s12 + $0x182c] ss:$16 sps:$4 sm:$0xff]  }
 0x536   : > { %13016 = vmatpush2.bf16.msra.mxu1 %v17667_v18  ;;  %12976 = vmatprep.subr.bf16.mxu0 %v17672_v7  ;;  %v17717_v18 = vld [vmem:[%s18652_s12 + $0x1a2c] ss:$16 sps:$4 sm:$0xff]   ;;  %v17712_v7 = vld [vmem:[%s18652_s12 + $0x1828] ss:$16 sps:$4 sm:$0xff]  }
 0x537   : > { %13017 = vmatprep.subr.bf16.mxu1 %v17675_v2  ;;  %v17715_v2 = vld [vmem:[%s18652_s12 + $0x1a28] ss:$16 sps:$4 sm:$0xff]  }
 0x539   : > { %12977 = vmatpush2.bf16.msra.mxu0 %v17670_v40  ;;  %v17720_v40 = vld [vmem:[%s18652_s12 + $0x180c] ss:$16 sps:$4 sm:$0xff]  }
 0x53a   : > { %13018 = vmatpush2.bf16.msra.mxu1 %v17673_v12  ;;  %13028 = vmatprep.subr.bf16.mxu0 %v17678_v33  ;;  %v17723_v12 = vld [vmem:[%s18652_s12 + $0x1a0c] ss:$16 sps:$4 sm:$0xff]   ;;  %v17718_v33 = vld [vmem:[%s18652_s12 + $0x1808] ss:$16 sps:$4 sm:$0xff]  }
 0x53b   : > { %13069 = vmatprep.subr.bf16.mxu1 %v17681_v34  ;;  %v17721_v34 = vld [vmem:[%s18652_s12 + $0x1a08] ss:$16 sps:$4 sm:$0xff]  }
 0x53c   : > { %v12734_v22 = vpop.f32.mrf.mxu0  ;;  %12979 = vmatmul.mubr.bf16.vlgmr.msra.gmra.mxu0 %v19235_v55 }
 0x53d   : > { %v12775_v57 = vpop.f32.mrf.mxu1  ;;  %13020 = vmatmul.mubr.bf16.vlgmr.msra.gmra.mxu1 %v19239_v56  ;;  %v12735_v49 = vadd.f32 %v12734_v22, %v20385_v0  ;;  %13029 = vmatpush1.bf16.msra.mxu0 %v17676_v26  ;;  %v17726_v26 = vld [vmem:[%s18652_s12 + $0x19ec] ss:$16 sps:$4 sm:$0xff]  }
 0x53e   : > { %13070 = vmatpush1.bf16.msra.mxu1 %v17679_v54  ;;  %v12736_v42 = vpop.f32.mrf.mxu0  ;;  %13030 = vmatprep.subr.bf16.mxu0 %v17684_v35  ;;  %v17729_v54 = vld [vmem:[%s18652_s12 + $0x1bec] ss:$16 sps:$4 sm:$0xff]   ;;  %v17724_v35 = vld [vmem:[%s18652_s12 + $0x19e8] ss:$16 sps:$4 sm:$0xff]  }
 0x53f   : > { %v12777_v59 = vpop.f32.mrf.mxu1  ;;  %13071 = vmatprep.subr.bf16.mxu1 %v17687_v36  ;;  %v20459_v11 = vadd.f32 %v12775_v57, %v12735_v49  ;;  %v12737_v55 = vadd.f32 %v12736_v42, %v20390_v9  ;;  %13060 = vmatprep.mubr.bf16.mxu0 %v19245_v47  ;;  %v17696_v47 = vld [vmem:[%s18652_s12 + $0x188c] ss:$16 sps:$4 sm:$0xff]   ;;  %v17694_v9 = vld [vmem:[%s18652_s12 + $0x1888] ss:$16 sps:$4 sm:$0xff]  }
 0x540   : > { %13101 = vmatprep.mubr.bf16.mxu1 %v19247_v3  ;;  %v12738_v56 = vpop.f32.mrf.mxu0  ;;  %v17699_v3 = vld [vmem:[%s18652_s12 + $0x1a8c] ss:$16 sps:$4 sm:$0xff]   ;;  %v17727_v36 = vld [vmem:[%s18652_s12 + $0x1be8] ss:$16 sps:$4 sm:$0xff]  }
 0x541   : > { %v12779_v0 = vpop.f32.mrf.mxu1  ;;  %v20464_v8 = vadd.f32 %v12777_v59, %v12737_v55  ;;  %13031 = vmatpush1.bf16.msra.mxu0 %v17682_v53  ;;  %v17732_v22 = vld [vmem:[%s18652_s12 + $0x19cc] ss:$16 sps:$4 sm:$0xff]   ;;  %v17730_v49 = vld [vmem:[%s18652_s12 + $0x19c8] ss:$16 sps:$4 sm:$0xff]  }
 0x542   : > { %13072 = vmatpush1.bf16.msra.mxu1 %v17685_v19  ;;  %v12739_v62 = vpop.f32.mrf.mxu0  ;;  %13032 = vmatprep.subr.bf16.mxu0 %v17690_v37  ;;  %v17735_v57 = vld [vmem:[%s18652_s12 + $0x1bcc] ss:$16 sps:$4 sm:$0xff]   ;;  %v17733_v53 = vld [vmem:[%s18652_s12 + $0x1bc8] ss:$16 sps:$4 sm:$0xff]  }
 0x543   : > { %v12780_v60 = vpop.f32.mrf.mxu1  ;;  %13073 = vmatprep.subr.bf16.mxu1 %v17693_v38  ;;  %v17738_v19 = vld [vmem:[%s18652_s12 + $0x19ac] ss:$16 sps:$4 sm:$0xff]   ;;  %v17736_v59 = vld [vmem:[%s18652_s12 + $0x19a8] ss:$16 sps:$4 sm:$0xff]  }
 0x544   : > { %v17741_v42 = vld [vmem:[%s18652_s12 + $0x1bac] ss:$16 sps:$4 sm:$0xff]   ;;  %v17739_v37 = vld [vmem:[%s18652_s12 + $0x1ba8] ss:$16 sps:$4 sm:$0xff]  }
 0x545   : > { %13033 = vmatpush1.bf16.msra.mxu0 %v17688_v63  ;;  %v17744_v38 = vld [vmem:[%s18652_s12 + $0x198c] ss:$16 sps:$4 sm:$0xff]   ;;  %v17742_v56 = vld [vmem:[%s18652_s12 + $0x1988] ss:$16 sps:$4 sm:$0xff]  }
 0x546   : > { %13074 = vmatpush1.bf16.msra.mxu1 %v17691_v4  ;;  %13034 = vmatprep.subr.bf16.mxu0 %v17696_v47  ;;  %v17747_v55 = vld [vmem:[%s18652_s12 + $0x1b8c] ss:$16 sps:$4 sm:$0xff]   ;;  %v17745_v0 = vld [vmem:[%s18652_s12 + $0x1b88] ss:$16 sps:$4 sm:$0xff]  }
 0x547   : > { %13075 = vmatprep.subr.bf16.mxu1 %v17699_v3  ;;  %v17750_v63 = vld [vmem:[%s18652_s12 + $0x196c] ss:$16 sps:$4 sm:$0xff]   ;;  %v17748_v62 = vld [vmem:[%s18652_s12 + $0x1968] ss:$16 sps:$4 sm:$0xff]  }
 0x548   : > { %v17753_v4 = vld [vmem:[%s18652_s12 + $0x1b6c] ss:$16 sps:$4 sm:$0xff]   ;;  %v17751_v60 = vld [vmem:[%s18652_s12 + $0x1b68] ss:$16 sps:$4 sm:$0xff]  }
 0x549   : > { %13035 = vmatpush1.bf16.msra.mxu0 %v17694_v9  ;;  %v17756_v47 = vld [vmem:[%s18652_s12 + $0x194c] ss:$16 sps:$4 sm:$0xff]   ;;  %v17754_v9 = vld [vmem:[%s18652_s12 + $0x1948] ss:$16 sps:$4 sm:$0xff]  }
 0x54a   : > { %13076 = vmatpush1.bf16.msra.mxu1 %v17697_v48  ;;  %13036 = vmatprep.subr.bf16.mxu0 %v17702_v58  ;;  %v17759_v3 = vld [vmem:[%s18652_s12 + $0x1b4c] ss:$16 sps:$4 sm:$0xff]   ;;  %v17757_v48 = vld [vmem:[%s18652_s12 + $0x1b48] ss:$16 sps:$4 sm:$0xff]  }
 0x54b   : > { %13077 = vmatprep.subr.bf16.mxu1 %v17705_v13  ;;  %v17762_v58 = vld [vmem:[%s18652_s12 + $0x192c] ss:$16 sps:$4 sm:$0xff]  }
 0x54c   : > { %v17765_v13 = vld [vmem:[%s18652_s12 + $0x1b2c] ss:$16 sps:$4 sm:$0xff]  }
 0x54d   : > { %13037 = vmatpush1.bf16.msra.mxu0 %v17700_v10  ;;  %v17760_v10 = vld [vmem:[%s18652_s12 + $0x1928] ss:$16 sps:$4 sm:$0xff]  }
 0x54e   : > { %13078 = vmatpush1.bf16.msra.mxu1 %v17703_v52  ;;  %13038 = vmatprep.subr.bf16.mxu0 %v17708_v16  ;;  %v17763_v52 = vld [vmem:[%s18652_s12 + $0x1b28] ss:$16 sps:$4 sm:$0xff]   ;;  %v17768_v16 = vld [vmem:[%s18652_s12 + $0x190c] ss:$16 sps:$4 sm:$0xff]  }
 0x54f   : > { %13079 = vmatprep.subr.bf16.mxu1 %v17711_v5  ;;  %v17771_v5 = vld [vmem:[%s18652_s12 + $0x1b0c] ss:$16 sps:$4 sm:$0xff]  }
 0x551   : > { %13039 = vmatpush1.bf16.msra.mxu0 %v17706_v6  ;;  %v17766_v6 = vld [vmem:[%s18652_s12 + $0x1908] ss:$16 sps:$4 sm:$0xff]  }
 0x552   : > { %13080 = vmatpush1.bf16.msra.mxu1 %v17709_v31  ;;  %13040 = vmatprep.subr.bf16.mxu0 %v17714_v17  ;;  %v17769_v31 = vld [vmem:[%s18652_s12 + $0x1b08] ss:$16 sps:$4 sm:$0xff]   ;;  %v17774_v17 = vld [vmem:[%s18652_s12 + $0x1cec] ss:$16 sps:$4 sm:$0xff]  }
 0x553   : > { %13081 = vmatprep.subr.bf16.mxu1 %v17717_v18  ;;  %v17777_v18 = vld [vmem:[%s18652_s12 + $0x1eec] ss:$16 sps:$4 sm:$0xff]  }
 0x555   : > { %13041 = vmatpush1.bf16.msra.mxu0 %v17712_v7  ;;  %v17772_v7 = vld [vmem:[%s18652_s12 + $0x1ce8] ss:$16 sps:$4 sm:$0xff]  }
 0x556   : > { %13082 = vmatpush1.bf16.msra.mxu1 %v17715_v2  ;;  %13042 = vmatprep.subr.bf16.mxu0 %v17720_v40  ;;  %v17775_v2 = vld [vmem:[%s18652_s12 + $0x1ee8] ss:$16 sps:$4 sm:$0xff]   ;;  %v17780_v40 = vld [vmem:[%s18652_s12 + $0x1ccc] ss:$16 sps:$4 sm:$0xff]  }
 0x557   : > { %13083 = vmatprep.subr.bf16.mxu1 %v17723_v12  ;;  %v17783_v12 = vld [vmem:[%s18652_s12 + $0x1ecc] ss:$16 sps:$4 sm:$0xff]  }
 0x559   : > { %13043 = vmatpush1.bf16.msra.mxu0 %v17718_v33 }
 0x55a   : > { %13084 = vmatpush1.bf16.msra.mxu1 %v17721_v34  ;;  %13044 = vmatprep.subr.bf16.mxu0 %v17726_v26 }
 0x55b   : > { %13085 = vmatprep.subr.bf16.mxu1 %v17729_v54  ;;  %v17778_v54 = vld [vmem:[%s18652_s12 + $0x1cc8] ss:$16 sps:$4 sm:$0xff]  }
 0x55d   : > { %13045 = vmatpush2.bf16.msra.mxu0 %v17724_v35  ;;  %v17781_v35 = vld [vmem:[%s18652_s12 + $0x1ec8] ss:$16 sps:$4 sm:$0xff]  }
 0x55e   : > { %13086 = vmatpush2.bf16.msra.mxu1 %v17727_v36  ;;  %13046 = vmatprep.subr.bf16.mxu0 %v17732_v22 }
 0x55f   : > { %13087 = vmatprep.subr.bf16.mxu1 %v17735_v57  ;;  %v17786_v57 = vld [vmem:[%s18652_s12 + $0x1cac] ss:$16 sps:$4 sm:$0xff]  }
 0x561   : > { %13047 = vmatpush2.bf16.msra.mxu0 %v17730_v49  ;;  %v17789_v49 = vld [vmem:[%s18652_s12 + $0x1eac] ss:$16 sps:$4 sm:$0xff]  }
 0x562   : > { %13088 = vmatpush2.bf16.msra.mxu1 %v17733_v53  ;;  %13048 = vmatprep.subr.bf16.mxu0 %v17738_v19 }
 0x563   : > { %13089 = vmatprep.subr.bf16.mxu1 %v17741_v42  ;;  %v17784_v42 = vld [vmem:[%s18652_s12 + $0x1ca8] ss:$16 sps:$4 sm:$0xff]  }
 0x565   : > { %13049 = vmatpush2.bf16.msra.mxu0 %v17736_v59  ;;  %v17787_v59 = vld [vmem:[%s18652_s12 + $0x1ea8] ss:$16 sps:$4 sm:$0xff]  }
 0x566   : > { %13090 = vmatpush2.bf16.msra.mxu1 %v17739_v37  ;;  %13050 = vmatprep.subr.bf16.mxu0 %v17744_v38 }
 0x567   : > { %13091 = vmatprep.subr.bf16.mxu1 %v17747_v55  ;;  %v17793_v55 = vld [vmem:[%s18652_s12 + $0x1e88] ss:$16 sps:$4 sm:$0xff]  }
 0x569   : > { %13051 = vmatpush2.bf16.msra.mxu0 %v17742_v56  ;;  %v17798_v56 = vld [vmem:[%s18652_s12 + $0x1c6c] ss:$16 sps:$4 sm:$0xff]  }
 0x56a   : > { %13092 = vmatpush2.bf16.msra.mxu1 %v17745_v0  ;;  %13052 = vmatprep.subr.bf16.mxu0 %v17750_v63  ;;  %v17801_v0 = vld [vmem:[%s18652_s12 + $0x1e6c] ss:$16 sps:$4 sm:$0xff]   ;;  %v17796_v63 = vld [vmem:[%s18652_s12 + $0x1c68] ss:$16 sps:$4 sm:$0xff]  }
 0x56b   : > { %13093 = vmatprep.subr.bf16.mxu1 %v17753_v4  ;;  %v17799_v4 = vld [vmem:[%s18652_s12 + $0x1e68] ss:$16 sps:$4 sm:$0xff]  }
 0x56d   : > { %13053 = vmatpush2.bf16.msra.mxu0 %v17748_v62  ;;  %v17804_v62 = vld [vmem:[%s18652_s12 + $0x1c4c] ss:$16 sps:$4 sm:$0xff]  }
 0x56e   : > { %13094 = vmatpush2.bf16.msra.mxu1 %v17751_v60  ;;  %13054 = vmatprep.subr.bf16.mxu0 %v17756_v47  ;;  %v17807_v60 = vld [vmem:[%s18652_s12 + $0x1e4c] ss:$16 sps:$4 sm:$0xff]   ;;  %v17802_v47 = vld [vmem:[%s18652_s12 + $0x1c48] ss:$16 sps:$4 sm:$0xff]  }
 0x56f   : > { %13095 = vmatprep.subr.bf16.mxu1 %v17759_v3  ;;  %v17805_v3 = vld [vmem:[%s18652_s12 + $0x1e48] ss:$16 sps:$4 sm:$0xff]  }
 0x571   : > { %13055 = vmatpush2.bf16.msra.mxu0 %v17754_v9  ;;  %v17810_v9 = vld [vmem:[%s18652_s12 + $0x1c2c] ss:$16 sps:$4 sm:$0xff]  }
 0x572   : > { %13096 = vmatpush2.bf16.msra.mxu1 %v17757_v48  ;;  %13056 = vmatprep.subr.bf16.mxu0 %v17762_v58  ;;  %v17813_v48 = vld [vmem:[%s18652_s12 + $0x1e2c] ss:$16 sps:$4 sm:$0xff]   ;;  %v17808_v58 = vld [vmem:[%s18652_s12 + $0x1c28] ss:$16 sps:$4 sm:$0xff]  }
 0x573   : > { %13097 = vmatprep.subr.bf16.mxu1 %v17765_v13  ;;  %v17811_v13 = vld [vmem:[%s18652_s12 + $0x1e28] ss:$16 sps:$4 sm:$0xff]  }
 0x575   : > { %13057 = vmatpush2.bf16.msra.mxu0 %v17760_v10  ;;  %v17816_v10 = vld [vmem:[%s18652_s12 + $0x1c0c] ss:$16 sps:$4 sm:$0xff]  }
 0x576   : > { %13098 = vmatpush2.bf16.msra.mxu1 %v17763_v52  ;;  %13058 = vmatprep.subr.bf16.mxu0 %v17768_v16  ;;  %v17819_v52 = vld [vmem:[%s18652_s12 + $0x1e0c] ss:$16 sps:$4 sm:$0xff]   ;;  %v17814_v16 = vld [vmem:[%s18652_s12 + $0x1c08] ss:$16 sps:$4 sm:$0xff]  }
 0x577   : > { %13099 = vmatprep.subr.bf16.mxu1 %v17771_v5  ;;  %v17817_v5 = vld [vmem:[%s18652_s12 + $0x1e08] ss:$16 sps:$4 sm:$0xff]  }
 0x579   : > { %13059 = vmatpush2.bf16.msra.mxu0 %v17766_v6  ;;  %v17822_v6 = vld [vmem:[%s18652_s12 + $0x1dec] ss:$16 sps:$4 sm:$0xff]  }
 0x57a   : > { %13100 = vmatpush2.bf16.msra.mxu1 %v17769_v31  ;;  %13110 = vmatprep.subr.bf16.mxu0 %v17774_v17  ;;  %v17825_v31 = vld [vmem:[%s18652_s12 + $0x1fec] ss:$16 sps:$4 sm:$0xff]   ;;  %v17820_v17 = vld [vmem:[%s18652_s12 + $0x1de8] ss:$16 sps:$4 sm:$0xff]  }
 0x57b   : > { %13151 = vmatprep.subr.bf16.mxu1 %v17777_v18  ;;  %v17823_v18 = vld [vmem:[%s18652_s12 + $0x1fe8] ss:$16 sps:$4 sm:$0xff]  }
 0x57c   : > { %v12816_v33 = vpop.f32.mrf.mxu0  ;;  %13061 = vmatmul.mubr.bf16.vlgmr.msra.gmra.mxu0 %v19332_v20 }
 0x57d   : > { %v12857_v34 = vpop.f32.mrf.mxu1  ;;  %13102 = vmatmul.mubr.bf16.vlgmr.msra.gmra.mxu1 %v19336_v23  ;;  %v12817_v26 = vadd.f32 %v12816_v33, %v20459_v11  ;;  %13111 = vmatpush1.bf16.msra.mxu0 %v17772_v7  ;;  %v17828_v7 = vld [vmem:[%s18652_s12 + $0x1dcc] ss:$16 sps:$4 sm:$0xff]  }
 0x57e   : > { %13152 = vmatpush1.bf16.msra.mxu1 %v17775_v2  ;;  %v12818_v36 = vpop.f32.mrf.mxu0  ;;  %13112 = vmatprep.subr.bf16.mxu0 %v17780_v40  ;;  %v17831_v2 = vld [vmem:[%s18652_s12 + $0x1fcc] ss:$16 sps:$4 sm:$0xff]   ;;  %v17826_v40 = vld [vmem:[%s18652_s12 + $0x1dc8] ss:$16 sps:$4 sm:$0xff]  }
 0x57f   : > { %v12859_v22 = vpop.f32.mrf.mxu1  ;;  %13153 = vmatprep.subr.bf16.mxu1 %v17783_v12  ;;  %v20533_v53 = vadd.f32 %v12857_v34, %v12817_v26  ;;  %v12819_v20 = vadd.f32 %v12818_v36, %v20464_v8  ;;  %13142 = vmatprep.mubr.bf16.mxu0 %v19342_v29  ;;  %v17792_v29 = vld [vmem:[%s18652_s12 + $0x1c8c] ss:$16 sps:$4 sm:$0xff]   ;;  %v17790_v8 = vld [vmem:[%s18652_s12 + $0x1c88] ss:$16 sps:$4 sm:$0xff]  }
 0x580   : > { %13183 = vmatprep.mubr.bf16.mxu1 %v19344_v30  ;;  %v12820_v23 = vpop.f32.mrf.mxu0  ;;  %v17795_v30 = vld [vmem:[%s18652_s12 + $0x1e8c] ss:$16 sps:$4 sm:$0xff]   ;;  %v17829_v12 = vld [vmem:[%s18652_s12 + $0x1fc8] ss:$16 sps:$4 sm:$0xff]  }
 0x581   : > { %v12861_v11 = vpop.f32.mrf.mxu1  ;;  %v20538_v19 = vadd.f32 %v12859_v22, %v12819_v20  ;;  %13113 = vmatpush1.bf16.msra.mxu0 %v17778_v54  ;;  %v17834_v33 = vld [vmem:[%s18652_s12 + $0x1dac] ss:$16 sps:$4 sm:$0xff]   ;;  %v17832_v26 = vld [vmem:[%s18652_s12 + $0x1da8] ss:$16 sps:$4 sm:$0xff]  }
 0x582   : > { %13154 = vmatpush1.bf16.msra.mxu1 %v17781_v35  ;;  %v12821_v37 = vpop.f32.mrf.mxu0  ;;  %13114 = vmatprep.subr.bf16.mxu0 %v17786_v57  ;;  %v17837_v34 = vld [vmem:[%s18652_s12 + $0x1fac] ss:$16 sps:$4 sm:$0xff]   ;;  %v17835_v54 = vld [vmem:[%s18652_s12 + $0x1fa8] ss:$16 sps:$4 sm:$0xff]  }
 0x583   : > { %v12862_v38 = vpop.f32.mrf.mxu1  ;;  %13155 = vmatprep.subr.bf16.mxu1 %v17789_v49  ;;  %v17840_v35 = vld [vmem:[%s18652_s12 + $0x1d8c] ss:$16 sps:$4 sm:$0xff]   ;;  %v17838_v22 = vld [vmem:[%s18652_s12 + $0x1d88] ss:$16 sps:$4 sm:$0xff]  }
 0x584   : > { %v17843_v36 = vld [vmem:[%s18652_s12 + $0x1f8c] ss:$16 sps:$4 sm:$0xff]   ;;  %v17841_v57 = vld [vmem:[%s18652_s12 + $0x1f88] ss:$16 sps:$4 sm:$0xff]  }
 0x585   : > { %13115 = vmatpush1.bf16.msra.mxu0 %v17784_v42  ;;  %v17846_v49 = vld [vmem:[%s18652_s12 + $0x1d6c] ss:$16 sps:$4 sm:$0xff]   ;;  %v17844_v23 = vld [vmem:[%s18652_s12 + $0x1d68] ss:$16 sps:$4 sm:$0xff]  }
 0x586   : > { %13156 = vmatpush1.bf16.msra.mxu1 %v17787_v59  ;;  %13116 = vmatprep.subr.bf16.mxu0 %v17792_v29  ;;  %v17849_v20 = vld [vmem:[%s18652_s12 + $0x1f6c] ss:$16 sps:$4 sm:$0xff]   ;;  %v17847_v11 = vld [vmem:[%s18652_s12 + $0x1f68] ss:$16 sps:$4 sm:$0xff]  }
 0x587   : > { %13157 = vmatprep.subr.bf16.mxu1 %v17795_v30  ;;  %v17852_v42 = vld [vmem:[%s18652_s12 + $0x1d4c] ss:$16 sps:$4 sm:$0xff]   ;;  %v17850_v37 = vld [vmem:[%s18652_s12 + $0x1d48] ss:$16 sps:$4 sm:$0xff]  }
 0x588   : > { %v17855_v59 = vld [vmem:[%s18652_s12 + $0x1f4c] ss:$16 sps:$4 sm:$0xff]   ;;  %v17853_v38 = vld [vmem:[%s18652_s12 + $0x1f48] ss:$16 sps:$4 sm:$0xff]  }
 0x589   : > { %13117 = vmatpush1.bf16.msra.mxu0 %v17790_v8  ;;  %v17858_v29 = vld [vmem:[%s18652_s12 + $0x1d2c] ss:$16 sps:$4 sm:$0xff]   ;;  %v17856_v8 = vld [vmem:[%s18652_s12 + $0x1d28] ss:$16 sps:$4 sm:$0xff]  }
 0x58a   : > { %13158 = vmatpush1.bf16.msra.mxu1 %v17793_v55  ;;  %13118 = vmatprep.subr.bf16.mxu0 %v17798_v56  ;;  %v17861_v30 = vld [vmem:[%s18652_s12 + $0x1f2c] ss:$16 sps:$4 sm:$0xff]   ;;  %v17859_v55 = vld [vmem:[%s18652_s12 + $0x1f28] ss:$16 sps:$4 sm:$0xff]  }
 0x58b   : > { %13159 = vmatprep.subr.bf16.mxu1 %v17801_v0  ;;  %v17864_v56 = vld [vmem:[%s18652_s12 + $0x1d0c] ss:$16 sps:$4 sm:$0xff]  }
 0x58c   : > { %v17867_v0 = vld [vmem:[%s18652_s12 + $0x1f0c] ss:$16 sps:$4 sm:$0xff]  }
 0x58d   : > { %13119 = vmatpush1.bf16.msra.mxu0 %v17796_v63  ;;  %v17862_v63 = vld [vmem:[%s18652_s12 + $0x1d08] ss:$16 sps:$4 sm:$0xff]  }
 0x58e   : > { %13160 = vmatpush1.bf16.msra.mxu1 %v17799_v4  ;;  %13120 = vmatprep.subr.bf16.mxu0 %v17804_v62  ;;  %v17865_v4 = vld [vmem:[%s18652_s12 + $0x1f08] ss:$16 sps:$4 sm:$0xff]   ;;  %v17870_v62 = vld [vmem:[%s18652_s12 + $0x20ec] ss:$16 sps:$4 sm:$0xff]  }
 0x58f   : > { %13161 = vmatprep.subr.bf16.mxu1 %v17807_v60  ;;  %v17873_v60 = vld [vmem:[%s18652_s12 + $0x22ec] ss:$16 sps:$4 sm:$0xff]  }
 0x591   : > { %13121 = vmatpush1.bf16.msra.mxu0 %v17802_v47  ;;  %v17868_v47 = vld [vmem:[%s18652_s12 + $0x20e8] ss:$16 sps:$4 sm:$0xff]  }
 0x592   : > { %13162 = vmatpush1.bf16.msra.mxu1 %v17805_v3  ;;  %13122 = vmatprep.subr.bf16.mxu0 %v17810_v9  ;;  %v17871_v3 = vld [vmem:[%s18652_s12 + $0x22e8] ss:$16 sps:$4 sm:$0xff]   ;;  %v17876_v9 = vld [vmem:[%s18652_s12 + $0x20cc] ss:$16 sps:$4 sm:$0xff]  }
 0x593   : > { %13163 = vmatprep.subr.bf16.mxu1 %v17813_v48  ;;  %v17879_v48 = vld [vmem:[%s18652_s12 + $0x22cc] ss:$16 sps:$4 sm:$0xff]  }
 0x595   : > { %13123 = vmatpush1.bf16.msra.mxu0 %v17808_v58 }
 0x596   : > { %13164 = vmatpush1.bf16.msra.mxu1 %v17811_v13  ;;  %13124 = vmatprep.subr.bf16.mxu0 %v17816_v10 }
 0x597   : > { %13165 = vmatprep.subr.bf16.mxu1 %v17819_v52  ;;  %v17874_v52 = vld [vmem:[%s18652_s12 + $0x20c8] ss:$16 sps:$4 sm:$0xff]  }
 0x599   : > { %13125 = vmatpush1.bf16.msra.mxu0 %v17814_v16  ;;  %v17877_v16 = vld [vmem:[%s18652_s12 + $0x22c8] ss:$16 sps:$4 sm:$0xff]  }
 0x59a   : > { %13166 = vmatpush1.bf16.msra.mxu1 %v17817_v5  ;;  %13126 = vmatprep.subr.bf16.mxu0 %v17822_v6 }
 0x59b   : > { %13167 = vmatprep.subr.bf16.mxu1 %v17825_v31  ;;  %v17882_v31 = vld [vmem:[%s18652_s12 + $0x20ac] ss:$16 sps:$4 sm:$0xff]  }
 0x59d   : > { %13127 = vmatpush2.bf16.msra.mxu0 %v17820_v17  ;;  %v17885_v17 = vld [vmem:[%s18652_s12 + $0x22ac] ss:$16 sps:$4 sm:$0xff]  }
 0x59e   : > { %13168 = vmatpush2.bf16.msra.mxu1 %v17823_v18  ;;  %13128 = vmatprep.subr.bf16.mxu0 %v17828_v7 }
 0x59f   : > { %13169 = vmatprep.subr.bf16.mxu1 %v17831_v2  ;;  %v17880_v2 = vld [vmem:[%s18652_s12 + $0x20a8] ss:$16 sps:$4 sm:$0xff]  }
 0x5a1   : > { %13129 = vmatpush2.bf16.msra.mxu0 %v17826_v40  ;;  %v17883_v40 = vld [vmem:[%s18652_s12 + $0x22a8] ss:$16 sps:$4 sm:$0xff]  }
 0x5a2   : > { %13170 = vmatpush2.bf16.msra.mxu1 %v17829_v12  ;;  %13130 = vmatprep.subr.bf16.mxu0 %v17834_v33 }
 0x5a3   : > { %13171 = vmatprep.subr.bf16.mxu1 %v17837_v34  ;;  %v17889_v34 = vld [vmem:[%s18652_s12 + $0x2288] ss:$16 sps:$4 sm:$0xff]  }
 0x5a5   : > { %13131 = vmatpush2.bf16.msra.mxu0 %v17832_v26  ;;  %v17894_v26 = vld [vmem:[%s18652_s12 + $0x206c] ss:$16 sps:$4 sm:$0xff]  }
 0x5a6   : > { %13172 = vmatpush2.bf16.msra.mxu1 %v17835_v54  ;;  %13132 = vmatprep.subr.bf16.mxu0 %v17840_v35  ;;  %v17897_v54 = vld [vmem:[%s18652_s12 + $0x226c] ss:$16 sps:$4 sm:$0xff]   ;;  %v17892_v35 = vld [vmem:[%s18652_s12 + $0x2068] ss:$16 sps:$4 sm:$0xff]  }
 0x5a7   : > { %13173 = vmatprep.subr.bf16.mxu1 %v17843_v36  ;;  %v17895_v36 = vld [vmem:[%s18652_s12 + $0x2268] ss:$16 sps:$4 sm:$0xff]  }
 0x5a9   : > { %13133 = vmatpush2.bf16.msra.mxu0 %v17838_v22  ;;  %v17900_v22 = vld [vmem:[%s18652_s12 + $0x204c] ss:$16 sps:$4 sm:$0xff]  }
 0x5aa   : > { %13174 = vmatpush2.bf16.msra.mxu1 %v17841_v57  ;;  %13134 = vmatprep.subr.bf16.mxu0 %v17846_v49  ;;  %v17903_v57 = vld [vmem:[%s18652_s12 + $0x224c] ss:$16 sps:$4 sm:$0xff]   ;;  %v17898_v49 = vld [vmem:[%s18652_s12 + $0x2048] ss:$16 sps:$4 sm:$0xff]  }
 0x5ab   : > { %13175 = vmatprep.subr.bf16.mxu1 %v17849_v20  ;;  %v17901_v20 = vld [vmem:[%s18652_s12 + $0x2248] ss:$16 sps:$4 sm:$0xff]  }
 0x5ad   : > { %13135 = vmatpush2.bf16.msra.mxu0 %v17844_v23  ;;  %v17906_v23 = vld [vmem:[%s18652_s12 + $0x202c] ss:$16 sps:$4 sm:$0xff]  }
 0x5ae   : > { %13176 = vmatpush2.bf16.msra.mxu1 %v17847_v11  ;;  %13136 = vmatprep.subr.bf16.mxu0 %v17852_v42  ;;  %v17909_v11 = vld [vmem:[%s18652_s12 + $0x222c] ss:$16 sps:$4 sm:$0xff]   ;;  %v17904_v42 = vld [vmem:[%s18652_s12 + $0x2028] ss:$16 sps:$4 sm:$0xff]  }
 0x5af   : > { %13177 = vmatprep.subr.bf16.mxu1 %v17855_v59  ;;  %v17907_v59 = vld [vmem:[%s18652_s12 + $0x2228] ss:$16 sps:$4 sm:$0xff]  }
 0x5b1   : > { %13137 = vmatpush2.bf16.msra.mxu0 %v17850_v37  ;;  %v17912_v37 = vld [vmem:[%s18652_s12 + $0x200c] ss:$16 sps:$4 sm:$0xff]  }
 0x5b2   : > { %13178 = vmatpush2.bf16.msra.mxu1 %v17853_v38  ;;  %13138 = vmatprep.subr.bf16.mxu0 %v17858_v29  ;;  %v17915_v38 = vld [vmem:[%s18652_s12 + $0x220c] ss:$16 sps:$4 sm:$0xff]   ;;  %v17910_v29 = vld [vmem:[%s18652_s12 + $0x2008] ss:$16 sps:$4 sm:$0xff]  }
 0x5b3   : > { %13179 = vmatprep.subr.bf16.mxu1 %v17861_v30  ;;  %v17913_v30 = vld [vmem:[%s18652_s12 + $0x2208] ss:$16 sps:$4 sm:$0xff]  }
 0x5b5   : > { %13139 = vmatpush2.bf16.msra.mxu0 %v17856_v8  ;;  %v17918_v8 = vld [vmem:[%s18652_s12 + $0x21ec] ss:$16 sps:$4 sm:$0xff]  }
 0x5b6   : > { %13180 = vmatpush2.bf16.msra.mxu1 %v17859_v55  ;;  %13140 = vmatprep.subr.bf16.mxu0 %v17864_v56  ;;  %v17921_v55 = vld [vmem:[%s18652_s12 + $0x23ec] ss:$16 sps:$4 sm:$0xff]   ;;  %v17916_v56 = vld [vmem:[%s18652_s12 + $0x21e8] ss:$16 sps:$4 sm:$0xff]  }
 0x5b7   : > { %13181 = vmatprep.subr.bf16.mxu1 %v17867_v0  ;;  %v17919_v0 = vld [vmem:[%s18652_s12 + $0x23e8] ss:$16 sps:$4 sm:$0xff]  }
 0x5b9   : > { %13141 = vmatpush2.bf16.msra.mxu0 %v17862_v63  ;;  %v17924_v63 = vld [vmem:[%s18652_s12 + $0x21cc] ss:$16 sps:$4 sm:$0xff]  }
 0x5ba   : > { %13182 = vmatpush2.bf16.msra.mxu1 %v17865_v4  ;;  %13192 = vmatprep.subr.bf16.mxu0 %v17870_v62  ;;  %v17927_v4 = vld [vmem:[%s18652_s12 + $0x23cc] ss:$16 sps:$4 sm:$0xff]   ;;  %v17922_v62 = vld [vmem:[%s18652_s12 + $0x21c8] ss:$16 sps:$4 sm:$0xff]  }
 0x5bb   : > { %13233 = vmatprep.subr.bf16.mxu1 %v17873_v60  ;;  %v17925_v60 = vld [vmem:[%s18652_s12 + $0x23c8] ss:$16 sps:$4 sm:$0xff]  }
 0x5bc   : > { %v12898_v58 = vpop.f32.mrf.mxu0  ;;  %13143 = vmatmul.mubr.bf16.vlgmr.msra.gmra.mxu0 %v19429_v14 }
 0x5bd   : > { %v12939_v13 = vpop.f32.mrf.mxu1  ;;  %13184 = vmatmul.mubr.bf16.vlgmr.msra.gmra.mxu1 %v19433_v15  ;;  %v12899_v10 = vadd.f32 %v12898_v58, %v20533_v53  ;;  %13193 = vmatpush1.bf16.msra.mxu0 %v17868_v47  ;;  %v17930_v47 = vld [vmem:[%s18652_s12 + $0x21ac] ss:$16 sps:$4 sm:$0xff]  }
 0x5be   : > { %13234 = vmatpush1.bf16.msra.mxu1 %v17871_v3  ;;  %v12900_v5 = vpop.f32.mrf.mxu0  ;;  %13194 = vmatprep.subr.bf16.mxu0 %v17876_v9  ;;  %v17933_v3 = vld [vmem:[%s18652_s12 + $0x23ac] ss:$16 sps:$4 sm:$0xff]   ;;  %v17928_v9 = vld [vmem:[%s18652_s12 + $0x21a8] ss:$16 sps:$4 sm:$0xff]  }
 0x5bf   : > { %v12941_v6 = vpop.f32.mrf.mxu1  ;;  %13235 = vmatprep.subr.bf16.mxu1 %v17879_v48  ;;  %v20607_v18 = vadd.f32 %v12939_v13, %v12899_v10  ;;  %v12901_v14 = vadd.f32 %v12900_v5, %v20538_v19  ;;  %13224 = vmatprep.mubr.bf16.mxu0 %v19439_v27  ;;  %v17888_v27 = vld [vmem:[%s18652_s12 + $0x208c] ss:$16 sps:$4 sm:$0xff]   ;;  %v17886_v19 = vld [vmem:[%s18652_s12 + $0x2088] ss:$16 sps:$4 sm:$0xff]  }
 0x5c0   : > { %13265 = vmatprep.mubr.bf16.mxu1 %v19441_v28  ;;  %v12902_v15 = vpop.f32.mrf.mxu0  ;;  %v17891_v28 = vld [vmem:[%s18652_s12 + $0x228c] ss:$16 sps:$4 sm:$0xff]   ;;  %v17931_v48 = vld [vmem:[%s18652_s12 + $0x23a8] ss:$16 sps:$4 sm:$0xff]  }
 0x5c1   : > { %v12943_v53 = vpop.f32.mrf.mxu1  ;;  %v20612_v7 = vadd.f32 %v12941_v6, %v12901_v14  ;;  %13195 = vmatpush1.bf16.msra.mxu0 %v17874_v52  ;;  %v17936_v58 = vld [vmem:[%s18652_s12 + $0x218c] ss:$16 sps:$4 sm:$0xff]   ;;  %v17934_v10 = vld [vmem:[%s18652_s12 + $0x2188] ss:$16 sps:$4 sm:$0xff]  }
 0x5c2   : > { %13236 = vmatpush1.bf16.msra.mxu1 %v17877_v16  ;;  %v12903_v12 = vpop.f32.mrf.mxu0  ;;  %13196 = vmatprep.subr.bf16.mxu0 %v17882_v31  ;;  %v17939_v13 = vld [vmem:[%s18652_s12 + $0x238c] ss:$16 sps:$4 sm:$0xff]   ;;  %v17937_v52 = vld [vmem:[%s18652_s12 + $0x2388] ss:$16 sps:$4 sm:$0xff]  }
 0x5c3   : > { %v12944_v33 = vpop.f32.mrf.mxu1  ;;  %13237 = vmatprep.subr.bf16.mxu1 %v17885_v17  ;;  %v17942_v16 = vld [vmem:[%s18652_s12 + $0x216c] ss:$16 sps:$4 sm:$0xff]   ;;  %v17940_v6 = vld [vmem:[%s18652_s12 + $0x2168] ss:$16 sps:$4 sm:$0xff]  }
 0x5c4   : > { %v17945_v5 = vld [vmem:[%s18652_s12 + $0x236c] ss:$16 sps:$4 sm:$0xff]   ;;  %v17943_v31 = vld [vmem:[%s18652_s12 + $0x2368] ss:$16 sps:$4 sm:$0xff]  }
 0x5c5   : > { %13197 = vmatpush1.bf16.msra.mxu0 %v17880_v2  ;;  %v17948_v17 = vld [vmem:[%s18652_s12 + $0x214c] ss:$16 sps:$4 sm:$0xff]   ;;  %v17946_v15 = vld [vmem:[%s18652_s12 + $0x2148] ss:$16 sps:$4 sm:$0xff]  }
 0x5c6   : > { %13238 = vmatpush1.bf16.msra.mxu1 %v17883_v40  ;;  %13198 = vmatprep.subr.bf16.mxu0 %v17888_v27  ;;  %v17951_v14 = vld [vmem:[%s18652_s12 + $0x234c] ss:$16 sps:$4 sm:$0xff]   ;;  %v17949_v53 = vld [vmem:[%s18652_s12 + $0x2348] ss:$16 sps:$4 sm:$0xff]  }
 0x5c7   : > { %13239 = vmatprep.subr.bf16.mxu1 %v17891_v28  ;;  %v17954_v2 = vld [vmem:[%s18652_s12 + $0x212c] ss:$16 sps:$4 sm:$0xff]   ;;  %v17952_v12 = vld [vmem:[%s18652_s12 + $0x2128] ss:$16 sps:$4 sm:$0xff]  }
 0x5c8   : > { %v17957_v40 = vld [vmem:[%s18652_s12 + $0x232c] ss:$16 sps:$4 sm:$0xff]   ;;  %v17955_v33 = vld [vmem:[%s18652_s12 + $0x2328] ss:$16 sps:$4 sm:$0xff]  }
 0x5c9   : > { %13199 = vmatpush1.bf16.msra.mxu0 %v17886_v19  ;;  %v17960_v27 = vld [vmem:[%s18652_s12 + $0x210c] ss:$16 sps:$4 sm:$0xff]   ;;  %v17958_v19 = vld [vmem:[%s18652_s12 + $0x2108] ss:$16 sps:$4 sm:$0xff]  }
 0x5ca   : > { %13240 = vmatpush1.bf16.msra.mxu1 %v17889_v34  ;;  %13200 = vmatprep.subr.bf16.mxu0 %v17894_v26  ;;  %v17963_v28 = vld [vmem:[%s18652_s12 + $0x230c] ss:$16 sps:$4 sm:$0xff]   ;;  %v17961_v34 = vld [vmem:[%s18652_s12 + $0x2308] ss:$16 sps:$4 sm:$0xff]  }
 0x5cb   : > { %13241 = vmatprep.subr.bf16.mxu1 %v17897_v54  ;;  %v17966_v26 = vld [vmem:[%s18652_s12 + $0x24ec] ss:$16 sps:$4 sm:$0xff]  }
 0x5cc   : > { %v17969_v54 = vld [vmem:[%s18652_s12 + $0x26ec] ss:$16 sps:$4 sm:$0xff]  }
 0x5cd   : > { %13201 = vmatpush1.bf16.msra.mxu0 %v17892_v35  ;;  %v17964_v35 = vld [vmem:[%s18652_s12 + $0x24e8] ss:$16 sps:$4 sm:$0xff]  }
 0x5ce   : > { %13242 = vmatpush1.bf16.msra.mxu1 %v17895_v36  ;;  %13202 = vmatprep.subr.bf16.mxu0 %v17900_v22  ;;  %v17967_v36 = vld [vmem:[%s18652_s12 + $0x26e8] ss:$16 sps:$4 sm:$0xff]   ;;  %v17972_v22 = vld [vmem:[%s18652_s12 + $0x24cc] ss:$16 sps:$4 sm:$0xff]  }
 0x5cf   : > { %13243 = vmatprep.subr.bf16.mxu1 %v17903_v57  ;;  %v17975_v57 = vld [vmem:[%s18652_s12 + $0x26cc] ss:$16 sps:$4 sm:$0xff]  }
 0x5d1   : > { %13203 = vmatpush1.bf16.msra.mxu0 %v17898_v49 }
 0x5d2   : > { %13244 = vmatpush1.bf16.msra.mxu1 %v17901_v20  ;;  %13204 = vmatprep.subr.bf16.mxu0 %v17906_v23 }
 0x5d3   : > { %13245 = vmatprep.subr.bf16.mxu1 %v17909_v11  ;;  %v17970_v11 = vld [vmem:[%s18652_s12 + $0x24c8] ss:$16 sps:$4 sm:$0xff]  }
 0x5d5   : > { %13205 = vmatpush1.bf16.msra.mxu0 %v17904_v42  ;;  %v17973_v42 = vld [vmem:[%s18652_s12 + $0x26c8] ss:$16 sps:$4 sm:$0xff]  }
 0x5d6   : > { %13246 = vmatpush1.bf16.msra.mxu1 %v17907_v59  ;;  %13206 = vmatprep.subr.bf16.mxu0 %v17912_v37 }
 0x5d7   : > { %13247 = vmatprep.subr.bf16.mxu1 %v17915_v38  ;;  %v17978_v38 = vld [vmem:[%s18652_s12 + $0x24ac] ss:$16 sps:$4 sm:$0xff]  }
 0x5d9   : > { %13207 = vmatpush1.bf16.msra.mxu0 %v17910_v29  ;;  %v17981_v29 = vld [vmem:[%s18652_s12 + $0x26ac] ss:$16 sps:$4 sm:$0xff]  }
 0x5da   : > { %13248 = vmatpush1.bf16.msra.mxu1 %v17913_v30  ;;  %13208 = vmatprep.subr.bf16.mxu0 %v17918_v8 }
 0x5db   : > { %13249 = vmatprep.subr.bf16.mxu1 %v17921_v55  ;;  %v17976_v55 = vld [vmem:[%s18652_s12 + $0x24a8] ss:$16 sps:$4 sm:$0xff]  }
 0x5dd   : > { %13209 = vmatpush2.bf16.msra.mxu0 %v17916_v56  ;;  %v17979_v56 = vld [vmem:[%s18652_s12 + $0x26a8] ss:$16 sps:$4 sm:$0xff]  }
 0x5de   : > { %13250 = vmatpush2.bf16.msra.mxu1 %v17919_v0  ;;  %13210 = vmatprep.subr.bf16.mxu0 %v17924_v63 }
 0x5df   : > { %13251 = vmatprep.subr.bf16.mxu1 %v17927_v4  ;;  %v17985_v4 = vld [vmem:[%s18652_s12 + $0x2688] ss:$16 sps:$4 sm:$0xff]  }
 0x5e1   : > { %13211 = vmatpush2.bf16.msra.mxu0 %v17922_v62  ;;  %v17990_v62 = vld [vmem:[%s18652_s12 + $0x246c] ss:$16 sps:$4 sm:$0xff]  }
 0x5e2   : > { %13252 = vmatpush2.bf16.msra.mxu1 %v17925_v60  ;;  %13212 = vmatprep.subr.bf16.mxu0 %v17930_v47  ;;  %v17993_v60 = vld [vmem:[%s18652_s12 + $0x266c] ss:$16 sps:$4 sm:$0xff]   ;;  %v17988_v47 = vld [vmem:[%s18652_s12 + $0x2468] ss:$16 sps:$4 sm:$0xff]  }
 0x5e3   : > { %13253 = vmatprep.subr.bf16.mxu1 %v17933_v3  ;;  %v17991_v3 = vld [vmem:[%s18652_s12 + $0x2668] ss:$16 sps:$4 sm:$0xff]  }
 0x5e5   : > { %13213 = vmatpush2.bf16.msra.mxu0 %v17928_v9  ;;  %v17996_v9 = vld [vmem:[%s18652_s12 + $0x244c] ss:$16 sps:$4 sm:$0xff]  }
 0x5e6   : > { %13254 = vmatpush2.bf16.msra.mxu1 %v17931_v48  ;;  %13214 = vmatprep.subr.bf16.mxu0 %v17936_v58  ;;  %v17999_v48 = vld [vmem:[%s18652_s12 + $0x264c] ss:$16 sps:$4 sm:$0xff]   ;;  %v17994_v58 = vld [vmem:[%s18652_s12 + $0x2448] ss:$16 sps:$4 sm:$0xff]  }
 0x5e7   : > { %13255 = vmatprep.subr.bf16.mxu1 %v17939_v13  ;;  %v17997_v13 = vld [vmem:[%s18652_s12 + $0x2648] ss:$16 sps:$4 sm:$0xff]  }
 0x5e9   : > { %13215 = vmatpush2.bf16.msra.mxu0 %v17934_v10  ;;  %v18002_v10 = vld [vmem:[%s18652_s12 + $0x242c] ss:$16 sps:$4 sm:$0xff]  }
 0x5ea   : > { %13256 = vmatpush2.bf16.msra.mxu1 %v17937_v52  ;;  %13216 = vmatprep.subr.bf16.mxu0 %v17942_v16  ;;  %v18005_v52 = vld [vmem:[%s18652_s12 + $0x262c] ss:$16 sps:$4 sm:$0xff]   ;;  %v18000_v16 = vld [vmem:[%s18652_s12 + $0x2428] ss:$16 sps:$4 sm:$0xff]  }
 0x5eb   : > { %13257 = vmatprep.subr.bf16.mxu1 %v17945_v5  ;;  %v18003_v5 = vld [vmem:[%s18652_s12 + $0x2628] ss:$16 sps:$4 sm:$0xff]  }
 0x5ed   : > { %13217 = vmatpush2.bf16.msra.mxu0 %v17940_v6  ;;  %v18008_v6 = vld [vmem:[%s18652_s12 + $0x240c] ss:$16 sps:$4 sm:$0xff]  }
 0x5ee   : > { %13258 = vmatpush2.bf16.msra.mxu1 %v17943_v31  ;;  %13218 = vmatprep.subr.bf16.mxu0 %v17948_v17  ;;  %v18011_v31 = vld [vmem:[%s18652_s12 + $0x260c] ss:$16 sps:$4 sm:$0xff]   ;;  %v18006_v17 = vld [vmem:[%s18652_s12 + $0x2408] ss:$16 sps:$4 sm:$0xff]  }
 0x5ef   : > { %13259 = vmatprep.subr.bf16.mxu1 %v17951_v14  ;;  %v18009_v14 = vld [vmem:[%s18652_s12 + $0x2608] ss:$16 sps:$4 sm:$0xff]  }
 0x5f1   : > { %13219 = vmatpush2.bf16.msra.mxu0 %v17946_v15  ;;  %v18014_v15 = vld [vmem:[%s18652_s12 + $0x25ec] ss:$16 sps:$4 sm:$0xff]  }
 0x5f2   : > { %13260 = vmatpush2.bf16.msra.mxu1 %v17949_v53  ;;  %13220 = vmatprep.subr.bf16.mxu0 %v17954_v2  ;;  %v18017_v53 = vld [vmem:[%s18652_s12 + $0x27ec] ss:$16 sps:$4 sm:$0xff]   ;;  %v18012_v2 = vld [vmem:[%s18652_s12 + $0x25e8] ss:$16 sps:$4 sm:$0xff]  }
 0x5f3   : > { %13261 = vmatprep.subr.bf16.mxu1 %v17957_v40  ;;  %v18015_v40 = vld [vmem:[%s18652_s12 + $0x27e8] ss:$16 sps:$4 sm:$0xff]  }
 0x5f5   : > { %13221 = vmatpush2.bf16.msra.mxu0 %v17952_v12  ;;  %v18020_v12 = vld [vmem:[%s18652_s12 + $0x25cc] ss:$16 sps:$4 sm:$0xff]  }
 0x5f6   : > { %13262 = vmatpush2.bf16.msra.mxu1 %v17955_v33  ;;  %13222 = vmatprep.subr.bf16.mxu0 %v17960_v27  ;;  %v18023_v33 = vld [vmem:[%s18652_s12 + $0x27cc] ss:$16 sps:$4 sm:$0xff]   ;;  %v18018_v27 = vld [vmem:[%s18652_s12 + $0x25c8] ss:$16 sps:$4 sm:$0xff]  }
 0x5f7   : > { %13263 = vmatprep.subr.bf16.mxu1 %v17963_v28  ;;  %v18021_v28 = vld [vmem:[%s18652_s12 + $0x27c8] ss:$16 sps:$4 sm:$0xff]  }
 0x5f9   : > { %13223 = vmatpush2.bf16.msra.mxu0 %v17958_v19  ;;  %v18026_v19 = vld [vmem:[%s18652_s12 + $0x25ac] ss:$16 sps:$4 sm:$0xff]  }
 0x5fa   : > { %13264 = vmatpush2.bf16.msra.mxu1 %v17961_v34  ;;  %13274 = vmatprep.subr.bf16.mxu0 %v17966_v26  ;;  %v18029_v34 = vld [vmem:[%s18652_s12 + $0x27ac] ss:$16 sps:$4 sm:$0xff]   ;;  %v18024_v26 = vld [vmem:[%s18652_s12 + $0x25a8] ss:$16 sps:$4 sm:$0xff]  }
 0x5fb   : > { %13315 = vmatprep.subr.bf16.mxu1 %v17969_v54  ;;  %v18027_v54 = vld [vmem:[%s18652_s12 + $0x27a8] ss:$16 sps:$4 sm:$0xff]  }
 0x5fc   : > { %v12980_v49 = vpop.f32.mrf.mxu0  ;;  %13225 = vmatmul.mubr.bf16.vlgmr.msra.gmra.mxu0 %v19526_v32 }
 0x5fd   : > { %v13021_v20 = vpop.f32.mrf.mxu1  ;;  %13266 = vmatmul.mubr.bf16.vlgmr.msra.gmra.mxu1 %v19530_v41  ;;  %v12981_v23 = vadd.f32 %v12980_v49, %v20607_v18  ;;  %13275 = vmatpush1.bf16.msra.mxu0 %v17964_v35  ;;  %v18032_v35 = vld [vmem:[%s18652_s12 + $0x258c] ss:$16 sps:$4 sm:$0xff]  }
 0x5fe   : > { %13316 = vmatpush1.bf16.msra.mxu1 %v17967_v36  ;;  %v12982_v59 = vpop.f32.mrf.mxu0  ;;  %13276 = vmatprep.subr.bf16.mxu0 %v17972_v22  ;;  %v18035_v36 = vld [vmem:[%s18652_s12 + $0x278c] ss:$16 sps:$4 sm:$0xff]   ;;  %v18030_v22 = vld [vmem:[%s18652_s12 + $0x2588] ss:$16 sps:$4 sm:$0xff]  }
 0x5ff   : > { %v13023_v37 = vpop.f32.mrf.mxu1  ;;  %13317 = vmatprep.subr.bf16.mxu1 %v17975_v57  ;;  %v20681_v30 = vadd.f32 %v13021_v20, %v12981_v23  ;;  %v12983_v32 = vadd.f32 %v12982_v59, %v20612_v7  ;;  %13306 = vmatprep.mubr.bf16.mxu0 %v19536_v51  ;;  %v17984_v51 = vld [vmem:[%s18652_s12 + $0x248c] ss:$16 sps:$4 sm:$0xff]   ;;  %v17982_v7 = vld [vmem:[%s18652_s12 + $0x2488] ss:$16 sps:$4 sm:$0xff]  }
 0x600   : > { %13347 = vmatprep.mubr.bf16.mxu1 %v19538_v61  ;;  %v12984_v41 = vpop.f32.mrf.mxu0  ;;  %v17987_v61 = vld [vmem:[%s18652_s12 + $0x268c] ss:$16 sps:$4 sm:$0xff]   ;;  %v18033_v57 = vld [vmem:[%s18652_s12 + $0x2788] ss:$16 sps:$4 sm:$0xff]  }
 0x601   : > { %v13025_v18 = vpop.f32.mrf.mxu1  ;;  %v20686_v8 = vadd.f32 %v13023_v37, %v12983_v32  ;;  %13277 = vmatpush1.bf16.msra.mxu0 %v17970_v11  ;;  %v18038_v49 = vld [vmem:[%s18652_s12 + $0x256c] ss:$16 sps:$4 sm:$0xff]   ;;  %v18036_v23 = vld [vmem:[%s18652_s12 + $0x2568] ss:$16 sps:$4 sm:$0xff]  }
 0x602   : > { %13318 = vmatpush1.bf16.msra.mxu1 %v17973_v42  ;;  %v12985_v0 = vpop.f32.mrf.mxu0  ;;  %13278 = vmatprep.subr.bf16.mxu0 %v17978_v38  ;;  %v18041_v20 = vld [vmem:[%s18652_s12 + $0x276c] ss:$16 sps:$4 sm:$0xff]   ;;  %v18039_v11 = vld [vmem:[%s18652_s12 + $0x2768] ss:$16 sps:$4 sm:$0xff]  }
 0x603   : > { %v13026_v63 = vpop.f32.mrf.mxu1  ;;  %13319 = vmatprep.subr.bf16.mxu1 %v17981_v29  ;;  %v18044_v42 = vld [vmem:[%s18652_s12 + $0x254c] ss:$16 sps:$4 sm:$0xff]   ;;  %v18042_v37 = vld [vmem:[%s18652_s12 + $0x2548] ss:$16 sps:$4 sm:$0xff]  }
 0x604   : > { %v18047_v59 = vld [vmem:[%s18652_s12 + $0x274c] ss:$16 sps:$4 sm:$0xff]   ;;  %v18045_v38 = vld [vmem:[%s18652_s12 + $0x2748] ss:$16 sps:$4 sm:$0xff]  }
 0x605   : > { %13279 = vmatpush1.bf16.msra.mxu0 %v17976_v55  ;;  %v18050_v29 = vld [vmem:[%s18652_s12 + $0x252c] ss:$16 sps:$4 sm:$0xff]   ;;  %v18048_v41 = vld [vmem:[%s18652_s12 + $0x2528] ss:$16 sps:$4 sm:$0xff]  }
 0x606   : > { %13320 = vmatpush1.bf16.msra.mxu1 %v17979_v56  ;;  %13280 = vmatprep.subr.bf16.mxu0 %v17984_v51  ;;  %v18053_v32 = vld [vmem:[%s18652_s12 + $0x272c] ss:$16 sps:$4 sm:$0xff]   ;;  %v18051_v18 = vld [vmem:[%s18652_s12 + $0x2728] ss:$16 sps:$4 sm:$0xff]  }
 0x607   : > { %13321 = vmatprep.subr.bf16.mxu1 %v17987_v61  ;;  %v18056_v55 = vld [vmem:[%s18652_s12 + $0x250c] ss:$16 sps:$4 sm:$0xff]   ;;  %v18054_v0 = vld [vmem:[%s18652_s12 + $0x2508] ss:$16 sps:$4 sm:$0xff]  }
 0x608   : > { %v18059_v56 = vld [vmem:[%s18652_s12 + $0x270c] ss:$16 sps:$4 sm:$0xff]   ;;  %v18057_v63 = vld [vmem:[%s18652_s12 + $0x2708] ss:$16 sps:$4 sm:$0xff]  }
 0x609   : > { %13281 = vmatpush1.bf16.msra.mxu0 %v17982_v7  ;;  %v18062_v51 = vld [vmem:[%s18652_s12 + $0x28ec] ss:$16 sps:$4 sm:$0xff]   ;;  %v18060_v7 = vld [vmem:[%s18652_s12 + $0x28e8] ss:$16 sps:$4 sm:$0xff]  }
 0x60a   : > { %13322 = vmatpush1.bf16.msra.mxu1 %v17985_v4  ;;  %13282 = vmatprep.subr.bf16.mxu0 %v17990_v62  ;;  %v18065_v61 = vld [vmem:[%s18652_s12 + $0x2aec] ss:$16 sps:$4 sm:$0xff]   ;;  %v18063_v4 = vld [vmem:[%s18652_s12 + $0x2ae8] ss:$16 sps:$4 sm:$0xff]  }
 0x60b   : > { %13323 = vmatprep.subr.bf16.mxu1 %v17993_v60  ;;  %v18068_v62 = vld [vmem:[%s18652_s12 + $0x28cc] ss:$16 sps:$4 sm:$0xff]  }
 0x60c   : > { %v18071_v60 = vld [vmem:[%s18652_s12 + $0x2acc] ss:$16 sps:$4 sm:$0xff]  }
 0x60d   : > { %13283 = vmatpush1.bf16.msra.mxu0 %v17988_v47 }
 0x60e   : > { %13324 = vmatpush1.bf16.msra.mxu1 %v17991_v3  ;;  %13284 = vmatprep.subr.bf16.mxu0 %v17996_v9  ;;  %v21123_v9 = vld [vmem:[#allocation7_spill] sm:$0xff] }
 0x60f   : > { %13325 = vmatprep.subr.bf16.mxu1 %v17999_v48 }
 0x611   : > { %13285 = vmatpush1.bf16.msra.mxu0 %v17994_v58  ;;  %v18066_v58 = vld [vmem:[%s18652_s12 + $0x28c8] ss:$16 sps:$4 sm:$0xff]  }
 0x612   : > { %13326 = vmatpush1.bf16.msra.mxu1 %v17997_v13  ;;  %13286 = vmatprep.subr.bf16.mxu0 %v18002_v10  ;;  %v18069_v13 = vld [vmem:[%s18652_s12 + $0x2ac8] ss:$16 sps:$4 sm:$0xff]  }
 0x613   : > { %13327 = vmatprep.subr.bf16.mxu1 %v18005_v52 }
 0x615   : > { %13287 = vmatpush1.bf16.msra.mxu0 %v18000_v16  ;;  %v18074_v16 = vld [vmem:[%s18652_s12 + $0x28ac] ss:$16 sps:$4 sm:$0xff]  }
 0x616   : > { %13328 = vmatpush1.bf16.msra.mxu1 %v18003_v5  ;;  %13288 = vmatprep.subr.bf16.mxu0 %v18008_v6  ;;  %v18077_v5 = vld [vmem:[%s18652_s12 + $0x2aac] ss:$16 sps:$4 sm:$0xff]  }
 0x617   : > { %13329 = vmatprep.subr.bf16.mxu1 %v18011_v31  ;;  %v21124_v31 = vld [vmem:[#allocation8_spill] sm:$0xff] }
 0x619   : > { %13289 = vmatpush1.bf16.msra.mxu0 %v18006_v17 }
 0x61a   : > { %13330 = vmatpush1.bf16.msra.mxu1 %v18009_v14  ;;  %13290 = vmatprep.subr.bf16.mxu0 %v18014_v15 }
 0x61b   : > { %13331 = vmatprep.subr.bf16.mxu1 %v18017_v53  ;;  %v18072_v53 = vld [vmem:[%s18652_s12 + $0x28a8] ss:$16 sps:$4 sm:$0xff]  }
 0x61d   : > { %13291 = vmatpush2.bf16.msra.mxu0 %v18012_v2  ;;  %v18075_v2 = vld [vmem:[%s18652_s12 + $0x2aa8] ss:$16 sps:$4 sm:$0xff]  }
 0x61e   : > { %13332 = vmatpush2.bf16.msra.mxu1 %v18015_v40  ;;  %13292 = vmatprep.subr.bf16.mxu0 %v18020_v12 }
 0x61f   : > { %13333 = vmatprep.subr.bf16.mxu1 %v18023_v33  ;;  %v18083_v33 = vld [vmem:[%s18652_s12 + $0x2a8c] ss:$16 sps:$4 sm:$0xff]  }
 0x621   : > { %13293 = vmatpush2.bf16.msra.mxu0 %v18018_v27  ;;  %v18078_v27 = vld [vmem:[%s18652_s12 + $0x2888] ss:$16 sps:$4 sm:$0xff]  }
 0x622   : > { %13334 = vmatpush2.bf16.msra.mxu1 %v18021_v28  ;;  %13294 = vmatprep.subr.bf16.mxu0 %v18026_v19  ;;  %v18081_v28 = vld [vmem:[%s18652_s12 + $0x2a88] ss:$16 sps:$4 sm:$0xff]   ;;  %v18086_v19 = vld [vmem:[%s18652_s12 + $0x286c] ss:$16 sps:$4 sm:$0xff]  }
 0x623   : > { %13335 = vmatprep.subr.bf16.mxu1 %v18029_v34  ;;  %v18089_v34 = vld [vmem:[%s18652_s12 + $0x2a6c] ss:$16 sps:$4 sm:$0xff]  }
 0x625   : > { %13295 = vmatpush2.bf16.msra.mxu0 %v18024_v26  ;;  %v18084_v26 = vld [vmem:[%s18652_s12 + $0x2868] ss:$16 sps:$4 sm:$0xff]  }
 0x626   : > { %13336 = vmatpush2.bf16.msra.mxu1 %v18027_v54  ;;  %13296 = vmatprep.subr.bf16.mxu0 %v18032_v35  ;;  %v18087_v54 = vld [vmem:[%s18652_s12 + $0x2a68] ss:$16 sps:$4 sm:$0xff]   ;;  %v18092_v35 = vld [vmem:[%s18652_s12 + $0x284c] ss:$16 sps:$4 sm:$0xff]  }
 0x627   : > { %13337 = vmatprep.subr.bf16.mxu1 %v18035_v36  ;;  %v18095_v36 = vld [vmem:[%s18652_s12 + $0x2a4c] ss:$16 sps:$4 sm:$0xff]  }
 0x629   : > { %13297 = vmatpush2.bf16.msra.mxu0 %v18030_v22  ;;  %v18090_v22 = vld [vmem:[%s18652_s12 + $0x2848] ss:$16 sps:$4 sm:$0xff]  }
 0x62a   : > { %13338 = vmatpush2.bf16.msra.mxu1 %v18033_v57  ;;  %13298 = vmatprep.subr.bf16.mxu0 %v18038_v49  ;;  %v18093_v57 = vld [vmem:[%s18652_s12 + $0x2a48] ss:$16 sps:$4 sm:$0xff]   ;;  %v18098_v49 = vld [vmem:[%s18652_s12 + $0x282c] ss:$16 sps:$4 sm:$0xff]  }
 0x62b   : > { %13339 = vmatprep.subr.bf16.mxu1 %v18041_v20  ;;  %v18101_v20 = vld [vmem:[%s18652_s12 + $0x2a2c] ss:$16 sps:$4 sm:$0xff]  }
 0x62d   : > { %13299 = vmatpush2.bf16.msra.mxu0 %v18036_v23  ;;  %v18096_v23 = vld [vmem:[%s18652_s12 + $0x2828] ss:$16 sps:$4 sm:$0xff]  }
 0x62e   : > { %13340 = vmatpush2.bf16.msra.mxu1 %v18039_v11  ;;  %13300 = vmatprep.subr.bf16.mxu0 %v18044_v42  ;;  %v18099_v11 = vld [vmem:[%s18652_s12 + $0x2a28] ss:$16 sps:$4 sm:$0xff]   ;;  %v18104_v42 = vld [vmem:[%s18652_s12 + $0x280c] ss:$16 sps:$4 sm:$0xff]  }
 0x62f   : > { %13341 = vmatprep.subr.bf16.mxu1 %v18047_v59  ;;  %v18107_v59 = vld [vmem:[%s18652_s12 + $0x2a0c] ss:$16 sps:$4 sm:$0xff]  }
 0x631   : > { %13301 = vmatpush2.bf16.msra.mxu0 %v18042_v37  ;;  %v18102_v37 = vld [vmem:[%s18652_s12 + $0x2808] ss:$16 sps:$4 sm:$0xff]  }
 0x632   : > { %13342 = vmatpush2.bf16.msra.mxu1 %v18045_v38  ;;  %13302 = vmatprep.subr.bf16.mxu0 %v18050_v29  ;;  %v18105_v38 = vld [vmem:[%s18652_s12 + $0x2a08] ss:$16 sps:$4 sm:$0xff]   ;;  %v18110_v29 = vld [vmem:[%s18652_s12 + $0x29ec] ss:$16 sps:$4 sm:$0xff]  }
 0x633   : > { %13343 = vmatprep.subr.bf16.mxu1 %v18053_v32  ;;  %v18113_v32 = vld [vmem:[%s18652_s12 + $0x2bec] ss:$16 sps:$4 sm:$0xff]  }
 0x635   : > { %13303 = vmatpush2.bf16.msra.mxu0 %v18048_v41  ;;  %v18108_v41 = vld [vmem:[%s18652_s12 + $0x29e8] ss:$16 sps:$4 sm:$0xff]  }
 0x636   : > { %13344 = vmatpush2.bf16.msra.mxu1 %v18051_v18  ;;  %13304 = vmatprep.subr.bf16.mxu0 %v18056_v55  ;;  %v18111_v18 = vld [vmem:[%s18652_s12 + $0x2be8] ss:$16 sps:$4 sm:$0xff]   ;;  %v18116_v55 = vld [vmem:[%s18652_s12 + $0x29cc] ss:$16 sps:$4 sm:$0xff]  }
 0x637   : > { %13345 = vmatprep.subr.bf16.mxu1 %v18059_v56  ;;  %v18119_v56 = vld [vmem:[%s18652_s12 + $0x2bcc] ss:$16 sps:$4 sm:$0xff]  }
 0x639   : > { %13305 = vmatpush2.bf16.msra.mxu0 %v18054_v0  ;;  %v18114_v0 = vld [vmem:[%s18652_s12 + $0x29c8] ss:$16 sps:$4 sm:$0xff]  }
 0x63a   : > { %13346 = vmatpush2.bf16.msra.mxu1 %v18057_v63  ;;  %13356 = vmatprep.subr.bf16.mxu0 %v18062_v51  ;;  %v18117_v63 = vld [vmem:[%s18652_s12 + $0x2bc8] ss:$16 sps:$4 sm:$0xff]   ;;  %v18122_v51 = vld [vmem:[%s18652_s12 + $0x29ac] ss:$16 sps:$4 sm:$0xff]  }
 0x63b   : > { %13397 = vmatprep.subr.bf16.mxu1 %v18065_v61  ;;  %v18125_v61 = vld [vmem:[%s18652_s12 + $0x2bac] ss:$16 sps:$4 sm:$0xff]  }
 0x63c   : > { %v13062_v47 = vpop.f32.mrf.mxu0  ;;  %13307 = vmatmul.mubr.bf16.vlgmr.msra.gmra.mxu0 %v19623_v43 }
 0x63d   : > { %v13103_v3 = vpop.f32.mrf.mxu1  ;;  %13348 = vmatmul.mubr.bf16.vlgmr.msra.gmra.mxu1 %v21123_v9  ;;  %v13063_v48 = vadd.f32 %v13062_v47, %v20681_v30  ;;  %13357 = vmatpush1.bf16.msra.mxu0 %v18060_v7  ;;  %v21125_v30 = vld [vmem:[#allocation9_spill] sm:$0xff]  ;;  %v18120_v7 = vld [vmem:[%s18652_s12 + $0x29a8] ss:$16 sps:$4 sm:$0xff]   ;;  %v18134_v9 = vld [vmem:[%s18652_s12 + $0x296c] ss:$16 sps:$4 sm:$0xff]  }
 0x63e   : > { %13398 = vmatpush1.bf16.msra.mxu1 %v18063_v4  ;;  %v13064_v10 = vpop.f32.mrf.mxu0  ;;  %13358 = vmatprep.subr.bf16.mxu0 %v18068_v62  ;;  %v18123_v4 = vld [vmem:[%s18652_s12 + $0x2ba8] ss:$16 sps:$4 sm:$0xff]   ;;  %v18128_v62 = vld [vmem:[%s18652_s12 + $0x298c] ss:$16 sps:$4 sm:$0xff]  }
 0x63f   : > { %v13105_v52 = vpop.f32.mrf.mxu1  ;;  %13399 = vmatprep.subr.bf16.mxu1 %v18071_v60  ;;  %v20755_v6 = vadd.f32 %v13103_v3, %v13063_v48  ;;  %v13065_v43 = vadd.f32 %v13064_v10, %v20686_v8  ;;  %13388 = vmatprep.mubr.bf16.mxu0 %v21124_v31  ;;  %v18080_v8 = vld [vmem:[%s18652_s12 + $0x288c] ss:$16 sps:$4 sm:$0xff]   ;;  %v18126_v47 = vld [vmem:[%s18652_s12 + $0x2988] ss:$16 sps:$4 sm:$0xff]  }
 0x640   : > { %13429 = vmatprep.mubr.bf16.mxu1 %v21125_v30  ;;  %v13066_v17 = vpop.f32.mrf.mxu0  ;;  %v18131_v60 = vld [vmem:[%s18652_s12 + $0x2b8c] ss:$16 sps:$4 sm:$0xff]   ;;  %v18129_v3 = vld [vmem:[%s18652_s12 + $0x2b88] ss:$16 sps:$4 sm:$0xff]  }
 0x641   : > { %v13107_v14 = vpop.f32.mrf.mxu1  ;;  %v20760_v15 = vadd.f32 %v13105_v52, %v13065_v43  ;;  %13359 = vmatpush1.bf16.msra.mxu0 %v18066_v58  ;;  %v18137_v48 = vld [vmem:[%s18652_s12 + $0x2b6c] ss:$16 sps:$4 sm:$0xff]   ;;  %v18132_v58 = vld [vmem:[%s18652_s12 + $0x2968] ss:$16 sps:$4 sm:$0xff]  }
 0x642   : > { %13400 = vmatpush1.bf16.msra.mxu1 %v18069_v13  ;;  %v13067_v40 = vpop.f32.mrf.mxu0  ;;  %13360 = vmatprep.subr.bf16.mxu0 %v18074_v16  ;;  %v18135_v13 = vld [vmem:[%s18652_s12 + $0x2b68] ss:$16 sps:$4 sm:$0xff]   ;;  %v18140_v10 = vld [vmem:[%s18652_s12 + $0x294c] ss:$16 sps:$4 sm:$0xff]  }
 0x643   : > { %v13108_v12 = vpop.f32.mrf.mxu1  ;;  %13401 = vmatprep.subr.bf16.mxu1 %v18077_v5  ;;  %v18143_v52 = vld [vmem:[%s18652_s12 + $0x2b4c] ss:$16 sps:$4 sm:$0xff]   ;;  %v18138_v16 = vld [vmem:[%s18652_s12 + $0x2948] ss:$16 sps:$4 sm:$0xff]  }
 0x644   : > { %v18141_v5 = vld [vmem:[%s18652_s12 + $0x2b48] ss:$16 sps:$4 sm:$0xff]   ;;  %v18146_v43 = vld [vmem:[%s18652_s12 + $0x292c] ss:$16 sps:$4 sm:$0xff]  }
 0x645   : > { %13361 = vmatpush1.bf16.msra.mxu0 %v18072_v53  ;;  %v18149_v31 = vld [vmem:[%s18652_s12 + $0x2b2c] ss:$16 sps:$4 sm:$0xff]   ;;  %v18144_v30 = vld [vmem:[%s18652_s12 + $0x2928] ss:$16 sps:$4 sm:$0xff]  }
 0x646   : > { %13402 = vmatpush1.bf16.msra.mxu1 %v18075_v2  ;;  %13362 = vmatprep.subr.bf16.mxu0 %v18080_v8  ;;  %v18147_v17 = vld [vmem:[%s18652_s12 + $0x2b28] ss:$16 sps:$4 sm:$0xff]   ;;  %v18152_v14 = vld [vmem:[%s18652_s12 + $0x290c] ss:$16 sps:$4 sm:$0xff]  }
 0x647   : > { %13403 = vmatprep.subr.bf16.mxu1 %v18083_v33  ;;  %v18155_v53 = vld [vmem:[%s18652_s12 + $0x2b0c] ss:$16 sps:$4 sm:$0xff]   ;;  %v18150_v2 = vld [vmem:[%s18652_s12 + $0x2908] ss:$16 sps:$4 sm:$0xff]  }
 0x648   : > { %v18153_v40 = vld [vmem:[%s18652_s12 + $0x2b08] ss:$16 sps:$4 sm:$0xff]   ;;  %v18158_v12 = vld [vmem:[%s18652_s12 + $0x2cec] ss:$16 sps:$4 sm:$0xff]  }
 0x649   : > { %13363 = vmatpush1.bf16.msra.mxu0 %v18078_v27  ;;  %v18161_v8 = vld [vmem:[%s18652_s12 + $0x2eec] ss:$16 sps:$4 sm:$0xff]   ;;  %v18156_v33 = vld [vmem:[%s18652_s12 + $0x2ce8] ss:$16 sps:$4 sm:$0xff]  }
 0x64a   : > { %13404 = vmatpush1.bf16.msra.mxu1 %v18081_v28  ;;  %13364 = vmatprep.subr.bf16.mxu0 %v18086_v19  ;;  %v18159_v27 = vld [vmem:[%s18652_s12 + $0x2ee8] ss:$16 sps:$4 sm:$0xff]   ;;  %v18164_v28 = vld [vmem:[%s18652_s12 + $0x2ccc] ss:$16 sps:$4 sm:$0xff]  }
 0x64b   : > { %13405 = vmatprep.subr.bf16.mxu1 %v18089_v34  ;;  %v18167_v19 = vld [vmem:[%s18652_s12 + $0x2ecc] ss:$16 sps:$4 sm:$0xff]  }
 0x64d   : > { %13365 = vmatpush1.bf16.msra.mxu0 %v18084_v26 }
 0x64e   : > { %13406 = vmatpush1.bf16.msra.mxu1 %v18087_v54  ;;  %13366 = vmatprep.subr.bf16.mxu0 %v18092_v35  ;;  %v21126_v54 = vld [vmem:[#allocation10_spill] sm:$0xff]  ;;  %v21127_v35 = vld [vmem:[#allocation11_spill] sm:$0xff] }
 0x64f   : > { %13407 = vmatprep.subr.bf16.mxu1 %v18095_v36 }
 0x651   : > { %13367 = vmatpush1.bf16.msra.mxu0 %v18090_v22  ;;  %v18162_v22 = vld [vmem:[%s18652_s12 + $0x2cc8] ss:$16 sps:$4 sm:$0xff]  }
 0x652   : > { %13408 = vmatpush1.bf16.msra.mxu1 %v18093_v57  ;;  %13368 = vmatprep.subr.bf16.mxu0 %v18098_v49  ;;  %v18165_v57 = vld [vmem:[%s18652_s12 + $0x2ec8] ss:$16 sps:$4 sm:$0xff]  }
 0x653   : > { %13409 = vmatprep.subr.bf16.mxu1 %v18101_v20 }
 0x655   : > { %13369 = vmatpush1.bf16.msra.mxu0 %v18096_v23  ;;  %v18170_v23 = vld [vmem:[%s18652_s12 + $0x2cac] ss:$16 sps:$4 sm:$0xff]  }
 0x656   : > { %13410 = vmatpush1.bf16.msra.mxu1 %v18099_v11  ;;  %13370 = vmatprep.subr.bf16.mxu0 %v18104_v42  ;;  %v18173_v11 = vld [vmem:[%s18652_s12 + $0x2eac] ss:$16 sps:$4 sm:$0xff]  }
 0x657   : > { %13411 = vmatprep.subr.bf16.mxu1 %v18107_v59 }
 0x659   : > { %13371 = vmatpush1.bf16.msra.mxu0 %v18102_v37  ;;  %v21128_v37 = vld [vmem:[#allocation12_spill] sm:$0xff] }
 0x65a   : > { %13412 = vmatpush1.bf16.msra.mxu1 %v18105_v38  ;;  %13372 = vmatprep.subr.bf16.mxu0 %v18110_v29 }
 0x65b   : > { %13413 = vmatprep.subr.bf16.mxu1 %v18113_v32 }
 0x65d   : > { %13373 = vmatpush2.bf16.msra.mxu0 %v18108_v41  ;;  %v18168_v41 = vld [vmem:[%s18652_s12 + $0x2ca8] ss:$16 sps:$4 sm:$0xff]  }
 0x65e   : > { %13414 = vmatpush2.bf16.msra.mxu1 %v18111_v18  ;;  %13374 = vmatprep.subr.bf16.mxu0 %v18116_v55  ;;  %v18171_v18 = vld [vmem:[%s18652_s12 + $0x2ea8] ss:$16 sps:$4 sm:$0xff]  }
 0x65f   : > { %13415 = vmatprep.subr.bf16.mxu1 %v18119_v56 }
 0x661   : > { %13375 = vmatpush2.bf16.msra.mxu0 %v18114_v0  ;;  %v18179_v0 = vld [vmem:[%s18652_s12 + $0x2e8c] ss:$16 sps:$4 sm:$0xff]  }
 0x662   : > { %13416 = vmatpush2.bf16.msra.mxu1 %v18117_v63  ;;  %13376 = vmatprep.subr.bf16.mxu0 %v18122_v51  ;;  %v18174_v63 = vld [vmem:[%s18652_s12 + $0x2c88] ss:$16 sps:$4 sm:$0xff]  }
 0x663   : > { %13417 = vmatprep.subr.bf16.mxu1 %v18125_v61  ;;  %v18177_v51 = vld [vmem:[%s18652_s12 + $0x2e88] ss:$16 sps:$4 sm:$0xff]   ;;  %v18182_v61 = vld [vmem:[%s18652_s12 + $0x2c6c] ss:$16 sps:$4 sm:$0xff]  }
 0x665   : > { %13377 = vmatpush2.bf16.msra.mxu0 %v18120_v7  ;;  %v18185_v7 = vld [vmem:[%s18652_s12 + $0x2e6c] ss:$16 sps:$4 sm:$0xff]  }
 0x666   : > { %13418 = vmatpush2.bf16.msra.mxu1 %v18123_v4  ;;  %13378 = vmatprep.subr.bf16.mxu0 %v18128_v62  ;;  %v18180_v4 = vld [vmem:[%s18652_s12 + $0x2c68] ss:$16 sps:$4 sm:$0xff]  }
 0x667   : > { %13419 = vmatprep.subr.bf16.mxu1 %v18131_v60  ;;  %v18183_v62 = vld [vmem:[%s18652_s12 + $0x2e68] ss:$16 sps:$4 sm:$0xff]   ;;  %v18188_v60 = vld [vmem:[%s18652_s12 + $0x2c4c] ss:$16 sps:$4 sm:$0xff]  }
 0x669   : > { %13379 = vmatpush2.bf16.msra.mxu0 %v18126_v47  ;;  %v18191_v47 = vld [vmem:[%s18652_s12 + $0x2e4c] ss:$16 sps:$4 sm:$0xff]  }
 0x66a   : > { %13420 = vmatpush2.bf16.msra.mxu1 %v18129_v3  ;;  %13380 = vmatprep.subr.bf16.mxu0 %v18134_v9  ;;  %v18186_v3 = vld [vmem:[%s18652_s12 + $0x2c48] ss:$16 sps:$4 sm:$0xff]  }
 0x66b   : > { %13421 = vmatprep.subr.bf16.mxu1 %v18137_v48  ;;  %v18189_v9 = vld [vmem:[%s18652_s12 + $0x2e48] ss:$16 sps:$4 sm:$0xff]   ;;  %v18194_v48 = vld [vmem:[%s18652_s12 + $0x2c2c] ss:$16 sps:$4 sm:$0xff]  }
 0x66d   : > { %13381 = vmatpush2.bf16.msra.mxu0 %v18132_v58  ;;  %v18197_v58 = vld [vmem:[%s18652_s12 + $0x2e2c] ss:$16 sps:$4 sm:$0xff]  }
 0x66e   : > { %13422 = vmatpush2.bf16.msra.mxu1 %v18135_v13  ;;  %13382 = vmatprep.subr.bf16.mxu0 %v18140_v10  ;;  %v18192_v13 = vld [vmem:[%s18652_s12 + $0x2c28] ss:$16 sps:$4 sm:$0xff]  }
 0x66f   : > { %13423 = vmatprep.subr.bf16.mxu1 %v18143_v52  ;;  %v18195_v10 = vld [vmem:[%s18652_s12 + $0x2e28] ss:$16 sps:$4 sm:$0xff]   ;;  %v18200_v52 = vld [vmem:[%s18652_s12 + $0x2c0c] ss:$16 sps:$4 sm:$0xff]  }
 0x671   : > { %13383 = vmatpush2.bf16.msra.mxu0 %v18138_v16  ;;  %v18203_v16 = vld [vmem:[%s18652_s12 + $0x2e0c] ss:$16 sps:$4 sm:$0xff]  }
 0x672   : > { %13424 = vmatpush2.bf16.msra.mxu1 %v18141_v5  ;;  %13384 = vmatprep.subr.bf16.mxu0 %v18146_v43  ;;  %v18198_v5 = vld [vmem:[%s18652_s12 + $0x2c08] ss:$16 sps:$4 sm:$0xff]  }
 0x673   : > { %13425 = vmatprep.subr.bf16.mxu1 %v18149_v31  ;;  %v18201_v43 = vld [vmem:[%s18652_s12 + $0x2e08] ss:$16 sps:$4 sm:$0xff]   ;;  %v18206_v31 = vld [vmem:[%s18652_s12 + $0x2dec] ss:$16 sps:$4 sm:$0xff]  }
 0x675   : > { %13385 = vmatpush2.bf16.msra.mxu0 %v18144_v30  ;;  %v18209_v30 = vld [vmem:[%s18652_s12 + $0x2fec] ss:$16 sps:$4 sm:$0xff]  }
 0x676   : > { %13426 = vmatpush2.bf16.msra.mxu1 %v18147_v17  ;;  %13386 = vmatprep.subr.bf16.mxu0 %v18152_v14  ;;  %v18204_v17 = vld [vmem:[%s18652_s12 + $0x2de8] ss:$16 sps:$4 sm:$0xff]  }
 0x677   : > { %13427 = vmatprep.subr.bf16.mxu1 %v18155_v53  ;;  %v18207_v14 = vld [vmem:[%s18652_s12 + $0x2fe8] ss:$16 sps:$4 sm:$0xff]   ;;  %v18212_v53 = vld [vmem:[%s18652_s12 + $0x2dcc] ss:$16 sps:$4 sm:$0xff]  }
 0x679   : > { %13387 = vmatpush2.bf16.msra.mxu0 %v18150_v2  ;;  %v18215_v2 = vld [vmem:[%s18652_s12 + $0x2fcc] ss:$16 sps:$4 sm:$0xff]  }
 0x67a   : > { %13428 = vmatpush2.bf16.msra.mxu1 %v18153_v40  ;;  %13438 = vmatprep.subr.bf16.mxu0 %v18158_v12  ;;  %v18210_v40 = vld [vmem:[%s18652_s12 + $0x2dc8] ss:$16 sps:$4 sm:$0xff]  }
 0x67b   : > { %13479 = vmatprep.subr.bf16.mxu1 %v18161_v8  ;;  %v18213_v12 = vld [vmem:[%s18652_s12 + $0x2fc8] ss:$16 sps:$4 sm:$0xff]   ;;  %v18218_v8 = vld [vmem:[%s18652_s12 + $0x2dac] ss:$16 sps:$4 sm:$0xff]  }
 0x67c   : > { %v13144_v34 = vpop.f32.mrf.mxu0  ;;  %13389 = vmatmul.mubr.bf16.vlgmr.msra.gmra.mxu0 %v21126_v54  ;;  %v18225_v54 = vld [vmem:[%s18652_s12 + $0x2f88] ss:$16 sps:$4 sm:$0xff]  }
 0x67d   : > { %v13185_v26 = vpop.f32.mrf.mxu1  ;;  %13430 = vmatmul.mubr.bf16.vlgmr.msra.gmra.mxu1 %v21127_v35  ;;  %v13145_v36 = vadd.f32 %v13144_v34, %v20755_v6  ;;  %13439 = vmatpush1.bf16.msra.mxu0 %v18156_v33  ;;  %v21129_v6 = vld [vmem:[#allocation13_spill] sm:$0xff]  ;;  %v18221_v33 = vld [vmem:[%s18652_s12 + $0x2fac] ss:$16 sps:$4 sm:$0xff]  }
 0x67e   : > { %13480 = vmatpush1.bf16.msra.mxu1 %v18159_v27  ;;  %v13146_v49 = vpop.f32.mrf.mxu0  ;;  %13440 = vmatprep.subr.bf16.mxu0 %v18164_v28  ;;  %v18216_v27 = vld [vmem:[%s18652_s12 + $0x2da8] ss:$16 sps:$4 sm:$0xff]   ;;  %v18227_v34 = vld [vmem:[%s18652_s12 + $0x2f8c] ss:$16 sps:$4 sm:$0xff]  }
 0x67f   : > { %v13187_v20 = vpop.f32.mrf.mxu1  ;;  %13481 = vmatprep.subr.bf16.mxu1 %v18167_v19  ;;  %v20829_v42 = vadd.f32 %v13185_v26, %v13145_v36  ;;  %v13147_v59 = vadd.f32 %v13146_v49, %v20760_v15  ;;  %13470 = vmatprep.mubr.bf16.mxu0 %v21128_v37  ;;  %v18176_v15 = vld [vmem:[%s18652_s12 + $0x2c8c] ss:$16 sps:$4 sm:$0xff]   ;;  %v18219_v28 = vld [vmem:[%s18652_s12 + $0x2fa8] ss:$16 sps:$4 sm:$0xff]  }
 0x680   : > { %13511 = vmatprep.mubr.bf16.mxu1 %v21129_v6  ;;  %v13148_v38 = vpop.f32.mrf.mxu0  ;;  %v18224_v19 = vld [vmem:[%s18652_s12 + $0x2d8c] ss:$16 sps:$4 sm:$0xff]   ;;  %v18222_v26 = vld [vmem:[%s18652_s12 + $0x2d88] ss:$16 sps:$4 sm:$0xff]  }
 0x681   : > { %v13189_v29 = vpop.f32.mrf.mxu1  ;;  %v20834_v32 = vadd.f32 %v13187_v20, %v13147_v59  ;;  %13441 = vmatpush1.bf16.msra.mxu0 %v18162_v22  ;;  %v18230_v35 = vld [vmem:[%s18652_s12 + $0x2d6c] ss:$16 sps:$4 sm:$0xff]   ;;  %v18228_v22 = vld [vmem:[%s18652_s12 + $0x2d68] ss:$16 sps:$4 sm:$0xff]  }
 0x682   : > { %13482 = vmatpush1.bf16.msra.mxu1 %v18165_v57  ;;  %v13149_v55 = vpop.f32.mrf.mxu0  ;;  %13442 = vmatprep.subr.bf16.mxu0 %v18170_v23  ;;  %v18233_v36 = vld [vmem:[%s18652_s12 + $0x2f6c] ss:$16 sps:$4 sm:$0xff]   ;;  %v18231_v57 = vld [vmem:[%s18652_s12 + $0x2f68] ss:$16 sps:$4 sm:$0xff]  }
 0x683   : > { %v13190_v56 = vpop.f32.mrf.mxu1  ;;  %13483 = vmatprep.subr.bf16.mxu1 %v18173_v11  ;;  %v18236_v49 = vld [vmem:[%s18652_s12 + $0x2d4c] ss:$16 sps:$4 sm:$0xff]   ;;  %v18234_v23 = vld [vmem:[%s18652_s12 + $0x2d48] ss:$16 sps:$4 sm:$0xff]  }
 0x684   : > { %v18239_v20 = vld [vmem:[%s18652_s12 + $0x2f4c] ss:$16 sps:$4 sm:$0xff]   ;;  %v18237_v11 = vld [vmem:[%s18652_s12 + $0x2f48] ss:$16 sps:$4 sm:$0xff]  }
 0x685   : > { %13443 = vmatpush1.bf16.msra.mxu0 %v18168_v41  ;;  %v18242_v59 = vld [vmem:[%s18652_s12 + $0x2d2c] ss:$16 sps:$4 sm:$0xff]   ;;  %v18240_v6 = vld [vmem:[%s18652_s12 + $0x2d28] ss:$16 sps:$4 sm:$0xff]  }
 0x686   : > { %13484 = vmatpush1.bf16.msra.mxu1 %v18171_v18  ;;  %13444 = vmatprep.subr.bf16.mxu0 %v18176_v15  ;;  %v18245_v37 = vld [vmem:[%s18652_s12 + $0x2f2c] ss:$16 sps:$4 sm:$0xff]   ;;  %v18243_v38 = vld [vmem:[%s18652_s12 + $0x2f28] ss:$16 sps:$4 sm:$0xff]  }
 0x687   : > { %13485 = vmatprep.subr.bf16.mxu1 %v18179_v0  ;;  %v18248_v29 = vld [vmem:[%s18652_s12 + $0x2d0c] ss:$16 sps:$4 sm:$0xff]   ;;  %v18246_v18 = vld [vmem:[%s18652_s12 + $0x2d08] ss:$16 sps:$4 sm:$0xff]  }
 0x688   : > { %v18251_v41 = vld [vmem:[%s18652_s12 + $0x2f0c] ss:$16 sps:$4 sm:$0xff]   ;;  %v18249_v55 = vld [vmem:[%s18652_s12 + $0x2f08] ss:$16 sps:$4 sm:$0xff]  }
 0x689   : > { %13445 = vmatpush1.bf16.msra.mxu0 %v18174_v63  ;;  %v18254_v56 = vld [vmem:[%s18652_s12 + $0x30ec] ss:$16 sps:$4 sm:$0xff]   ;;  %v18252_v0 = vld [vmem:[%s18652_s12 + $0x30e8] ss:$16 sps:$4 sm:$0xff]  }
 0x68a   : > { %13486 = vmatpush1.bf16.msra.mxu1 %v18177_v51  ;;  %13446 = vmatprep.subr.bf16.mxu0 %v18182_v61  ;;  %v18257_v15 = vld [vmem:[%s18652_s12 + $0x32ec] ss:$16 sps:$4 sm:$0xff]   ;;  %v18255_v63 = vld [vmem:[%s18652_s12 + $0x32e8] ss:$16 sps:$4 sm:$0xff]  }
 0x68b   : > { %13487 = vmatprep.subr.bf16.mxu1 %v18185_v7  ;;  %v18260_v51 = vld [vmem:[%s18652_s12 + $0x30cc] ss:$16 sps:$4 sm:$0xff]  }
 0x68c   : > { %v18263_v61 = vld [vmem:[%s18652_s12 + $0x32cc] ss:$16 sps:$4 sm:$0xff]  }
 0x68d   : > { %13447 = vmatpush1.bf16.msra.mxu0 %v18180_v4 }
 0x68e   : > { %13488 = vmatpush1.bf16.msra.mxu1 %v18183_v62  ;;  %13448 = vmatprep.subr.bf16.mxu0 %v18188_v60  ;;  %v21130_v62 = vld [vmem:[#allocation14_spill] sm:$0xff] }
 0x68f   : > { %13489 = vmatprep.subr.bf16.mxu1 %v18191_v47  ;;  %v18258_v47 = vld [vmem:[%s18652_s12 + $0x30c8] ss:$16 sps:$4 sm:$0xff]  }
 0x691   : > { %13449 = vmatpush1.bf16.msra.mxu0 %v18186_v3  ;;  %v18261_v3 = vld [vmem:[%s18652_s12 + $0x32c8] ss:$16 sps:$4 sm:$0xff]  }
 0x692   : > { %13490 = vmatpush1.bf16.msra.mxu1 %v18189_v9  ;;  %13450 = vmatprep.subr.bf16.mxu0 %v18194_v48 }
 0x693   : > { %13491 = vmatprep.subr.bf16.mxu1 %v18197_v58  ;;  %v18266_v58 = vld [vmem:[%s18652_s12 + $0x30ac] ss:$16 sps:$4 sm:$0xff]  }
 0x695   : > { %13451 = vmatpush1.bf16.msra.mxu0 %v18192_v13  ;;  %v18269_v13 = vld [vmem:[%s18652_s12 + $0x32ac] ss:$16 sps:$4 sm:$0xff]  }
 0x696   : > { %13492 = vmatpush1.bf16.msra.mxu1 %v18195_v10  ;;  %13452 = vmatprep.subr.bf16.mxu0 %v18200_v52  ;;  %v21131_v52 = vld [vmem:[#allocation15_spill] sm:$0xff] }
 0x697   : > { %13493 = vmatprep.subr.bf16.mxu1 %v18203_v16 }
 0x699   : > { %13453 = vmatpush1.bf16.msra.mxu0 %v18198_v5 }
 0x69a   : > { %13494 = vmatpush1.bf16.msra.mxu1 %v18201_v43  ;;  %13454 = vmatprep.subr.bf16.mxu0 %v18206_v31  ;;  %v18264_v31 = vld [vmem:[%s18652_s12 + $0x30a8] ss:$16 sps:$4 sm:$0xff]  }
 0x69b   : > { %13495 = vmatprep.subr.bf16.mxu1 %v18209_v30  ;;  %v18267_v30 = vld [vmem:[%s18652_s12 + $0x32a8] ss:$16 sps:$4 sm:$0xff]  }
 0x69d   : > { %13455 = vmatpush2.bf16.msra.mxu0 %v18204_v17 }
 0x69e   : > { %13496 = vmatpush2.bf16.msra.mxu1 %v18207_v14  ;;  %13456 = vmatprep.subr.bf16.mxu0 %v18212_v53  ;;  %v18275_v53 = vld [vmem:[%s18652_s12 + $0x328c] ss:$16 sps:$4 sm:$0xff]  }
 0x69f   : > { %13497 = vmatprep.subr.bf16.mxu1 %v18215_v2  ;;  %v18270_v2 = vld [vmem:[%s18652_s12 + $0x3088] ss:$16 sps:$4 sm:$0xff]  }
 0x6a1   : > { %13457 = vmatpush2.bf16.msra.mxu0 %v18210_v40  ;;  %v18273_v40 = vld [vmem:[%s18652_s12 + $0x3288] ss:$16 sps:$4 sm:$0xff]  }
 0x6a2   : > { %13498 = vmatpush2.bf16.msra.mxu1 %v18213_v12  ;;  %13458 = vmatprep.subr.bf16.mxu0 %v18218_v8  ;;  %v18278_v12 = vld [vmem:[%s18652_s12 + $0x306c] ss:$16 sps:$4 sm:$0xff]  }
 0x6a3   : > { %13499 = vmatprep.subr.bf16.mxu1 %v18221_v33  ;;  %v18281_v8 = vld [vmem:[%s18652_s12 + $0x326c] ss:$16 sps:$4 sm:$0xff]   ;;  %v18276_v33 = vld [vmem:[%s18652_s12 + $0x3068] ss:$16 sps:$4 sm:$0xff]  }
 0x6a5   : > { %13459 = vmatpush2.bf16.msra.mxu0 %v18216_v27  ;;  %v18279_v27 = vld [vmem:[%s18652_s12 + $0x3268] ss:$16 sps:$4 sm:$0xff]  }
 0x6a6   : > { %13500 = vmatpush2.bf16.msra.mxu1 %v18219_v28  ;;  %13460 = vmatprep.subr.bf16.mxu0 %v18224_v19  ;;  %v18284_v28 = vld [vmem:[%s18652_s12 + $0x304c] ss:$16 sps:$4 sm:$0xff]  }
 0x6a7   : > { %13501 = vmatprep.subr.bf16.mxu1 %v18227_v34  ;;  %v18287_v19 = vld [vmem:[%s18652_s12 + $0x324c] ss:$16 sps:$4 sm:$0xff]   ;;  %v18282_v34 = vld [vmem:[%s18652_s12 + $0x3048] ss:$16 sps:$4 sm:$0xff]  }
 0x6a9   : > { %13461 = vmatpush2.bf16.msra.mxu0 %v18222_v26  ;;  %v18285_v26 = vld [vmem:[%s18652_s12 + $0x3248] ss:$16 sps:$4 sm:$0xff]  }
 0x6aa   : > { %13502 = vmatpush2.bf16.msra.mxu1 %v18225_v54  ;;  %13462 = vmatprep.subr.bf16.mxu0 %v18230_v35  ;;  %v18290_v54 = vld [vmem:[%s18652_s12 + $0x302c] ss:$16 sps:$4 sm:$0xff]  }
 0x6ab   : > { %13503 = vmatprep.subr.bf16.mxu1 %v18233_v36  ;;  %v18293_v35 = vld [vmem:[%s18652_s12 + $0x322c] ss:$16 sps:$4 sm:$0xff]   ;;  %v18288_v36 = vld [vmem:[%s18652_s12 + $0x3028] ss:$16 sps:$4 sm:$0xff]  }
 0x6ad   : > { %13463 = vmatpush2.bf16.msra.mxu0 %v18228_v22  ;;  %v18291_v22 = vld [vmem:[%s18652_s12 + $0x3228] ss:$16 sps:$4 sm:$0xff]  }
 0x6ae   : > { %13504 = vmatpush2.bf16.msra.mxu1 %v18231_v57  ;;  %13464 = vmatprep.subr.bf16.mxu0 %v18236_v49  ;;  %v18296_v57 = vld [vmem:[%s18652_s12 + $0x300c] ss:$16 sps:$4 sm:$0xff]  }
 0x6af   : > { %13505 = vmatprep.subr.bf16.mxu1 %v18239_v20  ;;  %v18299_v49 = vld [vmem:[%s18652_s12 + $0x320c] ss:$16 sps:$4 sm:$0xff]   ;;  %v18294_v20 = vld [vmem:[%s18652_s12 + $0x3008] ss:$16 sps:$4 sm:$0xff]  }
 0x6b1   : > { %13465 = vmatpush2.bf16.msra.mxu0 %v18234_v23  ;;  %v18297_v23 = vld [vmem:[%s18652_s12 + $0x3208] ss:$16 sps:$4 sm:$0xff]  }
 0x6b2   : > { %13506 = vmatpush2.bf16.msra.mxu1 %v18237_v11  ;;  %13466 = vmatprep.subr.bf16.mxu0 %v18242_v59  ;;  %v18302_v11 = vld [vmem:[%s18652_s12 + $0x31ec] ss:$16 sps:$4 sm:$0xff]  }
 0x6b3   : > { %13507 = vmatprep.subr.bf16.mxu1 %v18245_v37  ;;  %v18305_v59 = vld [vmem:[%s18652_s12 + $0x33ec] ss:$16 sps:$4 sm:$0xff]   ;;  %v18300_v37 = vld [vmem:[%s18652_s12 + $0x31e8] ss:$16 sps:$4 sm:$0xff]  }
 0x6b5   : > { %13467 = vmatpush2.bf16.msra.mxu0 %v18240_v6  ;;  %v18303_v6 = vld [vmem:[%s18652_s12 + $0x33e8] ss:$16 sps:$4 sm:$0xff]  }
 0x6b6   : > { %13508 = vmatpush2.bf16.msra.mxu1 %v18243_v38  ;;  %13468 = vmatprep.subr.bf16.mxu0 %v18248_v29  ;;  %v18308_v38 = vld [vmem:[%s18652_s12 + $0x31cc] ss:$16 sps:$4 sm:$0xff]  }
 0x6b7   : > { %13509 = vmatprep.subr.bf16.mxu1 %v18251_v41  ;;  %v18311_v29 = vld [vmem:[%s18652_s12 + $0x33cc] ss:$16 sps:$4 sm:$0xff]   ;;  %v18306_v41 = vld [vmem:[%s18652_s12 + $0x31c8] ss:$16 sps:$4 sm:$0xff]  }
 0x6b9   : > { %13469 = vmatpush2.bf16.msra.mxu0 %v18246_v18  ;;  %v18309_v18 = vld [vmem:[%s18652_s12 + $0x33c8] ss:$16 sps:$4 sm:$0xff]  }
 0x6ba   : > { %13510 = vmatpush2.bf16.msra.mxu1 %v18249_v55  ;;  %13520 = vmatprep.subr.bf16.mxu0 %v18254_v56  ;;  %v18314_v55 = vld [vmem:[%s18652_s12 + $0x31ac] ss:$16 sps:$4 sm:$0xff]  }
 0x6bb   : > { %13561 = vmatprep.subr.bf16.mxu1 %v18257_v15  ;;  %v18317_v56 = vld [vmem:[%s18652_s12 + $0x33ac] ss:$16 sps:$4 sm:$0xff]   ;;  %v18312_v15 = vld [vmem:[%s18652_s12 + $0x31a8] ss:$16 sps:$4 sm:$0xff]  }
 0x6bc   : > { %v13226_v7 = vpop.f32.mrf.mxu0  ;;  %13471 = vmatmul.mubr.bf16.vlgmr.msra.gmra.mxu0 %v21130_v62  ;;  %v18329_v62 = vld [vmem:[%s18652_s12 + $0x336c] ss:$16 sps:$4 sm:$0xff]  }
 0x6bd   : > { %v13267_v4 = vpop.f32.mrf.mxu1  ;;  %13512 = vmatmul.mubr.bf16.vlgmr.msra.gmra.mxu1 %v19821_v46  ;;  %v13227_v60 = vadd.f32 %v13226_v7, %v20829_v42  ;;  %13521 = vmatpush1.bf16.msra.mxu0 %v18252_v0  ;;  %v21132_v42 = vld [vmem:[#allocation16_spill] sm:$0xff] }
 0x6be   : > { %13562 = vmatpush1.bf16.msra.mxu1 %v18255_v63  ;;  %v13228_v9 = vpop.f32.mrf.mxu0  ;;  %13522 = vmatprep.subr.bf16.mxu0 %v18260_v51  ;;  %v18315_v0 = vld [vmem:[%s18652_s12 + $0x33a8] ss:$16 sps:$4 sm:$0xff]   ;;  %v18320_v63 = vld [vmem:[%s18652_s12 + $0x318c] ss:$16 sps:$4 sm:$0xff]  }
 0x6bf   : > { %v13269_v48 = vpop.f32.mrf.mxu1  ;;  %13563 = vmatprep.subr.bf16.mxu1 %v18263_v61  ;;  %v20903_v10 = vadd.f32 %v13267_v4, %v13227_v60  ;;  %v13229_v46 = vadd.f32 %v13228_v9, %v20834_v32  ;;  %13552 = vmatprep.mubr.bf16.mxu0 %v21131_v52  ;;  %v18272_v32 = vld [vmem:[%s18652_s12 + $0x308c] ss:$16 sps:$4 sm:$0xff]   ;;  %v18318_v61 = vld [vmem:[%s18652_s12 + $0x3188] ss:$16 sps:$4 sm:$0xff]  }
 0x6c0   : > { %13593 = vmatprep.mubr.bf16.mxu1 %v21132_v42  ;;  %v13230_v16 = vpop.f32.mrf.mxu0  ;;  %v18323_v51 = vld [vmem:[%s18652_s12 + $0x338c] ss:$16 sps:$4 sm:$0xff]   ;;  %v18321_v7 = vld [vmem:[%s18652_s12 + $0x3388] ss:$16 sps:$4 sm:$0xff]  }
 0x6c1   : > { %v13271_v5 = vpop.f32.mrf.mxu1  ;;  %v20908_v43 = vadd.f32 %v13269_v48, %v13229_v46  ;;  %13523 = vmatpush1.bf16.msra.mxu0 %v18258_v47  ;;  %v18326_v4 = vld [vmem:[%s18652_s12 + $0x316c] ss:$16 sps:$4 sm:$0xff]   ;;  %v18324_v60 = vld [vmem:[%s18652_s12 + $0x3168] ss:$16 sps:$4 sm:$0xff]  }
 0x6c2   : > { %13564 = vmatpush1.bf16.msra.mxu1 %v18261_v3  ;;  %v13231_v17 = vpop.f32.mrf.mxu0  ;;  %13524 = vmatprep.subr.bf16.mxu0 %v18266_v58  ;;  %v18327_v47 = vld [vmem:[%s18652_s12 + $0x3368] ss:$16 sps:$4 sm:$0xff]   ;;  %v18332_v3 = vld [vmem:[%s18652_s12 + $0x314c] ss:$16 sps:$4 sm:$0xff]  }
 0x6c3   : > { %v13272_v14 = vpop.f32.mrf.mxu1  ;;  %13565 = vmatprep.subr.bf16.mxu1 %v18269_v13  ;;  %v18335_v9 = vld [vmem:[%s18652_s12 + $0x334c] ss:$16 sps:$4 sm:$0xff]   ;;  %v18330_v48 = vld [vmem:[%s18652_s12 + $0x3148] ss:$16 sps:$4 sm:$0xff]  }
 0x6c4   : > { %v18333_v58 = vld [vmem:[%s18652_s12 + $0x3348] ss:$16 sps:$4 sm:$0xff]   ;;  %v18338_v13 = vld [vmem:[%s18652_s12 + $0x312c] ss:$16 sps:$4 sm:$0xff]  }
 0x6c5   : > { %13525 = vmatpush1.bf16.msra.mxu0 %v18264_v31  ;;  %v18341_v46 = vld [vmem:[%s18652_s12 + $0x332c] ss:$16 sps:$4 sm:$0xff]   ;;  %v18336_v52 = vld [vmem:[%s18652_s12 + $0x3128] ss:$16 sps:$4 sm:$0xff]  }
 0x6c6   : > { %13566 = vmatpush1.bf16.msra.mxu1 %v18267_v30  ;;  %13526 = vmatprep.subr.bf16.mxu0 %v18272_v32  ;;  %v18339_v42 = vld [vmem:[%s18652_s12 + $0x3328] ss:$16 sps:$4 sm:$0xff]   ;;  %v18344_v16 = vld [vmem:[%s18652_s12 + $0x310c] ss:$16 sps:$4 sm:$0xff]  }
 0x6c7   : > { %13567 = vmatprep.subr.bf16.mxu1 %v18275_v53  ;;  %v18347_v5 = vld [vmem:[%s18652_s12 + $0x330c] ss:$16 sps:$4 sm:$0xff]   ;;  %v18342_v31 = vld [vmem:[%s18652_s12 + $0x3108] ss:$16 sps:$4 sm:$0xff]  }
 0x6c8   : > { %v18345_v30 = vld [vmem:[%s18652_s12 + $0x3308] ss:$16 sps:$4 sm:$0xff]   ;;  %v18350_v17 = vld [vmem:[%s18652_s12 + $0x34ec] ss:$16 sps:$4 sm:$0xff]  }
 0x6c9   : > { %13527 = vmatpush1.bf16.msra.mxu0 %v18270_v2  ;;  %v18353_v14 = vld [vmem:[%s18652_s12 + $0x36ec] ss:$16 sps:$4 sm:$0xff]   ;;  %v18348_v32 = vld [vmem:[%s18652_s12 + $0x34e8] ss:$16 sps:$4 sm:$0xff]  }
 0x6ca   : > { %13568 = vmatpush1.bf16.msra.mxu1 %v18273_v40  ;;  %13528 = vmatprep.subr.bf16.mxu0 %v18278_v12  ;;  %v18351_v53 = vld [vmem:[%s18652_s12 + $0x36e8] ss:$16 sps:$4 sm:$0xff]   ;;  %v18356_v2 = vld [vmem:[%s18652_s12 + $0x34cc] ss:$16 sps:$4 sm:$0xff]  }
 0x6cb   : > { %13569 = vmatprep.subr.bf16.mxu1 %v18281_v8  ;;  %v18359_v40 = vld [vmem:[%s18652_s12 + $0x36cc] ss:$16 sps:$4 sm:$0xff]  }
 0x6cd   : > { %13529 = vmatpush1.bf16.msra.mxu0 %v18276_v33  ;;  %v21133_v33 = vld [vmem:[#allocation17_spill] sm:$0xff] }
 0x6ce   : > { %13570 = vmatpush1.bf16.msra.mxu1 %v18279_v27  ;;  %13530 = vmatprep.subr.bf16.mxu0 %v18284_v28  ;;  %v18354_v28 = vld [vmem:[%s18652_s12 + $0x34c8] ss:$16 sps:$4 sm:$0xff]  }
 0x6cf   : > { %13571 = vmatprep.subr.bf16.mxu1 %v18287_v19  ;;  %v18357_v19 = vld [vmem:[%s18652_s12 + $0x36c8] ss:$16 sps:$4 sm:$0xff]  }
 0x6d1   : > { %13531 = vmatpush1.bf16.msra.mxu0 %v18282_v34 }
 0x6d2   : > { %13572 = vmatpush1.bf16.msra.mxu1 %v18285_v26  ;;  %13532 = vmatprep.subr.bf16.mxu0 %v18290_v54  ;;  %v18362_v54 = vld [vmem:[%s18652_s12 + $0x34ac] ss:$16 sps:$4 sm:$0xff]  }
 0x6d3   : > { %13573 = vmatprep.subr.bf16.mxu1 %v18293_v35  ;;  %v18365_v35 = vld [vmem:[%s18652_s12 + $0x36ac] ss:$16 sps:$4 sm:$0xff]  }
 0x6d5   : > { %13533 = vmatpush1.bf16.msra.mxu0 %v18288_v36 }
 0x6d6   : > { %13574 = vmatpush1.bf16.msra.mxu1 %v18291_v22  ;;  %13534 = vmatprep.subr.bf16.mxu0 %v18296_v57 }
 0x6d7   : > { %13575 = vmatprep.subr.bf16.mxu1 %v18299_v49  ;;  %v18360_v49 = vld [vmem:[%s18652_s12 + $0x34a8] ss:$16 sps:$4 sm:$0xff]  }
 0x6d9   : > { %13535 = vmatpush1.bf16.msra.mxu0 %v18294_v20  ;;  %v18363_v20 = vld [vmem:[%s18652_s12 + $0x36a8] ss:$16 sps:$4 sm:$0xff]  }
 0x6da   : > { %13576 = vmatpush1.bf16.msra.mxu1 %v18297_v23  ;;  %13536 = vmatprep.subr.bf16.mxu0 %v18302_v11 }
 0x6db   : > { %13577 = vmatprep.subr.bf16.mxu1 %v18305_v59  ;;  %v18369_v59 = vld [vmem:[%s18652_s12 + $0x3688] ss:$16 sps:$4 sm:$0xff]  }
 0x6dd   : > { %13537 = vmatpush2.bf16.msra.mxu0 %v18300_v37  ;;  %v18374_v37 = vld [vmem:[%s18652_s12 + $0x346c] ss:$16 sps:$4 sm:$0xff]  }
 0x6de   : > { %13578 = vmatpush2.bf16.msra.mxu1 %v18303_v6  ;;  %13538 = vmatprep.subr.bf16.mxu0 %v18308_v38  ;;  %v18377_v6 = vld [vmem:[%s18652_s12 + $0x366c] ss:$16 sps:$4 sm:$0xff]   ;;  %v18372_v38 = vld [vmem:[%s18652_s12 + $0x3468] ss:$16 sps:$4 sm:$0xff]  }
 0x6df   : > { %13579 = vmatprep.subr.bf16.mxu1 %v18311_v29  ;;  %v18375_v29 = vld [vmem:[%s18652_s12 + $0x3668] ss:$16 sps:$4 sm:$0xff]  }
 0x6e1   : > { %13539 = vmatpush2.bf16.msra.mxu0 %v18306_v41  ;;  %v18380_v41 = vld [vmem:[%s18652_s12 + $0x344c] ss:$16 sps:$4 sm:$0xff]  }
 0x6e2   : > { %13580 = vmatpush2.bf16.msra.mxu1 %v18309_v18  ;;  %13540 = vmatprep.subr.bf16.mxu0 %v18314_v55  ;;  %v18383_v18 = vld [vmem:[%s18652_s12 + $0x364c] ss:$16 sps:$4 sm:$0xff]   ;;  %v18378_v55 = vld [vmem:[%s18652_s12 + $0x3448] ss:$16 sps:$4 sm:$0xff]  }
 0x6e3   : > { %13581 = vmatprep.subr.bf16.mxu1 %v18317_v56  ;;  %v18381_v56 = vld [vmem:[%s18652_s12 + $0x3648] ss:$16 sps:$4 sm:$0xff]  }
 0x6e5   : > { %13541 = vmatpush2.bf16.msra.mxu0 %v18312_v15  ;;  %v18386_v15 = vld [vmem:[%s18652_s12 + $0x342c] ss:$16 sps:$4 sm:$0xff]  }
 0x6e6   : > { %13582 = vmatpush2.bf16.msra.mxu1 %v18315_v0  ;;  %13542 = vmatprep.subr.bf16.mxu0 %v18320_v63  ;;  %v18389_v0 = vld [vmem:[%s18652_s12 + $0x362c] ss:$16 sps:$4 sm:$0xff]   ;;  %v18384_v63 = vld [vmem:[%s18652_s12 + $0x3428] ss:$16 sps:$4 sm:$0xff]  }
 0x6e7   : > { %13583 = vmatprep.subr.bf16.mxu1 %v18323_v51  ;;  %v18387_v51 = vld [vmem:[%s18652_s12 + $0x3628] ss:$16 sps:$4 sm:$0xff]  }
 0x6e9   : > { %13543 = vmatpush2.bf16.msra.mxu0 %v18318_v61  ;;  %v18392_v61 = vld [vmem:[%s18652_s12 + $0x340c] ss:$16 sps:$4 sm:$0xff]  }
 0x6ea   : > { %13584 = vmatpush2.bf16.msra.mxu1 %v18321_v7  ;;  %13544 = vmatprep.subr.bf16.mxu0 %v18326_v4  ;;  %v18395_v7 = vld [vmem:[%s18652_s12 + $0x360c] ss:$16 sps:$4 sm:$0xff]   ;;  %v18390_v4 = vld [vmem:[%s18652_s12 + $0x3408] ss:$16 sps:$4 sm:$0xff]  }
 0x6eb   : > { %13585 = vmatprep.subr.bf16.mxu1 %v18329_v62  ;;  %v18393_v62 = vld [vmem:[%s18652_s12 + $0x3608] ss:$16 sps:$4 sm:$0xff]  }
 0x6ed   : > { %13545 = vmatpush2.bf16.msra.mxu0 %v18324_v60  ;;  %v18398_v60 = vld [vmem:[%s18652_s12 + $0x35ec] ss:$16 sps:$4 sm:$0xff]  }
 0x6ee   : > { %13586 = vmatpush2.bf16.msra.mxu1 %v18327_v47  ;;  %13546 = vmatprep.subr.bf16.mxu0 %v18332_v3  ;;  %v18401_v47 = vld [vmem:[%s18652_s12 + $0x37ec] ss:$16 sps:$4 sm:$0xff]   ;;  %v18396_v3 = vld [vmem:[%s18652_s12 + $0x35e8] ss:$16 sps:$4 sm:$0xff]  }
 0x6ef   : > { %13587 = vmatprep.subr.bf16.mxu1 %v18335_v9  ;;  %v18399_v9 = vld [vmem:[%s18652_s12 + $0x37e8] ss:$16 sps:$4 sm:$0xff]  }
 0x6f1   : > { %13547 = vmatpush2.bf16.msra.mxu0 %v18330_v48  ;;  %v18404_v48 = vld [vmem:[%s18652_s12 + $0x35cc] ss:$16 sps:$4 sm:$0xff]  }
 0x6f2   : > { %13588 = vmatpush2.bf16.msra.mxu1 %v18333_v58  ;;  %13548 = vmatprep.subr.bf16.mxu0 %v18338_v13  ;;  %v18407_v58 = vld [vmem:[%s18652_s12 + $0x37cc] ss:$16 sps:$4 sm:$0xff]   ;;  %v18402_v13 = vld [vmem:[%s18652_s12 + $0x35c8] ss:$16 sps:$4 sm:$0xff]  }
 0x6f3   : > { %13589 = vmatprep.subr.bf16.mxu1 %v18341_v46  ;;  %v18405_v46 = vld [vmem:[%s18652_s12 + $0x37c8] ss:$16 sps:$4 sm:$0xff]  }
 0x6f5   : > { %13549 = vmatpush2.bf16.msra.mxu0 %v18336_v52  ;;  %v18410_v52 = vld [vmem:[%s18652_s12 + $0x35ac] ss:$16 sps:$4 sm:$0xff]  }
 0x6f6   : > { %13590 = vmatpush2.bf16.msra.mxu1 %v18339_v42  ;;  %13550 = vmatprep.subr.bf16.mxu0 %v18344_v16  ;;  %v18413_v42 = vld [vmem:[%s18652_s12 + $0x37ac] ss:$16 sps:$4 sm:$0xff]   ;;  %v18408_v16 = vld [vmem:[%s18652_s12 + $0x35a8] ss:$16 sps:$4 sm:$0xff]  }
 0x6f7   : > { %13591 = vmatprep.subr.bf16.mxu1 %v18347_v5  ;;  %v18411_v5 = vld [vmem:[%s18652_s12 + $0x37a8] ss:$16 sps:$4 sm:$0xff]  }
 0x6f9   : > { %13551 = vmatpush2.bf16.msra.mxu0 %v18342_v31  ;;  %v18416_v31 = vld [vmem:[%s18652_s12 + $0x358c] ss:$16 sps:$4 sm:$0xff]  }
 0x6fa   : > { %13592 = vmatpush2.bf16.msra.mxu1 %v18345_v30  ;;  %13602 = vmatprep.subr.bf16.mxu0 %v18350_v17  ;;  %v18419_v30 = vld [vmem:[%s18652_s12 + $0x378c] ss:$16 sps:$4 sm:$0xff]   ;;  %v18414_v17 = vld [vmem:[%s18652_s12 + $0x3588] ss:$16 sps:$4 sm:$0xff]  }
 0x6fb   : > { %13643 = vmatprep.subr.bf16.mxu1 %v18353_v14  ;;  %v18417_v14 = vld [vmem:[%s18652_s12 + $0x3788] ss:$16 sps:$4 sm:$0xff]  }
 0x6fc   : > { %v13308_v12 = vpop.f32.mrf.mxu0  ;;  %13553 = vmatmul.mubr.bf16.vlgmr.msra.gmra.mxu0 %v21133_v33  ;;  %v18426_v33 = vld [vmem:[%s18652_s12 + $0x3548] ss:$16 sps:$4 sm:$0xff]  }
 0x6fd   : > { %v13349_v8 = vpop.f32.mrf.mxu1  ;;  %13594 = vmatmul.mubr.bf16.vlgmr.msra.gmra.mxu1 %v19918_v21  ;;  %v13309_v27 = vadd.f32 %v13308_v12, %v20903_v10  ;;  %13603 = vmatpush1.bf16.msra.mxu0 %v18348_v32  ;;  %v18422_v32 = vld [vmem:[%s18652_s12 + $0x356c] ss:$16 sps:$4 sm:$0xff]  }
 0x6fe   : > { %13644 = vmatpush1.bf16.msra.mxu1 %v18351_v53  ;;  %v13310_v34 = vpop.f32.mrf.mxu0  ;;  %13604 = vmatprep.subr.bf16.mxu0 %v18356_v2  ;;  %v18425_v53 = vld [vmem:[%s18652_s12 + $0x376c] ss:$16 sps:$4 sm:$0xff]   ;;  %v18420_v2 = vld [vmem:[%s18652_s12 + $0x3568] ss:$16 sps:$4 sm:$0xff]  }
 0x6ff   : > { %v13351_v26 = vpop.f32.mrf.mxu1  ;;  %13645 = vmatprep.subr.bf16.mxu1 %v18359_v40  ;;  %v20977_v36 = vadd.f32 %v13349_v8, %v13309_v27  ;;  %v13311_v21 = vadd.f32 %v13310_v34, %v20908_v43  ;;  %13634 = vmatprep.mubr.bf16.mxu0 %v19924_v44  ;;  %v18368_v44 = vld [vmem:[%s18652_s12 + $0x348c] ss:$16 sps:$4 sm:$0xff]   ;;  %v18366_v43 = vld [vmem:[%s18652_s12 + $0x3488] ss:$16 sps:$4 sm:$0xff]  }
 0x700   : > { %13675 = vmatprep.mubr.bf16.mxu1 %v19926_v50  ;;  %v13312_v10 = vpop.f32.mrf.mxu0  ;;  %v18371_v50 = vld [vmem:[%s18652_s12 + $0x368c] ss:$16 sps:$4 sm:$0xff]   ;;  %v18423_v40 = vld [vmem:[%s18652_s12 + $0x3768] ss:$16 sps:$4 sm:$0xff]  }
 0x701   : > { %v13353_v22 = vpop.f32.mrf.mxu1  ;;  %v20982_v57 = vadd.f32 %v13351_v26, %v13311_v21  ;;  %13605 = vmatpush1.bf16.msra.mxu0 %v18354_v28  ;;  %v18428_v12 = vld [vmem:[%s18652_s12 + $0x354c] ss:$16 sps:$4 sm:$0xff]   ;;  %v18429_v27 = vld [vmem:[%s18652_s12 + $0x3748] ss:$16 sps:$4 sm:$0xff]  }
 0x702   : > { %13646 = vmatpush1.bf16.msra.mxu1 %v18357_v19  ;;  %v13313_v23 = vpop.f32.mrf.mxu0  ;;  %13606 = vmatprep.subr.bf16.mxu0 %v18362_v54  ;;  %v18431_v8 = vld [vmem:[%s18652_s12 + $0x374c] ss:$16 sps:$4 sm:$0xff]   ;;  %v18432_v34 = vld [vmem:[%s18652_s12 + $0x3528] ss:$16 sps:$4 sm:$0xff]  }
 0x703   : > { %v13354_v11 = vpop.f32.mrf.mxu1  ;;  %13647 = vmatprep.subr.bf16.mxu1 %v18365_v35  ;;  %v18434_v28 = vld [vmem:[%s18652_s12 + $0x352c] ss:$16 sps:$4 sm:$0xff]   ;;  %v18435_v26 = vld [vmem:[%s18652_s12 + $0x3728] ss:$16 sps:$4 sm:$0xff]  }
 0x704   : > { %v18437_v19 = vld [vmem:[%s18652_s12 + $0x372c] ss:$16 sps:$4 sm:$0xff]   ;;  %v18438_v21 = vld [vmem:[%s18652_s12 + $0x3508] ss:$16 sps:$4 sm:$0xff]  }
 0x705   : > { %13607 = vmatpush1.bf16.msra.mxu0 %v18360_v49  ;;  %v18440_v54 = vld [vmem:[%s18652_s12 + $0x350c] ss:$16 sps:$4 sm:$0xff]   ;;  %v18441_v10 = vld [vmem:[%s18652_s12 + $0x3708] ss:$16 sps:$4 sm:$0xff]  }
 0x706   : > { %13648 = vmatpush1.bf16.msra.mxu1 %v18363_v20  ;;  %13608 = vmatprep.subr.bf16.mxu0 %v18368_v44  ;;  %v18443_v35 = vld [vmem:[%s18652_s12 + $0x370c] ss:$16 sps:$4 sm:$0xff]  }
 0x707   : > { %13649 = vmatprep.subr.bf16.mxu1 %v18371_v50 }
 0x709   : > { %13609 = vmatpush1.bf16.msra.mxu0 %v18366_v43 }
 0x70a   : > { %13650 = vmatpush1.bf16.msra.mxu1 %v18369_v59  ;;  %13610 = vmatprep.subr.bf16.mxu0 %v18374_v37 }
 0x70b   : > { %13651 = vmatprep.subr.bf16.mxu1 %v18377_v6 }
 0x70d   : > { %13611 = vmatpush1.bf16.msra.mxu0 %v18372_v38 }
 0x70e   : > { %13652 = vmatpush1.bf16.msra.mxu1 %v18375_v29  ;;  %13612 = vmatprep.subr.bf16.mxu0 %v18380_v41 }
 0x70f   : > { %13653 = vmatprep.subr.bf16.mxu1 %v18383_v18 }
 0x711   : > { %13613 = vmatpush1.bf16.msra.mxu0 %v18378_v55 }
 0x712   : > { %13654 = vmatpush1.bf16.msra.mxu1 %v18381_v56  ;;  %13614 = vmatprep.subr.bf16.mxu0 %v18386_v15 }
 0x713   : > { %13655 = vmatprep.subr.bf16.mxu1 %v18389_v0 }
 0x715   : > { %13615 = vmatpush1.bf16.msra.mxu0 %v18384_v63 }
 0x716   : > { %13656 = vmatpush1.bf16.msra.mxu1 %v18387_v51  ;;  %13616 = vmatprep.subr.bf16.mxu0 %v18392_v61 }
 0x717   : > { %13657 = vmatprep.subr.bf16.mxu1 %v18395_v7 }
 0x719   : > { %13617 = vmatpush1.bf16.msra.mxu0 %v18390_v4 }
 0x71a   : > { %13658 = vmatpush1.bf16.msra.mxu1 %v18393_v62  ;;  %13618 = vmatprep.subr.bf16.mxu0 %v18398_v60 }
 0x71b   : > { %13659 = vmatprep.subr.bf16.mxu1 %v18401_v47 }
 0x71d   : > { %13619 = vmatpush2.bf16.msra.mxu0 %v18396_v3 }
 0x71e   : > { %13660 = vmatpush2.bf16.msra.mxu1 %v18399_v9  ;;  %13620 = vmatprep.subr.bf16.mxu0 %v18404_v48 }
 0x71f   : > { %13661 = vmatprep.subr.bf16.mxu1 %v18407_v58 }
 0x721   : > { %13621 = vmatpush2.bf16.msra.mxu0 %v18402_v13 }
 0x722   : > { %13662 = vmatpush2.bf16.msra.mxu1 %v18405_v46  ;;  %13622 = vmatprep.subr.bf16.mxu0 %v18410_v52 }
 0x723   : > { %13663 = vmatprep.subr.bf16.mxu1 %v18413_v42 }
 0x725   : > { %13623 = vmatpush2.bf16.msra.mxu0 %v18408_v16 }
 0x726   : > { %13664 = vmatpush2.bf16.msra.mxu1 %v18411_v5  ;;  %13624 = vmatprep.subr.bf16.mxu0 %v18416_v31 }
 0x727   : > { %13665 = vmatprep.subr.bf16.mxu1 %v18419_v30 }
 0x729   : > { %13625 = vmatpush2.bf16.msra.mxu0 %v18414_v17 }
 0x72a   : > { %13666 = vmatpush2.bf16.msra.mxu1 %v18417_v14  ;;  %13626 = vmatprep.subr.bf16.mxu0 %v18422_v32 }
 0x72b   : > { %13667 = vmatprep.subr.bf16.mxu1 %v18425_v53 }
 0x72d   : > { %13627 = vmatpush2.bf16.msra.mxu0 %v18420_v2 }
 0x72e   : > { %13668 = vmatpush2.bf16.msra.mxu1 %v18423_v40  ;;  %13628 = vmatprep.subr.bf16.mxu0 %v18428_v12  ;;  %v21134_v12 = vld [vmem:[#allocation6_spill] sm:$0xff] }
 0x72f   : > { %13669 = vmatprep.subr.bf16.mxu1 %v18431_v8  ;;  %v13696_v8 = vrot.slane %v13688_v39, %v21134_v12 }
 0x731   : > { %13629 = vmatpush2.bf16.msra.mxu0 %v18426_v33 }
 0x732   : > { %13670 = vmatpush2.bf16.msra.mxu1 %v18429_v27  ;;  %13630 = vmatprep.subr.bf16.mxu0 %v18434_v28  ;;  %v257_v27 = vld [vmem:[%s18670_s30] sm:$0xff] }
 0x733   : > { %13671 = vmatprep.subr.bf16.mxu1 %v18437_v19 }
 0x735   : > { %13631 = vmatpush2.bf16.msra.mxu0 %v18432_v34 }
 0x736   : > { %13672 = vmatpush2.bf16.msra.mxu1 %v18435_v26  ;;  %13632 = vmatprep.subr.bf16.mxu0 %v18440_v54 }
 0x737   : > { %13673 = vmatprep.subr.bf16.mxu1 %v18443_v35 }
 0x739   : > { %13633 = vmatpush2.bf16.msra.mxu0 %v18438_v21 }
 0x73a   : > { %13674 = vmatpush2.bf16.msra.mxu1 %v18441_v10 }
 0x73c   : > { %v13390_v22 = vpop.f32.mrf.mxu0  ;;  %13635 = vmatmul.mubr.bf16.vlgmr.msra.gmra.mxu0 %v20000_v24 }
 0x73d   : > { %v13431_v49 = vpop.f32.mrf.mxu1  ;;  %13676 = vmatmul.mubr.bf16.vlgmr.msra.gmra.mxu1 %v20004_v1  ;;  %v13391_v20 = vadd.f32 %v13390_v22, %v20977_v36 }
 0x73e   : > { %v13392_v23 = vpop.f32.mrf.mxu0 }
 0x73f   : > { %v13433_v11 = vpop.f32.mrf.mxu1  ;;  %v13432_v44 = vadd.f32 %v13431_v49, %v13391_v20  ;;  %v13393_v50 = vadd.f32 %v13392_v23, %v20982_v57 }
 0x740   : > { %v13394_v43 = vpop.f32.mrf.mxu0 }
 0x741   : > { %v13435_v59 = vpop.f32.mrf.mxu1  ;;  %v13434_v37 = vadd.f32 %v13433_v11, %v13393_v50 }
 0x742   : > { %v13395_v6 = vpop.f32.mrf.mxu0 }
 0x743   : > { %v13436_v38 = vpop.f32.mrf.mxu1 }
 0x77c   : > { %v13472_v29 = vpop.f32.mrf.mxu0 }
 0x77d   : > { %v13513_v41 = vpop.f32.mrf.mxu1  ;;  %v13473_v18 = vadd.f32 %v13472_v29, %v13432_v44 }
 0x77e   : > { %v13474_v55 = vpop.f32.mrf.mxu0 }
 0x77f   : > { %v13515_v56 = vpop.f32.mrf.mxu1  ;;  %v13514_v24 = vadd.f32 %v13513_v41, %v13473_v18  ;;  %v13475_v15 = vadd.f32 %v13474_v55, %v13434_v37 }
 0x780   : > { %v13476_v1 = vpop.f32.mrf.mxu0 }
 0x781   : > { %v13517_v0 = vpop.f32.mrf.mxu1  ;;  %v13516_v36 = vadd.f32 %v13515_v56, %v13475_v15 }
 0x782   : > { %v13477_v63 = vpop.f32.mrf.mxu0 }
 0x783   : > { %v13518_v51 = vpop.f32.mrf.mxu1 }
 0x7bc   : > { %v13554_v61 = vpop.f32.mrf.mxu0 }
 0x7bd   : > { %v13595_v7 = vpop.f32.mrf.mxu1  ;;  %v13555_v57 = vadd.f32 %v13554_v61, %v13514_v24 }
 0x7be   : > { %v13556_v4 = vpop.f32.mrf.mxu0 }
 0x7bf   : > { %v13597_v62 = vpop.f32.mrf.mxu1  ;;  %v13596_v60 = vadd.f32 %v13595_v7, %v13555_v57  ;;  %v13557_v58 = vadd.f32 %v13556_v4, %v13516_v36 }
 0x7c0   : > { %v13558_v47 = vpop.f32.mrf.mxu0 }
 0x7c1   : > { %v13599_v3 = vpop.f32.mrf.mxu1  ;;  %v13598_v52 = vadd.f32 %v13597_v62, %v13557_v58 }
 0x7c2   : > { %v13559_v9 = vpop.f32.mrf.mxu0 }
 0x7c3   : > { %v13600_v48 = vpop.f32.mrf.mxu1 }
 0x7fc   : > { %v13636_v13 = vpop.f32.mrf.mxu0 }
 0x7fd   : > { %v13677_v46 = vpop.f32.mrf.mxu1  ;;  %v13637_v42 = vadd.f32 %v13636_v13, %v13596_v60 }
 0x7fe   : > { %v13638_v16 = vpop.f32.mrf.mxu0 }
 0x7ff   : > { %v13679_v5 = vpop.f32.mrf.mxu1  ;;  %v13639_v31 = vadd.f32 %v13638_v16, %v13598_v52  ;;  %v13678_v14 = vadd.f32 %v13677_v46, %v13637_v42 }
 0x800   : > { %v13640_v30 = vpop.f32.mrf.mxu0 }
 0x801   : > { %v13681_v17 = vpop.f32.mrf.mxu1  ;;  %v13680_v32 = vadd.f32 %v13679_v5, %v13639_v31 }
 0x802   : > { %v13641_v53 = vpop.f32.mrf.mxu0 }
 0x803   : > { %v13682_v2 = vpop.f32.mrf.mxu1  ;;  %v13689_v40 = vcombine.low %v13678_v14, %v13680_v32 }
 0x805   : > { %v13703_v33 = vrot.slane %v13689_v40, %v21134_v12 }
 0x807   : > { %v13704_v28 = vcombine.low %v13696_v8, %v13703_v33  ;;  %13711 = sbr.rel (%p15660_p11) target bundleno = 2077 (0x81d), region = 44 }
 0x809   : > { %v13706_v19 = vadd.f32 %v13704_v28, %v257_v27 }
 0x80b   : > { %13707 = vst [vmem:[%s18670_s30] sm:$0xff] %v13706_v19 }
 0x80c   : > { %v13713_v34 = vld [vmem:[%s244_s27] sm:$0xf]  ;;  %v21136_v23 = vld [vmem:[#allocation6_spill] sm:$0xff] }
 0x80d   : > { %v21135_v26 = vld [vmem:[#allocation5_spill] sm:$0xff] }
 0x80e   : > { %v13717_v54 = vsub.s32 0, %v21135_v26  ;;  %v13721_v45 = vsub.s32 1, %v21135_v26  ;;  %v13725_v25 = vsub.s32 2, %v21135_v26  ;;  %v13729_v39 = vsub.s32 3, %v21135_v26 }
 0x810   : > { %v13718_v35 = vrot.slane %v13713_v34, %v13717_v54  ;;  %v13722_v21 = vrot.slane %v13713_v34, %v13721_v45  ;;  %v13726_v10 = vrot.slane %v13713_v34, %v13725_v25  ;;  %v13730_v22 = vrot.slane %v13713_v34, %v13729_v39 }
 0x812   : > { %v13731_v49 = vcombine.low %v13718_v35, %v13722_v21  ;;  %v13732_v20 = vcombine.low %v13726_v10, %v13730_v22  ;;  %v13712_v50 = vld [vmem:[%s18670_s30] sm:$0xff] }
 0x814   : > { %v13739_v11 = vrot.slane %v13731_v49, %v21136_v23  ;;  %v13746_v44 = vrot.slane %v13732_v20, %v21136_v23 }
 0x816   : > { %v13747_v43 = vcombine.low %v13739_v11, %v13746_v44 }
 0x818   : > { %v13749_v59 = vadd.f32 %v13747_v43, %v13712_v50 }
 0x81a   : > { %v13750_v37 = vmax.f32 %v13749_v59, 0.0 }
 0x81c   : > { %13751 = vst [vmem:[%s18670_s30] sm:$0xff] %v13750_v37 }
 0x81d PF: > { %s16_s19 = sadd.s32 1, %s18538_s19   ;;  %s21137_s12 = smov %s18514_s13 }
 0x81e   : > { %p13_p12 = scmp.ge.s32.totalorder %s16_s19, 44   ;;  %s21138_s13 = smov %s18518_s14 }
 0x81f   : > { %s21139_s14 = smov %s18633_s5  ;;  %s21140_s15 = smov %s18530_s17 }
 0x820   : > { %s21141_s16 = smov %s18534_s18  ;;  %s21142_s17 = smov %s21145_s21 }
 0x821   : > { %s21143_s18 = smov %s21149_s22  ;;  %15 = sbr.rel (!%p13_p12) target bundleno = 5 (0x5), region = 86 }
 0x826   :  { %13774 = vsyncpa [#allocation3], 1 }
 0x827   :  { %13776 = vsyncpa [#allocation3 + $0x1], 1 }

</bundles_post_ra>
